<compile_context>
chip_gen: v7x
topology: tpu7x:2x2x1
jax: 0.10.0
libtpu: 0.0.40
codegen_flags: <defaults>
</compile_context>

<pallas_src>
import functools

import jax
import jax.numpy as jnp
from jax.experimental import pallas as pl
from jax.experimental.pallas import tpu as pltpu

EPS = 1e-5
LANES = 128
_FLAT_MARGIN = 8           # extra zero rows at both ends of the flattened image
MXU_DTYPE = jnp.float32    # set to jnp.bfloat16 for ~2x MXU throughput
                           # (then compare at ~1e-2 instead of 1e-4)


def _resblock_kernel(xf_ref, m1_ref, m2_ref,
                     w1_ref, g1_ref, b1_ref,
                     w2_ref, g2_ref, b2_ref,
                     out_ref, h1_ref, *, H, W):
    """One batch element, flattened-spatial layout.

    xf_ref : (Nf, Cp) f32  zero-padded, flattened (H+4, W+2, Cp) image
    m*_ref : (R, 1)   f32  validity masks (1 = real pixel, 0 = pad/junk col)
    w*_ref : (3, 3, Cp, Cp) conv taps, (kh, kw, Cin, Cout)
    g*/b*  : (1, Cp)  f32  InstanceNorm affine params (zero-padded channels)
    out_ref: (R2, Cp) f32  conv2->IN2->+residual band (junk cols included)
    h1_ref : (R1, Cp) VMEM scratch for the conv1->IN1->ReLU band
    """
    Wp = W + 2
    R1 = m1_ref.shape[0]             # (H + 2) * Wp + 2
    R2 = out_ref.shape[0]            # H * Wp
    inv_n = 1.0 / float(H * W)

    def conv3x3(load_lhs, w_ref, rows):
        # 9 shifted 2-D matmuls; every LHS is a contiguous row-slice of a
        # 2-D (rows, Cp) matrix — no window slices, no reshapes.
        acc = None
        for dy in range(3):
            for dx in range(3):
                lhs = load_lhs(dy * Wp + dx, rows).astype(MXU_DTYPE)
                tap = w_ref[dy, dx].astype(MXU_DTYPE)     # (Cp, Cp)
                part = jnp.dot(lhs, tap, preferred_element_type=jnp.float32)
                acc = part if acc is None else acc + part
        return acc

    def in_stats(z, mask, g_ref, b_ref):
        # Per-channel stats over the valid (masked) positions, all in f32.
        zm = z * mask
        mean = jnp.sum(zm, axis=0, keepdims=True) * inv_n
        cen = z - mean
        d = cen * mask
        var = jnp.sum(d * d, axis=0, keepdims=True) * inv_n   # biased variance
        scale = g_ref[...] * jax.lax.rsqrt(var + EPS)          # EUP rsqrt
        return cen, scale, b_ref[...]

    # ---- conv1 over the extended band (covers conv2's zero-padding ring) ----
    base1 = _FLAT_MARGIN - 2          # flat-row offset of tap (dy=0, dx=0)
    z1 = conv3x3(lambda off, r: xf_ref[base1 + off: base1 + off + r, :],
                 w1_ref, R1)

    m1 = m1_ref[...]
    cen1, s1, sh1 = in_stats(z1, m1, g1_ref, b1_ref)
    # IN1 -> ReLU -> mask (zeroes the padding ring and junk columns), staged
    # in VMEM scratch so conv2 reads it via static ref-slices.
    h1_ref[...] = (jnp.maximum(cen1 * s1 + sh1, 0.0) * m1).astype(h1_ref.dtype)

    # ---- conv2 straight from the masked band (tap offsets dy*Wp + dx) ----
    z2 = conv3x3(lambda off, r: h1_ref[off: off + r, :], w2_ref, R2)
    cen2, s2, sh2 = in_stats(z2, m2_ref[...], g2_ref, b2_ref)

    # ---- residual add; exact f32 input slab; lane-dense store ----
    res_start = _FLAT_MARGIN + 2 * Wp
    out_ref[...] = (xf_ref[res_start: res_start + R2, :]
                    + (cen2 * s2 + sh2)).astype(out_ref.dtype)


def residual_block_pallas(x_nchw, w1, g1, b1, w2, g2, b2):
    """x_nchw: (N, C, H, W); w1/w2: PyTorch OIHW (C, C, 3, 3); g*/b*: (C,)."""
    N, C, H, W = x_nchw.shape
    assert w1.shape[0] == C and w2.shape[0] == C, "dim_in must equal dim_out"
    Wp = W + 2
    Cp = ((C + LANES - 1) // LANES) * LANES        # lane-dense channel count
    R1 = (H + 2) * Wp + 2                          # conv1 output band rows
    R2 = H * Wp                                    # conv2/output band rows
    Nf = (H + 4) * Wp + 2 * _FLAT_MARGIN           # flattened input rows
    f32 = jnp.float32

    # NCHW -> NHWC, pad channels to Cp, pad spatial (H by 2, W by 1), flatten
    # HW, and add a small flat margin so every conv tap is an in-bounds slice.
    x_nhwc = jnp.transpose(x_nchw.astype(f32), (0, 2, 3, 1))
    x_p = jnp.pad(x_nhwc, ((0, 0), (2, 2), (1, 1), (0, Cp - C)))
    x_f = jnp.pad(x_p.reshape(N, (H + 4) * Wp, Cp),
                  ((0, 0), (_FLAT_MARGIN, _FLAT_MARGIN), (0, 0)))

    def prep_w(w):                                  # OIHW -> (kh, kw, Cin, Cout)
        wk = jnp.transpose(w.astype(f32), (2, 3, 1, 0))
        return jnp.pad(wk, ((0, 0), (0, 0), (0, Cp - C), (0, Cp - C)))

    def prep_v(v):                                  # (C,) -> (1, Cp), zero pad
        return jnp.pad(v.astype(f32), (0, Cp - C)).reshape(1, Cp)

    # Validity masks over the flattened bands (1 = real pixel, else 0).
    g_idx = jnp.arange(R1) + (Wp - 1)
    py, px = g_idx // Wp, g_idx % Wp
    m1 = ((py >= 2) & (py < H + 2) & (px >= 1) & (px < W + 1))
    m1 = m1.astype(f32).reshape(R1, 1)
    px2 = jnp.arange(R2) % Wp
    m2 = ((px2 >= 1) & (px2 < W + 1)).astype(f32).reshape(R2, 1)

    kernel = functools.partial(_resblock_kernel, H=H, W=W)

    out_flat = pl.pallas_call(
        kernel,
        out_shape=jax.ShapeDtypeStruct((N, R2, Cp), f32),
        grid_spec=pltpu.PrefetchScalarGridSpec(
            num_scalar_prefetch=0,
            grid=(N,),
            in_specs=[
                pl.BlockSpec((None, Nf, Cp), lambda n: (n, 0, 0)),   # x (flat)
                pl.BlockSpec((R1, 1), lambda n: (0, 0)),             # mask1
                pl.BlockSpec((R2, 1), lambda n: (0, 0)),             # mask2
                pl.BlockSpec((3, 3, Cp, Cp), lambda n: (0, 0, 0, 0)),  # w1
                pl.BlockSpec((1, Cp), lambda n: (0, 0)),             # gamma1
                pl.BlockSpec((1, Cp), lambda n: (0, 0)),             # beta1
                pl.BlockSpec((3, 3, Cp, Cp), lambda n: (0, 0, 0, 0)),  # w2
                pl.BlockSpec((1, Cp), lambda n: (0, 0)),             # gamma2
                pl.BlockSpec((1, Cp), lambda n: (0, 0)),             # beta2
            ],
            out_specs=pl.BlockSpec((None, R2, Cp), lambda n: (n, 0, 0)),
            scratch_shapes=[pltpu.VMEM((R1, Cp), MXU_DTYPE)],        # h1 band
        ),
        compiler_params=pltpu.CompilerParams(
            dimension_semantics=("parallel",)),
    )(x_f, m1, m2, prep_w(w1), prep_v(g1), prep_v(b1),
      prep_w(w2), prep_v(g2), prep_v(b2))

    # (N, H*Wp, Cp) -> (N, H, Wp, Cp), strip junk columns + channel pad -> NCHW
    out = out_flat.reshape(N, H, Wp, Cp)[:, :, 1:W + 1, :C]
    return jnp.transpose(out, (0, 3, 1, 2)).astype(x_nchw.dtype)


def residual_block_reference(x, w1, g1, b1, w2, g2, b2):
    """Pure-JAX reference matching the PyTorch forward (training-mode IN)."""
    def conv(y, w):
        return jax.lax.conv_general_dilated(
            y, w, window_strides=(1, 1), padding=((1, 1), (1, 1)),
            dimension_numbers=("NCHW", "OIHW", "NCHW"))

    def inorm(y, g, b):
        mean = y.mean(axis=(2, 3), keepdims=True)
        var = ((y - mean) ** 2).mean(axis=(2, 3), keepdims=True)
        yh = (y - mean) / jnp.sqrt(var + EPS)
        return yh * g[None, :, None, None] + b[None, :, None, None]

    h = jax.nn.relu(inorm(conv(x, w1), g1, b1))
    h = inorm(conv(h, w2), g2, b2)
    return x + h


if __name__ == "__main__":
    key = jax.random.PRNGKey(0)
    N, C, H, W = 2, 4, 16, 16        # dim_in = dim_out = 4
    k = jax.random.split(key, 7)

    x = jax.random.normal(k[0], (N, C, H, W), dtype=jnp.float32)

    # Deterministic synthetic parameters (PyTorch shapes: OIHW conv weights,
    # per-channel InstanceNorm affine weight/bias).
    w1 = 0.2 * jax.random.normal(k[1], (C, C, 3, 3), dtype=jnp.float32)
    w2 = 0.2 * jax.random.normal(k[2], (C, C, 3, 3), dtype=jnp.float32)
    g1 = 1.0 + 0.1 * jax.random.normal(k[3], (C,), dtype=jnp.float32)
    b1 = 0.1 * jax.random.normal(k[4], (C,), dtype=jnp.float32)
    g2 = 1.0 + 0.1 * jax.random.normal(k[5], (C,), dtype=jnp.float32)
    b2 = 0.1 * jax.random.normal(k[6], (C,), dtype=jnp.float32)

    out = jax.block_until_ready(
        residual_block_pallas(x, w1, g1, b1, w2, g2, b2))
    ref = jax.block_until_ready(
        residual_block_reference(x, w1, g1, b1, w2, g2, b2))

    assert out.shape == (N, C, H, W)
    assert jnp.allclose(out, ref, atol=1e-4, rtol=1e-4), (
        float(jnp.max(jnp.abs(out - ref))))

    print("KERNEL_OK")
</pallas_src>

<mosaic_0001>
module attributes {stable_mosaic.version = 11 : i64} {
  func.func @_resblock_kernel(%arg0: i32, %arg1: memref<1x376x128xf32, #tpu.memory_space<vmem>>, %arg2: memref<326x1xf32, #tpu.memory_space<vmem>>, %arg3: memref<288x1xf32, #tpu.memory_space<vmem>>, %arg4: memref<3x3x128x128xf32, #tpu.memory_space<vmem>>, %arg5: memref<1x128xf32, #tpu.memory_space<vmem>>, %arg6: memref<1x128xf32, #tpu.memory_space<vmem>>, %arg7: memref<3x3x128x128xf32, #tpu.memory_space<vmem>>, %arg8: memref<1x128xf32, #tpu.memory_space<vmem>>, %arg9: memref<1x128xf32, #tpu.memory_space<vmem>>, %arg10: memref<1x288x128xf32, #tpu.memory_space<vmem>>, %arg11: memref<326x128xf32, #tpu.memory_space<vmem>>) attributes {dimension_semantics = [#tpu.dimension_semantics<parallel>], iteration_bounds = array<i64: 2>, scalar_prefetch = 0 : i64, scratch_operands = 1 : i64, tpu.core_type = #tpu.core_type<tc>, window_params = [{transform_indices = @transform_0, window_bounds = array<i64: 1, 376, 128>}, {pipeline_mode = #tpu.pipeline_mode<synchronous>, transform_indices = @transform_1, window_bounds = array<i64: 326, 1>}, {pipeline_mode = #tpu.pipeline_mode<synchronous>, transform_indices = @transform_2, window_bounds = array<i64: 288, 1>}, {pipeline_mode = #tpu.pipeline_mode<synchronous>, transform_indices = @transform_3, window_bounds = array<i64: 3, 3, 128, 128>}, {pipeline_mode = #tpu.pipeline_mode<synchronous>, transform_indices = @transform_4, window_bounds = array<i64: 1, 128>}, {pipeline_mode = #tpu.pipeline_mode<synchronous>, transform_indices = @transform_5, window_bounds = array<i64: 1, 128>}, {pipeline_mode = #tpu.pipeline_mode<synchronous>, transform_indices = @transform_6, window_bounds = array<i64: 3, 3, 128, 128>}, {pipeline_mode = #tpu.pipeline_mode<synchronous>, transform_indices = @transform_7, window_bounds = array<i64: 1, 128>}, {pipeline_mode = #tpu.pipeline_mode<synchronous>, transform_indices = @transform_8, window_bounds = array<i64: 1, 128>}, {transform_indices = @transform_9, window_bounds = array<i64: 1, 288, 128>}]} {
    %c0 = arith.constant 0 : index
    %c6 = arith.constant 6 : index
    %c0_0 = arith.constant 0 : index
    %0 = vector.load %arg1[%c0, %c6, %c0_0] : memref<1x376x128xf32, #tpu.memory_space<vmem>>, vector<1x326x128xf32>
    %1 = vector.shape_cast %0 : vector<1x326x128xf32> to vector<326x128xf32>
    %c0_1 = arith.constant 0 : index
    %c0_2 = arith.constant 0 : index
    %c0_3 = arith.constant 0 : index
    %c0_4 = arith.constant 0 : index
    %2 = vector.load %arg4[%c0_1, %c0_2, %c0_3, %c0_4] : memref<3x3x128x128xf32, #tpu.memory_space<vmem>>, vector<1x1x128x128xf32>
    %3 = vector.shape_cast %2 : vector<1x1x128x128xf32> to vector<128x128xf32>
    %cst = arith.constant dense<0.000000e+00> : vector<326x128xf32>
    %4 = tpu.matmul %1, %3, %cst {dimension_numbers = #tpu.dot_dimension_numbers<[1], [0], [0], [1], [0, 0, 1, 1], [], []>} : vector<326x128xf32>, vector<128x128xf32>, vector<326x128xf32> -> vector<326x128xf32>
    %c0_5 = arith.constant 0 : index
    %c7 = arith.constant 7 : index
    %c0_6 = arith.constant 0 : index
    %5 = vector.load %arg1[%c0_5, %c7, %c0_6] : memref<1x376x128xf32, #tpu.memory_space<vmem>>, vector<1x326x128xf32>
    %6 = vector.shape_cast %5 : vector<1x326x128xf32> to vector<326x128xf32>
    %c0_7 = arith.constant 0 : index
    %c1 = arith.constant 1 : index
    %c0_8 = arith.constant 0 : index
    %c0_9 = arith.constant 0 : index
    %7 = vector.load %arg4[%c0_7, %c1, %c0_8, %c0_9] : memref<3x3x128x128xf32, #tpu.memory_space<vmem>>, vector<1x1x128x128xf32>
    %8 = vector.shape_cast %7 : vector<1x1x128x128xf32> to vector<128x128xf32>
    %cst_10 = arith.constant dense<0.000000e+00> : vector<326x128xf32>
    %9 = tpu.matmul %6, %8, %cst_10 {dimension_numbers = #tpu.dot_dimension_numbers<[1], [0], [0], [1], [0, 0, 1, 1], [], []>} : vector<326x128xf32>, vector<128x128xf32>, vector<326x128xf32> -> vector<326x128xf32>
    %10 = arith.addf %4, %9 : vector<326x128xf32>
    %c0_11 = arith.constant 0 : index
    %c8 = arith.constant 8 : index
    %c0_12 = arith.constant 0 : index
    %11 = vector.load %arg1[%c0_11, %c8, %c0_12] : memref<1x376x128xf32, #tpu.memory_space<vmem>>, vector<1x326x128xf32>
    %12 = vector.shape_cast %11 : vector<1x326x128xf32> to vector<326x128xf32>
    %c0_13 = arith.constant 0 : index
    %c2 = arith.constant 2 : index
    %c0_14 = arith.constant 0 : index
    %c0_15 = arith.constant 0 : index
    %13 = vector.load %arg4[%c0_13, %c2, %c0_14, %c0_15] : memref<3x3x128x128xf32, #tpu.memory_space<vmem>>, vector<1x1x128x128xf32>
    %14 = vector.shape_cast %13 : vector<1x1x128x128xf32> to vector<128x128xf32>
    %cst_16 = arith.constant dense<0.000000e+00> : vector<326x128xf32>
    %15 = tpu.matmul %12, %14, %cst_16 {dimension_numbers = #tpu.dot_dimension_numbers<[1], [0], [0], [1], [0, 0, 1, 1], [], []>} : vector<326x128xf32>, vector<128x128xf32>, vector<326x128xf32> -> vector<326x128xf32>
    %16 = arith.addf %10, %15 : vector<326x128xf32>
    %c0_17 = arith.constant 0 : index
    %c24 = arith.constant 24 : index
    %c0_18 = arith.constant 0 : index
    %17 = vector.load %arg1[%c0_17, %c24, %c0_18] : memref<1x376x128xf32, #tpu.memory_space<vmem>>, vector<1x326x128xf32>
    %18 = vector.shape_cast %17 : vector<1x326x128xf32> to vector<326x128xf32>
    %c1_19 = arith.constant 1 : index
    %c0_20 = arith.constant 0 : index
    %c0_21 = arith.constant 0 : index
    %c0_22 = arith.constant 0 : index
    %19 = vector.load %arg4[%c1_19, %c0_20, %c0_21, %c0_22] : memref<3x3x128x128xf32, #tpu.memory_space<vmem>>, vector<1x1x128x128xf32>
    %20 = vector.shape_cast %19 : vector<1x1x128x128xf32> to vector<128x128xf32>
    %cst_23 = arith.constant dense<0.000000e+00> : vector<326x128xf32>
    %21 = tpu.matmul %18, %20, %cst_23 {dimension_numbers = #tpu.dot_dimension_numbers<[1], [0], [0], [1], [0, 0, 1, 1], [], []>} : vector<326x128xf32>, vector<128x128xf32>, vector<326x128xf32> -> vector<326x128xf32>
    %22 = arith.addf %16, %21 : vector<326x128xf32>
    %c0_24 = arith.constant 0 : index
    %c25 = arith.constant 25 : index
    %c0_25 = arith.constant 0 : index
    %23 = vector.load %arg1[%c0_24, %c25, %c0_25] : memref<1x376x128xf32, #tpu.memory_space<vmem>>, vector<1x326x128xf32>
    %24 = vector.shape_cast %23 : vector<1x326x128xf32> to vector<326x128xf32>
    %c1_26 = arith.constant 1 : index
    %c1_27 = arith.constant 1 : index
    %c0_28 = arith.constant 0 : index
    %c0_29 = arith.constant 0 : index
    %25 = vector.load %arg4[%c1_26, %c1_27, %c0_28, %c0_29] : memref<3x3x128x128xf32, #tpu.memory_space<vmem>>, vector<1x1x128x128xf32>
    %26 = vector.shape_cast %25 : vector<1x1x128x128xf32> to vector<128x128xf32>
    %cst_30 = arith.constant dense<0.000000e+00> : vector<326x128xf32>
    %27 = tpu.matmul %24, %26, %cst_30 {dimension_numbers = #tpu.dot_dimension_numbers<[1], [0], [0], [1], [0, 0, 1, 1], [], []>} : vector<326x128xf32>, vector<128x128xf32>, vector<326x128xf32> -> vector<326x128xf32>
    %28 = arith.addf %22, %27 : vector<326x128xf32>
    %c0_31 = arith.constant 0 : index
    %c26 = arith.constant 26 : index
    %c0_32 = arith.constant 0 : index
    %29 = vector.load %arg1[%c0_31, %c26, %c0_32] : memref<1x376x128xf32, #tpu.memory_space<vmem>>, vector<1x326x128xf32>
    %30 = vector.shape_cast %29 : vector<1x326x128xf32> to vector<326x128xf32>
    %c1_33 = arith.constant 1 : index
    %c2_34 = arith.constant 2 : index
    %c0_35 = arith.constant 0 : index
    %c0_36 = arith.constant 0 : index
    %31 = vector.load %arg4[%c1_33, %c2_34, %c0_35, %c0_36] : memref<3x3x128x128xf32, #tpu.memory_space<vmem>>, vector<1x1x128x128xf32>
    %32 = vector.shape_cast %31 : vector<1x1x128x128xf32> to vector<128x128xf32>
    %cst_37 = arith.constant dense<0.000000e+00> : vector<326x128xf32>
    %33 = tpu.matmul %30, %32, %cst_37 {dimension_numbers = #tpu.dot_dimension_numbers<[1], [0], [0], [1], [0, 0, 1, 1], [], []>} : vector<326x128xf32>, vector<128x128xf32>, vector<326x128xf32> -> vector<326x128xf32>
    %34 = arith.addf %28, %33 : vector<326x128xf32>
    %c0_38 = arith.constant 0 : index
    %c42 = arith.constant 42 : index
    %c0_39 = arith.constant 0 : index
    %35 = vector.load %arg1[%c0_38, %c42, %c0_39] : memref<1x376x128xf32, #tpu.memory_space<vmem>>, vector<1x326x128xf32>
    %36 = vector.shape_cast %35 : vector<1x326x128xf32> to vector<326x128xf32>
    %c2_40 = arith.constant 2 : index
    %c0_41 = arith.constant 0 : index
    %c0_42 = arith.constant 0 : index
    %c0_43 = arith.constant 0 : index
    %37 = vector.load %arg4[%c2_40, %c0_41, %c0_42, %c0_43] : memref<3x3x128x128xf32, #tpu.memory_space<vmem>>, vector<1x1x128x128xf32>
    %38 = vector.shape_cast %37 : vector<1x1x128x128xf32> to vector<128x128xf32>
    %cst_44 = arith.constant dense<0.000000e+00> : vector<326x128xf32>
    %39 = tpu.matmul %36, %38, %cst_44 {dimension_numbers = #tpu.dot_dimension_numbers<[1], [0], [0], [1], [0, 0, 1, 1], [], []>} : vector<326x128xf32>, vector<128x128xf32>, vector<326x128xf32> -> vector<326x128xf32>
    %40 = arith.addf %34, %39 : vector<326x128xf32>
    %c0_45 = arith.constant 0 : index
    %c43 = arith.constant 43 : index
    %c0_46 = arith.constant 0 : index
    %41 = vector.load %arg1[%c0_45, %c43, %c0_46] : memref<1x376x128xf32, #tpu.memory_space<vmem>>, vector<1x326x128xf32>
    %42 = vector.shape_cast %41 : vector<1x326x128xf32> to vector<326x128xf32>
    %c2_47 = arith.constant 2 : index
    %c1_48 = arith.constant 1 : index
    %c0_49 = arith.constant 0 : index
    %c0_50 = arith.constant 0 : index
    %43 = vector.load %arg4[%c2_47, %c1_48, %c0_49, %c0_50] : memref<3x3x128x128xf32, #tpu.memory_space<vmem>>, vector<1x1x128x128xf32>
    %44 = vector.shape_cast %43 : vector<1x1x128x128xf32> to vector<128x128xf32>
    %cst_51 = arith.constant dense<0.000000e+00> : vector<326x128xf32>
    %45 = tpu.matmul %42, %44, %cst_51 {dimension_numbers = #tpu.dot_dimension_numbers<[1], [0], [0], [1], [0, 0, 1, 1], [], []>} : vector<326x128xf32>, vector<128x128xf32>, vector<326x128xf32> -> vector<326x128xf32>
    %46 = arith.addf %40, %45 : vector<326x128xf32>
    %c0_52 = arith.constant 0 : index
    %c44 = arith.constant 44 : index
    %c0_53 = arith.constant 0 : index
    %47 = vector.load %arg1[%c0_52, %c44, %c0_53] : memref<1x376x128xf32, #tpu.memory_space<vmem>>, vector<1x326x128xf32>
    %48 = vector.shape_cast %47 : vector<1x326x128xf32> to vector<326x128xf32>
    %c2_54 = arith.constant 2 : index
    %c2_55 = arith.constant 2 : index
    %c0_56 = arith.constant 0 : index
    %c0_57 = arith.constant 0 : index
    %49 = vector.load %arg4[%c2_54, %c2_55, %c0_56, %c0_57] : memref<3x3x128x128xf32, #tpu.memory_space<vmem>>, vector<1x1x128x128xf32>
    %50 = vector.shape_cast %49 : vector<1x1x128x128xf32> to vector<128x128xf32>
    %cst_58 = arith.constant dense<0.000000e+00> : vector<326x128xf32>
    %51 = tpu.matmul %48, %50, %cst_58 {dimension_numbers = #tpu.dot_dimension_numbers<[1], [0], [0], [1], [0, 0, 1, 1], [], []>} : vector<326x128xf32>, vector<128x128xf32>, vector<326x128xf32> -> vector<326x128xf32>
    %52 = arith.addf %46, %51 : vector<326x128xf32>
    %c0_59 = arith.constant 0 : index
    %c0_60 = arith.constant 0 : index
    %53 = vector.load %arg2[%c0_59, %c0_60] : memref<326x1xf32, #tpu.memory_space<vmem>>, vector<326x1xf32>
    %54 = vector.broadcast %53 : vector<326x1xf32> to vector<326x128xf32>
    %55 = arith.mulf %52, %54 : vector<326x128xf32>
    %cst_61 = arith.constant dense<0.000000e+00> : vector<128xf32>
    %56 = vector.multi_reduction <add>, %55, %cst_61 [0] : vector<326x128xf32> to vector<128xf32>
    %57 = vector.shape_cast %56 : vector<128xf32> to vector<1x128xf32>
    %cst_62 = arith.constant 3.906250e-03 : f32
    %58 = vector.broadcast %cst_62 : f32 to vector<1x128xf32>
    %59 = arith.mulf %57, %58 : vector<1x128xf32>
    %60 = vector.broadcast %59 : vector<1x128xf32> to vector<326x128xf32>
    %61 = arith.subf %52, %60 : vector<326x128xf32>
    %62 = vector.broadcast %53 : vector<326x1xf32> to vector<326x128xf32>
    %63 = arith.mulf %61, %62 : vector<326x128xf32>
    %64 = arith.mulf %63, %63 : vector<326x128xf32>
    %cst_63 = arith.constant dense<0.000000e+00> : vector<128xf32>
    %65 = vector.multi_reduction <add>, %64, %cst_63 [0] : vector<326x128xf32> to vector<128xf32>
    %66 = vector.shape_cast %65 : vector<128xf32> to vector<1x128xf32>
    %cst_64 = arith.constant 3.906250e-03 : f32
    %67 = vector.broadcast %cst_64 : f32 to vector<1x128xf32>
    %68 = arith.mulf %66, %67 : vector<1x128xf32>
    %c0_65 = arith.constant 0 : index
    %c0_66 = arith.constant 0 : index
    %69 = vector.load %arg5[%c0_65, %c0_66] : memref<1x128xf32, #tpu.memory_space<vmem>>, vector<1x128xf32>
    %cst_67 = arith.constant 9.99999974E-6 : f32
    %70 = vector.broadcast %cst_67 : f32 to vector<1x128xf32>
    %71 = arith.addf %68, %70 : vector<1x128xf32>
    %72 = math.rsqrt %71 : vector<1x128xf32>
    %73 = arith.mulf %69, %72 : vector<1x128xf32>
    %c0_68 = arith.constant 0 : index
    %c0_69 = arith.constant 0 : index
    %74 = vector.load %arg6[%c0_68, %c0_69] : memref<1x128xf32, #tpu.memory_space<vmem>>, vector<1x128xf32>
    %75 = vector.broadcast %73 : vector<1x128xf32> to vector<326x128xf32>
    %76 = arith.mulf %61, %75 : vector<326x128xf32>
    %77 = vector.broadcast %74 : vector<1x128xf32> to vector<326x128xf32>
    %78 = arith.addf %76, %77 : vector<326x128xf32>
    %cst_70 = arith.constant 0.000000e+00 : f32
    %79 = vector.broadcast %cst_70 : f32 to vector<326x128xf32>
    %80 = arith.maximumf %78, %79 : vector<326x128xf32>
    %81 = vector.broadcast %53 : vector<326x1xf32> to vector<326x128xf32>
    %82 = arith.mulf %80, %81 : vector<326x128xf32>
    %c0_71 = arith.constant 0 : index
    %c0_72 = arith.constant 0 : index
    %83 = vector.load %arg11[%c0_71, %c0_72] : memref<326x128xf32, #tpu.memory_space<vmem>>, vector<326x128xf32>
    tpu.vector_store %arg11[%c0_71, %c0_72], %82 {strides = array<i32>} : memref<326x128xf32, #tpu.memory_space<vmem>>, vector<326x128xf32>,
    %c0_73 = arith.constant 0 : index
    %c0_74 = arith.constant 0 : index
    %84 = vector.load %arg11[%c0_73, %c0_74] : memref<326x128xf32, #tpu.memory_space<vmem>>, vector<288x128xf32>
    %c0_75 = arith.constant 0 : index
    %c0_76 = arith.constant 0 : index
    %c0_77 = arith.constant 0 : index
    %c0_78 = arith.constant 0 : index
    %85 = vector.load %arg7[%c0_75, %c0_76, %c0_77, %c0_78] : memref<3x3x128x128xf32, #tpu.memory_space<vmem>>, vector<1x1x128x128xf32>
    %86 = vector.shape_cast %85 : vector<1x1x128x128xf32> to vector<128x128xf32>
    %cst_79 = arith.constant dense<0.000000e+00> : vector<288x128xf32>
    %87 = tpu.matmul %84, %86, %cst_79 {dimension_numbers = #tpu.dot_dimension_numbers<[1], [0], [0], [1], [0, 0, 1, 1], [], []>} : vector<288x128xf32>, vector<128x128xf32>, vector<288x128xf32> -> vector<288x128xf32>
    %c1_80 = arith.constant 1 : index
    %c0_81 = arith.constant 0 : index
    %88 = vector.load %arg11[%c1_80, %c0_81] : memref<326x128xf32, #tpu.memory_space<vmem>>, vector<288x128xf32>
    %c0_82 = arith.constant 0 : index
    %c1_83 = arith.constant 1 : index
    %c0_84 = arith.constant 0 : index
    %c0_85 = arith.constant 0 : index
    %89 = vector.load %arg7[%c0_82, %c1_83, %c0_84, %c0_85] : memref<3x3x128x128xf32, #tpu.memory_space<vmem>>, vector<1x1x128x128xf32>
    %90 = vector.shape_cast %89 : vector<1x1x128x128xf32> to vector<128x128xf32>
    %cst_86 = arith.constant dense<0.000000e+00> : vector<288x128xf32>
    %91 = tpu.matmul %88, %90, %cst_86 {dimension_numbers = #tpu.dot_dimension_numbers<[1], [0], [0], [1], [0, 0, 1, 1], [], []>} : vector<288x128xf32>, vector<128x128xf32>, vector<288x128xf32> -> vector<288x128xf32>
    %92 = arith.addf %87, %91 : vector<288x128xf32>
    %c2_87 = arith.constant 2 : index
    %c0_88 = arith.constant 0 : index
    %93 = vector.load %arg11[%c2_87, %c0_88] : memref<326x128xf32, #tpu.memory_space<vmem>>, vector<288x128xf32>
    %c0_89 = arith.constant 0 : index
    %c2_90 = arith.constant 2 : index
    %c0_91 = arith.constant 0 : index
    %c0_92 = arith.constant 0 : index
    %94 = vector.load %arg7[%c0_89, %c2_90, %c0_91, %c0_92] : memref<3x3x128x128xf32, #tpu.memory_space<vmem>>, vector<1x1x128x128xf32>
    %95 = vector.shape_cast %94 : vector<1x1x128x128xf32> to vector<128x128xf32>
    %cst_93 = arith.constant dense<0.000000e+00> : vector<288x128xf32>
    %96 = tpu.matmul %93, %95, %cst_93 {dimension_numbers = #tpu.dot_dimension_numbers<[1], [0], [0], [1], [0, 0, 1, 1], [], []>} : vector<288x128xf32>, vector<128x128xf32>, vector<288x128xf32> -> vector<288x128xf32>
    %97 = arith.addf %92, %96 : vector<288x128xf32>
    %c18 = arith.constant 18 : index
    %c0_94 = arith.constant 0 : index
    %98 = vector.load %arg11[%c18, %c0_94] : memref<326x128xf32, #tpu.memory_space<vmem>>, vector<288x128xf32>
    %c1_95 = arith.constant 1 : index
    %c0_96 = arith.constant 0 : index
    %c0_97 = arith.constant 0 : index
    %c0_98 = arith.constant 0 : index
    %99 = vector.load %arg7[%c1_95, %c0_96, %c0_97, %c0_98] : memref<3x3x128x128xf32, #tpu.memory_space<vmem>>, vector<1x1x128x128xf32>
    %100 = vector.shape_cast %99 : vector<1x1x128x128xf32> to vector<128x128xf32>
    %cst_99 = arith.constant dense<0.000000e+00> : vector<288x128xf32>
    %101 = tpu.matmul %98, %100, %cst_99 {dimension_numbers = #tpu.dot_dimension_numbers<[1], [0], [0], [1], [0, 0, 1, 1], [], []>} : vector<288x128xf32>, vector<128x128xf32>, vector<288x128xf32> -> vector<288x128xf32>
    %102 = arith.addf %97, %101 : vector<288x128xf32>
    %c19 = arith.constant 19 : index
    %c0_100 = arith.constant 0 : index
    %103 = vector.load %arg11[%c19, %c0_100] : memref<326x128xf32, #tpu.memory_space<vmem>>, vector<288x128xf32>
    %c1_101 = arith.constant 1 : index
    %c1_102 = arith.constant 1 : index
    %c0_103 = arith.constant 0 : index
    %c0_104 = arith.constant 0 : index
    %104 = vector.load %arg7[%c1_101, %c1_102, %c0_103, %c0_104] : memref<3x3x128x128xf32, #tpu.memory_space<vmem>>, vector<1x1x128x128xf32>
    %105 = vector.shape_cast %104 : vector<1x1x128x128xf32> to vector<128x128xf32>
    %cst_105 = arith.constant dense<0.000000e+00> : vector<288x128xf32>
    %106 = tpu.matmul %103, %105, %cst_105 {dimension_numbers = #tpu.dot_dimension_numbers<[1], [0], [0], [1], [0, 0, 1, 1], [], []>} : vector<288x128xf32>, vector<128x128xf32>, vector<288x128xf32> -> vector<288x128xf32>
    %107 = arith.addf %102, %106 : vector<288x128xf32>
    %c20 = arith.constant 20 : index
    %c0_106 = arith.constant 0 : index
    %108 = vector.load %arg11[%c20, %c0_106] : memref<326x128xf32, #tpu.memory_space<vmem>>, vector<288x128xf32>
    %c1_107 = arith.constant 1 : index
    %c2_108 = arith.constant 2 : index
    %c0_109 = arith.constant 0 : index
    %c0_110 = arith.constant 0 : index
    %109 = vector.load %arg7[%c1_107, %c2_108, %c0_109, %c0_110] : memref<3x3x128x128xf32, #tpu.memory_space<vmem>>, vector<1x1x128x128xf32>
    %110 = vector.shape_cast %109 : vector<1x1x128x128xf32> to vector<128x128xf32>
    %cst_111 = arith.constant dense<0.000000e+00> : vector<288x128xf32>
    %111 = tpu.matmul %108, %110, %cst_111 {dimension_numbers = #tpu.dot_dimension_numbers<[1], [0], [0], [1], [0, 0, 1, 1], [], []>} : vector<288x128xf32>, vector<128x128xf32>, vector<288x128xf32> -> vector<288x128xf32>
    %112 = arith.addf %107, %111 : vector<288x128xf32>
    %c36 = arith.constant 36 : index
    %c0_112 = arith.constant 0 : index
    %113 = vector.load %arg11[%c36, %c0_112] : memref<326x128xf32, #tpu.memory_space<vmem>>, vector<288x128xf32>
    %c2_113 = arith.constant 2 : index
    %c0_114 = arith.constant 0 : index
    %c0_115 = arith.constant 0 : index
    %c0_116 = arith.constant 0 : index
    %114 = vector.load %arg7[%c2_113, %c0_114, %c0_115, %c0_116] : memref<3x3x128x128xf32, #tpu.memory_space<vmem>>, vector<1x1x128x128xf32>
    %115 = vector.shape_cast %114 : vector<1x1x128x128xf32> to vector<128x128xf32>
    %cst_117 = arith.constant dense<0.000000e+00> : vector<288x128xf32>
    %116 = tpu.matmul %113, %115, %cst_117 {dimension_numbers = #tpu.dot_dimension_numbers<[1], [0], [0], [1], [0, 0, 1, 1], [], []>} : vector<288x128xf32>, vector<128x128xf32>, vector<288x128xf32> -> vector<288x128xf32>
    %117 = arith.addf %112, %116 : vector<288x128xf32>
    %c37 = arith.constant 37 : index
    %c0_118 = arith.constant 0 : index
    %118 = vector.load %arg11[%c37, %c0_118] : memref<326x128xf32, #tpu.memory_space<vmem>>, vector<288x128xf32>
    %c2_119 = arith.constant 2 : index
    %c1_120 = arith.constant 1 : index
    %c0_121 = arith.constant 0 : index
    %c0_122 = arith.constant 0 : index
    %119 = vector.load %arg7[%c2_119, %c1_120, %c0_121, %c0_122] : memref<3x3x128x128xf32, #tpu.memory_space<vmem>>, vector<1x1x128x128xf32>
    %120 = vector.shape_cast %119 : vector<1x1x128x128xf32> to vector<128x128xf32>
    %cst_123 = arith.constant dense<0.000000e+00> : vector<288x128xf32>
    %121 = tpu.matmul %118, %120, %cst_123 {dimension_numbers = #tpu.dot_dimension_numbers<[1], [0], [0], [1], [0, 0, 1, 1], [], []>} : vector<288x128xf32>, vector<128x128xf32>, vector<288x128xf32> -> vector<288x128xf32>
    %122 = arith.addf %117, %121 : vector<288x128xf32>
    %c38 = arith.constant 38 : index
    %c0_124 = arith.constant 0 : index
    %123 = vector.load %arg11[%c38, %c0_124] : memref<326x128xf32, #tpu.memory_space<vmem>>, vector<288x128xf32>
    %c2_125 = arith.constant 2 : index
    %c2_126 = arith.constant 2 : index
    %c0_127 = arith.constant 0 : index
    %c0_128 = arith.constant 0 : index
    %124 = vector.load %arg7[%c2_125, %c2_126, %c0_127, %c0_128] : memref<3x3x128x128xf32, #tpu.memory_space<vmem>>, vector<1x1x128x128xf32>
    %125 = vector.shape_cast %124 : vector<1x1x128x128xf32> to vector<128x128xf32>
    %cst_129 = arith.constant dense<0.000000e+00> : vector<288x128xf32>
    %126 = tpu.matmul %123, %125, %cst_129 {dimension_numbers = #tpu.dot_dimension_numbers<[1], [0], [0], [1], [0, 0, 1, 1], [], []>} : vector<288x128xf32>, vector<128x128xf32>, vector<288x128xf32> -> vector<288x128xf32>
    %127 = arith.addf %122, %126 : vector<288x128xf32>
    %c0_130 = arith.constant 0 : index
    %c0_131 = arith.constant 0 : index
    %128 = vector.load %arg3[%c0_130, %c0_131] : memref<288x1xf32, #tpu.memory_space<vmem>>, vector<288x1xf32>
    %129 = vector.broadcast %128 : vector<288x1xf32> to vector<288x128xf32>
    %130 = arith.mulf %127, %129 : vector<288x128xf32>
    %cst_132 = arith.constant dense<0.000000e+00> : vector<128xf32>
    %131 = vector.multi_reduction <add>, %130, %cst_132 [0] : vector<288x128xf32> to vector<128xf32>
    %132 = vector.shape_cast %131 : vector<128xf32> to vector<1x128xf32>
    %cst_133 = arith.constant 3.906250e-03 : f32
    %133 = vector.broadcast %cst_133 : f32 to vector<1x128xf32>
    %134 = arith.mulf %132, %133 : vector<1x128xf32>
    %135 = vector.broadcast %134 : vector<1x128xf32> to vector<288x128xf32>
    %136 = arith.subf %127, %135 : vector<288x128xf32>
    %137 = vector.broadcast %128 : vector<288x1xf32> to vector<288x128xf32>
    %138 = arith.mulf %136, %137 : vector<288x128xf32>
    %139 = arith.mulf %138, %138 : vector<288x128xf32>
    %cst_134 = arith.constant dense<0.000000e+00> : vector<128xf32>
    %140 = vector.multi_reduction <add>, %139, %cst_134 [0] : vector<288x128xf32> to vector<128xf32>
    %141 = vector.shape_cast %140 : vector<128xf32> to vector<1x128xf32>
    %cst_135 = arith.constant 3.906250e-03 : f32
    %142 = vector.broadcast %cst_135 : f32 to vector<1x128xf32>
    %143 = arith.mulf %141, %142 : vector<1x128xf32>
    %c0_136 = arith.constant 0 : index
    %c0_137 = arith.constant 0 : index
    %144 = vector.load %arg8[%c0_136, %c0_137] : memref<1x128xf32, #tpu.memory_space<vmem>>, vector<1x128xf32>
    %cst_138 = arith.constant 9.99999974E-6 : f32
    %145 = vector.broadcast %cst_138 : f32 to vector<1x128xf32>
    %146 = arith.addf %143, %145 : vector<1x128xf32>
    %147 = math.rsqrt %146 : vector<1x128xf32>
    %148 = arith.mulf %144, %147 : vector<1x128xf32>
    %c0_139 = arith.constant 0 : index
    %c0_140 = arith.constant 0 : index
    %149 = vector.load %arg9[%c0_139, %c0_140] : memref<1x128xf32, #tpu.memory_space<vmem>>, vector<1x128xf32>
    %c0_141 = arith.constant 0 : index
    %c44_142 = arith.constant 44 : index
    %c0_143 = arith.constant 0 : index
    %150 = vector.load %arg1[%c0_141, %c44_142, %c0_143] : memref<1x376x128xf32, #tpu.memory_space<vmem>>, vector<1x288x128xf32>
    %151 = vector.shape_cast %150 : vector<1x288x128xf32> to vector<288x128xf32>
    %152 = vector.broadcast %148 : vector<1x128xf32> to vector<288x128xf32>
    %153 = arith.mulf %136, %152 : vector<288x128xf32>
    %154 = vector.broadcast %149 : vector<1x128xf32> to vector<288x128xf32>
    %155 = arith.addf %153, %154 : vector<288x128xf32>
    %156 = arith.addf %151, %155 : vector<288x128xf32>
    %c0_144 = arith.constant 0 : index
    %c0_145 = arith.constant 0 : index
    %c0_146 = arith.constant 0 : index
    %157 = vector.load %arg10[%c0_144, %c0_145, %c0_146] : memref<1x288x128xf32, #tpu.memory_space<vmem>>, vector<1x288x128xf32>
    %158 = vector.shape_cast %157 : vector<1x288x128xf32> to vector<288x128xf32>
    %159 = vector.shape_cast %156 : vector<288x128xf32> to vector<1x288x128xf32>
    tpu.vector_store %arg10[%c0_144, %c0_145, %c0_146], %159 {strides = array<i32>} : memref<1x288x128xf32, #tpu.memory_space<vmem>>, vector<1x288x128xf32>,
    return
  }
  func.func @transform_0(%arg0: i32) -> (i32, i32, i32) {
    %c0_i32 = arith.constant 0 : i32
    %c0_i32_0 = arith.constant 0 : i32
    %c0_i32_1 = arith.constant 0 : i32
    return %arg0, %c0_i32, %c0_i32_0 : i32, i32, i32
  }
  func.func @transform_1(%arg0: i32) -> (i32, i32) {
    %c0_i32 = arith.constant 0 : i32
    %c0_i32_0 = arith.constant 0 : i32
    %c0_i32_1 = arith.constant 0 : i32
    return %c0_i32, %c0_i32_0 : i32, i32
  }
  func.func @transform_2(%arg0: i32) -> (i32, i32) {
    %c0_i32 = arith.constant 0 : i32
    %c0_i32_0 = arith.constant 0 : i32
    %c0_i32_1 = arith.constant 0 : i32
    return %c0_i32, %c0_i32_0 : i32, i32
  }
  func.func @transform_3(%arg0: i32) -> (i32, i32, i32, i32) {
    %c0_i32 = arith.constant 0 : i32
    %c0_i32_0 = arith.constant 0 : i32
    %c0_i32_1 = arith.constant 0 : i32
    %c0_i32_2 = arith.constant 0 : i32
    %c0_i32_3 = arith.constant 0 : i32
    return %c0_i32, %c0_i32_0, %c0_i32_1, %c0_i32_2 : i32, i32, i32, i32
  }
  func.func @transform_4(%arg0: i32) -> (i32, i32) {
    %c0_i32 = arith.constant 0 : i32
    %c0_i32_0 = arith.constant 0 : i32
    %c0_i32_1 = arith.constant 0 : i32
    return %c0_i32, %c0_i32_0 : i32, i32
  }
  func.func @transform_5(%arg0: i32) -> (i32, i32) {
    %c0_i32 = arith.constant 0 : i32
    %c0_i32_0 = arith.constant 0 : i32
    %c0_i32_1 = arith.constant 0 : i32
    return %c0_i32, %c0_i32_0 : i32, i32
  }
  func.func @transform_6(%arg0: i32) -> (i32, i32, i32, i32) {
    %c0_i32 = arith.constant 0 : i32
    %c0_i32_0 = arith.constant 0 : i32
    %c0_i32_1 = arith.constant 0 : i32
    %c0_i32_2 = arith.constant 0 : i32
    %c0_i32_3 = arith.constant 0 : i32
    return %c0_i32, %c0_i32_0, %c0_i32_1, %c0_i32_2 : i32, i32, i32, i32
  }
  func.func @transform_7(%arg0: i32) -> (i32, i32) {
    %c0_i32 = arith.constant 0 : i32
    %c0_i32_0 = arith.constant 0 : i32
    %c0_i32_1 = arith.constant 0 : i32
    return %c0_i32, %c0_i32_0 : i32, i32
  }
  func.func @transform_8(%arg0: i32) -> (i32, i32) {
    %c0_i32 = arith.constant 0 : i32
    %c0_i32_0 = arith.constant 0 : i32
    %c0_i32_1 = arith.constant 0 : i32
    return %c0_i32, %c0_i32_0 : i32, i32
  }
  func.func @transform_9(%arg0: i32) -> (i32, i32, i32) {
    %c0_i32 = arith.constant 0 : i32
    %c0_i32_0 = arith.constant 0 : i32
    %c0_i32_1 = arith.constant 0 : i32
    return %arg0, %c0_i32, %c0_i32_0 : i32, i32, i32
  }
}

</mosaic_0001>

<bundles_post_ra>
// kernel: tpu_custom_call.1
= control target key start
LH: loop header
LB: loop body
LE: loop exit
PB: predicated region body
PF: predicated region fallthrough
CT: control target
= control target key end

     0   :  { %s16673_s0 = inlined_call_operand.hbm [shape: f32[2,376,128], index: 0, kind: input, shape index: {}]   ;;  %s16674_s1 = inlined_call_operand.vmem [shape: f32[326,1], index: 1, kind: input, shape index: {}]   ;;  %s16675_s2 = inlined_call_operand.vmem [shape: f32[288,1], index: 2, kind: input, shape index: {}]   ;;  %s16676_s3 = inlined_call_operand.hbm [shape: f32[3,3,128,128], index: 3, kind: input, shape index: {}]   ;;  %s16677_s4 = inlined_call_operand.vmem [shape: f32[1,128], index: 4, kind: input, shape index: {}]   ;;  %s16678_s5 = inlined_call_operand.vmem [shape: f32[1,128], index: 5, kind: input, shape index: {}]   ;;  %s16679_s6 = inlined_call_operand.hbm [shape: f32[3,3,128,128], index: 6, kind: input, shape index: {}]   ;;  %s16680_s7 = inlined_call_operand.vmem [shape: f32[1,128], index: 7, kind: input, shape index: {}]   ;;  %s16681_s8 = inlined_call_operand.vmem [shape: f32[1,128], index: 8, kind: input, shape index: {}]   ;;  %s16682_s9 = inlined_call_operand.hbm [shape: f32[2,288,128], index: 9, kind: output, shape index: {}]  }
   0x1   :  { %16796 = sst [smem:[#allocation59_spill]] %s16676_s3 }
   0x2   :  { %16797 = sst [smem:[#allocation60_spill]] %s16679_s6 }
   0x3   :  { %14 = vsyncpa [#allocation4], 0 }
   0x4   :  { %16 = vsyncpa [#allocation4 + $0x1], 0 }
   0x5   :  { %17 = vsyncpa [#allocation7], 0 }
   0x6   :  { %18 = vsyncpa [#allocation5], 0 }
   0x7   :  { %20 = vsyncpa [#allocation5 + $0x1], 0  ;;  %s12920_s30 = smov 0   ;;  %s12922_s10 = smov 0  }
   0x8   :  { %s12924_s11 = smov 0   ;;  %s12926_s12 = smov 0  }
   0x9 LB: > { %s12941_s13 = sadd.s32 4294967295, %s12856_s12   ;;  %s8027_s14 = sadd.s32 4294967294, %s12856_s12   ;;  %s12856_s12 = sphi %s12926_s12, %s17011_s12   ;;  %s12852_s11 = sphi %s12924_s11, %s17010_s11   ;;  %s12848_s10 = sphi %s12922_s10, %s17009_s10   ;;  %s12844_s30 = sphi %s12920_s30, %s17008_s30  }
   0xa   : > { %p46_p0 = scmp.ne.s32.totalorder %s12848_s10, %s12844_s30  ;;  %p16683_p1 = scmp.eq.s32.totalorder %s12941_s13, 0 }
   0xb   : > { %p244_p3 = scmp.eq.s32.totalorder %s8027_s14, 1  ;;  %p8028_p5 = scmp.ge.s32.totalorder %s12856_s12, 1 }
   0xc   : > { %p12950_p4 = por %p16683_p1, %p46_p0  ;;  %p251_p7 = scmp.lt.s32.totalorder %s12856_s12, 3 }
   0xd   : > { %p12955_p6 = por %p244_p3, %p46_p0  ;;  %s12858_s18 = smov [#allocation6]  }
   0xe   : > { %s16798_s15 = scalar_select %p12950_p4, 1, 0 }
   0xf   : > { %s16799_s16 = scalar_select %p12955_p6, 1, 0 }
  0x10   : > { %p12960_p8 = pnand %p8028_p5, %p251_p7  ;;  %s269_s19 = sshll.u32 %s12858_s18, 4  ;;  %s12964_s19 = int_to_ptr.vmem [resolvable:$true] %s269_s19 }
  0x11   : > { %16800 = sst [smem:[#allocation13_spill]] %s16799_s16  ;;  %s12859_s21 = smov [#allocation8]  }
  0x12   : > { %p12631_p9 = pneg %p12960_p8  ;;  %s288_s22 = sshll.u32 %s12859_s21, 4  ;;  %s12975_s22 = int_to_ptr.vmem [resolvable:$true] %s288_s22 }
  0x13   : > { %s16803_s3 = sld [smem:[#allocation59_spill]] }
  0x14   : > { %p12971_p11 = pnand %p12631_p9, %p16683_p1 }
  0x16   : > { %p12702_p13 = pneg %p12971_p11 }
  0x19   : > { %s12700_s25 = scalar_lea.hbm %s16803_s3, 18432 }
  0x1a   : > { %p12701_p12 = scmp.ne.s32.totalorder %s16803_s3, %s12700_s25  ;;  %p12707_p5 = scmp.lt.u32.totalorder %s12700_s25, %s16803_s3 }
  0x1c   : > { %p12703_p0 = pnand %p12702_p13, %p12701_p12 }
  0x1e   : > { %p12704_p3 = pneg %p12703_p0 }
  0x20   : > { %p12709_p7 = pnand %p12707_p5, %p12704_p3 }
  0x22   : > { %12712 = shalt.err (!%p12709_p7)
}
  0x23   : > { %s12713_s14 = scalar_lea.vmem %s12964_s19, 18432  ;;  %p12721_p2 = scmp.lt.s32.totalorder %s12964_s19, %s12964_s19 }
  0x24   : > { %p12714_p9 = scmp.ne.s32.totalorder %s12964_s19, %s12713_s14  ;;  %p12722_p12 = scmp.lt.s32.totalorder %s12713_s14, %s12713_s14 }
  0x26   : > { %p12716_p10 = pnand %p12714_p9, %p12702_p13  ;;  %p12723_p0 = por %p12722_p12, %p12721_p2 }
  0x28   : > { %p12717_p1 = pneg %p12716_p10 }
  0x2a   : > { %p12724_p6 = pnand %p12723_p0, %p12717_p1 }
  0x2c   : > { %12727 = shalt.err (!%p12724_p6)
}
  0x2d   : > { %s16685_s18 = smov 128   ;;  %s16686_s21 = smov 8  }
  0x2e   : > { %12634 = dma.hbm_to_vmem [thread:$0]  (!%p12971_p11), %s16803_s3, 18432, %s12964_s19, [#allocation7], %s16685_s18, %s16685_s18, %s16686_s21  }
  0x2f   : > { %s16804_s6 = sld [smem:[#allocation60_spill]] }
  0x35   : > { %s12728_s27 = scalar_lea.hbm %s16804_s6, 18432 }
  0x36   : > { %p12729_p1 = scmp.ne.s32.totalorder %s16804_s6, %s12728_s27  ;;  %p12735_p10 = scmp.lt.u32.totalorder %s12728_s27, %s16804_s6 }
  0x38   : > { %p12731_p2 = pnand %p12729_p1, %p12702_p13 }
  0x3a   : > { %p12732_p6 = pneg %p12731_p2 }
  0x3c   : > { %p12737_p3 = pnand %p12735_p10, %p12732_p6 }
  0x3e   : > { %12740 = shalt.err (!%p12737_p3)
}
  0x3f   : > { %s12741_s19 = scalar_lea.vmem %s12975_s22, 18432  ;;  %p12749_p12 = scmp.lt.s32.totalorder %s12975_s22, %s12975_s22 }
  0x40   : > { %p12742_p5 = scmp.ne.s32.totalorder %s12975_s22, %s12741_s19  ;;  %p12750_p0 = scmp.lt.s32.totalorder %s12741_s19, %s12741_s19 }
  0x42   : > { %p12744_p7 = pnand %p12742_p5, %p12702_p13  ;;  %p12751_p1 = por %p12750_p0, %p12749_p12 }
  0x44   : > { %p12745_p9 = pneg %p12744_p7 }
  0x46   : > { %p12752_p2 = pnand %p12751_p1, %p12745_p9 }
  0x48   : > { %12755 = shalt.err (!%p12752_p2)
}
  0x49   : > { %12637 = dma.hbm_to_vmem [thread:$0]  (!%p12971_p11), %s16804_s6, 18432, %s12975_s22, [#allocation7], %s16685_s18, %s16685_s18, %s16686_s21  }
  0x4a   : > { %s13036_s20 = sadd.s32 1, %s12856_s12   ;;  %s33_s24 = sadd.s32 1, %s12852_s11 }
  0x4b   : > { %s30_s25 = ssub.s32 %s12856_s12, %s13036_s20  ;;  %p40_p13 = scmp.ne.s32.totalorder %s12852_s11, %s12848_s10 }
  0x4c   : > { %p31_p6 = scmp.eq.s32.totalorder %s30_s25, 0  ;;  %p41_p10 = scmp.eq.s32.totalorder %s12856_s12, 0 }
  0x4d   : > { %p16805_p3 = scmp.eq.s32.totalorder %s12941_s13, 1  ;;  %p12648_p7 = scmp.lt.s32.totalorder %s12856_s12, 2 }
  0x4e   : > { %s13052_s27 = scalar_select %p31_p6, %s12852_s11, %s33_s24  }
  0x4f   : > { %p13046_p5 = por %p16805_p3, %p40_p13  ;;  %p42_p9 = por %p41_p10, %p40_p13 }
  0x50   : > { %s308_s28 = sand.u32 1, %s12852_s11   ;;  %s12615_s22 = smul.u32 6016, %s12856_s12 }
  0x51   : > { %s16806_s26 = scalar_select %p13046_p5, 1, 0 }
  0x52   : > { %s12614_s29 = smul.u32 376, %s308_s28  ;;  %p13056_p11 = pnand %p12648_p7, %p42_p9 }
  0x53   : > { %s13063_s23 = scalar_lea.hbm %s16673_s0, %s12615_s22  ;;  %s13067_s18 = scalar_lea.sflag [#allocation4], %s308_s28 }
  0x54   : > { %s312_s24 = scalar_lea.vmem [#allocation3], %s12614_s29  ;;  %s12756_s21 = scalar_lea.hbm %s13063_s23, 6016 }
  0x55   : > { %s319_s25 = sshll.u32 %s312_s24, 4  ;;  %p12757_p12 = scmp.ne.s32.totalorder %s13063_s23, %s12756_s21  ;;  %s13065_s25 = int_to_ptr.vmem [resolvable:$true] %s319_s25 }
  0x56   : > { %p12758_p0 = pneg %p13056_p11  ;;  %s12761_s16 = scalar_lea.hbm %s16673_s0, 12032 }
  0x57   : > { %p12762_p13 = scmp.lt.u32.totalorder %s13063_s23, %s16673_s0  ;;  %p12763_p6 = scmp.lt.u32.totalorder %s12761_s16, %s12756_s21 }
  0x58   : > { %p12759_p1 = pnand %p12758_p0, %p12757_p12  ;;  %p12765_p3 = scmp.lt.u32.totalorder %s12756_s21, %s13063_s23 }
  0x59   : > { %p12764_p10 = por %p12763_p6, %p12762_p13 }
  0x5a   : > { %p12760_p2 = pneg %p12759_p1 }
  0x5b   : > { %p12766_p7 = por %p12765_p3, %p12764_p10 }
  0x5d   : > { %p12767_p9 = pnand %p12766_p7, %p12760_p2 }
  0x5f   : > { %12770 = shalt.err (!%p12767_p9)
}
  0x60   : > { %s12771_s28 = scalar_lea.vmem %s13065_s25, 6016  ;;  %s12862_s29 = smov [#allocation3]  }
  0x61   : > { %p12772_p12 = scmp.ne.s32.totalorder %s13065_s25, %s12771_s28  ;;  %s12776_s24 = sshll.u32 %s12862_s29, 4  ;;  %s12777_s24 = int_to_ptr.vmem [resolvable:$false] %s12776_s24 }
  0x62   : > { %s12778_s3 = scalar_lea.vmem %s12777_s24, 12032  ;;  %p12779_p4 = scmp.lt.s32.totalorder %s13065_s25, %s12777_s24 }
  0x63   : > { %p12774_p1 = pnand %p12772_p12, %p12758_p0  ;;  %p12780_p13 = scmp.lt.s32.totalorder %s12778_s3, %s12771_s28 }
  0x65   : > { %p12775_p5 = pneg %p12774_p1  ;;  %p12781_p6 = por %p12780_p13, %p12779_p4 }
  0x67   : > { %p12782_p10 = pnand %p12781_p6, %p12775_p5 }
  0x69   : > { %12785 = shalt.err (!%p12782_p10)
}
  0x6a   : > { %s16808_s6 = smov 8   ;;  %s16809_s21 = smov 128  }
  0x6b   : > { %12641 = dma.hbm_to_vmem [thread:$0]  (!%p13056_p11), %s13063_s23, 6016, %s13065_s25, %s13067_s18, %s16809_s21, %s16809_s21, %s16808_s6  }
  0x6c   : > { %331 = sbr.rel (%p12960_p8) target bundleno = 2658 (0xa62), region = 56 }
  0x73   : > { %s13101_s22 = sand.u32 1, %s12848_s10   ;;  %p16810_p4 = scmp.ne.s32.totalorder %s16798_s15, 0 }
  0x74   : > { %s12616_s19 = smul.u32 376, %s13101_s22  ;;  %s334_s16 = scalar_lea.sflag [#allocation4], %s13101_s22 }
  0x76   : > { %s13105_s28 = scalar_lea.vmem [#allocation3], %s12616_s19 }
  0x77   : > { %12831 = dma.done.wait (%p16810_p4), %s334_s16, 6016  }
  0x78   : > { %12833 = vsyncadd (%p16810_p4), %s334_s16, 4294961280  ;;  %p16811_p5 = scmp.eq.s32.totalorder %s12941_s13, 0 }
  0x7a   : > { %12835 = dma.done.wait (%p16811_p5), [#allocation7], 36864   ;;  %p16812_p8 = pmov %p16811_p5 }
  0x7b   : > { %v12863_v0 = vmov 0.0|0.0   ;;  %vm12864_vm0 = vmmov 0   ;;  %v12865_v1 = vmov 0.0   ;;  %v1077_v2 = vld [vmem:[#allocation6 + $0x100] sm:$0xff]  ;;  %v1078_v3 = vld [vmem:[#allocation6 + $0x108] sm:$0xff]  ;;  %v1079_v4 = vld [vmem:[#allocation6 + $0x110] sm:$0xff] }
  0x7c   : > { %12837 = vsyncadd (%p16812_p8), [#allocation7], 4294930432  ;;  %11239 = vmatprep.subr.bf16.mxu0 %v12863_v0  ;;  %9364 = vmatprep.mubr.msk.f32.mxu0 %vm12864_vm0, %v12865_v1  ;;  %v13121_v5 = vpack.c.bf16 %v1078_v3, %v1077_v2  ;;  %v1080_v6 = vld [vmem:[#allocation6 + $0x118] sm:$0xff]  ;;  %v1081_v8 = vld [vmem:[#allocation6 + $0x120] sm:$0xff]  ;;  %vm3944_vm1 = vcmask 1045504   ;;  %s12617_s23 = smul.u32 288, %s13101_s22 }
  0x7d   : > { %11191 = vmatprep.subr.bf16.mxu1 %v12863_v0  ;;  %9054 = vmatprep.mubr.msk.f32.mxu1 %vm12864_vm0, %v12865_v1  ;;  %v13124_v7 = vpack.c.bf16 %v1080_v6, %v1079_v4  ;;  %v1082_v9 = vld [vmem:[#allocation6 + $0x128] sm:$0xff]  ;;  %v1083_v11 = vld [vmem:[#allocation6 + $0x130] sm:$0xff]  ;;  %v1084_v12 = vld [vmem:[#allocation6 + $0x138] sm:$0xff]  ;;  %s12618_s3 = smul.u32 4608, %s12941_s13  ;;  %s7922_s13 = scalar_lea.sflag [#allocation5], %s13101_s22 }
  0x7e   : > { %11241 = vmatpush3.bf16.msra.mxu0 %v13121_v5  ;;  %v13128_v10 = vpack.c.bf16 %v1082_v9, %v1081_v8  ;;  %v13132_v13 = vpack.c.bf16 %v1084_v12, %v1083_v11  ;;  %v1085_v14 = vld [vmem:[#allocation6 + $0x140] sm:$0xff]  ;;  %v1086_v15 = vld [vmem:[#allocation6 + $0x148] sm:$0xff]  ;;  %v1087_v17 = vld [vmem:[#allocation6 + $0x150] sm:$0xff]  ;;  %s16426_s24 = scalar_lea.vmem [#allocation9], %s12617_s23  ;;  %p17004_p0 = scmp.ne.s32.totalorder %s16806_s26, 0 }
  0x7f   : > { %11242 = vmatprep.subr.bf16.mxu0 %v12863_v0  ;;  %v13136_v16 = vpack.c.bf16 %v1086_v15, %v1085_v14  ;;  %v1088_v18 = vld [vmem:[#allocation6 + $0x158] sm:$0xff]  ;;  %v1089_v20 = vld [vmem:[#allocation6 + $0x160] sm:$0xff]  ;;  %v1090_v21 = vld [vmem:[#allocation6 + $0x168] sm:$0xff]  ;;  %s7935_s6 = sshll.u32 %s16426_s24, 4  ;;  %s16611_s19 = scalar_lea.hbm %s16682_s9, %s12618_s3  ;;  %s16621_s6 = int_to_ptr.vmem [resolvable:$true] %s7935_s6 }
  0x80   : > { %v13140_v19 = vpack.c.bf16 %v1088_v18, %v1087_v17  ;;  %v13144_v22 = vpack.c.bf16 %v1090_v21, %v1089_v20  ;;  %v1091_v23 = vld [vmem:[#allocation6 + $0x170] sm:$0xff]  ;;  %v1092_v24 = vld [vmem:[#allocation6 + $0x178] sm:$0xff]  ;;  %v1446_v26 = vld [vmem:[#allocation6 + $0x180] sm:$0xff]  ;;  %s12786_s16 = scalar_lea.vmem %s16621_s6, 4608  ;;  %s12867_s15 = smov [#allocation9]  }
  0x81   : > { %v13148_v25 = vpack.c.bf16 %v1092_v24, %v1091_v23  ;;  %v1447_v27 = vld [vmem:[#allocation6 + $0x188] sm:$0xff]  ;;  %v1035_v28 = vld [vmem:[%s13105_s28 + $0x8] sm:$0xff]  ;;  %v1036_v32 = vld [vmem:[%s13105_s28 + $0x10] sm:$0xff]  ;;  %p12787_p11 = scmp.ne.s32.totalorder %s16621_s6, %s12786_s16  ;;  %s12790_s17 = sshll.u32 %s12867_s15, 4  ;;  %s12791_s17 = int_to_ptr.vmem [resolvable:$false] %s12790_s17 }
  0x82   : > { %11244 = vmatpush3.bf16.msra.mxu0 %v13124_v7  ;;  %v11264_v29 = vpack.c.bf16 %v1447_v27, %v1446_v26  ;;  %v1448_v30 = vld [vmem:[#allocation6 + $0x190] sm:$0xff]  ;;  %v1449_v31 = vld [vmem:[#allocation6 + $0x198] sm:$0xff]  ;;  %v1450_v34 = vld [vmem:[#allocation6 + $0x1a0] sm:$0xff]  ;;  %s12792_s18 = scalar_lea.vmem %s12791_s17, 9216  ;;  %p12793_p7 = scmp.lt.s32.totalorder %s16621_s6, %s12791_s17 }
  0x83   : > { %11245 = vmatprep.subr.bf16.mxu0 %v12863_v0  ;;  %v11267_v33 = vpack.c.bf16 %v1449_v31, %v1448_v30  ;;  %v1451_v35 = vld [vmem:[#allocation6 + $0x1a8] sm:$0xff]  ;;  %v1452_v38 = vld [vmem:[#allocation6 + $0x1b0] sm:$0xff]  ;;  %v1453_v39 = vld [vmem:[#allocation6 + $0x1b8] sm:$0xff]  ;;  %p12788_p2 = pnand %p12787_p11, %p17004_p0  ;;  %p12794_p9 = scmp.lt.s32.totalorder %s12792_s18, %s12786_s16 }
  0x84   : > { %v13161_v36 = vld [vmem:[%s13105_s28 + $0x18] sm:$0xff]  ;;  %v11270_v37 = vpack.c.bf16 %v1451_v35, %v1450_v34  ;;  %v13168_v40 = vld [vmem:[%s13105_s28 + $0x20] sm:$0xff]  ;;  %v11273_v41 = vpack.c.bf16 %v1453_v39, %v1452_v38  ;;  %v13175_v44 = vld [vmem:[%s13105_s28 + $0x28] sm:$0xff] }
  0x85   : > { %v1454_v42 = vld [vmem:[#allocation6 + $0x1c0] sm:$0xff]  ;;  %v1455_v43 = vld [vmem:[#allocation6 + $0x1c8] sm:$0xff]  ;;  %v1456_v46 = vld [vmem:[#allocation6 + $0x1d0] sm:$0xff]  ;;  %p12789_p3 = pneg %p12788_p2  ;;  %p12795_p12 = por %p12794_p9, %p12793_p7 }
  0x86   : > { %11247 = vmatpush3.bf16.msra.mxu0 %v13128_v10  ;;  %v11276_v45 = vpack.c.bf16 %v1455_v43, %v1454_v42  ;;  %v1457_v47 = vld [vmem:[#allocation6 + $0x1d8] sm:$0xff]  ;;  %v1458_v50 = vld [vmem:[#allocation6 + $0x1e0] sm:$0xff]  ;;  %v1459_v51 = vld [vmem:[#allocation6 + $0x1e8] sm:$0xff] }
  0x87   : > { %11248 = vmatprep.subr.bf16.mxu0 %v12863_v0  ;;  %v13182_v48 = vld [vmem:[%s13105_s28 + $0x30] sm:$0xff]  ;;  %v11279_v49 = vpack.c.bf16 %v1457_v47, %v1456_v46  ;;  %v13189_v52 = vld [vmem:[%s13105_s28 + $0x38] sm:$0xff]  ;;  %v11282_v53 = vpack.c.bf16 %v1459_v51, %v1458_v50  ;;  %v1460_v54 = vld [vmem:[#allocation6 + $0x1f0] sm:$0xff]  ;;  %p12796_p1 = pnand %p12795_p12, %p12789_p3 }
  0x88   : > { %v1461_v55 = vld [vmem:[#allocation6 + $0x1f8] sm:$0xff]  ;;  %v13196_v56 = vld [vmem:[%s13105_s28 + $0x40] sm:$0xff]  ;;  %v13216_v60 = vld [vmem:[%s13105_s28 + $0x58] sm:$0xff] }
  0x89   : > { %v11285_v57 = vpack.c.bf16 %v1461_v55, %v1460_v54  ;;  %v13203_v58 = vld [vmem:[%s13105_s28 + $0x48] sm:$0xff]  ;;  %v13210_v59 = vld [vmem:[%s13105_s28 + $0x50] sm:$0xff]  ;;  %v13222_v61 = vld [vmem:[%s13105_s28 + $0x60] sm:$0xff] }
  0x8a   : > { %11250 = vmatpush3.bf16.msra.mxu0 %v13132_v13  ;;  %v13228_v62 = vld [vmem:[%s13105_s28 + $0x68] sm:$0xff]  ;;  %v13234_v63 = vld [vmem:[%s13105_s28 + $0x70] sm:$0xff]  ;;  %v13240_v2 = vld [vmem:[%s13105_s28 + $0x78] sm:$0xff] }
  0x8b   : > { %11251 = vmatprep.subr.bf16.mxu0 %v12863_v0  ;;  %v13246_v3 = vld [vmem:[%s13105_s28 + $0x80] sm:$0xff]  ;;  %v13252_v4 = vld [vmem:[%s13105_s28 + $0x88] sm:$0xff]  ;;  %v13258_v6 = vld [vmem:[%s13105_s28 + $0x90] sm:$0xff] }
  0x8c   : > { %v13264_v8 = vld [vmem:[%s13105_s28 + $0x98] sm:$0xff]  ;;  %v13270_v9 = vld [vmem:[%s13105_s28 + $0xa0] sm:$0xff]  ;;  %v1818_v17 = vld [vmem:[#allocation6 + $0x218] sm:$0xff] }
  0x8d   : > { %v1815_v11 = vld [vmem:[#allocation6 + $0x200] sm:$0xff]  ;;  %v1816_v12 = vld [vmem:[#allocation6 + $0x208] sm:$0xff]  ;;  %v1817_v15 = vld [vmem:[#allocation6 + $0x210] sm:$0xff] }
  0x8e   : > { %11253 = vmatpush3.bf16.msra.mxu0 %v13136_v16  ;;  %v11288_v14 = vpack.c.bf16 %v1816_v12, %v1815_v11  ;;  %v11291_v18 = vpack.c.bf16 %v1818_v17, %v1817_v15  ;;  %v1819_v20 = vld [vmem:[#allocation6 + $0x220] sm:$0xff]  ;;  %v1820_v21 = vld [vmem:[#allocation6 + $0x228] sm:$0xff]  ;;  %v1821_v24 = vld [vmem:[#allocation6 + $0x230] sm:$0xff] }
  0x8f   : > { %11254 = vmatprep.subr.bf16.mxu0 %v12863_v0  ;;  %v11294_v23 = vpack.c.bf16 %v1820_v21, %v1819_v20  ;;  %v1822_v26 = vld [vmem:[#allocation6 + $0x238] sm:$0xff]  ;;  %v1825_v31 = vld [vmem:[#allocation6 + $0x250] sm:$0xff]  ;;  %v1827_v34 = vld [vmem:[#allocation6 + $0x260] sm:$0xff] }
  0x90   : > { %v11297_v27 = vpack.c.bf16 %v1822_v26, %v1821_v24  ;;  %v1828_v35 = vld [vmem:[#allocation6 + $0x268] sm:$0xff]  ;;  %v1830_v38 = vld [vmem:[#allocation6 + $0x278] sm:$0xff]  ;;  %v481_v17 = vld [vmem:[#allocation6 + $0x90] sm:$0xff] }
  0x91   : > { %v1424_v42 = vld [vmem:[%s13105_s28 + $0xb8] sm:$0xff]  ;;  %v1425_v43 = vld [vmem:[%s13105_s28 + $0xc0] sm:$0xff]  ;;  %v2187_v11 = vld [vmem:[#allocation6 + $0x298] sm:$0xff] }
  0x92   : > { %11256 = vmatpush3.bf16.msra.mxu0 %v13140_v19  ;;  %v1428_v46 = vld [vmem:[%s13105_s28 + $0xd8] sm:$0xff]  ;;  %v1429_v47 = vld [vmem:[%s13105_s28 + $0xe0] sm:$0xff]  ;;  %v1775_v24 = vld [vmem:[%s13105_s28 + $0x29] sm:$0xff] }
  0x93   : > { %11257 = vmatprep.subr.bf16.mxu0 %v12863_v0  ;;  %v1432_v50 = vld [vmem:[%s13105_s28 + $0xf8] sm:$0xff]  ;;  %v1433_v51 = vld [vmem:[%s13105_s28 + $0x100] sm:$0xff] }
  0x94   : > { %v1436_v54 = vld [vmem:[%s13105_s28 + $0x118] sm:$0xff]  ;;  %v1437_v55 = vld [vmem:[%s13105_s28 + $0x120] sm:$0xff] }
  0x95   : > { %v2188_v20 = vld [vmem:[#allocation6 + $0x2a0] sm:$0xff]  ;;  %v2189_v21 = vld [vmem:[#allocation6 + $0x2a8] sm:$0xff] }
  0x96   : > { %11259 = vmatpush3.bf16.msra.mxu0 %v13144_v22  ;;  %v11318_v26 = vpack.c.bf16 %v2189_v21, %v2188_v20  ;;  %v442_v20 = vld [vmem:[%s13105_s28 + $0x2f] sm:$0xff] }
  0x97   : > { %11260 = vmatprep.subr.bf16.mxu0 %v12863_v0  ;;  %v1787_v21 = vld [vmem:[%s13105_s28 + $0x89] sm:$0xff] }
  0x9a   : > { %11262 = vmatpush3.bf16.msra.mxu0 %v13148_v25 }
  0x9b   : > { %11263 = vmatprep.subr.bf16.mxu0 %v12863_v0 }
  0x9d   : > { %9365 = vmatmul.mubr.f32.vlgmr.msra.gmra.mrb[0].mxu0 %v1035_v28  ;;  %v1823_v28 = vld [vmem:[#allocation6 + $0x240] sm:$0xff] }
  0x9e   : > { %11265 = vmatpush3.bf16.msra.mxu0 %v11264_v29  ;;  %9367 = vmatprep.mubr.msk.f32.mxu0 %vm12864_vm0, %v12865_v1  ;;  %v1824_v29 = vld [vmem:[#allocation6 + $0x248] sm:$0xff] }
  0x9f   : > { %11266 = vmatprep.subr.bf16.mxu0 %v12863_v0  ;;  %v11300_v30 = vpack.c.bf16 %v1824_v29, %v1823_v28  ;;  %v484_v28 = vld [vmem:[#allocation6 + $0xa8] sm:$0xff]  ;;  %v2190_v29 = vld [vmem:[#allocation6 + $0x2b0] sm:$0xff] }
  0xa1   : > { %9368 = vmatmul.mubr.f32.gmra.mrb[2].mxu0 %v1036_v32  ;;  %v1826_v32 = vld [vmem:[#allocation6 + $0x258] sm:$0xff] }
  0xa2   : > { %9370 = vmatprep.mubr.msk.f32.mxu0 %vm12864_vm0, %v12865_v1  ;;  %11268 = vmatpush3.bf16.msra.mxu0 %v11267_v33  ;;  %v11303_v33 = vpack.c.bf16 %v1826_v32, %v1825_v31  ;;  %v1776_v32 = vld [vmem:[%s13105_s28 + $0x31] sm:$0xff] }
  0xa3   : > { %11269 = vmatprep.subr.bf16.mxu0 %v12863_v0 }
  0xa5   : > { %9371 = vmatmul.mubr.f32.gmra.mrb[4].mxu0 %v13161_v36 }
  0xa6   : > { %9373 = vmatprep.mubr.msk.f32.mxu0 %vm12864_vm0, %v12865_v1  ;;  %11271 = vmatpush3.bf16.msra.mxu0 %v11270_v37  ;;  %v1829_v37 = vld [vmem:[#allocation6 + $0x270] sm:$0xff] }
  0xa7   : > { %11272 = vmatprep.subr.bf16.mxu0 %v12863_v0  ;;  %v11309_v39 = vpack.c.bf16 %v1830_v38, %v1829_v37  ;;  %v2193_v37 = vld [vmem:[#allocation6 + $0x2c8] sm:$0xff] }
  0xa9   : > { %9374 = vmatmul.mubr.f32.gmra.mrb[6].mxu0 %v13168_v40 }
  0xaa   : > { %9376 = vmatprep.mubr.msk.f32.mxu0 %vm12864_vm0, %v12865_v1  ;;  %11274 = vmatpush3.bf16.msra.mxu0 %v11273_v41  ;;  %v1423_v41 = vld [vmem:[%s13105_s28 + $0xb0] sm:$0xff] }
  0xab   : > { %11275 = vmatprep.subr.bf16.mxu0 %v12863_v0 }
  0xad   : > { %9377 = vmatmul.mubr.f32.gmra.mrb[8].mxu0 %v13175_v44 }
  0xae   : > { %9379 = vmatprep.mubr.msk.f32.mxu0 %vm12864_vm0, %v12865_v1  ;;  %11277 = vmatpush3.bf16.msra.mxu0 %v11276_v45  ;;  %v1427_v45 = vld [vmem:[%s13105_s28 + $0xd0] sm:$0xff] }
  0xaf   : > { %11278 = vmatprep.subr.bf16.mxu0 %v12863_v0 }
  0xb1   : > { %9380 = vmatmul.mubr.f32.gmra.mrb[10].mxu0 %v13182_v48 }
  0xb2   : > { %9382 = vmatprep.mubr.msk.f32.mxu0 %vm12864_vm0, %v12865_v1  ;;  %11280 = vmatpush3.bf16.msra.mxu0 %v11279_v49  ;;  %v1431_v49 = vld [vmem:[%s13105_s28 + $0xf0] sm:$0xff] }
  0xb3   : > { %11281 = vmatprep.subr.bf16.mxu0 %v12863_v0 }
  0xb5   : > { %9383 = vmatmul.mubr.f32.gmra.mrb[12].mxu0 %v13189_v52 }
  0xb6   : > { %9385 = vmatprep.mubr.msk.f32.mxu0 %vm12864_vm0, %v12865_v1  ;;  %11283 = vmatpush3.bf16.msra.mxu0 %v11282_v53  ;;  %v1435_v53 = vld [vmem:[%s13105_s28 + $0x110] sm:$0xff] }
  0xb7   : > { %11284 = vmatprep.subr.bf16.mxu0 %v12863_v0 }
  0xb9   : > { %9386 = vmatmul.mubr.f32.gmra.mrb[14].mxu0 %v13196_v56 }
  0xba   : > { %9388 = vmatprep.mubr.msk.f32.mxu0 %vm12864_vm0, %v12865_v1  ;;  %11286 = vmatpush3.bf16.msra.mxu0 %v11285_v57  ;;  %v1439_v57 = vld [vmem:[%s13105_s28 + $0x130] sm:$0xff] }
  0xbb   : > { %11287 = vmatprep.subr.bf16.mxu0 %v12863_v0 }
  0xbd   : > { %9389 = vmatmul.mubr.f32.gmra.mrb[16].mxu0 %v13203_v58 }
  0xbe   : > { %9391 = vmatprep.mubr.msk.f32.mxu0 %vm12864_vm0, %v12865_v1 }
  0xc1   : > { %9392 = vmatmul.mubr.f32.gmra.mrb[18].mxu0 %v13210_v59 }
  0xc2   : > { %9394 = vmatprep.mubr.msk.f32.mxu0 %vm12864_vm0, %v12865_v1 }
  0xc5   : > { %9395 = vmatmul.mubr.f32.gmra.mrb[20].mxu0 %v13216_v60 }
  0xc6   : > { %9397 = vmatprep.mubr.msk.f32.mxu0 %vm12864_vm0, %v12865_v1 }
  0xc9   : > { %9398 = vmatmul.mubr.f32.gmra.mrb[22].mxu0 %v13222_v61 }
  0xca   : > { %9400 = vmatprep.mubr.msk.f32.mxu0 %vm12864_vm0, %v12865_v1 }
  0xcd   : > { %9401 = vmatmul.mubr.f32.gmra.mrb[24].mxu0 %v13228_v62 }
  0xce   : > { %9403 = vmatprep.mubr.msk.f32.mxu0 %vm12864_vm0, %v12865_v1 }
  0xd1   : > { %9404 = vmatmul.mubr.f32.gmra.mrb[26].mxu0 %v13234_v63 }
  0xd2   : > { %9406 = vmatprep.mubr.msk.f32.mxu0 %vm12864_vm0, %v12865_v1 }
  0xd5   : > { %9407 = vmatmul.mubr.f32.gmra.mrb[28].mxu0 %v13240_v2 }
  0xd6   : > { %9409 = vmatprep.mubr.msk.f32.mxu0 %vm12864_vm0, %v12865_v1 }
  0xd9   : > { %9410 = vmatmul.mubr.f32.gmra.mrb[30].mxu0 %v13246_v3 }
  0xda   : > { %9412 = vmatprep.mubr.msk.f32.mxu0 %vm12864_vm0, %v12865_v1 }
  0xdd   : > { %9413 = vmatmul.mubr.f32.gmra.mrb[32].mxu0 %v13252_v4 }
  0xde   : > { %9415 = vmatprep.mubr.msk.f32.mxu0 %vm12864_vm0, %v12865_v1 }
  0xe1   : > { %9416 = vmatmul.mubr.f32.gmra.mrb[34].mxu0 %v13258_v6 }
  0xe2   : > { %9418 = vmatprep.mubr.msk.f32.mxu0 %vm12864_vm0, %v12865_v1 }
  0xe5   : > { %9419 = vmatmul.mubr.f32.gmra.mrb[36].mxu0 %v13264_v8 }
  0xe6   : > { %9421 = vmatprep.mubr.msk.f32.mxu0 %vm12864_vm0, %v12865_v1 }
  0xe9   : > { %9422 = vmatmul.mubr.f32.gmra.mrb[38].mxu0 %v13270_v9 }
  0xea   : > { %9519 = vmatprep.mubr.msk.f32.mxu0 %vm12864_vm0, %v12865_v1 }
  0xed   : > { %9520 = vmatmul.mubr.f32.vlgmr.msra.gmra.mrb[0].mxu0 %v13161_v36  ;;  %v11306_v36 = vpack.c.bf16 %v1828_v35, %v1827_v34  ;;  %v485_v34 = vld [vmem:[#allocation6 + $0xb0] sm:$0xff]  ;;  %v486_v35 = vld [vmem:[#allocation6 + $0xb8] sm:$0xff] }
  0xee   : > { %11289 = vmatpush3.bf16.msra.mxu0 %v11288_v14  ;;  %9522 = vmatprep.mubr.msk.f32.mxu0 %vm12864_vm0, %v12865_v1  ;;  %v1774_v14 = vld [vmem:[%s13105_s28 + $0x21] sm:$0xff]  ;;  %v11201_v38 = vpack.c.bf16 %v486_v35, %v485_v34  ;;  %v1793_v35 = vld [vmem:[%s13105_s28 + $0xb9] sm:$0xff] }
  0xef   : > { %11290 = vmatprep.subr.bf16.mxu0 %v12863_v0  ;;  %v448_v34 = vld [vmem:[%s13105_s28 + $0x5f] sm:$0xff] }
  0xf1   : > { %9523 = vmatmul.mubr.f32.gmra.mrb[2].mxu0 %v13168_v40  ;;  %v1422_v40 = vld [vmem:[%s13105_s28 + $0xa8] sm:$0xff] }
  0xf2   : > { %9525 = vmatprep.mubr.msk.f32.mxu0 %vm12864_vm0, %v12865_v1  ;;  %11292 = vmatpush3.bf16.msra.mxu0 %v11291_v18  ;;  %v482_v18 = vld [vmem:[#allocation6 + $0x98] sm:$0xff] }
  0xf3   : > { %11293 = vmatprep.subr.bf16.mxu0 %v12863_v0 }
  0xf5   : > { %9526 = vmatmul.mubr.f32.gmra.mrb[4].mxu0 %v13175_v44  ;;  %v1426_v44 = vld [vmem:[%s13105_s28 + $0xc8] sm:$0xff] }
  0xf6   : > { %9528 = vmatprep.mubr.msk.f32.mxu0 %vm12864_vm0, %v12865_v1  ;;  %11295 = vmatpush3.bf16.msra.mxu0 %v11294_v23  ;;  %v11195_v23 = vpack.c.bf16 %v482_v18, %v481_v17  ;;  %v441_v17 = vld [vmem:[%s13105_s28 + $0x27] sm:$0xff] }
  0xf7   : > { %11296 = vmatprep.subr.bf16.mxu0 %v12863_v0  ;;  %v1786_v18 = vld [vmem:[%s13105_s28 + $0x81] sm:$0xff] }
  0xf9   : > { %9529 = vmatmul.mubr.f32.gmra.mrb[6].mxu0 %v13182_v48  ;;  %v1430_v48 = vld [vmem:[%s13105_s28 + $0xe8] sm:$0xff] }
  0xfa   : > { %9531 = vmatprep.mubr.msk.f32.mxu0 %vm12864_vm0, %v12865_v1  ;;  %11298 = vmatpush3.bf16.msra.mxu0 %v11297_v27  ;;  %v483_v27 = vld [vmem:[#allocation6 + $0xa0] sm:$0xff] }
  0xfb   : > { %11299 = vmatprep.subr.bf16.mxu0 %v12863_v0  ;;  %v11198_v31 = vpack.c.bf16 %v484_v28, %v483_v27  ;;  %v1789_v27 = vld [vmem:[%s13105_s28 + $0x99] sm:$0xff]  ;;  %v445_v28 = vld [vmem:[%s13105_s28 + $0x47] sm:$0xff] }
  0xfd   : > { %9532 = vmatmul.mubr.f32.gmra.mrb[8].mxu0 %v13189_v52  ;;  %v1434_v52 = vld [vmem:[%s13105_s28 + $0x108] sm:$0xff] }
  0xfe   : > { %9534 = vmatprep.mubr.msk.f32.mxu0 %vm12864_vm0, %v12865_v1  ;;  %11301 = vmatpush3.bf16.msra.mxu0 %v11300_v30  ;;  %v2191_v30 = vld [vmem:[#allocation6 + $0x2b8] sm:$0xff] }
  0xff   : > { %11302 = vmatprep.subr.bf16.mxu0 %v12863_v0 }
 0x101   : > { %9535 = vmatmul.mubr.f32.gmra.mrb[10].mxu0 %v13196_v56  ;;  %v1438_v56 = vld [vmem:[%s13105_s28 + $0x128] sm:$0xff] }
 0x102   : > { %9537 = vmatprep.mubr.msk.f32.mxu0 %vm12864_vm0, %v12865_v1  ;;  %11304 = vmatpush3.bf16.msra.mxu0 %v11303_v33  ;;  %v11321_v33 = vpack.c.bf16 %v2191_v30, %v2190_v29  ;;  %v1790_v29 = vld [vmem:[%s13105_s28 + $0xa1] sm:$0xff]  ;;  %v446_v30 = vld [vmem:[%s13105_s28 + $0x4f] sm:$0xff] }
 0x103   : > { %11305 = vmatprep.subr.bf16.mxu0 %v12863_v0 }
 0x105   : > { %9538 = vmatmul.mubr.f32.gmra.mrb[12].mxu0 %v13203_v58  ;;  %v1440_v58 = vld [vmem:[%s13105_s28 + $0x138] sm:$0xff] }
 0x106   : > { %9540 = vmatprep.mubr.msk.f32.mxu0 %vm12864_vm0, %v12865_v1  ;;  %11307 = vmatpush3.bf16.msra.mxu0 %v11306_v36  ;;  %v2192_v36 = vld [vmem:[#allocation6 + $0x2c0] sm:$0xff] }
 0x107   : > { %11308 = vmatprep.subr.bf16.mxu0 %v12863_v0 }
 0x109   : > { %9541 = vmatmul.mubr.f32.gmra.mrb[14].mxu0 %v13210_v59  ;;  %v1441_v59 = vld [vmem:[%s13105_s28 + $0x140] sm:$0xff] }
 0x10a   : > { %9543 = vmatprep.mubr.msk.f32.mxu0 %vm12864_vm0, %v12865_v1  ;;  %11310 = vmatpush3.bf16.msra.mxu0 %v11309_v39  ;;  %v1777_v39 = vld [vmem:[%s13105_s28 + $0x39] sm:$0xff] }
 0x10b   : > { %11311 = vmatprep.subr.bf16.mxu0 %v12863_v0 }
 0x10d   : > { %9544 = vmatmul.mubr.f32.gmra.mrb[16].mxu0 %v13216_v60  ;;  %v1442_v60 = vld [vmem:[%s13105_s28 + $0x148] sm:$0xff] }
 0x10e   : > { %9546 = vmatprep.mubr.msk.f32.mxu0 %vm12864_vm0, %v12865_v1 }
 0x111   : > { %9547 = vmatmul.mubr.f32.gmra.mrb[18].mxu0 %v13222_v61  ;;  %v1443_v61 = vld [vmem:[%s13105_s28 + $0x150] sm:$0xff] }
 0x112   : > { %9549 = vmatprep.mubr.msk.f32.mxu0 %vm12864_vm0, %v12865_v1 }
 0x115   : > { %9550 = vmatmul.mubr.f32.gmra.mrb[20].mxu0 %v13228_v62  ;;  %v1444_v62 = vld [vmem:[%s13105_s28 + $0x158] sm:$0x3f] }
 0x116   : > { %9552 = vmatprep.mubr.msk.f32.mxu0 %vm12864_vm0, %v12865_v1 }
 0x119   : > { %9553 = vmatmul.mubr.f32.gmra.mrb[22].mxu0 %v13234_v63  ;;  %v2184_v63 = vld [vmem:[#allocation6 + $0x280] sm:$0xff] }
 0x11a   : > { %9555 = vmatprep.mubr.msk.f32.mxu0 %vm12864_vm0, %v12865_v1 }
 0x11d   : > { %9556 = vmatmul.mubr.f32.gmra.mrb[24].mxu0 %v13240_v2  ;;  %v2185_v2 = vld [vmem:[#allocation6 + $0x288] sm:$0xff] }
 0x11e   : > { %9558 = vmatprep.mubr.msk.f32.mxu0 %vm12864_vm0, %v12865_v1 }
 0x121   : > { %9559 = vmatmul.mubr.f32.gmra.mrb[26].mxu0 %v13246_v3  ;;  %v1773_v3 = vld [vmem:[%s13105_s28 + $0x19] sm:$0xff] }
 0x122   : > { %9561 = vmatprep.mubr.msk.f32.mxu0 %vm12864_vm0, %v12865_v1 }
 0x125   : > { %9562 = vmatmul.mubr.f32.gmra.mrb[28].mxu0 %v13252_v4  ;;  %v11312_v4 = vpack.c.bf16 %v2185_v2, %v2184_v63  ;;  %v494_v63 = vld [vmem:[#allocation6 + $0xf8] sm:$0xff] }
 0x126   : > { %9564 = vmatprep.mubr.msk.f32.mxu0 %vm12864_vm0, %v12865_v1 }
 0x129   : > { %9565 = vmatmul.mubr.f32.gmra.mrb[30].mxu0 %v13258_v6  ;;  %v479_v6 = vld [vmem:[#allocation6 + $0x80] sm:$0xff] }
 0x12a   : > { %9567 = vmatprep.mubr.msk.f32.mxu0 %vm12864_vm0, %v12865_v1 }
 0x12d   : > { %9568 = vmatmul.mubr.f32.gmra.mrb[32].mxu0 %v13264_v8  ;;  %v480_v8 = vld [vmem:[#allocation6 + $0x88] sm:$0xff] }
 0x12e   : > { %9570 = vmatprep.mubr.msk.f32.mxu0 %vm12864_vm0, %v12865_v1  ;;  %v11192_v12 = vpack.c.bf16 %v480_v8, %v479_v6  ;;  %v1782_v6 = vld [vmem:[%s13105_s28 + $0x61] sm:$0xff]  ;;  %v438_v8 = vld [vmem:[%s13105_s28 + $0xf] sm:$0xff] }
 0x130   : > { %11193 = vmatpush3.bf16.msra.mxu1 %v11192_v12  ;;  %v1784_v12 = vld [vmem:[%s13105_s28 + $0x71] sm:$0xff] }
 0x131   : > { %9571 = vmatmul.mubr.f32.gmra.mrb[34].mxu0 %v13270_v9  ;;  %v2186_v9 = vld [vmem:[#allocation6 + $0x290] sm:$0xff]  ;;  %11194 = vmatprep.subr.bf16.mxu1 %v12863_v0 }
 0x132   : > { %9573 = vmatprep.mubr.msk.f32.mxu0 %vm12864_vm0, %v12865_v1  ;;  %v11315_v15 = vpack.c.bf16 %v2187_v11, %v2186_v9  ;;  %v1783_v9 = vld [vmem:[%s13105_s28 + $0x69] sm:$0xff]  ;;  %v439_v11 = vld [vmem:[%s13105_s28 + $0x17] sm:$0xff] }
 0x134   : > { %11196 = vmatpush3.bf16.msra.mxu1 %v11195_v23  ;;  %v443_v23 = vld [vmem:[%s13105_s28 + $0x37] sm:$0xff] }
 0x135   : > { %9574 = vmatmul.mubr.f32.gmra.mrb[36].mxu0 %v1422_v40  ;;  %11197 = vmatprep.subr.bf16.mxu1 %v12863_v0  ;;  %v11324_v40 = vpack.c.bf16 %v2193_v37, %v2192_v36  ;;  %v449_v36 = vld [vmem:[%s13105_s28 + $0x67] sm:$0xff] }
 0x136   : > { %9576 = vmatprep.mubr.msk.f32.mxu0 %vm12864_vm0, %v12865_v1  ;;  %v1794_v37 = vld [vmem:[%s13105_s28 + $0xc1] sm:$0xff] }
 0x138   : > { %11199 = vmatpush3.bf16.msra.mxu1 %v11198_v31  ;;  %v1791_v31 = vld [vmem:[%s13105_s28 + $0xa9] sm:$0xff] }
 0x139   : > { %9577 = vmatmul.mubr.f32.gmra.mrb[38].mxu0 %v1423_v41  ;;  %11200 = vmatprep.subr.bf16.mxu1 %v12863_v0  ;;  %v487_v41 = vld [vmem:[#allocation6 + $0xc0] sm:$0xff] }
 0x13a   : > { %9579 = vmatprep.mubr.msk.f32.mxu0 %vm12864_vm0, %v12865_v1 }
 0x13c   : > { %11202 = vmatpush3.bf16.msra.mxu1 %v11201_v38  ;;  %v450_v38 = vld [vmem:[%s13105_s28 + $0x6f] sm:$0xff] }
 0x13d   : > { %9580 = vmatmul.mubr.f32.gmra.mrb[40].mxu0 %v1424_v42  ;;  %v488_v42 = vld [vmem:[#allocation6 + $0xc8] sm:$0xff]  ;;  %11203 = vmatprep.subr.bf16.mxu1 %v12863_v0 }
 0x13e   : > { %9582 = vmatprep.mubr.msk.f32.mxu0 %vm12864_vm0, %v12865_v1 }
 0x141   : > { %9583 = vmatmul.mubr.f32.gmra.mrb[42].mxu0 %v1425_v43  ;;  %v2194_v43 = vld [vmem:[#allocation6 + $0x2d0] sm:$0xff] }
 0x142   : > { %9585 = vmatprep.mubr.msk.f32.mxu0 %vm12864_vm0, %v12865_v1 }
 0x145   : > { %9586 = vmatmul.mubr.f32.gmra.mrb[44].mxu0 %v1426_v44  ;;  %v2195_v44 = vld [vmem:[#allocation6 + $0x2d8] sm:$0xff] }
 0x146   : > { %9588 = vmatprep.mubr.msk.f32.mxu0 %vm12864_vm0, %v12865_v1 }
 0x149   : > { %9589 = vmatmul.mubr.f32.gmra.mrb[46].mxu0 %v1427_v45  ;;  %v11204_v45 = vpack.c.bf16 %v488_v42, %v487_v41  ;;  %v1796_v41 = vld [vmem:[%s13105_s28 + $0xd1] sm:$0xff]  ;;  %v452_v42 = vld [vmem:[%s13105_s28 + $0x7f] sm:$0xff] }
 0x14a   : > { %9591 = vmatprep.mubr.msk.f32.mxu0 %vm12864_vm0, %v12865_v1 }
 0x14b   : > { %11205 = vmatpush3.bf16.msra.mxu1 %v11204_v45  ;;  %v1798_v45 = vld [vmem:[%s13105_s28 + $0xe1] sm:$0xff] }
 0x14c   : > { %11206 = vmatprep.subr.bf16.mxu1 %v12863_v0 }
 0x14d   : > { %9592 = vmatmul.mubr.f32.gmra.mrb[48].mxu0 %v1428_v46  ;;  %v1778_v46 = vld [vmem:[%s13105_s28 + $0x41] sm:$0xff] }
 0x14e   : > { %9594 = vmatprep.mubr.msk.f32.mxu0 %vm12864_vm0, %v12865_v1 }
 0x151   : > { %9595 = vmatmul.mubr.f32.gmra.mrb[50].mxu0 %v1429_v47  ;;  %v11327_v47 = vpack.c.bf16 %v2195_v44, %v2194_v43  ;;  %v1797_v43 = vld [vmem:[%s13105_s28 + $0xd9] sm:$0xff]  ;;  %v453_v44 = vld [vmem:[%s13105_s28 + $0x87] sm:$0xff] }
 0x152   : > { %9597 = vmatprep.mubr.msk.f32.mxu0 %vm12864_vm0, %v12865_v1 }
 0x155   : > { %9598 = vmatmul.mubr.f32.gmra.mrb[52].mxu0 %v1430_v48  ;;  %v489_v48 = vld [vmem:[#allocation6 + $0xd0] sm:$0xff] }
 0x156   : > { %9600 = vmatprep.mubr.msk.f32.mxu0 %vm12864_vm0, %v12865_v1 }
 0x159   : > { %9601 = vmatmul.mubr.f32.gmra.mrb[54].mxu0 %v1431_v49  ;;  %v490_v49 = vld [vmem:[#allocation6 + $0xd8] sm:$0xff] }
 0x15a   : > { %9603 = vmatprep.mubr.msk.f32.mxu0 %vm12864_vm0, %v12865_v1 }
 0x15d   : > { %9604 = vmatmul.mubr.f32.gmra.mrb[56].mxu0 %v1432_v50  ;;  %v2196_v50 = vld [vmem:[#allocation6 + $0x2e0] sm:$0xff] }
 0x15e   : > { %9606 = vmatprep.mubr.msk.f32.mxu0 %vm12864_vm0, %v12865_v1 }
 0x161   : > { %9607 = vmatmul.mubr.f32.gmra.mrb[58].mxu0 %v1433_v51  ;;  %v2197_v51 = vld [vmem:[#allocation6 + $0x2e8] sm:$0xff] }
 0x162   : > { %9609 = vmatprep.mubr.msk.f32.mxu0 %vm12864_vm0, %v12865_v1 }
 0x165   : > { %9610 = vmatmul.mubr.f32.gmra.mrb[60].mxu0 %v1434_v52  ;;  %v11207_v52 = vpack.c.bf16 %v490_v49, %v489_v48  ;;  %v455_v48 = vld [vmem:[%s13105_s28 + $0x97] sm:$0xff] }
 0x166   : > { %9612 = vmatprep.mubr.msk.f32.mxu0 %vm12864_vm0, %v12865_v1  ;;  %v1800_v49 = vld [vmem:[%s13105_s28 + $0xf1] sm:$0xff] }
 0x167   : > { %11208 = vmatpush3.bf16.msra.mxu1 %v11207_v52  ;;  %v457_v52 = vld [vmem:[%s13105_s28 + $0xa7] sm:$0xff] }
 0x168   : > { %11209 = vmatprep.subr.bf16.mxu1 %v12863_v0 }
 0x169   : > { %9613 = vmatmul.mubr.f32.gmra.mrb[62].mxu0 %v1435_v53  ;;  %v1779_v53 = vld [vmem:[%s13105_s28 + $0x49] sm:$0xff] }
 0x16a   : > { %9615 = vmatprep.mubr.msk.f32.mxu0 %vm12864_vm0, %v12865_v1 }
 0x16d   : > { %9616 = vmatmul.mubr.f32.gmra.mrb[64].mxu0 %v1436_v54  ;;  %v11330_v54 = vpack.c.bf16 %v2197_v51, %v2196_v50  ;;  %v456_v50 = vld [vmem:[%s13105_s28 + $0x9f] sm:$0xff] }
 0x16e   : > { %9618 = vmatprep.mubr.msk.f32.mxu0 %vm12864_vm0, %v12865_v1  ;;  %v1801_v51 = vld [vmem:[%s13105_s28 + $0xf9] sm:$0xff] }
 0x171   : > { %9619 = vmatmul.mubr.f32.gmra.mrb[66].mxu0 %v1437_v55  ;;  %v491_v55 = vld [vmem:[#allocation6 + $0xe0] sm:$0xff] }
 0x172   : > { %9621 = vmatprep.mubr.msk.f32.mxu0 %vm12864_vm0, %v12865_v1 }
 0x175   : > { %9622 = vmatmul.mubr.f32.gmra.mrb[68].mxu0 %v1438_v56  ;;  %v492_v56 = vld [vmem:[#allocation6 + $0xe8] sm:$0xff] }
 0x176   : > { %9624 = vmatprep.mubr.msk.f32.mxu0 %vm12864_vm0, %v12865_v1 }
 0x179   : > { %9625 = vmatmul.mubr.f32.gmra.mrb[70].mxu0 %v1439_v57  ;;  %v2198_v57 = vld [vmem:[#allocation6 + $0x2f0] sm:$0xff] }
 0x17a   : > { %9627 = vmatprep.mubr.msk.f32.mxu0 %vm12864_vm0, %v12865_v1 }
 0x17d   : > { %9628 = vmatmul.mubr.f32.gmra.mrb[72].mxu0 %v1440_v58  ;;  %v2199_v58 = vld [vmem:[#allocation6 + $0x2f8] sm:$0xff] }
 0x17e   : > { %9630 = vmatprep.mubr.msk.f32.mxu0 %vm12864_vm0, %v12865_v1 }
 0x181   : > { %9631 = vmatmul.mubr.f32.gmra.mrb[74].mxu0 %v1441_v59  ;;  %v11210_v59 = vpack.c.bf16 %v492_v56, %v491_v55  ;;  %v1803_v55 = vld [vmem:[%s13105_s28 + $0x109] sm:$0xff]  ;;  %v459_v56 = vld [vmem:[%s13105_s28 + $0xb7] sm:$0xff] }
 0x182   : > { %9633 = vmatprep.mubr.msk.f32.mxu0 %vm12864_vm0, %v12865_v1 }
 0x183   : > { %11211 = vmatpush3.bf16.msra.mxu1 %v11210_v59  ;;  %v1805_v59 = vld [vmem:[%s13105_s28 + $0x119] sm:$0xff] }
 0x184   : > { %11212 = vmatprep.subr.bf16.mxu1 %v12863_v0 }
 0x185   : > { %9634 = vmatmul.mubr.f32.gmra.mrb[76].mxu0 %v1442_v60  ;;  %v1780_v60 = vld [vmem:[%s13105_s28 + $0x51] sm:$0xff] }
 0x186   : > { %9636 = vmatprep.mubr.msk.f32.mxu0 %vm12864_vm0, %v12865_v1 }
 0x189   : > { %9637 = vmatmul.mubr.f32.gmra.mrb[78].mxu0 %v1443_v61  ;;  %v11333_v61 = vpack.c.bf16 %v2199_v58, %v2198_v57  ;;  %v1804_v57 = vld [vmem:[%s13105_s28 + $0x111] sm:$0xff]  ;;  %v460_v58 = vld [vmem:[%s13105_s28 + $0xbf] sm:$0xff] }
 0x18a   : > { %9639 = vmatprep.mubr.msk.f32.mxu0 %vm12864_vm0, %v12865_v1 }
 0x18d   : > { %9640 = vmatmul.mubr.f32.gmra.mrb[80].mxu0 %v1444_v62  ;;  %v493_v62 = vld [vmem:[#allocation6 + $0xf0] sm:$0xff] }
 0x18e   : > { %9674 = vmatprep.mubr.msk.f32.mxu0 %vm12864_vm0, %v12865_v1  ;;  %v11213_v2 = vpack.c.bf16 %v494_v63, %v493_v62  ;;  %v462_v62 = vld [vmem:[%s13105_s28 + $0xcf] sm:$0xff] }
 0x18f   : > { %v1807_v63 = vld [vmem:[%s13105_s28 + $0x129] sm:$0xff] }
 0x190   : > { %11214 = vmatpush3.bf16.msra.mxu1 %v11213_v2  ;;  %v463_v2 = vld [vmem:[%s13105_s28 + $0xd7] sm:$0xff] }
 0x191   : > { %9675 = vmatmul.mubr.f32.vlgmr.msra.gmra.mrb[0].mxu0 %v1773_v3  ;;  %v1781_v3 = vld [vmem:[%s13105_s28 + $0x59] sm:$0xff]  ;;  %11215 = vmatprep.subr.bf16.mxu1 %v12863_v0 }
 0x192   : > { %11313 = vmatpush3.bf16.msra.mxu0 %v11312_v4  ;;  %9677 = vmatprep.mubr.msk.f32.mxu0 %vm12864_vm0, %v12865_v1  ;;  %v437_v4 = vld [vmem:[%s13105_s28 + $0x7] sm:$0xff] }
 0x193   : > { %11314 = vmatprep.subr.bf16.mxu0 %v12863_v0  ;;  %9055 = vmatmul.mubr.f32.vlgmr.msra.gmra.mrb[0].mxu1 %v437_v4  ;;  %v464_v4 = vld [vmem:[%s13105_s28 + $0xdf] sm:$0xff] }
 0x194   : > { %9057 = vmatprep.mubr.msk.f32.mxu1 %vm12864_vm0, %v12865_v1 }
 0x195   : > { %9678 = vmatmul.mubr.f32.gmra.mrb[2].mxu0 %v1774_v14  ;;  %v440_v14 = vld [vmem:[%s13105_s28 + $0x1f] sm:$0xff] }
 0x196   : > { %9680 = vmatprep.mubr.msk.f32.mxu0 %vm12864_vm0, %v12865_v1  ;;  %11316 = vmatpush3.bf16.msra.mxu0 %v11315_v15  ;;  %v1785_v15 = vld [vmem:[%s13105_s28 + $0x79] sm:$0xff] }
 0x197   : > { %11317 = vmatprep.subr.bf16.mxu0 %v12863_v0  ;;  %9058 = vmatmul.mubr.f32.gmra.mrb[2].mxu1 %v438_v8  ;;  %v465_v8 = vld [vmem:[%s13105_s28 + $0xe7] sm:$0xff] }
 0x198   : > { %9060 = vmatprep.mubr.msk.f32.mxu1 %vm12864_vm0, %v12865_v1 }
 0x199   : > { %9681 = vmatmul.mubr.f32.gmra.mrb[4].mxu0 %v1775_v24  ;;  %v1788_v24 = vld [vmem:[%s13105_s28 + $0x91] sm:$0xff] }
 0x19a   : > { %9683 = vmatprep.mubr.msk.f32.mxu0 %vm12864_vm0, %v12865_v1  ;;  %11319 = vmatpush3.bf16.msra.mxu0 %v11318_v26  ;;  %v444_v26 = vld [vmem:[%s13105_s28 + $0x3f] sm:$0xff] }
 0x19b   : > { %11320 = vmatprep.subr.bf16.mxu0 %v12863_v0  ;;  %9061 = vmatmul.mubr.f32.gmra.mrb[4].mxu1 %v439_v11  ;;  %v466_v11 = vld [vmem:[%s13105_s28 + $0xef] sm:$0xff] }
 0x19c   : > { %9063 = vmatprep.mubr.msk.f32.mxu1 %vm12864_vm0, %v12865_v1 }
 0x19d   : > { %9684 = vmatmul.mubr.f32.gmra.mrb[6].mxu0 %v1776_v32  ;;  %v447_v32 = vld [vmem:[%s13105_s28 + $0x57] sm:$0xff] }
 0x19e   : > { %9686 = vmatprep.mubr.msk.f32.mxu0 %vm12864_vm0, %v12865_v1  ;;  %11322 = vmatpush3.bf16.msra.mxu0 %v11321_v33  ;;  %v1792_v33 = vld [vmem:[%s13105_s28 + $0xb1] sm:$0xff] }
 0x19f   : > { %11323 = vmatprep.subr.bf16.mxu0 %v12863_v0  ;;  %9064 = vmatmul.mubr.f32.gmra.mrb[6].mxu1 %v440_v14  ;;  %v467_v14 = vld [vmem:[%s13105_s28 + $0xf7] sm:$0xff] }
 0x1a0   : > { %9066 = vmatprep.mubr.msk.f32.mxu1 %vm12864_vm0, %v12865_v1 }
 0x1a1   : > { %9687 = vmatmul.mubr.f32.gmra.mrb[8].mxu0 %v1777_v39  ;;  %v1795_v39 = vld [vmem:[%s13105_s28 + $0xc9] sm:$0xff] }
 0x1a2   : > { %9689 = vmatprep.mubr.msk.f32.mxu0 %vm12864_vm0, %v12865_v1  ;;  %11325 = vmatpush3.bf16.msra.mxu0 %v11324_v40  ;;  %v451_v40 = vld [vmem:[%s13105_s28 + $0x77] sm:$0xff] }
 0x1a3   : > { %11326 = vmatprep.subr.bf16.mxu0 %v12863_v0  ;;  %9067 = vmatmul.mubr.f32.gmra.mrb[8].mxu1 %v441_v17  ;;  %v468_v17 = vld [vmem:[%s13105_s28 + $0xff] sm:$0xff] }
 0x1a4   : > { %9069 = vmatprep.mubr.msk.f32.mxu1 %vm12864_vm0, %v12865_v1 }
 0x1a5   : > { %9690 = vmatmul.mubr.f32.gmra.mrb[10].mxu0 %v1778_v46  ;;  %v454_v46 = vld [vmem:[%s13105_s28 + $0x8f] sm:$0xff] }
 0x1a6   : > { %9692 = vmatprep.mubr.msk.f32.mxu0 %vm12864_vm0, %v12865_v1  ;;  %11328 = vmatpush3.bf16.msra.mxu0 %v11327_v47  ;;  %v1799_v47 = vld [vmem:[%s13105_s28 + $0xe9] sm:$0xff] }
 0x1a7   : > { %11329 = vmatprep.subr.bf16.mxu0 %v12863_v0  ;;  %9070 = vmatmul.mubr.f32.gmra.mrb[10].mxu1 %v442_v20  ;;  %v469_v20 = vld [vmem:[%s13105_s28 + $0x107] sm:$0xff] }
 0x1a8   : > { %9072 = vmatprep.mubr.msk.f32.mxu1 %vm12864_vm0, %v12865_v1 }
 0x1a9   : > { %9693 = vmatmul.mubr.f32.gmra.mrb[12].mxu0 %v1779_v53  ;;  %v1802_v53 = vld [vmem:[%s13105_s28 + $0x101] sm:$0xff] }
 0x1aa   : > { %9695 = vmatprep.mubr.msk.f32.mxu0 %vm12864_vm0, %v12865_v1  ;;  %11331 = vmatpush3.bf16.msra.mxu0 %v11330_v54  ;;  %v458_v54 = vld [vmem:[%s13105_s28 + $0xaf] sm:$0xff] }
 0x1ab   : > { %11332 = vmatprep.subr.bf16.mxu0 %v12863_v0  ;;  %9073 = vmatmul.mubr.f32.gmra.mrb[12].mxu1 %v443_v23  ;;  %v2554_v23 = vld [vmem:[#allocation6 + $0x308] sm:$0xff] }
 0x1ac   : > { %9075 = vmatprep.mubr.msk.f32.mxu1 %vm12864_vm0, %v12865_v1 }
 0x1ad   : > { %9696 = vmatmul.mubr.f32.gmra.mrb[14].mxu0 %v1780_v60  ;;  %v461_v60 = vld [vmem:[%s13105_s28 + $0xc7] sm:$0xff] }
 0x1ae   : > { %9698 = vmatprep.mubr.msk.f32.mxu0 %vm12864_vm0, %v12865_v1  ;;  %11334 = vmatpush3.bf16.msra.mxu0 %v11333_v61  ;;  %v1806_v61 = vld [vmem:[%s13105_s28 + $0x121] sm:$0xff] }
 0x1af   : > { %11335 = vmatprep.subr.bf16.mxu0 %v12863_v0  ;;  %9076 = vmatmul.mubr.f32.gmra.mrb[14].mxu1 %v444_v26 }
 0x1b0   : > { %9078 = vmatprep.mubr.msk.f32.mxu1 %vm12864_vm0, %v12865_v1 }
 0x1b1   : > { %9699 = vmatmul.mubr.f32.gmra.mrb[16].mxu0 %v1781_v3  ;;  %v1808_v3 = vld [vmem:[%s13105_s28 + $0x131] sm:$0xff] }
 0x1b2   : > { %9701 = vmatprep.mubr.msk.f32.mxu0 %vm12864_vm0, %v12865_v1 }
 0x1b3   : > { %9079 = vmatmul.mubr.f32.gmra.mrb[16].mxu1 %v445_v28  ;;  %v421_v28 = vld [vmem:[#allocation6] sm:$0xff] }
 0x1b4   : > { %9081 = vmatprep.mubr.msk.f32.mxu1 %vm12864_vm0, %v12865_v1 }
 0x1b5   : > { %9702 = vmatmul.mubr.f32.gmra.mrb[18].mxu0 %v1782_v6  ;;  %v1809_v6 = vld [vmem:[%s13105_s28 + $0x139] sm:$0xff] }
 0x1b6   : > { %9704 = vmatprep.mubr.msk.f32.mxu0 %vm12864_vm0, %v12865_v1 }
 0x1b7   : > { %9082 = vmatmul.mubr.f32.gmra.mrb[18].mxu1 %v446_v30  ;;  %v2556_v30 = vld [vmem:[#allocation6 + $0x318] sm:$0xff] }
 0x1b8   : > { %9084 = vmatprep.mubr.msk.f32.mxu1 %vm12864_vm0, %v12865_v1 }
 0x1b9   : > { %9705 = vmatmul.mubr.f32.gmra.mrb[20].mxu0 %v1783_v9  ;;  %v1810_v9 = vld [vmem:[%s13105_s28 + $0x141] sm:$0xff] }
 0x1ba   : > { %9707 = vmatprep.mubr.msk.f32.mxu0 %vm12864_vm0, %v12865_v1 }
 0x1bb   : > { %9085 = vmatmul.mubr.f32.gmra.mrb[20].mxu1 %v447_v32 }
 0x1bc   : > { %9087 = vmatprep.mubr.msk.f32.mxu1 %vm12864_vm0, %v12865_v1 }
 0x1bd   : > { %9708 = vmatmul.mubr.f32.gmra.mrb[22].mxu0 %v1784_v12  ;;  %v1811_v12 = vld [vmem:[%s13105_s28 + $0x149] sm:$0xff] }
 0x1be   : > { %9710 = vmatprep.mubr.msk.f32.mxu0 %vm12864_vm0, %v12865_v1 }
 0x1bf   : > { %9088 = vmatmul.mubr.f32.gmra.mrb[22].mxu1 %v448_v34 }
 0x1c0   : > { %9090 = vmatprep.mubr.msk.f32.mxu1 %vm12864_vm0, %v12865_v1 }
 0x1c1   : > { %9711 = vmatmul.mubr.f32.gmra.mrb[24].mxu0 %v1785_v15  ;;  %v1812_v15 = vld [vmem:[%s13105_s28 + $0x151] sm:$0xff] }
 0x1c2   : > { %9713 = vmatprep.mubr.msk.f32.mxu0 %vm12864_vm0, %v12865_v1 }
 0x1c3   : > { %9091 = vmatmul.mubr.f32.gmra.mrb[24].mxu1 %v449_v36  ;;  %v423_v36 = vld [vmem:[#allocation6 + $0x10] sm:$0xff] }
 0x1c4   : > { %9093 = vmatprep.mubr.msk.f32.mxu1 %vm12864_vm0, %v12865_v1 }
 0x1c5   : > { %9714 = vmatmul.mubr.f32.gmra.mrb[26].mxu0 %v1786_v18  ;;  %v1813_v18 = vld [vmem:[%s13105_s28 + $0x159] sm:$0x3f] }
 0x1c6   : > { %9716 = vmatprep.mubr.msk.f32.mxu0 %vm12864_vm0, %v12865_v1 }
 0x1c7   : > { %9094 = vmatmul.mubr.f32.gmra.mrb[26].mxu1 %v450_v38  ;;  %v2558_v38 = vld [vmem:[#allocation6 + $0x328] sm:$0xff] }
 0x1c8   : > { %9096 = vmatprep.mubr.msk.f32.mxu1 %vm12864_vm0, %v12865_v1 }
 0x1c9   : > { %9717 = vmatmul.mubr.f32.gmra.mrb[28].mxu0 %v1787_v21  ;;  %v2553_v21 = vld [vmem:[#allocation6 + $0x300] sm:$0xff] }
 0x1ca   : > { %9719 = vmatprep.mubr.msk.f32.mxu0 %vm12864_vm0, %v12865_v1  ;;  %v11336_v26 = vpack.c.bf16 %v2554_v23, %v2553_v21  ;;  %v2567_v21 = vld [vmem:[#allocation6 + $0x370] sm:$0xff]  ;;  %v2568_v23 = vld [vmem:[#allocation6 + $0x378] sm:$0xff] }
 0x1cb   : > { %9097 = vmatmul.mubr.f32.gmra.mrb[28].mxu1 %v451_v40 }
 0x1cc   : > { %9099 = vmatprep.mubr.msk.f32.mxu1 %vm12864_vm0, %v12865_v1 }
 0x1cd   : > { %9720 = vmatmul.mubr.f32.gmra.mrb[30].mxu0 %v1788_v24  ;;  %v2142_v24 = vld [vmem:[%s13105_s28 + $0x1a] sm:$0xff] }
 0x1ce   : > { %9722 = vmatprep.mubr.msk.f32.mxu0 %vm12864_vm0, %v12865_v1 }
 0x1cf   : > { %9100 = vmatmul.mubr.f32.gmra.mrb[30].mxu1 %v452_v42 }
 0x1d0   : > { %9102 = vmatprep.mubr.msk.f32.mxu1 %vm12864_vm0, %v12865_v1 }
 0x1d1   : > { %9723 = vmatmul.mubr.f32.gmra.mrb[32].mxu0 %v1789_v27  ;;  %v470_v27 = vld [vmem:[%s13105_s28 + $0x10f] sm:$0xff] }
 0x1d2   : > { %9725 = vmatprep.mubr.msk.f32.mxu0 %vm12864_vm0, %v12865_v1 }
 0x1d3   : > { %9103 = vmatmul.mubr.f32.gmra.mrb[32].mxu1 %v453_v44  ;;  %v425_v44 = vld [vmem:[#allocation6 + $0x20] sm:$0xff] }
 0x1d4   : > { %9105 = vmatprep.mubr.msk.f32.mxu1 %vm12864_vm0, %v12865_v1 }
 0x1d5   : > { %9726 = vmatmul.mubr.f32.gmra.mrb[34].mxu0 %v1790_v29  ;;  %v2555_v29 = vld [vmem:[#allocation6 + $0x310] sm:$0xff] }
 0x1d6   : > { %9728 = vmatprep.mubr.msk.f32.mxu0 %vm12864_vm0, %v12865_v1  ;;  %v11339_v34 = vpack.c.bf16 %v2556_v30, %v2555_v29  ;;  %v477_v29 = vld [vmem:[%s13105_s28 + $0x147] sm:$0x3f] }
 0x1d7   : > { %9106 = vmatmul.mubr.f32.gmra.mrb[34].mxu1 %v454_v46  ;;  %v2560_v46 = vld [vmem:[#allocation6 + $0x338] sm:$0xff]  ;;  %v435_v30 = vld [vmem:[#allocation6 + $0x70] sm:$0xff] }
 0x1d8   : > { %9108 = vmatprep.mubr.msk.f32.mxu1 %vm12864_vm0, %v12865_v1 }
 0x1d9   : > { %9729 = vmatmul.mubr.f32.gmra.mrb[36].mxu0 %v1791_v31  ;;  %v422_v31 = vld [vmem:[#allocation6 + $0x8] sm:$0xff] }
 0x1da   : > { %9731 = vmatprep.mubr.msk.f32.mxu0 %vm12864_vm0, %v12865_v1  ;;  %v11216_v32 = vpack.c.bf16 %v422_v31, %v421_v28  ;;  %v11357_v28 = vpack.c.bf16 %v2568_v23, %v2567_v21  ;;  %v436_v31 = vld [vmem:[#allocation6 + $0x78] sm:$0xff]  ;;  %v403_v21 = vld [vmem:[%s13105_s28 + $0xbe] sm:$0xff] }
 0x1db   : > { %9109 = vmatmul.mubr.f32.gmra.mrb[36].mxu1 %v455_v48  ;;  %v13956_v23 = vld [vmem:[%s13105_s28 + $0x11a] sm:$0xff] }
 0x1dc   : > { %9111 = vmatprep.mubr.msk.f32.mxu1 %vm12864_vm0, %v12865_v1  ;;  %11217 = vmatpush3.bf16.msra.mxu1 %v11216_v32  ;;  %v11237_v32 = vpack.c.bf16 %v436_v31, %v435_v30  ;;  %v406_v30 = vld [vmem:[%s13105_s28 + $0xd6] sm:$0xff] }
 0x1dd   : > { %9732 = vmatmul.mubr.f32.gmra.mrb[38].mxu0 %v1792_v33  ;;  %v2143_v33 = vld [vmem:[%s13105_s28 + $0x22] sm:$0xff]  ;;  %11218 = vmatprep.subr.bf16.mxu1 %v12863_v0  ;;  %v13983_v31 = vld [vmem:[%s13105_s28 + $0x132] sm:$0xff] }
 0x1de   : > { %9734 = vmatprep.mubr.msk.f32.mxu0 %vm12864_vm0, %v12865_v1 }
 0x1df   : > { %9112 = vmatmul.mubr.f32.gmra.mrb[38].mxu1 %v456_v50 }
 0x1e0   : > { %9114 = vmatprep.mubr.msk.f32.mxu1 %vm12864_vm0, %v12865_v1 }
 0x1e1   : > { %9735 = vmatmul.mubr.f32.gmra.mrb[40].mxu0 %v1793_v35  ;;  %v471_v35 = vld [vmem:[%s13105_s28 + $0x117] sm:$0xff] }
 0x1e2   : > { %9737 = vmatprep.mubr.msk.f32.mxu0 %vm12864_vm0, %v12865_v1 }
 0x1e3   : > { %9115 = vmatmul.mubr.f32.gmra.mrb[40].mxu1 %v457_v52  ;;  %v427_v52 = vld [vmem:[#allocation6 + $0x30] sm:$0xff] }
 0x1e4   : > { %9117 = vmatprep.mubr.msk.f32.mxu1 %vm12864_vm0, %v12865_v1 }
 0x1e5   : > { %9738 = vmatmul.mubr.f32.gmra.mrb[42].mxu0 %v1794_v37  ;;  %v2557_v37 = vld [vmem:[#allocation6 + $0x320] sm:$0xff] }
 0x1e6   : > { %9740 = vmatprep.mubr.msk.f32.mxu0 %vm12864_vm0, %v12865_v1  ;;  %v11342_v42 = vpack.c.bf16 %v2558_v38, %v2557_v37  ;;  %v13745_v37 = vld [vmem:[%s13105_s28 + $0x6a] sm:$0xff]  ;;  %v382_v38 = vld [vmem:[%s13105_s28 + $0x16] sm:$0xff] }
 0x1e7   : > { %9118 = vmatmul.mubr.f32.gmra.mrb[42].mxu1 %v458_v54  ;;  %v2562_v54 = vld [vmem:[#allocation6 + $0x348] sm:$0xff] }
 0x1e8   : > { %9120 = vmatprep.mubr.msk.f32.mxu1 %vm12864_vm0, %v12865_v1 }
 0x1e9   : > { %9741 = vmatmul.mubr.f32.gmra.mrb[44].mxu0 %v1795_v39  ;;  %v424_v39 = vld [vmem:[#allocation6 + $0x18] sm:$0xff] }
 0x1ea   : > { %9743 = vmatprep.mubr.msk.f32.mxu0 %vm12864_vm0, %v12865_v1  ;;  %v11219_v40 = vpack.c.bf16 %v424_v39, %v423_v36  ;;  %v381_v36 = vld [vmem:[%s13105_s28 + $0xe] sm:$0xff]  ;;  %v383_v39 = vld [vmem:[%s13105_s28 + $0x1e] sm:$0xff] }
 0x1eb   : > { %9121 = vmatmul.mubr.f32.gmra.mrb[44].mxu1 %v459_v56 }
 0x1ec   : > { %9123 = vmatprep.mubr.msk.f32.mxu1 %vm12864_vm0, %v12865_v1  ;;  %11220 = vmatpush3.bf16.msra.mxu1 %v11219_v40  ;;  %v384_v40 = vld [vmem:[%s13105_s28 + $0x26] sm:$0xff] }
 0x1ed   : > { %9744 = vmatmul.mubr.f32.gmra.mrb[46].mxu0 %v1796_v41  ;;  %v13659_v41 = vld [vmem:[%s13105_s28 + $0x2a] sm:$0xff]  ;;  %11221 = vmatprep.subr.bf16.mxu1 %v12863_v0 }
 0x1ee   : > { %9746 = vmatprep.mubr.msk.f32.mxu0 %vm12864_vm0, %v12865_v1 }
 0x1ef   : > { %9124 = vmatmul.mubr.f32.gmra.mrb[46].mxu1 %v460_v58 }
 0x1f0   : > { %9126 = vmatprep.mubr.msk.f32.mxu1 %vm12864_vm0, %v12865_v1 }
 0x1f1   : > { %9747 = vmatmul.mubr.f32.gmra.mrb[48].mxu0 %v1797_v43  ;;  %v472_v43 = vld [vmem:[%s13105_s28 + $0x11f] sm:$0xff] }
 0x1f2   : > { %9749 = vmatprep.mubr.msk.f32.mxu0 %vm12864_vm0, %v12865_v1 }
 0x1f3   : > { %9127 = vmatmul.mubr.f32.gmra.mrb[48].mxu1 %v461_v60  ;;  %v429_v60 = vld [vmem:[#allocation6 + $0x40] sm:$0xff] }
 0x1f4   : > { %9129 = vmatprep.mubr.msk.f32.mxu1 %vm12864_vm0, %v12865_v1 }
 0x1f5   : > { %9750 = vmatmul.mubr.f32.gmra.mrb[50].mxu0 %v1798_v45  ;;  %v2559_v45 = vld [vmem:[#allocation6 + $0x330] sm:$0xff] }
 0x1f6   : > { %9752 = vmatprep.mubr.msk.f32.mxu0 %vm12864_vm0, %v12865_v1  ;;  %v11345_v50 = vpack.c.bf16 %v2560_v46, %v2559_v45  ;;  %v388_v45 = vld [vmem:[%s13105_s28 + $0x46] sm:$0xff]  ;;  %v389_v46 = vld [vmem:[%s13105_s28 + $0x4e] sm:$0xff] }
 0x1f7   : > { %9130 = vmatmul.mubr.f32.gmra.mrb[50].mxu1 %v462_v62  ;;  %v2564_v62 = vld [vmem:[#allocation6 + $0x358] sm:$0xff] }
 0x1f8   : > { %9132 = vmatprep.mubr.msk.f32.mxu1 %vm12864_vm0, %v12865_v1 }
 0x1f9   : > { %9753 = vmatmul.mubr.f32.gmra.mrb[52].mxu0 %v1799_v47  ;;  %v426_v47 = vld [vmem:[#allocation6 + $0x28] sm:$0xff] }
 0x1fa   : > { %9755 = vmatprep.mubr.msk.f32.mxu0 %vm12864_vm0, %v12865_v1  ;;  %v11222_v48 = vpack.c.bf16 %v426_v47, %v425_v44  ;;  %v387_v44 = vld [vmem:[%s13105_s28 + $0x3e] sm:$0xff]  ;;  %v390_v47 = vld [vmem:[%s13105_s28 + $0x56] sm:$0xff] }
 0x1fb   : > { %9133 = vmatmul.mubr.f32.gmra.mrb[52].mxu1 %v463_v2 }
 0x1fc   : > { %9135 = vmatprep.mubr.msk.f32.mxu1 %vm12864_vm0, %v12865_v1  ;;  %11223 = vmatpush3.bf16.msra.mxu1 %v11222_v48  ;;  %v13839_v48 = vld [vmem:[%s13105_s28 + $0xb2] sm:$0xff] }
 0x1fd   : > { %9756 = vmatmul.mubr.f32.gmra.mrb[54].mxu0 %v1800_v49  ;;  %v13670_v49 = vld [vmem:[%s13105_s28 + $0x32] sm:$0xff]  ;;  %11224 = vmatprep.subr.bf16.mxu1 %v12863_v0 }
 0x1fe   : > { %9758 = vmatprep.mubr.msk.f32.mxu0 %vm12864_vm0, %v12865_v1 }
 0x1ff   : > { %9136 = vmatmul.mubr.f32.gmra.mrb[54].mxu1 %v464_v4 }
 0x200   : > { %9138 = vmatprep.mubr.msk.f32.mxu1 %vm12864_vm0, %v12865_v1 }
 0x201   : > { %9759 = vmatmul.mubr.f32.gmra.mrb[56].mxu0 %v1801_v51  ;;  %v473_v51 = vld [vmem:[%s13105_s28 + $0x127] sm:$0xff] }
 0x202   : > { %9761 = vmatprep.mubr.msk.f32.mxu0 %vm12864_vm0, %v12865_v1 }
 0x203   : > { %9139 = vmatmul.mubr.f32.gmra.mrb[56].mxu1 %v465_v8  ;;  %v431_v8 = vld [vmem:[#allocation6 + $0x50] sm:$0xff] }
 0x204   : > { %9141 = vmatprep.mubr.msk.f32.mxu1 %vm12864_vm0, %v12865_v1 }
 0x205   : > { %9762 = vmatmul.mubr.f32.gmra.mrb[58].mxu0 %v1802_v53  ;;  %v2561_v53 = vld [vmem:[#allocation6 + $0x340] sm:$0xff] }
 0x206   : > { %9764 = vmatprep.mubr.msk.f32.mxu0 %vm12864_vm0, %v12865_v1  ;;  %v11348_v58 = vpack.c.bf16 %v2562_v54, %v2561_v53  ;;  %v13857_v53 = vld [vmem:[%s13105_s28 + $0xc2] sm:$0xff]  ;;  %v393_v54 = vld [vmem:[%s13105_s28 + $0x6e] sm:$0xff] }
 0x207   : > { %9142 = vmatmul.mubr.f32.gmra.mrb[58].mxu1 %v466_v11  ;;  %v2566_v11 = vld [vmem:[#allocation6 + $0x368] sm:$0xff] }
 0x208   : > { %9144 = vmatprep.mubr.msk.f32.mxu1 %vm12864_vm0, %v12865_v1 }
 0x209   : > { %9765 = vmatmul.mubr.f32.gmra.mrb[60].mxu0 %v1803_v55  ;;  %v428_v55 = vld [vmem:[#allocation6 + $0x38] sm:$0xff] }
 0x20a   : > { %9767 = vmatprep.mubr.msk.f32.mxu0 %vm12864_vm0, %v12865_v1  ;;  %v11225_v56 = vpack.c.bf16 %v428_v55, %v427_v52  ;;  %v392_v52 = vld [vmem:[%s13105_s28 + $0x66] sm:$0xff] }
 0x20b   : > { %9145 = vmatmul.mubr.f32.gmra.mrb[60].mxu1 %v467_v14  ;;  %v13866_v55 = vld [vmem:[%s13105_s28 + $0xca] sm:$0xff] }
 0x20c   : > { %9147 = vmatprep.mubr.msk.f32.mxu1 %vm12864_vm0, %v12865_v1  ;;  %11226 = vmatpush3.bf16.msra.mxu1 %v11225_v56  ;;  %v394_v56 = vld [vmem:[%s13105_s28 + $0x76] sm:$0xff] }
 0x20d   : > { %9768 = vmatmul.mubr.f32.gmra.mrb[62].mxu0 %v1804_v57  ;;  %v13681_v57 = vld [vmem:[%s13105_s28 + $0x3a] sm:$0xff]  ;;  %11227 = vmatprep.subr.bf16.mxu1 %v12863_v0 }
 0x20e   : > { %9770 = vmatprep.mubr.msk.f32.mxu0 %vm12864_vm0, %v12865_v1 }
 0x20f   : > { %9148 = vmatmul.mubr.f32.gmra.mrb[62].mxu1 %v468_v17 }
 0x210   : > { %9150 = vmatprep.mubr.msk.f32.mxu1 %vm12864_vm0, %v12865_v1 }
 0x211   : > { %9771 = vmatmul.mubr.f32.gmra.mrb[64].mxu0 %v1805_v59  ;;  %v474_v59 = vld [vmem:[%s13105_s28 + $0x12f] sm:$0xff] }
 0x212   : > { %9773 = vmatprep.mubr.msk.f32.mxu0 %vm12864_vm0, %v12865_v1 }
 0x213   : > { %9151 = vmatmul.mubr.f32.gmra.mrb[64].mxu1 %v469_v20  ;;  %v433_v20 = vld [vmem:[#allocation6 + $0x60] sm:$0xff] }
 0x214   : > { %9153 = vmatprep.mubr.msk.f32.mxu1 %vm12864_vm0, %v12865_v1 }
 0x215   : > { %9774 = vmatmul.mubr.f32.gmra.mrb[66].mxu0 %v1806_v61  ;;  %v2563_v61 = vld [vmem:[#allocation6 + $0x350] sm:$0xff] }
 0x216   : > { %9776 = vmatprep.mubr.msk.f32.mxu0 %vm12864_vm0, %v12865_v1  ;;  %v11351_v4 = vpack.c.bf16 %v2564_v62, %v2563_v61  ;;  %v396_v61 = vld [vmem:[%s13105_s28 + $0x86] sm:$0xff] }
 0x217   : > { %9154 = vmatmul.mubr.f32.gmra.mrb[66].mxu1 %v470_v27  ;;  %v13714_v27 = vld [vmem:[%s13105_s28 + $0x52] sm:$0xff]  ;;  %v13893_v62 = vld [vmem:[%s13105_s28 + $0xe2] sm:$0xff] }
 0x218   : > { %9156 = vmatprep.mubr.msk.f32.mxu1 %vm12864_vm0, %v12865_v1 }
 0x219   : > { %9777 = vmatmul.mubr.f32.gmra.mrb[68].mxu0 %v1807_v63  ;;  %v430_v63 = vld [vmem:[#allocation6 + $0x48] sm:$0xff] }
 0x21a   : > { %9779 = vmatprep.mubr.msk.f32.mxu0 %vm12864_vm0, %v12865_v1  ;;  %v11228_v2 = vpack.c.bf16 %v430_v63, %v429_v60  ;;  %v13884_v60 = vld [vmem:[%s13105_s28 + $0xda] sm:$0xff]  ;;  %v397_v63 = vld [vmem:[%s13105_s28 + $0x8e] sm:$0xff] }
 0x21b   : > { %9157 = vmatmul.mubr.f32.gmra.mrb[68].mxu1 %v471_v35  ;;  %v13734_v35 = vld [vmem:[%s13105_s28 + $0x62] sm:$0xff] }
 0x21c   : > { %9159 = vmatprep.mubr.msk.f32.mxu1 %vm12864_vm0, %v12865_v1  ;;  %11229 = vmatpush3.bf16.msra.mxu1 %v11228_v2  ;;  %v13902_v2 = vld [vmem:[%s13105_s28 + $0xea] sm:$0xff] }
 0x21d   : > { %9780 = vmatmul.mubr.f32.gmra.mrb[70].mxu0 %v1808_v3  ;;  %v13692_v3 = vld [vmem:[%s13105_s28 + $0x42] sm:$0xff]  ;;  %11230 = vmatprep.subr.bf16.mxu1 %v12863_v0 }
 0x21e   : > { %9782 = vmatprep.mubr.msk.f32.mxu0 %vm12864_vm0, %v12865_v1 }
 0x21f   : > { %9160 = vmatmul.mubr.f32.gmra.mrb[70].mxu1 %v472_v43  ;;  %v386_v43 = vld [vmem:[%s13105_s28 + $0x36] sm:$0xff] }
 0x220   : > { %9162 = vmatprep.mubr.msk.f32.mxu1 %vm12864_vm0, %v12865_v1 }
 0x221   : > { %9783 = vmatmul.mubr.f32.gmra.mrb[72].mxu0 %v1809_v6  ;;  %v475_v6 = vld [vmem:[%s13105_s28 + $0x137] sm:$0xff] }
 0x222   : > { %9785 = vmatprep.mubr.msk.f32.mxu0 %vm12864_vm0, %v12865_v1 }
 0x223   : > { %9163 = vmatmul.mubr.f32.gmra.mrb[72].mxu1 %v473_v51  ;;  %v13848_v51 = vld [vmem:[%s13105_s28 + $0xba] sm:$0xff] }
 0x224   : > { %9165 = vmatprep.mubr.msk.f32.mxu1 %vm12864_vm0, %v12865_v1 }
 0x225   : > { %9786 = vmatmul.mubr.f32.gmra.mrb[74].mxu0 %v1810_v9  ;;  %v2565_v9 = vld [vmem:[#allocation6 + $0x360] sm:$0xff] }
 0x226   : > { %9788 = vmatprep.mubr.msk.f32.mxu0 %vm12864_vm0, %v12865_v1  ;;  %v11354_v17 = vpack.c.bf16 %v2566_v11, %v2565_v9  ;;  %v13920_v9 = vld [vmem:[%s13105_s28 + $0xfa] sm:$0xff]  ;;  %v400_v11 = vld [vmem:[%s13105_s28 + $0xa6] sm:$0xff] }
 0x227   : > { %9166 = vmatmul.mubr.f32.gmra.mrb[74].mxu1 %v474_v59  ;;  %v395_v59 = vld [vmem:[%s13105_s28 + $0x7e] sm:$0xff] }
 0x228   : > { %9168 = vmatprep.mubr.msk.f32.mxu1 %vm12864_vm0, %v12865_v1 }
 0x229   : > { %9789 = vmatmul.mubr.f32.gmra.mrb[76].mxu0 %v1811_v12  ;;  %v432_v12 = vld [vmem:[#allocation6 + $0x58] sm:$0xff] }
 0x22a   : > { %9791 = vmatprep.mubr.msk.f32.mxu0 %vm12864_vm0, %v12865_v1  ;;  %v11231_v14 = vpack.c.bf16 %v432_v12, %v431_v8  ;;  %v399_v8 = vld [vmem:[%s13105_s28 + $0x9e] sm:$0xff] }
 0x22b   : > { %9169 = vmatmul.mubr.f32.gmra.mrb[76].mxu1 %v475_v6  ;;  %v13911_v6 = vld [vmem:[%s13105_s28 + $0xf2] sm:$0xff]  ;;  %v13929_v12 = vld [vmem:[%s13105_s28 + $0x102] sm:$0xff] }
 0x22c   : > { %9171 = vmatprep.mubr.msk.f32.mxu1 %vm12864_vm0, %v12865_v1  ;;  %11232 = vmatpush3.bf16.msra.mxu1 %v11231_v14  ;;  %v401_v14 = vld [vmem:[%s13105_s28 + $0xae] sm:$0xff] }
 0x22d   : > { %9792 = vmatmul.mubr.f32.gmra.mrb[78].mxu0 %v1812_v15  ;;  %v13703_v15 = vld [vmem:[%s13105_s28 + $0x4a] sm:$0xff]  ;;  %11233 = vmatprep.subr.bf16.mxu1 %v12863_v0 }
 0x22e   : > { %9794 = vmatprep.mubr.msk.f32.mxu0 %vm12864_vm0, %v12865_v1 }
 0x231   : > { %9795 = vmatmul.mubr.f32.gmra.mrb[80].mxu0 %v1813_v18  ;;  %v476_v18 = vld [vmem:[%s13105_s28 + $0x13f] sm:$0xff] }
 0x232   : > { %9829 = vmatprep.mubr.msk.f32.mxu0 %vm12864_vm0, %v12865_v1  ;;  %9172 = vmatmul.mubr.f32.gmra.mrb[78].mxu1 %v476_v18  ;;  %v402_v18 = vld [vmem:[%s13105_s28 + $0xb6] sm:$0xff] }
 0x233   : > { %9174 = vmatprep.mubr.msk.f32.mxu1 %vm12864_vm0, %v12865_v1 }
 0x235   : > { %9830 = vmatmul.mubr.f32.vlgmr.msra.gmra.mrb[0].mxu0 %v2142_v24  ;;  %v434_v24 = vld [vmem:[#allocation6 + $0x68] sm:$0xff] }
 0x236   : > { %11337 = vmatpush3.bf16.msra.mxu0 %v11336_v26  ;;  %9832 = vmatprep.mubr.msk.f32.mxu0 %vm12864_vm0, %v12865_v1  ;;  %v11234_v26 = vpack.c.bf16 %v434_v24, %v433_v20  ;;  %v13947_v20 = vld [vmem:[%s13105_s28 + $0x112] sm:$0xff]  ;;  %v404_v24 = vld [vmem:[%s13105_s28 + $0xc6] sm:$0xff] }
 0x237   : > { %11338 = vmatprep.subr.bf16.mxu0 %v12863_v0  ;;  %9175 = vmatmul.mubr.f32.gmra.mrb[80].mxu1 %v477_v29  ;;  %v13974_v29 = vld [vmem:[%s13105_s28 + $0x12a] sm:$0xff] }
 0x238   : > { %11235 = vmatpush3.bf16.msra.mxu1 %v11234_v26  ;;  %9209 = vmatprep.mubr.msk.f32.mxu1 %vm12864_vm0, %v12865_v1  ;;  %v13965_v26 = vld [vmem:[%s13105_s28 + $0x122] sm:$0xff] }
 0x239   : > { %9833 = vmatmul.mubr.f32.gmra.mrb[2].mxu0 %v2143_v33  ;;  %11236 = vmatprep.subr.bf16.mxu1 %v12863_v0  ;;  %v13725_v33 = vld [vmem:[%s13105_s28 + $0x5a] sm:$0xff] }
 0x23a   : > { %9835 = vmatprep.mubr.msk.f32.mxu0 %vm12864_vm0, %v12865_v1  ;;  %11340 = vmatpush3.bf16.msra.mxu0 %v11339_v34  ;;  %v380_v34 = vld [vmem:[%s13105_s28 + $0x6] sm:$0xff] }
 0x23b   : > { %11341 = vmatprep.subr.bf16.mxu0 %v12863_v0 }
 0x23c   : > { %11238 = vmatpush3.bf16.msra.mxu1 %v11237_v32  ;;  %v407_v32 = vld [vmem:[%s13105_s28 + $0xde] sm:$0xff] }
 0x23d   : > { %9836 = vmatmul.mubr.f32.gmra.mrb[4].mxu0 %v13659_v41  ;;  %11695 = vmatprep.subr.bf16.mxu1 %v12863_v0 }
 0x23e   : > { %9838 = vmatprep.mubr.msk.f32.mxu0 %vm12864_vm0, %v12865_v1  ;;  %11343 = vmatpush3.bf16.msra.mxu0 %v11342_v42  ;;  %v385_v42 = vld [vmem:[%s13105_s28 + $0x2e] sm:$0xff] }
 0x23f   : > { %11344 = vmatprep.subr.bf16.mxu0 %v12863_v0  ;;  %9210 = vmatmul.mubr.f32.vlgmr.msra.gmra.mrb[0].mxu1 %v380_v34  ;;  %v13992_v34 = vld [vmem:[%s13105_s28 + $0x13a] sm:$0xff] }
 0x240   : > { %9212 = vmatprep.mubr.msk.f32.mxu1 %vm12864_vm0, %v12865_v1  ;;  %11703 = vmatpush3.bf16.msra.mxu1 %v13121_v5  ;;  %v13756_v5 = vld [vmem:[%s13105_s28 + $0x72] sm:$0xff] }
 0x241   : > { %9839 = vmatmul.mubr.f32.gmra.mrb[6].mxu0 %v13670_v49  ;;  %11696 = vmatprep.subr.bf16.mxu1 %v12863_v0 }
 0x242   : > { %9841 = vmatprep.mubr.msk.f32.mxu0 %vm12864_vm0, %v12865_v1  ;;  %11346 = vmatpush3.bf16.msra.mxu0 %v11345_v50  ;;  %v391_v50 = vld [vmem:[%s13105_s28 + $0x5e] sm:$0xff] }
 0x243   : > { %11347 = vmatprep.subr.bf16.mxu0 %v12863_v0  ;;  %9213 = vmatmul.mubr.f32.gmra.mrb[2].mxu1 %v381_v36  ;;  %v408_v36 = vld [vmem:[%s13105_s28 + $0xe6] sm:$0xff] }
 0x244   : > { %9215 = vmatprep.mubr.msk.f32.mxu1 %vm12864_vm0, %v12865_v1  ;;  %11704 = vmatpush3.bf16.msra.mxu1 %v13124_v7  ;;  %v13767_v7 = vld [vmem:[%s13105_s28 + $0x7a] sm:$0xff] }
 0x245   : > { %9842 = vmatmul.mubr.f32.gmra.mrb[8].mxu0 %v13681_v57  ;;  %11697 = vmatprep.subr.bf16.mxu1 %v12863_v0 }
 0x246   : > { %9844 = vmatprep.mubr.msk.f32.mxu0 %vm12864_vm0, %v12865_v1  ;;  %11349 = vmatpush3.bf16.msra.mxu0 %v11348_v58  ;;  %v13875_v58 = vld [vmem:[%s13105_s28 + $0xd2] sm:$0xff] }
 0x247   : > { %11350 = vmatprep.subr.bf16.mxu0 %v12863_v0  ;;  %9216 = vmatmul.mubr.f32.gmra.mrb[4].mxu1 %v382_v38  ;;  %v14001_v38 = vld [vmem:[%s13105_s28 + $0x142] sm:$0xff] }
 0x248   : > { %9218 = vmatprep.mubr.msk.f32.mxu1 %vm12864_vm0, %v12865_v1  ;;  %11705 = vmatpush3.bf16.msra.mxu1 %v13128_v10  ;;  %v13778_v10 = vld [vmem:[%s13105_s28 + $0x82] sm:$0xff] }
 0x249   : > { %9845 = vmatmul.mubr.f32.gmra.mrb[10].mxu0 %v13692_v3  ;;  %11698 = vmatprep.subr.bf16.mxu1 %v12863_v0 }
 0x24a   : > { %9847 = vmatprep.mubr.msk.f32.mxu0 %vm12864_vm0, %v12865_v1  ;;  %11352 = vmatpush3.bf16.msra.mxu0 %v11351_v4  ;;  %v398_v4 = vld [vmem:[%s13105_s28 + $0x96] sm:$0xff] }
 0x24b   : > { %11353 = vmatprep.subr.bf16.mxu0 %v12863_v0  ;;  %9219 = vmatmul.mubr.f32.gmra.mrb[6].mxu1 %v383_v39  ;;  %v409_v39 = vld [vmem:[%s13105_s28 + $0xee] sm:$0xff] }
 0x24c   : > { %9221 = vmatprep.mubr.msk.f32.mxu1 %vm12864_vm0, %v12865_v1  ;;  %11706 = vmatpush3.bf16.msra.mxu1 %v13132_v13  ;;  %v13789_v13 = vld [vmem:[%s13105_s28 + $0x8a] sm:$0xff] }
 0x24d   : > { %9848 = vmatmul.mubr.f32.gmra.mrb[12].mxu0 %v13703_v15  ;;  %11699 = vmatprep.subr.bf16.mxu1 %v12863_v0 }
 0x24e   : > { %9850 = vmatprep.mubr.msk.f32.mxu0 %vm12864_vm0, %v12865_v1  ;;  %11355 = vmatpush3.bf16.msra.mxu0 %v11354_v17  ;;  %v13938_v17 = vld [vmem:[%s13105_s28 + $0x10a] sm:$0xff] }
 0x24f   : > { %11356 = vmatprep.subr.bf16.mxu0 %v12863_v0  ;;  %9222 = vmatmul.mubr.f32.gmra.mrb[8].mxu1 %v384_v40  ;;  %v14010_v40 = vld [vmem:[%s13105_s28 + $0x14a] sm:$0xff] }
 0x250   : > { %9224 = vmatprep.mubr.msk.f32.mxu1 %vm12864_vm0, %v12865_v1  ;;  %11707 = vmatpush3.bf16.msra.mxu1 %v13136_v16  ;;  %v13800_v16 = vld [vmem:[%s13105_s28 + $0x92] sm:$0xff] }
 0x251   : > { %9851 = vmatmul.mubr.f32.gmra.mrb[14].mxu0 %v13714_v27  ;;  %11700 = vmatprep.subr.bf16.mxu1 %v12863_v0 }
 0x252   : > { %9853 = vmatprep.mubr.msk.f32.mxu0 %vm12864_vm0, %v12865_v1  ;;  %11358 = vmatpush3.bf16.msra.mxu0 %v11357_v28  ;;  %v405_v28 = vld [vmem:[%s13105_s28 + $0xce] sm:$0xff] }
 0x253   : > { %11359 = vmatprep.subr.bf16.mxu0 %v12863_v0  ;;  %9225 = vmatmul.mubr.f32.gmra.mrb[10].mxu1 %v385_v42  ;;  %v410_v42 = vld [vmem:[%s13105_s28 + $0xf6] sm:$0xff] }
 0x254   : > { %9227 = vmatprep.mubr.msk.f32.mxu1 %vm12864_vm0, %v12865_v1  ;;  %11708 = vmatpush3.bf16.msra.mxu1 %v13140_v19  ;;  %v13811_v19 = vld [vmem:[%s13105_s28 + $0x9a] sm:$0xff] }
 0x255   : > { %9854 = vmatmul.mubr.f32.gmra.mrb[16].mxu0 %v13725_v33  ;;  %11701 = vmatprep.subr.bf16.mxu1 %v12863_v0 }
 0x256   : > { %9856 = vmatprep.mubr.msk.f32.mxu0 %vm12864_vm0, %v12865_v1 }
 0x257   : > { %9228 = vmatmul.mubr.f32.gmra.mrb[12].mxu1 %v386_v43  ;;  %v14019_v43 = vld [vmem:[%s13105_s28 + $0x152] sm:$0xff] }
 0x258   : > { %9230 = vmatprep.mubr.msk.f32.mxu1 %vm12864_vm0, %v12865_v1  ;;  %11709 = vmatpush3.bf16.msra.mxu1 %v13144_v22  ;;  %v13821_v22 = vld [vmem:[%s13105_s28 + $0xa2] sm:$0xff] }
 0x259   : > { %9857 = vmatmul.mubr.f32.gmra.mrb[18].mxu0 %v13734_v35  ;;  %11702 = vmatprep.subr.bf16.mxu1 %v12863_v0 }
 0x25a   : > { %9859 = vmatprep.mubr.msk.f32.mxu0 %vm12864_vm0, %v12865_v1 }
 0x25b   : > { %9231 = vmatmul.mubr.f32.gmra.mrb[14].mxu1 %v387_v44  ;;  %v411_v44 = vld [vmem:[%s13105_s28 + $0xfe] sm:$0xff] }
 0x25c   : > { %9233 = vmatprep.mubr.msk.f32.mxu1 %vm12864_vm0, %v12865_v1  ;;  %11710 = vmatpush3.bf16.msra.mxu1 %v13148_v25  ;;  %v13830_v25 = vld [vmem:[%s13105_s28 + $0xaa] sm:$0xff] }
 0x25d   : > { %9860 = vmatmul.mubr.f32.gmra.mrb[20].mxu0 %v13745_v37 }
 0x25e   : > { %9862 = vmatprep.mubr.msk.f32.mxu0 %vm12864_vm0, %v12865_v1 }
 0x25f   : > { %9234 = vmatmul.mubr.f32.gmra.mrb[16].mxu1 %v388_v45  ;;  %v2182_v45 = vld [vmem:[%s13105_s28 + $0x15a] sm:$0x3f] }
 0x260   : > { %9236 = vmatprep.mubr.msk.f32.mxu1 %vm12864_vm0, %v12865_v1 }
 0x261   : > { %9863 = vmatmul.mubr.f32.gmra.mrb[22].mxu0 %v13756_v5 }
 0x262   : > { %9865 = vmatprep.mubr.msk.f32.mxu0 %vm12864_vm0, %v12865_v1 }
 0x263   : > { %9237 = vmatmul.mubr.f32.gmra.mrb[18].mxu1 %v389_v46  ;;  %v2922_v46 = vld [vmem:[#allocation6 + $0x380] sm:$0xff] }
 0x264   : > { %9239 = vmatprep.mubr.msk.f32.mxu1 %vm12864_vm0, %v12865_v1 }
 0x265   : > { %9866 = vmatmul.mubr.f32.gmra.mrb[24].mxu0 %v13767_v7 }
 0x266   : > { %9868 = vmatprep.mubr.msk.f32.mxu0 %vm12864_vm0, %v12865_v1 }
 0x267   : > { %9240 = vmatmul.mubr.f32.gmra.mrb[20].mxu1 %v390_v47  ;;  %v2923_v47 = vld [vmem:[#allocation6 + $0x388] sm:$0xff] }
 0x268   : > { %9242 = vmatprep.mubr.msk.f32.mxu1 %vm12864_vm0, %v12865_v1 }
 0x269   : > { %9869 = vmatmul.mubr.f32.gmra.mrb[26].mxu0 %v13778_v10 }
 0x26a   : > { %9871 = vmatprep.mubr.msk.f32.mxu0 %vm12864_vm0, %v12865_v1 }
 0x26b   : > { %9243 = vmatmul.mubr.f32.gmra.mrb[22].mxu1 %v391_v50  ;;  %v412_v50 = vld [vmem:[%s13105_s28 + $0x106] sm:$0xff] }
 0x26c   : > { %9245 = vmatprep.mubr.msk.f32.mxu1 %vm12864_vm0, %v12865_v1 }
 0x26d   : > { %9872 = vmatmul.mubr.f32.gmra.mrb[28].mxu0 %v13789_v13 }
 0x26e   : > { %9874 = vmatprep.mubr.msk.f32.mxu0 %vm12864_vm0, %v12865_v1 }
 0x26f   : > { %9246 = vmatmul.mubr.f32.gmra.mrb[24].mxu1 %v392_v52  ;;  %v11360_v52 = vpack.c.bf16 %v2923_v47, %v2922_v46  ;;  %v2937_v46 = vld [vmem:[#allocation6 + $0x3f8] sm:$0xff]  ;;  %v419_v47 = vld [vmem:[%s13105_s28 + $0x13e] sm:$0xff] }
 0x270   : > { %9248 = vmatprep.mubr.msk.f32.mxu1 %vm12864_vm0, %v12865_v1 }
 0x271   : > { %9875 = vmatmul.mubr.f32.gmra.mrb[30].mxu0 %v13800_v16 }
 0x272   : > { %9877 = vmatprep.mubr.msk.f32.mxu0 %vm12864_vm0, %v12865_v1 }
 0x273   : > { %9249 = vmatmul.mubr.f32.gmra.mrb[26].mxu1 %v393_v54  ;;  %v2924_v54 = vld [vmem:[#allocation6 + $0x390] sm:$0xff] }
 0x274   : > { %9251 = vmatprep.mubr.msk.f32.mxu1 %vm12864_vm0, %v12865_v1 }
 0x275   : > { %9878 = vmatmul.mubr.f32.gmra.mrb[32].mxu0 %v13811_v19 }
 0x276   : > { %9880 = vmatprep.mubr.msk.f32.mxu0 %vm12864_vm0, %v12865_v1 }
 0x277   : > { %9252 = vmatmul.mubr.f32.gmra.mrb[28].mxu1 %v394_v56  ;;  %v2925_v56 = vld [vmem:[#allocation6 + $0x398] sm:$0xff] }
 0x278   : > { %9254 = vmatprep.mubr.msk.f32.mxu1 %vm12864_vm0, %v12865_v1 }
 0x279   : > { %9881 = vmatmul.mubr.f32.gmra.mrb[34].mxu0 %v13821_v22 }
 0x27a   : > { %9883 = vmatprep.mubr.msk.f32.mxu0 %vm12864_vm0, %v12865_v1 }
 0x27b   : > { %9255 = vmatmul.mubr.f32.gmra.mrb[30].mxu1 %v395_v59  ;;  %v413_v59 = vld [vmem:[%s13105_s28 + $0x10e] sm:$0xff] }
 0x27c   : > { %9257 = vmatprep.mubr.msk.f32.mxu1 %vm12864_vm0, %v12865_v1 }
 0x27d   : > { %9884 = vmatmul.mubr.f32.gmra.mrb[36].mxu0 %v13830_v25 }
 0x27e   : > { %9886 = vmatprep.mubr.msk.f32.mxu0 %vm12864_vm0, %v12865_v1 }
 0x27f   : > { %9258 = vmatmul.mubr.f32.gmra.mrb[32].mxu1 %v396_v61  ;;  %v11363_v61 = vpack.c.bf16 %v2925_v56, %v2924_v54  ;;  %v2881_v54 = vld [vmem:[%s13105_s28 + $0x33] sm:$0xff] }
 0x280   : > { %9260 = vmatprep.mubr.msk.f32.mxu1 %vm12864_vm0, %v12865_v1 }
 0x281   : > { %9887 = vmatmul.mubr.f32.gmra.mrb[38].mxu0 %v13839_v48 }
 0x282   : > { %9889 = vmatprep.mubr.msk.f32.mxu0 %vm12864_vm0, %v12865_v1 }
 0x283   : > { %9261 = vmatmul.mubr.f32.gmra.mrb[34].mxu1 %v397_v63  ;;  %v2926_v63 = vld [vmem:[#allocation6 + $0x3a0] sm:$0xff] }
 0x284   : > { %9263 = vmatprep.mubr.msk.f32.mxu1 %vm12864_vm0, %v12865_v1 }
 0x285   : > { %9890 = vmatmul.mubr.f32.gmra.mrb[40].mxu0 %v13848_v51 }
 0x286   : > { %9892 = vmatprep.mubr.msk.f32.mxu0 %vm12864_vm0, %v12865_v1 }
 0x287   : > { %9264 = vmatmul.mubr.f32.gmra.mrb[36].mxu1 %v398_v4  ;;  %v2927_v4 = vld [vmem:[#allocation6 + $0x3a8] sm:$0xff] }
 0x288   : > { %9266 = vmatprep.mubr.msk.f32.mxu1 %vm12864_vm0, %v12865_v1 }
 0x289   : > { %9893 = vmatmul.mubr.f32.gmra.mrb[42].mxu0 %v13857_v53 }
 0x28a   : > { %9895 = vmatprep.mubr.msk.f32.mxu0 %vm12864_vm0, %v12865_v1 }
 0x28b   : > { %9267 = vmatmul.mubr.f32.gmra.mrb[38].mxu1 %v399_v8  ;;  %v414_v8 = vld [vmem:[%s13105_s28 + $0x116] sm:$0xff] }
 0x28c   : > { %9269 = vmatprep.mubr.msk.f32.mxu1 %vm12864_vm0, %v12865_v1 }
 0x28d   : > { %9896 = vmatmul.mubr.f32.gmra.mrb[44].mxu0 %v13866_v55 }
 0x28e   : > { %9898 = vmatprep.mubr.msk.f32.mxu0 %vm12864_vm0, %v12865_v1 }
 0x28f   : > { %9270 = vmatmul.mubr.f32.gmra.mrb[40].mxu1 %v400_v11  ;;  %v2928_v11 = vld [vmem:[#allocation6 + $0x3b0] sm:$0xff] }
 0x290   : > { %9272 = vmatprep.mubr.msk.f32.mxu1 %vm12864_vm0, %v12865_v1 }
 0x291   : > { %9899 = vmatmul.mubr.f32.gmra.mrb[46].mxu0 %v13875_v58 }
 0x292   : > { %9901 = vmatprep.mubr.msk.f32.mxu0 %vm12864_vm0, %v12865_v1 }
 0x293   : > { %9273 = vmatmul.mubr.f32.gmra.mrb[42].mxu1 %v401_v14  ;;  %v2929_v14 = vld [vmem:[#allocation6 + $0x3b8] sm:$0xff] }
 0x294   : > { %9275 = vmatprep.mubr.msk.f32.mxu1 %vm12864_vm0, %v12865_v1 }
 0x295   : > { %9902 = vmatmul.mubr.f32.gmra.mrb[48].mxu0 %v13884_v60 }
 0x296   : > { %9904 = vmatprep.mubr.msk.f32.mxu0 %vm12864_vm0, %v12865_v1 }
 0x297   : > { %9276 = vmatmul.mubr.f32.gmra.mrb[44].mxu1 %v402_v18  ;;  %v415_v18 = vld [vmem:[%s13105_s28 + $0x11e] sm:$0xff] }
 0x298   : > { %9278 = vmatprep.mubr.msk.f32.mxu1 %vm12864_vm0, %v12865_v1 }
 0x299   : > { %9905 = vmatmul.mubr.f32.gmra.mrb[50].mxu0 %v13893_v62 }
 0x29a   : > { %9907 = vmatprep.mubr.msk.f32.mxu0 %vm12864_vm0, %v12865_v1 }
 0x29b   : > { %9279 = vmatmul.mubr.f32.gmra.mrb[46].mxu1 %v403_v21  ;;  %v2930_v21 = vld [vmem:[#allocation6 + $0x3c0] sm:$0xff] }
 0x29c   : > { %9281 = vmatprep.mubr.msk.f32.mxu1 %vm12864_vm0, %v12865_v1 }
 0x29d   : > { %9908 = vmatmul.mubr.f32.gmra.mrb[52].mxu0 %v13902_v2 }
 0x29e   : > { %9910 = vmatprep.mubr.msk.f32.mxu0 %vm12864_vm0, %v12865_v1 }
 0x29f   : > { %9282 = vmatmul.mubr.f32.gmra.mrb[48].mxu1 %v404_v24  ;;  %v2931_v24 = vld [vmem:[#allocation6 + $0x3c8] sm:$0xff] }
 0x2a0   : > { %9284 = vmatprep.mubr.msk.f32.mxu1 %vm12864_vm0, %v12865_v1 }
 0x2a1   : > { %9911 = vmatmul.mubr.f32.gmra.mrb[54].mxu0 %v13911_v6 }
 0x2a2   : > { %9913 = vmatprep.mubr.msk.f32.mxu0 %vm12864_vm0, %v12865_v1 }
 0x2a3   : > { %9285 = vmatmul.mubr.f32.gmra.mrb[50].mxu1 %v405_v28  ;;  %v416_v28 = vld [vmem:[%s13105_s28 + $0x126] sm:$0xff] }
 0x2a4   : > { %9287 = vmatprep.mubr.msk.f32.mxu1 %vm12864_vm0, %v12865_v1 }
 0x2a5   : > { %9914 = vmatmul.mubr.f32.gmra.mrb[56].mxu0 %v13920_v9 }
 0x2a6   : > { %9916 = vmatprep.mubr.msk.f32.mxu0 %vm12864_vm0, %v12865_v1 }
 0x2a7   : > { %9288 = vmatmul.mubr.f32.gmra.mrb[52].mxu1 %v406_v30  ;;  %v2932_v30 = vld [vmem:[#allocation6 + $0x3d0] sm:$0xff] }
 0x2a8   : > { %9290 = vmatprep.mubr.msk.f32.mxu1 %vm12864_vm0, %v12865_v1 }
 0x2a9   : > { %9917 = vmatmul.mubr.f32.gmra.mrb[58].mxu0 %v13929_v12 }
 0x2aa   : > { %9919 = vmatprep.mubr.msk.f32.mxu0 %vm12864_vm0, %v12865_v1 }
 0x2ab   : > { %9291 = vmatmul.mubr.f32.gmra.mrb[54].mxu1 %v407_v32  ;;  %v2933_v32 = vld [vmem:[#allocation6 + $0x3d8] sm:$0xff] }
 0x2ac   : > { %9293 = vmatprep.mubr.msk.f32.mxu1 %vm12864_vm0, %v12865_v1 }
 0x2ad   : > { %9920 = vmatmul.mubr.f32.gmra.mrb[60].mxu0 %v13938_v17 }
 0x2ae   : > { %9922 = vmatprep.mubr.msk.f32.mxu0 %vm12864_vm0, %v12865_v1 }
 0x2af   : > { %9294 = vmatmul.mubr.f32.gmra.mrb[56].mxu1 %v408_v36  ;;  %v417_v36 = vld [vmem:[%s13105_s28 + $0x12e] sm:$0xff] }
 0x2b0   : > { %9296 = vmatprep.mubr.msk.f32.mxu1 %vm12864_vm0, %v12865_v1 }
 0x2b1   : > { %9923 = vmatmul.mubr.f32.gmra.mrb[62].mxu0 %v13947_v20 }
 0x2b2   : > { %9925 = vmatprep.mubr.msk.f32.mxu0 %vm12864_vm0, %v12865_v1 }
 0x2b3   : > { %9297 = vmatmul.mubr.f32.gmra.mrb[58].mxu1 %v409_v39  ;;  %v2934_v39 = vld [vmem:[#allocation6 + $0x3e0] sm:$0xff] }
 0x2b4   : > { %9299 = vmatprep.mubr.msk.f32.mxu1 %vm12864_vm0, %v12865_v1 }
 0x2b5   : > { %9926 = vmatmul.mubr.f32.gmra.mrb[64].mxu0 %v13956_v23 }
 0x2b6   : > { %9928 = vmatprep.mubr.msk.f32.mxu0 %vm12864_vm0, %v12865_v1 }
 0x2b7   : > { %9300 = vmatmul.mubr.f32.gmra.mrb[60].mxu1 %v410_v42  ;;  %v2935_v42 = vld [vmem:[#allocation6 + $0x3e8] sm:$0xff] }
 0x2b8   : > { %9302 = vmatprep.mubr.msk.f32.mxu1 %vm12864_vm0, %v12865_v1 }
 0x2b9   : > { %9929 = vmatmul.mubr.f32.gmra.mrb[66].mxu0 %v13965_v26 }
 0x2ba   : > { %9931 = vmatprep.mubr.msk.f32.mxu0 %vm12864_vm0, %v12865_v1 }
 0x2bb   : > { %9303 = vmatmul.mubr.f32.gmra.mrb[62].mxu1 %v411_v44  ;;  %v418_v44 = vld [vmem:[%s13105_s28 + $0x136] sm:$0xff] }
 0x2bc   : > { %9305 = vmatprep.mubr.msk.f32.mxu1 %vm12864_vm0, %v12865_v1 }
 0x2bd   : > { %9932 = vmatmul.mubr.f32.gmra.mrb[68].mxu0 %v13974_v29 }
 0x2be   : > { %9934 = vmatprep.mubr.msk.f32.mxu0 %vm12864_vm0, %v12865_v1 }
 0x2bf   : > { %9306 = vmatmul.mubr.f32.gmra.mrb[64].mxu1 %v412_v50  ;;  %v420_v50 = vld [vmem:[%s13105_s28 + $0x146] sm:$0x3f] }
 0x2c0   : > { %9308 = vmatprep.mubr.msk.f32.mxu1 %vm12864_vm0, %v12865_v1 }
 0x2c1   : > { %9935 = vmatmul.mubr.f32.gmra.mrb[70].mxu0 %v13983_v31 }
 0x2c2   : > { %9937 = vmatprep.mubr.msk.f32.mxu0 %vm12864_vm0, %v12865_v1 }
 0x2c3   : > { %9309 = vmatmul.mubr.f32.gmra.mrb[66].mxu1 %v413_v59 }
 0x2c4   : > { %9311 = vmatprep.mubr.msk.f32.mxu1 %vm12864_vm0, %v12865_v1 }
 0x2c5   : > { %9938 = vmatmul.mubr.f32.gmra.mrb[72].mxu0 %v13992_v34 }
 0x2c6   : > { %9940 = vmatprep.mubr.msk.f32.mxu0 %vm12864_vm0, %v12865_v1 }
 0x2c7   : > { %9312 = vmatmul.mubr.f32.gmra.mrb[68].mxu1 %v414_v8  ;;  %v2882_v8 = vld [vmem:[%s13105_s28 + $0x3b] sm:$0xff] }
 0x2c8   : > { %9314 = vmatprep.mubr.msk.f32.mxu1 %vm12864_vm0, %v12865_v1 }
 0x2c9   : > { %9941 = vmatmul.mubr.f32.gmra.mrb[74].mxu0 %v14001_v38 }
 0x2ca   : > { %9943 = vmatprep.mubr.msk.f32.mxu0 %vm12864_vm0, %v12865_v1 }
 0x2cb   : > { %9315 = vmatmul.mubr.f32.gmra.mrb[70].mxu1 %v415_v18  ;;  %v3298_v18 = vld [vmem:[#allocation6 + $0x438] sm:$0xff] }
 0x2cc   : > { %9317 = vmatprep.mubr.msk.f32.mxu1 %vm12864_vm0, %v12865_v1 }
 0x2cd   : > { %9944 = vmatmul.mubr.f32.gmra.mrb[76].mxu0 %v14010_v40 }
 0x2ce   : > { %9946 = vmatprep.mubr.msk.f32.mxu0 %vm12864_vm0, %v12865_v1 }
 0x2cf   : > { %9318 = vmatmul.mubr.f32.gmra.mrb[72].mxu1 %v416_v28 }
 0x2d0   : > { %9320 = vmatprep.mubr.msk.f32.mxu1 %vm12864_vm0, %v12865_v1 }
 0x2d1   : > { %9947 = vmatmul.mubr.f32.gmra.mrb[78].mxu0 %v14019_v43 }
 0x2d2   : > { %9949 = vmatprep.mubr.msk.f32.mxu0 %vm12864_vm0, %v12865_v1 }
 0x2d3   : > { %9321 = vmatmul.mubr.f32.gmra.mrb[74].mxu1 %v417_v36  ;;  %v2884_v36 = vld [vmem:[%s13105_s28 + $0x4b] sm:$0xff] }
 0x2d4   : > { %9323 = vmatprep.mubr.msk.f32.mxu1 %vm12864_vm0, %v12865_v1 }
 0x2d5   : > { %9950 = vmatmul.mubr.f32.gmra.mrb[80].mxu0 %v2182_v45  ;;  %v2936_v45 = vld [vmem:[#allocation6 + $0x3f0] sm:$0xff] }
 0x2d6   : > { %9984 = vmatprep.mubr.msk.f32.mxu0 %vm12864_vm0, %v12865_v1 }
 0x2d7   : > { %9324 = vmatmul.mubr.f32.gmra.mrb[76].mxu1 %v418_v44  ;;  %v3302_v44 = vld [vmem:[#allocation6 + $0x458] sm:$0xff] }
 0x2d8   : > { %9326 = vmatprep.mubr.msk.f32.mxu1 %vm12864_vm0, %v12865_v1 }
 0x2d9   : > { %9985 = vmatmul.mubr.f32.vlgmr.msra.gmra.mrb[0].mxu0 %v13659_v41  ;;  %v11366_v41 = vpack.c.bf16 %v2927_v4, %v2926_v63  ;;  %v3296_v63 = vld [vmem:[#allocation6 + $0x428] sm:$0xff] }
 0x2da   : > { %11361 = vmatpush3.bf16.msra.mxu0 %v11360_v52  ;;  %9987 = vmatprep.mubr.msk.f32.mxu0 %vm12864_vm0, %v12865_v1  ;;  %v1073_v52 = vld [vmem:[%s13105_s28 + $0x138] sm:$0xff] }
 0x2db   : > { %11362 = vmatprep.subr.bf16.mxu0 %v12863_v0  ;;  %9327 = vmatmul.mubr.f32.gmra.mrb[78].mxu1 %v419_v47 }
 0x2dc   : > { %9329 = vmatprep.mubr.msk.f32.mxu1 %vm12864_vm0, %v12865_v1 }
 0x2dd   : > { %9988 = vmatmul.mubr.f32.gmra.mrb[2].mxu0 %v13670_v49  ;;  %v11369_v49 = vpack.c.bf16 %v2929_v14, %v2928_v11  ;;  %v3297_v14 = vld [vmem:[#allocation6 + $0x430] sm:$0xff] }
 0x2de   : > { %9990 = vmatprep.mubr.msk.f32.mxu0 %vm12864_vm0, %v12865_v1  ;;  %11364 = vmatpush3.bf16.msra.mxu0 %v11363_v61  ;;  %v3295_v61 = vld [vmem:[#allocation6 + $0x420] sm:$0xff] }
 0x2df   : > { %11365 = vmatprep.subr.bf16.mxu0 %v12863_v0  ;;  %9330 = vmatmul.mubr.f32.gmra.mrb[80].mxu1 %v420_v50  ;;  %v3304_v50 = vld [vmem:[#allocation6 + $0x468] sm:$0xff] }
 0x2e0   : > { %9424 = vmatprep.mubr.msk.f32.mxu1 %vm12864_vm0, %v12865_v1 }
 0x2e1   : > { %9991 = vmatmul.mubr.f32.gmra.mrb[4].mxu0 %v13681_v57  ;;  %v11372_v57 = vpack.c.bf16 %v2931_v24, %v2930_v21  ;;  %v2883_v21 = vld [vmem:[%s13105_s28 + $0x43] sm:$0xff]  ;;  %v11393_v24 = vpack.c.bf16 %v3298_v18, %v3297_v14 }
 0x2e2   : > { %9993 = vmatprep.mubr.msk.f32.mxu0 %vm12864_vm0, %v12865_v1  ;;  %11367 = vmatpush3.bf16.msra.mxu0 %v11366_v41  ;;  %v11390_v41 = vpack.c.bf16 %v3296_v63, %v3295_v61  ;;  %v3622_v61 = vld [vmem:[%s16674_s1 + $0x20] sm:$0xff]  ;;  %v3624_v14 = vld [vmem:[%s16674_s1 + $0x30] sm:$0xff] }
 0x2e3   : > { %11368 = vmatprep.subr.bf16.mxu0 %v12863_v0 }
 0x2e5   : > { %9994 = vmatmul.mubr.f32.gmra.mrb[6].mxu0 %v13692_v3  ;;  %v11375_v3 = vpack.c.bf16 %v2933_v32, %v2932_v30  ;;  %v3300_v30 = vld [vmem:[#allocation6 + $0x448] sm:$0xff] }
 0x2e6   : > { %9996 = vmatprep.mubr.msk.f32.mxu0 %vm12864_vm0, %v12865_v1  ;;  %11370 = vmatpush3.bf16.msra.mxu0 %v11369_v49 }
 0x2e7   : > { %11371 = vmatprep.subr.bf16.mxu0 %v12863_v0 }
 0x2e9   : > { %9997 = vmatmul.mubr.f32.gmra.mrb[8].mxu0 %v13703_v15  ;;  %v11378_v15 = vpack.c.bf16 %v2935_v42, %v2934_v39  ;;  %v3301_v42 = vld [vmem:[#allocation6 + $0x450] sm:$0xff] }
 0x2ea   : > { %9999 = vmatprep.mubr.msk.f32.mxu0 %vm12864_vm0, %v12865_v1  ;;  %11373 = vmatpush3.bf16.msra.mxu0 %v11372_v57  ;;  %v3299_v57 = vld [vmem:[#allocation6 + $0x440] sm:$0xff] }
 0x2eb   : > { %11374 = vmatprep.subr.bf16.mxu0 %v12863_v0 }
 0x2ed   : > { %10000 = vmatmul.mubr.f32.gmra.mrb[10].mxu0 %v13714_v27  ;;  %v11381_v27 = vpack.c.bf16 %v2937_v46, %v2936_v45  ;;  %v2885_v45 = vld [vmem:[%s13105_s28 + $0x53] sm:$0xff]  ;;  %v11399_v46 = vpack.c.bf16 %v3302_v44, %v3301_v42 }
 0x2ee   : > { %10002 = vmatprep.mubr.msk.f32.mxu0 %vm12864_vm0, %v12865_v1  ;;  %11376 = vmatpush3.bf16.msra.mxu0 %v11375_v3  ;;  %v11396_v3 = vpack.c.bf16 %v3300_v30, %v3299_v57  ;;  %v3626_v57 = vld [vmem:[%s16674_s1 + $0x40] sm:$0xff]  ;;  %v3628_v42 = vld [vmem:[%s16674_s1 + $0x50] sm:$0xff] }
 0x2ef   : > { %11377 = vmatprep.subr.bf16.mxu0 %v12863_v0 }
 0x2f1   : > { %10003 = vmatmul.mubr.f32.gmra.mrb[12].mxu0 %v13725_v33  ;;  %v1055_v33 = vld [vmem:[%s13105_s28 + $0xa8] sm:$0xff] }
 0x2f2   : > { %10005 = vmatprep.mubr.msk.f32.mxu0 %vm12864_vm0, %v12865_v1  ;;  %11379 = vmatpush3.bf16.msra.mxu0 %v11378_v15 }
 0x2f3   : > { %11380 = vmatprep.subr.bf16.mxu0 %v12863_v0  ;;  %9425 = vmatmul.mubr.f32.vlgmr.msra.gmra.mrb[40].mxu1 %v1055_v33 }
 0x2f4   : > { %9427 = vmatprep.mubr.msk.f32.mxu1 %vm12864_vm0, %v12865_v1 }
 0x2f5   : > { %10006 = vmatmul.mubr.f32.gmra.mrb[14].mxu0 %v13734_v35  ;;  %v1056_v35 = vld [vmem:[%s13105_s28 + $0xb0] sm:$0xff] }
 0x2f6   : > { %10008 = vmatprep.mubr.msk.f32.mxu0 %vm12864_vm0, %v12865_v1  ;;  %11382 = vmatpush3.bf16.msra.mxu0 %v11381_v27  ;;  %v3303_v27 = vld [vmem:[#allocation6 + $0x460] sm:$0xff] }
 0x2f7   : > { %11383 = vmatprep.subr.bf16.mxu0 %v12863_v0  ;;  %9428 = vmatmul.mubr.f32.gmra.mrb[42].mxu1 %v1056_v35  ;;  %v2886_v35 = vld [vmem:[%s13105_s28 + $0x5b] sm:$0xff] }
 0x2f8   : > { %9430 = vmatprep.mubr.msk.f32.mxu1 %vm12864_vm0, %v12865_v1 }
 0x2f9   : > { %10009 = vmatmul.mubr.f32.gmra.mrb[16].mxu0 %v13745_v37  ;;  %v1057_v37 = vld [vmem:[%s13105_s28 + $0xb8] sm:$0xff] }
 0x2fa   : > { %10011 = vmatprep.mubr.msk.f32.mxu0 %vm12864_vm0, %v12865_v1 }
 0x2fb   : > { %9431 = vmatmul.mubr.f32.gmra.mrb[44].mxu1 %v1057_v37  ;;  %v11402_v37 = vpack.c.bf16 %v3304_v50, %v3303_v27  ;;  %v3630_v27 = vld [vmem:[%s16674_s1 + $0x60] sm:$0xff] }
 0x2fc   : > { %9433 = vmatprep.mubr.msk.f32.mxu1 %vm12864_vm0, %v12865_v1 }
 0x2fd   : > { %10012 = vmatmul.mubr.f32.gmra.mrb[18].mxu0 %v13756_v5  ;;  %v1058_v5 = vld [vmem:[%s13105_s28 + $0xc0] sm:$0xff] }
 0x2fe   : > { %10014 = vmatprep.mubr.msk.f32.mxu0 %vm12864_vm0, %v12865_v1 }
 0x2ff   : > { %9434 = vmatmul.mubr.f32.gmra.mrb[46].mxu1 %v1058_v5 }
 0x300   : > { %9436 = vmatprep.mubr.msk.f32.mxu1 %vm12864_vm0, %v12865_v1 }
 0x301   : > { %10015 = vmatmul.mubr.f32.gmra.mrb[20].mxu0 %v13767_v7  ;;  %v1059_v7 = vld [vmem:[%s13105_s28 + $0xc8] sm:$0xff] }
 0x302   : > { %10017 = vmatprep.mubr.msk.f32.mxu0 %vm12864_vm0, %v12865_v1 }
 0x303   : > { %9437 = vmatmul.mubr.f32.gmra.mrb[48].mxu1 %v1059_v7  ;;  %v3305_v7 = vld [vmem:[#allocation6 + $0x470] sm:$0xff] }
 0x304   : > { %9439 = vmatprep.mubr.msk.f32.mxu1 %vm12864_vm0, %v12865_v1 }
 0x305   : > { %10018 = vmatmul.mubr.f32.gmra.mrb[22].mxu0 %v13778_v10  ;;  %v1060_v10 = vld [vmem:[%s13105_s28 + $0xd0] sm:$0xff] }
 0x306   : > { %10020 = vmatprep.mubr.msk.f32.mxu0 %vm12864_vm0, %v12865_v1 }
 0x307   : > { %9440 = vmatmul.mubr.f32.gmra.mrb[50].mxu1 %v1060_v10  ;;  %v3306_v10 = vld [vmem:[#allocation6 + $0x478] sm:$0xff] }
 0x308   : > { %9442 = vmatprep.mubr.msk.f32.mxu1 %vm12864_vm0, %v12865_v1 }
 0x309   : > { %10021 = vmatmul.mubr.f32.gmra.mrb[24].mxu0 %v13789_v13  ;;  %v1061_v13 = vld [vmem:[%s13105_s28 + $0xd8] sm:$0xff] }
 0x30a   : > { %10023 = vmatprep.mubr.msk.f32.mxu0 %vm12864_vm0, %v12865_v1 }
 0x30b   : > { %9443 = vmatmul.mubr.f32.gmra.mrb[52].mxu1 %v1061_v13 }
 0x30c   : > { %9445 = vmatprep.mubr.msk.f32.mxu1 %vm12864_vm0, %v12865_v1 }
 0x30d   : > { %10024 = vmatmul.mubr.f32.gmra.mrb[26].mxu0 %v13800_v16  ;;  %v1062_v16 = vld [vmem:[%s13105_s28 + $0xe0] sm:$0xff] }
 0x30e   : > { %10026 = vmatprep.mubr.msk.f32.mxu0 %vm12864_vm0, %v12865_v1 }
 0x30f   : > { %9446 = vmatmul.mubr.f32.gmra.mrb[54].mxu1 %v1062_v16  ;;  %v2887_v16 = vld [vmem:[%s13105_s28 + $0x63] sm:$0xff] }
 0x310   : > { %9448 = vmatprep.mubr.msk.f32.mxu1 %vm12864_vm0, %v12865_v1 }
 0x311   : > { %10027 = vmatmul.mubr.f32.gmra.mrb[28].mxu0 %v13811_v19  ;;  %v1063_v19 = vld [vmem:[%s13105_s28 + $0xe8] sm:$0xff] }
 0x312   : > { %10029 = vmatprep.mubr.msk.f32.mxu0 %vm12864_vm0, %v12865_v1 }
 0x313   : > { %9449 = vmatmul.mubr.f32.gmra.mrb[56].mxu1 %v1063_v19  ;;  %v11405_v19 = vpack.c.bf16 %v3306_v10, %v3305_v7  ;;  %v3632_v7 = vld [vmem:[%s16674_s1 + $0x70] sm:$0xff] }
 0x314   : > { %9451 = vmatprep.mubr.msk.f32.mxu1 %vm12864_vm0, %v12865_v1  ;;  %v2900_v10 = vld [vmem:[%s13105_s28 + $0xcb] sm:$0xff] }
 0x315   : > { %10030 = vmatmul.mubr.f32.gmra.mrb[30].mxu0 %v13821_v22  ;;  %v1064_v22 = vld [vmem:[%s13105_s28 + $0xf0] sm:$0xff] }
 0x316   : > { %10032 = vmatprep.mubr.msk.f32.mxu0 %vm12864_vm0, %v12865_v1 }
 0x317   : > { %9452 = vmatmul.mubr.f32.gmra.mrb[58].mxu1 %v1064_v22 }
 0x318   : > { %9454 = vmatprep.mubr.msk.f32.mxu1 %vm12864_vm0, %v12865_v1 }
 0x319   : > { %10033 = vmatmul.mubr.f32.gmra.mrb[32].mxu0 %v13830_v25  ;;  %v1065_v25 = vld [vmem:[%s13105_s28 + $0xf8] sm:$0xff] }
 0x31a   : > { %10035 = vmatprep.mubr.msk.f32.mxu0 %vm12864_vm0, %v12865_v1 }
 0x31b   : > { %9455 = vmatmul.mubr.f32.gmra.mrb[60].mxu1 %v1065_v25 }
 0x31c   : > { %9457 = vmatprep.mubr.msk.f32.mxu1 %vm12864_vm0, %v12865_v1 }
 0x31d   : > { %10036 = vmatmul.mubr.f32.gmra.mrb[34].mxu0 %v13839_v48  ;;  %v1066_v48 = vld [vmem:[%s13105_s28 + $0x100] sm:$0xff] }
 0x31e   : > { %10038 = vmatprep.mubr.msk.f32.mxu0 %vm12864_vm0, %v12865_v1 }
 0x31f   : > { %9458 = vmatmul.mubr.f32.gmra.mrb[62].mxu1 %v1066_v48  ;;  %v2888_v48 = vld [vmem:[%s13105_s28 + $0x6b] sm:$0xff] }
 0x320   : > { %9460 = vmatprep.mubr.msk.f32.mxu1 %vm12864_vm0, %v12865_v1 }
 0x321   : > { %10039 = vmatmul.mubr.f32.gmra.mrb[36].mxu0 %v13848_v51  ;;  %v1067_v51 = vld [vmem:[%s13105_s28 + $0x108] sm:$0xff] }
 0x322   : > { %10041 = vmatprep.mubr.msk.f32.mxu0 %vm12864_vm0, %v12865_v1 }
 0x323   : > { %9461 = vmatmul.mubr.f32.gmra.mrb[64].mxu1 %v1067_v51 }
 0x324   : > { %9463 = vmatprep.mubr.msk.f32.mxu1 %vm12864_vm0, %v12865_v1 }
 0x325   : > { %10042 = vmatmul.mubr.f32.gmra.mrb[38].mxu0 %v13857_v53  ;;  %v1068_v53 = vld [vmem:[%s13105_s28 + $0x110] sm:$0xff] }
 0x326   : > { %10044 = vmatprep.mubr.msk.f32.mxu0 %vm12864_vm0, %v12865_v1 }
 0x327   : > { %9464 = vmatmul.mubr.f32.gmra.mrb[66].mxu1 %v1068_v53 }
 0x328   : > { %9466 = vmatprep.mubr.msk.f32.mxu1 %vm12864_vm0, %v12865_v1 }
 0x329   : > { %10045 = vmatmul.mubr.f32.gmra.mrb[40].mxu0 %v13866_v55  ;;  %v1069_v55 = vld [vmem:[%s13105_s28 + $0x118] sm:$0xff] }
 0x32a   : > { %10047 = vmatprep.mubr.msk.f32.mxu0 %vm12864_vm0, %v12865_v1 }
 0x32b   : > { %9467 = vmatmul.mubr.f32.gmra.mrb[68].mxu1 %v1069_v55  ;;  %v2889_v55 = vld [vmem:[%s13105_s28 + $0x73] sm:$0xff] }
 0x32c   : > { %9469 = vmatprep.mubr.msk.f32.mxu1 %vm12864_vm0, %v12865_v1 }
 0x32d   : > { %10048 = vmatmul.mubr.f32.gmra.mrb[42].mxu0 %v13875_v58  ;;  %v1070_v58 = vld [vmem:[%s13105_s28 + $0x120] sm:$0xff] }
 0x32e   : > { %10050 = vmatprep.mubr.msk.f32.mxu0 %vm12864_vm0, %v12865_v1 }
 0x32f   : > { %9470 = vmatmul.mubr.f32.gmra.mrb[70].mxu1 %v1070_v58 }
 0x330   : > { %9472 = vmatprep.mubr.msk.f32.mxu1 %vm12864_vm0, %v12865_v1 }
 0x331   : > { %10051 = vmatmul.mubr.f32.gmra.mrb[44].mxu0 %v13884_v60  ;;  %v1071_v60 = vld [vmem:[%s13105_s28 + $0x128] sm:$0xff] }
 0x332   : > { %10053 = vmatprep.mubr.msk.f32.mxu0 %vm12864_vm0, %v12865_v1 }
 0x333   : > { %9473 = vmatmul.mubr.f32.gmra.mrb[72].mxu1 %v1071_v60  ;;  %v2890_v60 = vld [vmem:[%s13105_s28 + $0x7b] sm:$0xff] }
 0x334   : > { %9475 = vmatprep.mubr.msk.f32.mxu1 %vm12864_vm0, %v12865_v1 }
 0x335   : > { %10054 = vmatmul.mubr.f32.gmra.mrb[46].mxu0 %v13893_v62  ;;  %v1072_v62 = vld [vmem:[%s13105_s28 + $0x130] sm:$0xff] }
 0x336   : > { %10056 = vmatprep.mubr.msk.f32.mxu0 %vm12864_vm0, %v12865_v1 }
 0x337   : > { %9476 = vmatmul.mubr.f32.gmra.mrb[74].mxu1 %v1072_v62 }
 0x338   : > { %9478 = vmatprep.mubr.msk.f32.mxu1 %vm12864_vm0, %v12865_v1 }
 0x339   : > { %10057 = vmatmul.mubr.f32.gmra.mrb[48].mxu0 %v13902_v2  ;;  %v1074_v2 = vld [vmem:[%s13105_s28 + $0x140] sm:$0xff] }
 0x33a   : > { %10059 = vmatprep.mubr.msk.f32.mxu0 %vm12864_vm0, %v12865_v1 }
 0x33b   : > { %9479 = vmatmul.mubr.f32.gmra.mrb[76].mxu1 %v1073_v52 }
 0x33c   : > { %9481 = vmatprep.mubr.msk.f32.mxu1 %vm12864_vm0, %v12865_v1 }
 0x33d   : > { %10060 = vmatmul.mubr.f32.gmra.mrb[50].mxu0 %v13911_v6  ;;  %v1075_v6 = vld [vmem:[%s13105_s28 + $0x148] sm:$0x3f] }
 0x33e   : > { %10062 = vmatprep.mubr.msk.f32.mxu0 %vm12864_vm0, %v12865_v1 }
 0x33f   : > { %9482 = vmatmul.mubr.f32.gmra.mrb[78].mxu1 %v1074_v2  ;;  %v2891_v2 = vld [vmem:[%s13105_s28 + $0x83] sm:$0xff] }
 0x340   : > { %9484 = vmatprep.mubr.msk.f32.mxu1 %vm12864_vm0, %v12865_v1 }
 0x341   : > { %10063 = vmatmul.mubr.f32.gmra.mrb[52].mxu0 %v13920_v9  ;;  %v2549_v9 = vld [vmem:[%s13105_s28 + $0x15a] sm:$0xff] }
 0x342   : > { %10065 = vmatprep.mubr.msk.f32.mxu0 %vm12864_vm0, %v12865_v1 }
 0x343   : > { %9485 = vmatmul.mubr.f32.gmra.mrb[80].mxu1 %v1075_v6 }
 0x345   : > { %10066 = vmatmul.mubr.f32.gmra.mrb[54].mxu0 %v13929_v12  ;;  %v2550_v12 = vld [vmem:[%s13105_s28 + $0x162] sm:$0xff] }
 0x346   : > { %10068 = vmatprep.mubr.msk.f32.mxu0 %vm12864_vm0, %v12865_v1 }
 0x349   : > { %10069 = vmatmul.mubr.f32.gmra.mrb[56].mxu0 %v13938_v17  ;;  %v2551_v17 = vld [vmem:[%s13105_s28 + $0x16a] sm:$0x3f] }
 0x34a   : > { %10071 = vmatprep.mubr.msk.f32.mxu0 %vm12864_vm0, %v12865_v1 }
 0x34d   : > { %10072 = vmatmul.mubr.f32.gmra.mrb[58].mxu0 %v13947_v20  ;;  %v3291_v20 = vld [vmem:[#allocation6 + $0x400] sm:$0xff] }
 0x34e   : > { %10074 = vmatprep.mubr.msk.f32.mxu0 %vm12864_vm0, %v12865_v1 }
 0x351   : > { %10075 = vmatmul.mubr.f32.gmra.mrb[60].mxu0 %v13956_v23  ;;  %v3292_v23 = vld [vmem:[#allocation6 + $0x408] sm:$0xff] }
 0x352   : > { %10077 = vmatprep.mubr.msk.f32.mxu0 %vm12864_vm0, %v12865_v1 }
 0x355   : > { %10078 = vmatmul.mubr.f32.gmra.mrb[62].mxu0 %v13965_v26  ;;  %v14249_v26 = vpop.f32.mrb[0].mxu1 }
 0x356   : > { %10080 = vmatprep.mubr.msk.f32.mxu0 %vm12864_vm0, %v12865_v1 }
 0x359   : > { %10081 = vmatmul.mubr.f32.gmra.mrb[64].mxu0 %v13974_v29  ;;  %v2880_v29 = vld [vmem:[%s13105_s28 + $0x2b] sm:$0xff] }
 0x35a   : > { %10083 = vmatprep.mubr.msk.f32.mxu0 %vm12864_vm0, %v12865_v1 }
 0x35d   : > { %10084 = vmatmul.mubr.f32.gmra.mrb[66].mxu0 %v13983_v31  ;;  %v11384_v31 = vpack.c.bf16 %v3292_v23, %v3291_v20  ;;  %v12866_v20 = vmov 0   ;;  %v3618_v23 = vld [vmem:[%s16674_s1] sm:$0xff] }
 0x35e   : > { %10086 = vmatprep.mubr.msk.f32.mxu0 %vm12864_vm0, %v12865_v1  ;;  %12694 = vset.pattern.permute.xlu0 %v12866_v20 }
 0x35f   : > { %3661 = vperm.xlu0 %12694, %v3618_v23   ;;  %12695 = vset.pattern.permute.xlu1 %v12866_v20 }
 0x361   : > { %10087 = vmatmul.mubr.f32.gmra.mrb[68].mxu0 %v13992_v34  ;;  %v9211_v34 = vpop.f32.mrb[1].mxu1 }
 0x362   : > { %10089 = vmatprep.mubr.msk.f32.mxu0 %vm12864_vm0, %v12865_v1 }
 0x365   : > { %10090 = vmatmul.mubr.f32.gmra.mrb[70].mxu0 %v14001_v38  ;;  %v3293_v38 = vld [vmem:[#allocation6 + $0x410] sm:$0xff] }
 0x366   : > { %10092 = vmatprep.mubr.msk.f32.mxu0 %vm12864_vm0, %v12865_v1 }
 0x369   : > { %10093 = vmatmul.mubr.f32.gmra.mrb[72].mxu0 %v14010_v40  ;;  %v3294_v40 = vld [vmem:[#allocation6 + $0x418] sm:$0xff] }
 0x36a   : > { %10095 = vmatprep.mubr.msk.f32.mxu0 %vm12864_vm0, %v12865_v1  ;;  %v11387_v56 = vpack.c.bf16 %v3294_v40, %v3293_v38  ;;  %v3619_v38 = vld [vmem:[%s16674_s1 + $0x8] sm:$0xff] }
 0x36b   : > { %3666 = vperm.xlu0 %12694, %v3619_v38   ;;  %v2904_v38 = vld [vmem:[%s13105_s28 + $0xeb] sm:$0xff] }
 0x36d   : > { %10096 = vmatmul.mubr.f32.gmra.mrb[74].mxu0 %v14019_v43  ;;  %v14254_v43 = vpop.f32.mrb[2].mxu1 }
 0x36e   : > { %10098 = vmatprep.mubr.msk.f32.mxu0 %vm12864_vm0, %v12865_v1  ;;  %v9214_v59 = vpop.f32.mrb[3].mxu1 }
 0x36f   : > { %v14260_v4 = vpop.f32.mrb[4].mxu1  ;;  %v3620_v59 = vld [vmem:[%s16674_s1 + $0x10] sm:$0xff]  ;;  %3681 = vperm.xlu0 %12694, %v3622_v61   ;;  %v3642_v61 = vld [vmem:[%s16674_s1 + $0xc0] sm:$0xff] }
 0x370   : > { %v9217_v11 = vpop.f32.mrb[5].mxu1  ;;  %3671 = vperm.xlu1 %12695, %v3620_v59   ;;  %v3639_v59 = vld [vmem:[%s16674_s1 + $0xa8] sm:$0xff] }
 0x371   : > { %10099 = vmatmul.mubr.f32.gmra.mrb[76].mxu0 %v2549_v9  ;;  %v14266_v49 = vpop.f32.mrb[6].mxu1  ;;  %v3621_v11 = vld [vmem:[%s16674_s1 + $0x18] sm:$0xff] }
 0x372   : > { %10101 = vmatprep.mubr.msk.f32.mxu0 %vm12864_vm0, %v12865_v1  ;;  %v9220_v28 = vpop.f32.mrb[7].mxu1 }
 0x373   : > { %v14272_v32 = vpop.f32.mrb[8].mxu1  ;;  %3691 = vperm.xlu0 %12694, %v3624_v14   ;;  %v3623_v28 = vld [vmem:[%s16674_s1 + $0x28] sm:$0xff]  ;;  %v3641_v14 = vld [vmem:[%s16674_s1 + $0xb8] sm:$0xff] }
 0x374   : > { %v9223_v39 = vpop.f32.mrb[9].mxu1  ;;  %3676 = vperm.xlu1 %12695, %v3621_v11  }
 0x375   : > { %10102 = vmatmul.mubr.f32.gmra.mrb[78].mxu0 %v2550_v12  ;;  %v14278_v15 = vpop.f32.mrb[10].mxu1  ;;  %v2892_v12 = vld [vmem:[%s13105_s28 + $0x8b] sm:$0xff] }
 0x376   : > { %10104 = vmatprep.mubr.msk.f32.mxu0 %vm12864_vm0, %v12865_v1  ;;  %v9226_v47 = vpop.f32.mrb[11].mxu1  ;;  %v3625_v39 = vld [vmem:[%s16674_s1 + $0x38] sm:$0xff] }
 0x377   : > { %v14284_v33 = vpop.f32.mrb[12].mxu1  ;;  %3701 = vperm.xlu0 %12694, %v3626_v57   ;;  %v3627_v47 = vld [vmem:[%s16674_s1 + $0x48] sm:$0xff] }
 0x378   : > { %v9229_v5 = vpop.f32.mrb[13].mxu1  ;;  %3686 = vperm.xlu1 %12695, %v3623_v28  }
 0x379   : > { %10105 = vmatmul.mubr.f32.gmra.mrb[80].mxu0 %v2551_v17  ;;  %v14290_v13 = vpop.f32.mrb[14].mxu1  ;;  %v3629_v5 = vld [vmem:[%s16674_s1 + $0x58] sm:$0xff] }
 0x37a   : > { %10139 = vmatprep.mubr.msk.f32.mxu0 %vm12864_vm0, %v12865_v1  ;;  %v9232_v22 = vpop.f32.mrb[15].mxu1 }
 0x37b   : > { %v14296_v25 = vpop.f32.mrb[16].mxu1  ;;  %3711 = vperm.xlu0 %12694, %v3628_v42   ;;  %v2901_v22 = vld [vmem:[%s13105_s28 + $0xd3] sm:$0xff] }
 0x37c   : > { %v9235_v51 = vpop.f32.mrb[17].mxu1  ;;  %3696 = vperm.xlu1 %12695, %v3625_v39   ;;  %v2907_v39 = vld [vmem:[%s13105_s28 + $0x103] sm:$0xff] }
 0x37d   : > { %10140 = vmatmul.mubr.f32.vlgmr.msra.gmra.mrb[0].mxu0 %v2880_v29  ;;  %v14301_v53 = vpop.f32.mrb[18].mxu1 }
 0x37e   : > { %11385 = vmatpush3.bf16.msra.mxu0 %v11384_v31  ;;  %10142 = vmatprep.mubr.msk.f32.mxu0 %vm12864_vm0, %v12865_v1  ;;  %v9238_v58 = vpop.f32.mrb[19].mxu1  ;;  %v2893_v31 = vld [vmem:[%s13105_s28 + $0x93] sm:$0xff] }
 0x37f   : > { %11386 = vmatprep.subr.bf16.mxu0 %v12863_v0  ;;  %3721 = vperm.xlu0 %12694, %v3630_v27   ;;  %v3636_v58 = vld [vmem:[%s16674_s1 + $0x90] sm:$0xff] }
 0x380   : > { %3706 = vperm.xlu1 %12695, %v3627_v47   ;;  %v3648_v47 = vld [vmem:[%s16674_s1 + $0xf0] sm:$0xff] }
 0x381   : > { %10143 = vmatmul.mubr.f32.gmra.mrb[2].mxu0 %v2881_v54  ;;  %v2894_v54 = vld [vmem:[%s13105_s28 + $0x9b] sm:$0xff]  ;;  %v2908_v27 = vld [vmem:[%s13105_s28 + $0x10b] sm:$0xff] }
 0x382   : > { %10145 = vmatprep.mubr.msk.f32.mxu0 %vm12864_vm0, %v12865_v1  ;;  %11388 = vmatpush3.bf16.msra.mxu0 %v11387_v56 }
 0x383   : > { %11389 = vmatprep.subr.bf16.mxu0 %v12863_v0  ;;  %3731 = vperm.xlu0 %12694, %v3632_v7   ;;  %v3650_v7 = vld [vmem:[%s16674_s1 + $0x100] sm:$0xff] }
 0x384   : > { %3716 = vperm.xlu1 %12695, %v3629_v5   ;;  %v3647_v5 = vld [vmem:[%s16674_s1 + $0xe8] sm:$0xff] }
 0x385   : > { %10146 = vmatmul.mubr.f32.gmra.mrb[4].mxu0 %v2882_v8  ;;  %v2895_v8 = vld [vmem:[%s13105_s28 + $0xa3] sm:$0xff] }
 0x386   : > { %10148 = vmatprep.mubr.msk.f32.mxu0 %vm12864_vm0, %v12865_v1  ;;  %11391 = vmatpush3.bf16.msra.mxu0 %v11390_v41 }
 0x387   : > { %11392 = vmatprep.subr.bf16.mxu0 %v12863_v0 }
 0x389   : > { %10149 = vmatmul.mubr.f32.gmra.mrb[6].mxu0 %v2883_v21  ;;  %v2896_v21 = vld [vmem:[%s13105_s28 + $0xab] sm:$0xff] }
 0x38a   : > { %10151 = vmatprep.mubr.msk.f32.mxu0 %vm12864_vm0, %v12865_v1  ;;  %11394 = vmatpush3.bf16.msra.mxu0 %v11393_v24 }
 0x38b   : > { %11395 = vmatprep.subr.bf16.mxu0 %v12863_v0 }
 0x38d   : > { %10152 = vmatmul.mubr.f32.gmra.mrb[8].mxu0 %v2884_v36  ;;  %v2897_v36 = vld [vmem:[%s13105_s28 + $0xb3] sm:$0xff] }
 0x38e   : > { %10154 = vmatprep.mubr.msk.f32.mxu0 %vm12864_vm0, %v12865_v1  ;;  %11397 = vmatpush3.bf16.msra.mxu0 %v11396_v3 }
 0x38f   : > { %11398 = vmatprep.subr.bf16.mxu0 %v12863_v0 }
 0x391   : > { %10155 = vmatmul.mubr.f32.gmra.mrb[10].mxu0 %v2885_v45  ;;  %v2898_v45 = vld [vmem:[%s13105_s28 + $0xbb] sm:$0xff] }
 0x392   : > { %10157 = vmatprep.mubr.msk.f32.mxu0 %vm12864_vm0, %v12865_v1  ;;  %11400 = vmatpush3.bf16.msra.mxu0 %v11399_v46 }
 0x393   : > { %11401 = vmatprep.subr.bf16.mxu0 %v12863_v0 }
 0x395   : > { %10158 = vmatmul.mubr.f32.gmra.mrb[12].mxu0 %v2886_v35  ;;  %v2899_v35 = vld [vmem:[%s13105_s28 + $0xc3] sm:$0xff] }
 0x396   : > { %10160 = vmatprep.mubr.msk.f32.mxu0 %vm12864_vm0, %v12865_v1  ;;  %11403 = vmatpush3.bf16.msra.mxu0 %v11402_v37 }
 0x397   : > { %11404 = vmatprep.subr.bf16.mxu0 %v12863_v0  ;;  %v14306_v0 = vpop.f32.mrb[20].mxu1 }
 0x398   : > { %v9241_v62 = vpop.f32.mrb[21].mxu1 }
 0x399   : > { %10161 = vmatmul.mubr.f32.gmra.mrb[14].mxu0 %v2887_v16  ;;  %v14311_v52 = vpop.f32.mrb[22].mxu1  ;;  %v3631_v16 = vld [vmem:[%s16674_s1 + $0x68] sm:$0xff] }
 0x39a   : > { %10163 = vmatprep.mubr.msk.f32.mxu0 %vm12864_vm0, %v12865_v1  ;;  %11406 = vmatpush3.bf16.msra.mxu0 %v11405_v19  ;;  %v9244_v6 = vpop.f32.mrb[23].mxu1  ;;  %v3634_v19 = vld [vmem:[%s16674_s1 + $0x80] sm:$0xff] }
 0x39b   : > { %v14316_v9 = vpop.f32.mrb[24].mxu1  ;;  %3726 = vperm.xlu1 %12695, %v3631_v16   ;;  %3741 = vperm.xlu0 %12694, %v3634_v19   ;;  %v3635_v6 = vld [vmem:[%s16674_s1 + $0x88] sm:$0xff] }
 0x39c   : > { %v9247_v17 = vpop.f32.mrb[25].mxu1 }
 0x39d   : > { %10164 = vmatmul.mubr.f32.gmra.mrb[16].mxu0 %v2888_v48  ;;  %v14324_v29 = vpop.f32.mrb[26].mxu1  ;;  %v2903_v17 = vld [vmem:[%s13105_s28 + $0xe3] sm:$0xff] }
 0x39e   : > { %10166 = vmatprep.mubr.msk.f32.mxu0 %vm12864_vm0, %v12865_v1  ;;  %v9250_v34 = vpop.f32.mrb[27].mxu1 }
 0x39f   : > { %v14332_v40 = vpop.f32.mrb[28].mxu1  ;;  %3751 = vperm.xlu0 %12694, %v3636_v58   ;;  %v3640_v34 = vld [vmem:[%s16674_s1 + $0xb0] sm:$0xff] }
 0x3a0   : > { %v9253_v56 = vpop.f32.mrb[29].mxu1 }
 0x3a1   : > { %10167 = vmatmul.mubr.f32.gmra.mrb[18].mxu0 %v2889_v55  ;;  %v14343_v63 = vpop.f32.mrb[30].mxu1  ;;  %v3633_v55 = vld [vmem:[%s16674_s1 + $0x78] sm:$0xff] }
 0x3a2   : > { %10169 = vmatprep.mubr.msk.f32.mxu0 %vm12864_vm0, %v12865_v1  ;;  %v9256_v41 = vpop.f32.mrb[31].mxu1  ;;  %3736 = vperm.xlu1 %12695, %v3633_v55   ;;  %v2910_v55 = vld [vmem:[%s13105_s28 + $0x11b] sm:$0xff] }
 0x3a3   : > { %v14354_v18 = vpop.f32.mrb[32].mxu1 }
 0x3a4   : > { %v9259_v24 = vpop.f32.mrb[33].mxu1 }
 0x3a5   : > { %10170 = vmatmul.mubr.f32.gmra.mrb[20].mxu0 %v2890_v60  ;;  %v14365_v30 = vpop.f32.mrb[34].mxu1  ;;  %v2902_v60 = vld [vmem:[%s13105_s28 + $0xdb] sm:$0xff] }
 0x3a6   : > { %10172 = vmatprep.mubr.msk.f32.mxu0 %vm12864_vm0, %v12865_v1  ;;  %v9262_v3 = vpop.f32.mrb[35].mxu1  ;;  %3746 = vperm.xlu1 %12695, %v3635_v6   ;;  %v2906_v24 = vld [vmem:[%s13105_s28 + $0xfb] sm:$0xff] }
 0x3a7   : > { %v14376_v44 = vpop.f32.mrb[36].mxu1  ;;  %v3646_v3 = vld [vmem:[%s16674_s1 + $0xe0] sm:$0xff] }
 0x3a8   : > { %v9265_v46 = vpop.f32.mrb[37].mxu1  ;;  %v3654_v6 = vld [vmem:[%s16674_s1 + $0x120] sm:$0xff] }
 0x3a9   : > { %10173 = vmatmul.mubr.f32.gmra.mrb[22].mxu0 %v2891_v2  ;;  %v14387_v50 = vpop.f32.mrb[38].mxu1  ;;  %v3645_v46 = vld [vmem:[%s16674_s1 + $0xd8] sm:$0xff] }
 0x3aa   : > { %10175 = vmatprep.mubr.msk.f32.mxu0 %vm12864_vm0, %v12865_v1  ;;  %v9268_v37 = vpop.f32.mrb[39].mxu1 }
 0x3ad   : > { %10176 = vmatmul.mubr.f32.gmra.mrb[24].mxu0 %v2892_v12  ;;  %v3638_v12 = vld [vmem:[%s16674_s1 + $0xa0] sm:$0xff] }
 0x3ae   : > { %10178 = vmatprep.mubr.msk.f32.mxu0 %vm12864_vm0, %v12865_v1  ;;  %3761 = vperm.xlu0 %12694, %v3638_v12   ;;  %v2911_v12 = vld [vmem:[%s13105_s28 + $0x123] sm:$0xff] }
 0x3b1   : > { %10179 = vmatmul.mubr.f32.gmra.mrb[26].mxu0 %v2893_v31  ;;  %v3637_v31 = vld [vmem:[%s16674_s1 + $0x98] sm:$0xff] }
 0x3b2   : > { %10181 = vmatprep.mubr.msk.f32.mxu0 %vm12864_vm0, %v12865_v1  ;;  %3756 = vperm.xlu1 %12695, %v3637_v31   ;;  %v3653_v31 = vld [vmem:[%s16674_s1 + $0x118] sm:$0xff] }
 0x3b3   : > { %3771 = vperm.xlu0 %12694, %v3640_v34   ;;  %v3656_v34 = vld [vmem:[%s16674_s1 + $0x130] sm:$0xff] }
 0x3b5   : > { %10182 = vmatmul.mubr.f32.gmra.mrb[28].mxu0 %v2894_v54 }
 0x3b6   : > { %10184 = vmatprep.mubr.msk.f32.mxu0 %vm12864_vm0, %v12865_v1  ;;  %3766 = vperm.xlu1 %12695, %v3639_v59  }
 0x3b7   : > { %3781 = vperm.xlu0 %12694, %v3642_v61   ;;  %v3655_v61 = vld [vmem:[%s16674_s1 + $0x128] sm:$0xff] }
 0x3b9   : > { %10185 = vmatmul.mubr.f32.gmra.mrb[30].mxu0 %v2895_v8  ;;  %v2905_v8 = vld [vmem:[%s13105_s28 + $0xf3] sm:$0xff] }
 0x3ba   : > { %10187 = vmatprep.mubr.msk.f32.mxu0 %vm12864_vm0, %v12865_v1  ;;  %3776 = vperm.xlu1 %12695, %v3641_v14  }
 0x3bd   : > { %10188 = vmatmul.mubr.f32.gmra.mrb[32].mxu0 %v2896_v21  ;;  %v3644_v21 = vld [vmem:[%s16674_s1 + $0xd0] sm:$0xff] }
 0x3be   : > { %10190 = vmatprep.mubr.msk.f32.mxu0 %vm12864_vm0, %v12865_v1  ;;  %3791 = vperm.xlu0 %12694, %v3644_v21  }
 0x3c1   : > { %10191 = vmatmul.mubr.f32.gmra.mrb[34].mxu0 %v2897_v36  ;;  %v3643_v36 = vld [vmem:[%s16674_s1 + $0xc8] sm:$0xff] }
 0x3c2   : > { %10193 = vmatprep.mubr.msk.f32.mxu0 %vm12864_vm0, %v12865_v1  ;;  %3786 = vperm.xlu1 %12695, %v3643_v36   ;;  %v2914_v36 = vld [vmem:[%s13105_s28 + $0x13b] sm:$0xff] }
 0x3c3   : > { %3801 = vperm.xlu0 %12694, %v3646_v3  }
 0x3c5   : > { %10194 = vmatmul.mubr.f32.gmra.mrb[36].mxu0 %v2898_v45 }
 0x3c6   : > { %10196 = vmatprep.mubr.msk.f32.mxu0 %vm12864_vm0, %v12865_v1  ;;  %v14410_v48 = vpop.f32.mrb[40].mxu1  ;;  %3796 = vperm.xlu1 %12695, %v3645_v46   ;;  %v7283_v46 = vld [vmem:[%s16675_s2 + $0x18] sm:$0xff] }
 0x3c7   : > { %v9426_v51 = vpop.f32.mrb[41].mxu1  ;;  %3811 = vperm.xlu0 %12694, %v3648_v47   ;;  %v2915_v47 = vld [vmem:[%s13105_s28 + $0x143] sm:$0xff] }
 0x3c8   : > { %v3652_v51 = vld [vmem:[%s16674_s1 + $0x110] sm:$0xff] }
 0x3c9   : > { %10197 = vmatmul.mubr.f32.gmra.mrb[38].mxu0 %v2899_v35 }
 0x3ca   : > { %10199 = vmatprep.mubr.msk.f32.mxu0 %vm12864_vm0, %v12865_v1  ;;  %v14421_v62 = vpop.f32.mrb[42].mxu1  ;;  %3806 = vperm.xlu1 %12695, %v3647_v5   ;;  %v7282_v5 = vld [vmem:[%s16675_s2 + $0x10] sm:$0xff] }
 0x3cb   : > { %v9429_v2 = vpop.f32.mrb[43].mxu1  ;;  %3821 = vperm.xlu0 %12694, %v3650_v7   ;;  %v7285_v7 = vld [vmem:[%s16675_s2 + $0x28] sm:$0xff] }
 0x3cc   : > { %v3651_v2 = vld [vmem:[%s16674_s1 + $0x108] sm:$0xff] }
 0x3cd   : > { %10200 = vmatmul.mubr.f32.gmra.mrb[40].mxu0 %v2900_v10  ;;  %v2909_v10 = vld [vmem:[%s13105_s28 + $0x113] sm:$0xff] }
 0x3ce   : > { %10202 = vmatprep.mubr.msk.f32.mxu0 %vm12864_vm0, %v12865_v1  ;;  %v14432_v20 = vpop.f32.mrb[44].mxu1 }
 0x3cf   : > { %v9432_v23 = vpop.f32.mrb[45].mxu1  ;;  %3831 = vperm.xlu0 %12694, %v3652_v51   ;;  %v7284_v51 = vld [vmem:[%s16675_s2 + $0x20] sm:$0xff] }
 0x3d1   : > { %10203 = vmatmul.mubr.f32.gmra.mrb[42].mxu0 %v2901_v22  ;;  %v3649_v22 = vld [vmem:[%s16674_s1 + $0xf8] sm:$0xff] }
 0x3d2   : > { %10205 = vmatprep.mubr.msk.f32.mxu0 %vm12864_vm0, %v12865_v1  ;;  %v14443_v54 = vpop.f32.mrb[46].mxu1  ;;  %3816 = vperm.xlu1 %12695, %v3649_v22  }
 0x3d3   : > { %v9435_v56 = vpop.f32.mrb[47].mxu1  ;;  %3841 = vperm.xlu0 %12694, %v3654_v6  }
 0x3d5   : > { %10206 = vmatmul.mubr.f32.gmra.mrb[44].mxu0 %v2902_v60 }
 0x3d6   : > { %10208 = vmatprep.mubr.msk.f32.mxu0 %vm12864_vm0, %v12865_v1  ;;  %v14454_v41 = vpop.f32.mrb[48].mxu1  ;;  %3826 = vperm.xlu1 %12695, %v3651_v2  }
 0x3d7   : > { %v9438_v11 = vpop.f32.mrb[49].mxu1  ;;  %3851 = vperm.xlu0 %12694, %v3656_v34  }
 0x3d8   : > { %v2913_v11 = vld [vmem:[%s13105_s28 + $0x133] sm:$0xff] }
 0x3d9   : > { %10209 = vmatmul.mubr.f32.gmra.mrb[46].mxu0 %v2903_v17 }
 0x3da   : > { %10211 = vmatprep.mubr.msk.f32.mxu0 %vm12864_vm0, %v12865_v1  ;;  %v14465_v28 = vpop.f32.mrb[50].mxu1  ;;  %3836 = vperm.xlu1 %12695, %v3653_v31   ;;  %v2918_v31 = vld [vmem:[%s13105_s28 + $0x15b] sm:$0xff] }
 0x3db   : > { %v9441_v57 = vpop.f32.mrb[51].mxu1 }
 0x3dc   : > { %v7281_v57 = vld [vmem:[%s16675_s2 + $0x8] sm:$0xff] }
 0x3dd   : > { %10212 = vmatmul.mubr.f32.gmra.mrb[48].mxu0 %v2904_v38  ;;  %v2912_v38 = vld [vmem:[%s13105_s28 + $0x12b] sm:$0xff] }
 0x3de   : > { %10214 = vmatprep.mubr.msk.f32.mxu0 %vm12864_vm0, %v12865_v1  ;;  %v14476_v42 = vpop.f32.mrb[52].mxu1  ;;  %3846 = vperm.xlu1 %12695, %v3655_v61   ;;  %v7291_v61 = vld [vmem:[%s16675_s2 + $0x58] sm:$0xff] }
 0x3df   : > { %v9444_v45 = vpop.f32.mrb[53].mxu1 }
 0x3e0   : > { %v7280_v45 = vld [vmem:[%s16675_s2] sm:$0xff] }
 0x3e1   : > { %10215 = vmatmul.mubr.f32.gmra.mrb[50].mxu0 %v2905_v8  ;;  %v3658_v8 = vld [vmem:[%s16674_s1 + $0x140] sm:$0x3f] }
 0x3e2   : > { %10217 = vmatprep.mubr.msk.f32.mxu0 %vm12864_vm0, %v12865_v1  ;;  %v14487_v35 = vpop.f32.mrb[54].mxu1  ;;  %3861 = vperm.xlu0 %12694, %v3658_v8   ;;  %v2919_v8 = vld [vmem:[%s13105_s28 + $0x163] sm:$0xff] }
 0x3e3   : > { %v9447_v37 = vpop.f32.mrb[55].mxu1 }
 0x3e5   : > { %10218 = vmatmul.mubr.f32.gmra.mrb[52].mxu0 %v2906_v24  ;;  %v3657_v24 = vld [vmem:[%s16674_s1 + $0x138] sm:$0xff] }
 0x3e6   : > { %10220 = vmatprep.mubr.msk.f32.mxu0 %vm12864_vm0, %v12865_v1  ;;  %v14498_v16 = vpop.f32.mrb[56].mxu1  ;;  %3856 = vperm.xlu1 %12695, %v3657_v24   ;;  %v7290_v24 = vld [vmem:[%s16675_s2 + $0x50] sm:$0xff] }
 0x3e7   : > { %v9450_v19 = vpop.f32.mrb[57].mxu1  ;;  %7323 = vperm.xlu0 %12694, %v7281_v57   ;;  %v7293_v57 = vld [vmem:[%s16675_s2 + $0x68] sm:$0xff] }
 0x3e9   : > { %10221 = vmatmul.mubr.f32.gmra.mrb[54].mxu0 %v2907_v39 }
 0x3ea   : > { %10223 = vmatprep.mubr.msk.f32.mxu0 %vm12864_vm0, %v12865_v1  ;;  %v14509_v58 = vpop.f32.mrb[58].mxu1  ;;  %7318 = vperm.xlu1 %12695, %v7280_v45  }
 0x3eb   : > { %v9453_v60 = vpop.f32.mrb[59].mxu1  ;;  %7333 = vperm.xlu0 %12694, %v7283_v46   ;;  %v7292_v46 = vld [vmem:[%s16675_s2 + $0x60] sm:$0xff] }
 0x3ec   : > { %v2917_v60 = vld [vmem:[%s13105_s28 + $0x153] sm:$0xff] }
 0x3ed   : > { %10224 = vmatmul.mubr.f32.gmra.mrb[56].mxu0 %v2908_v27 }
 0x3ee   : > { %10226 = vmatprep.mubr.msk.f32.mxu0 %vm12864_vm0, %v12865_v1  ;;  %v14520_v17 = vpop.f32.mrb[60].mxu1  ;;  %7328 = vperm.xlu1 %12695, %v7282_v5  }
 0x3ef   : > { %v9456_v23 = vpop.f32.mrb[61].mxu1  ;;  %7343 = vperm.xlu0 %12694, %v7285_v7  }
 0x3f0   : > { %v7289_v23 = vld [vmem:[%s16675_s2 + $0x48] sm:$0xff] }
 0x3f1   : > { %10227 = vmatmul.mubr.f32.gmra.mrb[58].mxu0 %v2909_v10  ;;  %v2916_v10 = vld [vmem:[%s13105_s28 + $0x14b] sm:$0xff] }
 0x3f2   : > { %10229 = vmatprep.mubr.msk.f32.mxu0 %vm12864_vm0, %v12865_v1  ;;  %v14531_v56 = vpop.f32.mrb[62].mxu1  ;;  %7338 = vperm.xlu1 %12695, %v7284_v51   ;;  %v3250_v51 = vld [vmem:[%s13105_s28 + $0x34] sm:$0xff] }
 0x3f3   : > { %v9459_v59 = vpop.f32.mrb[63].mxu1 }
 0x3f4   : > { %v7288_v59 = vld [vmem:[%s16675_s2 + $0x40] sm:$0xff] }
 0x3f5   : > { %10230 = vmatmul.mubr.f32.gmra.mrb[60].mxu0 %v2910_v55  ;;  %v7287_v55 = vld [vmem:[%s16675_s2 + $0x38] sm:$0xff] }
 0x3f6   : > { %10232 = vmatprep.mubr.msk.f32.mxu0 %vm12864_vm0, %v12865_v1  ;;  %v14542_v14 = vpop.f32.mrb[64].mxu1  ;;  %7353 = vperm.xlu0 %12694, %v7287_v55   ;;  %v7296_v55 = vld [vmem:[%s16675_s2 + $0x80] sm:$0xff] }
 0x3f7   : > { %v9462_v21 = vpop.f32.mrb[65].mxu1 }
 0x3f9   : > { %10233 = vmatmul.mubr.f32.gmra.mrb[62].mxu0 %v2911_v12  ;;  %v7286_v12 = vld [vmem:[%s16675_s2 + $0x30] sm:$0xff] }
 0x3fa   : > { %10235 = vmatprep.mubr.msk.f32.mxu0 %vm12864_vm0, %v12865_v1  ;;  %v14553_v3 = vpop.f32.mrb[66].mxu1  ;;  %7348 = vperm.xlu1 %12695, %v7286_v12   ;;  %v7298_v12 = vld [vmem:[%s16675_s2 + $0x90] sm:$0xff] }
 0x3fb   : > { %v9465_v39 = vpop.f32.mrb[67].mxu1  ;;  %7363 = vperm.xlu0 %12694, %v7289_v23   ;;  %v7301_v23 = vld [vmem:[%s16675_s2 + $0xa8] sm:$0xff] }
 0x3fd   : > { %10236 = vmatmul.mubr.f32.gmra.mrb[64].mxu0 %v2912_v38 }
 0x3fe   : > { %10238 = vmatprep.mubr.msk.f32.mxu0 %vm12864_vm0, %v12865_v1  ;;  %v14564_v27 = vpop.f32.mrb[68].mxu1  ;;  %7358 = vperm.xlu1 %12695, %v7288_v59   ;;  %v7303_v59 = vld [vmem:[%s16675_s2 + $0xb8] sm:$0xff] }
 0x3ff   : > { %v9468_v37 = vpop.f32.mrb[69].mxu1  ;;  %7373 = vperm.xlu0 %12694, %v7291_v61   ;;  %v3253_v61 = vld [vmem:[%s13105_s28 + $0x4c] sm:$0xff] }
 0x400   : > { %v3249_v37 = vld [vmem:[%s13105_s28 + $0x2c] sm:$0xff] }
 0x401   : > { %10239 = vmatmul.mubr.f32.gmra.mrb[66].mxu0 %v2913_v11 }
 0x402   : > { %10241 = vmatprep.mubr.msk.f32.mxu0 %vm12864_vm0, %v12865_v1  ;;  %v14575_v19 = vpop.f32.mrb[70].mxu1  ;;  %7368 = vperm.xlu1 %12695, %v7290_v24   ;;  %v3254_v24 = vld [vmem:[%s13105_s28 + $0x54] sm:$0xff] }
 0x403   : > { %v9471_v22 = vpop.f32.mrb[71].mxu1  ;;  %7383 = vperm.xlu0 %12694, %v7293_v57   ;;  %v7304_v57 = vld [vmem:[%s16675_s2 + $0xc0] sm:$0xff] }
 0x404   : > { %v7297_v22 = vld [vmem:[%s16675_s2 + $0x88] sm:$0xff] }
 0x405   : > { %10242 = vmatmul.mubr.f32.gmra.mrb[68].mxu0 %v2914_v36  ;;  %v2920_v36 = vld [vmem:[%s13105_s28 + $0x16b] sm:$0x3f] }
 0x406   : > { %10244 = vmatprep.mubr.msk.f32.mxu0 %vm12864_vm0, %v12865_v1  ;;  %v14586_v2 = vpop.f32.mrb[72].mxu1  ;;  %7378 = vperm.xlu1 %12695, %v7292_v46   ;;  %v7306_v46 = vld [vmem:[%s16675_s2 + $0xd0] sm:$0xff] }
 0x407   : > { %v9474_v6 = vpop.f32.mrb[73].mxu1 }
 0x408   : > { %v3251_v6 = vld [vmem:[%s13105_s28 + $0x3c] sm:$0xff] }
 0x409   : > { %10245 = vmatmul.mubr.f32.gmra.mrb[70].mxu0 %v2915_v47  ;;  %v7295_v47 = vld [vmem:[%s16675_s2 + $0x78] sm:$0xff] }
 0x40a   : > { %10247 = vmatprep.mubr.msk.f32.mxu0 %vm12864_vm0, %v12865_v1  ;;  %v14597_v34 = vpop.f32.mrb[74].mxu1  ;;  %7393 = vperm.xlu0 %12694, %v7295_v47   ;;  %v7309_v47 = vld [vmem:[%s16675_s2 + $0xe8] sm:$0xff] }
 0x40b   : > { %v9477_v38 = vpop.f32.mrb[75].mxu1 }
 0x40c   : > { %v7300_v38 = vld [vmem:[%s16675_s2 + $0xa0] sm:$0xff] }
 0x40d   : > { %10248 = vmatmul.mubr.f32.gmra.mrb[72].mxu0 %v2916_v10  ;;  %v7294_v10 = vld [vmem:[%s16675_s2 + $0x70] sm:$0xff] }
 0x40e   : > { %10250 = vmatprep.mubr.msk.f32.mxu0 %vm12864_vm0, %v12865_v1  ;;  %v14608_v11 = vpop.f32.mrb[76].mxu1  ;;  %7388 = vperm.xlu1 %12695, %v7294_v10   ;;  %v7311_v10 = vld [vmem:[%s16675_s2 + $0xf8] sm:$0xff] }
 0x40f   : > { %v9480_v21 = vpop.f32.mrb[77].mxu1  ;;  %7403 = vperm.xlu0 %12694, %v7297_v22   ;;  %v3257_v22 = vld [vmem:[%s13105_s28 + $0x6c] sm:$0xff] }
 0x410   : > { %v7305_v21 = vld [vmem:[%s16675_s2 + $0xc8] sm:$0xff] }
 0x411   : > { %10251 = vmatmul.mubr.f32.gmra.mrb[74].mxu0 %v2917_v60  ;;  %v7299_v60 = vld [vmem:[%s16675_s2 + $0x98] sm:$0xff] }
 0x412   : > { %10253 = vmatprep.mubr.msk.f32.mxu0 %vm12864_vm0, %v12865_v1  ;;  %v14619_v39 = vpop.f32.mrb[78].mxu1  ;;  %7398 = vperm.xlu1 %12695, %v7296_v55   ;;  %v7313_v55 = vld [vmem:[%s16675_s2 + $0x108] sm:$0xff] }
 0x413   : > { %v9483_v45 = vpop.f32.mrb[79].mxu1  ;;  %7413 = vperm.xlu0 %12694, %v7299_v60   ;;  %v3258_v60 = vld [vmem:[%s13105_s28 + $0x74] sm:$0xff] }
 0x414   : > { %v3255_v45 = vld [vmem:[%s13105_s28 + $0x5c] sm:$0xff] }
 0x415   : > { %10254 = vmatmul.mubr.f32.gmra.mrb[76].mxu0 %v2918_v31  ;;  %v3252_v31 = vld [vmem:[%s13105_s28 + $0x44] sm:$0xff] }
 0x416   : > { %10256 = vmatprep.mubr.msk.f32.mxu0 %vm12864_vm0, %v12865_v1  ;;  %v14630_v5 = vpop.f32.mrb[80].mxu1  ;;  %7408 = vperm.xlu1 %12695, %v7298_v12   ;;  %v7315_v12 = vld [vmem:[%s16675_s2 + $0x118] sm:$0xff] }
 0x417   : > { %v9486_v7 = vpop.f32.mrb[81].mxu1  ;;  %7423 = vperm.xlu0 %12694, %v7301_v23   ;;  %v3259_v23 = vld [vmem:[%s13105_s28 + $0x7c] sm:$0xff] }
 0x418   : > { %v7308_v7 = vld [vmem:[%s16675_s2 + $0xe0] sm:$0xff] }
 0x419   : > { %10257 = vmatmul.mubr.f32.gmra.mrb[78].mxu0 %v2919_v8  ;;  %v7302_v8 = vld [vmem:[%s16675_s2 + $0xb0] sm:$0xff] }
 0x41a   : > { %10259 = vmatprep.mubr.msk.f32.mxu0 %vm12864_vm0, %v12865_v1  ;;  %7418 = vperm.xlu1 %12695, %v7300_v38   ;;  %v3260_v38 = vld [vmem:[%s13105_s28 + $0x84] sm:$0xff] }
 0x41b   : > { %7433 = vperm.xlu0 %12694, %v7303_v59   ;;  %v3261_v59 = vld [vmem:[%s13105_s28 + $0x8c] sm:$0xff] }
 0x41d   : > { %10260 = vmatmul.mubr.f32.gmra.mrb[80].mxu0 %v2920_v36  ;;  %v7307_v36 = vld [vmem:[%s16675_s2 + $0xd8] sm:$0xff] }
 0x41e   : > { %10294 = vmatprep.mubr.msk.f32.mxu0 %vm12864_vm0, %v12865_v1  ;;  %7428 = vperm.xlu1 %12695, %v7302_v8   ;;  %v3263_v8 = vld [vmem:[%s13105_s28 + $0x9c] sm:$0xff] }
 0x41f   : > { %7443 = vperm.xlu0 %12694, %v7305_v21   ;;  %v3264_v21 = vld [vmem:[%s13105_s28 + $0xa4] sm:$0xff] }
 0x421   : > { %10295 = vmatmul.mubr.f32.vlgmr.msra.gmra.mrb[0].mxu0 %v3249_v37  ;;  %v3256_v37 = vld [vmem:[%s13105_s28 + $0x64] sm:$0xff] }
 0x422   : > { %10297 = vmatprep.mubr.msk.f32.mxu0 %vm12864_vm0, %v12865_v1  ;;  %7438 = vperm.xlu1 %12695, %v7304_v57   ;;  %v3266_v57 = vld [vmem:[%s13105_s28 + $0xb4] sm:$0xff] }
 0x423   : > { %7453 = vperm.xlu0 %12694, %v7307_v36   ;;  %v3267_v36 = vld [vmem:[%s13105_s28 + $0xbc] sm:$0xff] }
 0x425   : > { %10298 = vmatmul.mubr.f32.gmra.mrb[2].mxu0 %v3250_v51  ;;  %v7310_v51 = vld [vmem:[%s16675_s2 + $0xf0] sm:$0xff] }
 0x426   : > { %10300 = vmatprep.mubr.msk.f32.mxu0 %vm12864_vm0, %v12865_v1  ;;  %7448 = vperm.xlu1 %12695, %v7306_v46   ;;  %v3269_v46 = vld [vmem:[%s13105_s28 + $0xcc] sm:$0xff] }
 0x427   : > { %7463 = vperm.xlu0 %12694, %v7309_v47   ;;  %v3270_v47 = vld [vmem:[%s13105_s28 + $0xd4] sm:$0xff] }
 0x429   : > { %10301 = vmatmul.mubr.f32.gmra.mrb[4].mxu0 %v3251_v6  ;;  %v7312_v6 = vld [vmem:[%s16675_s2 + $0x100] sm:$0xff] }
 0x42a   : > { %10303 = vmatprep.mubr.msk.f32.mxu0 %vm12864_vm0, %v12865_v1  ;;  %7458 = vperm.xlu1 %12695, %v7308_v7   ;;  %v3272_v7 = vld [vmem:[%s13105_s28 + $0xe4] sm:$0xff] }
 0x42b   : > { %7473 = vperm.xlu0 %12694, %v7311_v10   ;;  %v3273_v10 = vld [vmem:[%s13105_s28 + $0xec] sm:$0xff] }
 0x42d   : > { %10304 = vmatmul.mubr.f32.gmra.mrb[6].mxu0 %v3252_v31  ;;  %v7314_v31 = vld [vmem:[%s16675_s2 + $0x110] sm:$0xff] }
 0x42e   : > { %10306 = vmatprep.mubr.msk.f32.mxu0 %vm12864_vm0, %v12865_v1  ;;  %7468 = vperm.xlu1 %12695, %v7310_v51   ;;  %v3275_v51 = vld [vmem:[%s13105_s28 + $0xfc] sm:$0xff] }
 0x42f   : > { %7483 = vperm.xlu0 %12694, %v7313_v55   ;;  %v3276_v55 = vld [vmem:[%s13105_s28 + $0x104] sm:$0xff] }
 0x431   : > { %10307 = vmatmul.mubr.f32.gmra.mrb[8].mxu0 %v3253_v61  ;;  %v3262_v61 = vld [vmem:[%s13105_s28 + $0x94] sm:$0xff] }
 0x432   : > { %10309 = vmatprep.mubr.msk.f32.mxu0 %vm12864_vm0, %v12865_v1  ;;  %7478 = vperm.xlu1 %12695, %v7312_v6   ;;  %v3278_v6 = vld [vmem:[%s13105_s28 + $0x114] sm:$0xff] }
 0x433   : > { %7493 = vperm.xlu0 %12694, %v7315_v12   ;;  %v3279_v12 = vld [vmem:[%s13105_s28 + $0x11c] sm:$0xff] }
 0x435   : > { %10310 = vmatmul.mubr.f32.gmra.mrb[10].mxu0 %v3254_v24  ;;  %v3265_v24 = vld [vmem:[%s13105_s28 + $0xac] sm:$0xff] }
 0x436   : > { %10312 = vmatprep.mubr.msk.f32.mxu0 %vm12864_vm0, %v12865_v1  ;;  %7488 = vperm.xlu1 %12695, %v7314_v31   ;;  %v3281_v31 = vld [vmem:[%s13105_s28 + $0x12c] sm:$0xff] }
 0x439   : > { %10313 = vmatmul.mubr.f32.gmra.mrb[12].mxu0 %v3255_v45  ;;  %v3268_v45 = vld [vmem:[%s13105_s28 + $0xc4] sm:$0xff] }
 0x43a   : > { %10315 = vmatprep.mubr.msk.f32.mxu0 %vm12864_vm0, %v12865_v1 }
 0x43d   : > { %10316 = vmatmul.mubr.f32.gmra.mrb[14].mxu0 %v3256_v37  ;;  %v3271_v37 = vld [vmem:[%s13105_s28 + $0xdc] sm:$0xff] }
 0x43e   : > { %10318 = vmatprep.mubr.msk.f32.mxu0 %vm12864_vm0, %v12865_v1 }
 0x441   : > { %10319 = vmatmul.mubr.f32.gmra.mrb[16].mxu0 %v3257_v22  ;;  %v3274_v22 = vld [vmem:[%s13105_s28 + $0xf4] sm:$0xff] }
 0x442   : > { %10321 = vmatprep.mubr.msk.f32.mxu0 %vm12864_vm0, %v12865_v1 }
 0x445   : > { %10322 = vmatmul.mubr.f32.gmra.mrb[18].mxu0 %v3258_v60  ;;  %v3277_v60 = vld [vmem:[%s13105_s28 + $0x10c] sm:$0xff] }
 0x446   : > { %10324 = vmatprep.mubr.msk.f32.mxu0 %vm12864_vm0, %v12865_v1 }
 0x449   : > { %10325 = vmatmul.mubr.f32.gmra.mrb[20].mxu0 %v3259_v23  ;;  %v3280_v23 = vld [vmem:[%s13105_s28 + $0x124] sm:$0xff] }
 0x44a   : > { %10327 = vmatprep.mubr.msk.f32.mxu0 %vm12864_vm0, %v12865_v1 }
 0x44d   : > { %10328 = vmatmul.mubr.f32.gmra.mrb[22].mxu0 %v3260_v38  ;;  %v3282_v38 = vld [vmem:[%s13105_s28 + $0x134] sm:$0xff] }
 0x44e   : > { %10330 = vmatprep.mubr.msk.f32.mxu0 %vm12864_vm0, %v12865_v1 }
 0x451   : > { %10331 = vmatmul.mubr.f32.gmra.mrb[24].mxu0 %v3261_v59  ;;  %v3283_v59 = vld [vmem:[%s13105_s28 + $0x13c] sm:$0xff] }
 0x452   : > { %10333 = vmatprep.mubr.msk.f32.mxu0 %vm12864_vm0, %v12865_v1 }
 0x455   : > { %10334 = vmatmul.mubr.f32.gmra.mrb[26].mxu0 %v3262_v61  ;;  %v3284_v61 = vld [vmem:[%s13105_s28 + $0x144] sm:$0xff] }
 0x456   : > { %10336 = vmatprep.mubr.msk.f32.mxu0 %vm12864_vm0, %v12865_v1 }
 0x459   : > { %10337 = vmatmul.mubr.f32.gmra.mrb[28].mxu0 %v3263_v8  ;;  %v3285_v8 = vld [vmem:[%s13105_s28 + $0x14c] sm:$0xff] }
 0x45a   : > { %10339 = vmatprep.mubr.msk.f32.mxu0 %vm12864_vm0, %v12865_v1 }
 0x45d   : > { %10340 = vmatmul.mubr.f32.gmra.mrb[30].mxu0 %v3264_v21  ;;  %v3286_v21 = vld [vmem:[%s13105_s28 + $0x154] sm:$0xff] }
 0x45e   : > { %10342 = vmatprep.mubr.msk.f32.mxu0 %vm12864_vm0, %v12865_v1 }
 0x461   : > { %10343 = vmatmul.mubr.f32.gmra.mrb[32].mxu0 %v3265_v24  ;;  %v3287_v24 = vld [vmem:[%s13105_s28 + $0x15c] sm:$0xff] }
 0x462   : > { %10345 = vmatprep.mubr.msk.f32.mxu0 %vm12864_vm0, %v12865_v1 }
 0x465   : > { %10346 = vmatmul.mubr.f32.gmra.mrb[34].mxu0 %v3266_v57  ;;  %v3288_v57 = vld [vmem:[%s13105_s28 + $0x164] sm:$0xff] }
 0x466   : > { %10348 = vmatprep.mubr.msk.f32.mxu0 %vm12864_vm0, %v12865_v1 }
 0x469   : > { %10349 = vmatmul.mubr.f32.gmra.mrb[36].mxu0 %v3267_v36  ;;  %v3289_v36 = vld [vmem:[%s13105_s28 + $0x16c] sm:$0x3f] }
 0x46a   : > { %10351 = vmatprep.mubr.msk.f32.mxu0 %vm12864_vm0, %v12865_v1 }
 0x46d   : > { %10352 = vmatmul.mubr.f32.gmra.mrb[38].mxu0 %v3268_v45 }
 0x46e   : > { %10354 = vmatprep.mubr.msk.f32.mxu0 %vm12864_vm0, %v12865_v1 }
 0x471   : > { %10355 = vmatmul.mubr.f32.gmra.mrb[40].mxu0 %v3269_v46 }
 0x472   : > { %10357 = vmatprep.mubr.msk.f32.mxu0 %vm12864_vm0, %v12865_v1 }
 0x475   : > { %10358 = vmatmul.mubr.f32.gmra.mrb[42].mxu0 %v3270_v47 }
 0x476   : > { %10360 = vmatprep.mubr.msk.f32.mxu0 %vm12864_vm0, %v12865_v1 }
 0x479   : > { %10361 = vmatmul.mubr.f32.gmra.mrb[44].mxu0 %v3271_v37 }
 0x47a   : > { %10363 = vmatprep.mubr.msk.f32.mxu0 %vm12864_vm0, %v12865_v1 }
 0x47d   : > { %10364 = vmatmul.mubr.f32.gmra.mrb[46].mxu0 %v3272_v7 }
 0x47e   : > { %10366 = vmatprep.mubr.msk.f32.mxu0 %vm12864_vm0, %v12865_v1 }
 0x481   : > { %10367 = vmatmul.mubr.f32.gmra.mrb[48].mxu0 %v3273_v10 }
 0x482   : > { %10369 = vmatprep.mubr.msk.f32.mxu0 %vm12864_vm0, %v12865_v1 }
 0x485   : > { %10370 = vmatmul.mubr.f32.gmra.mrb[50].mxu0 %v3274_v22 }
 0x486   : > { %10372 = vmatprep.mubr.msk.f32.mxu0 %vm12864_vm0, %v12865_v1 }
 0x489   : > { %10373 = vmatmul.mubr.f32.gmra.mrb[52].mxu0 %v3275_v51 }
 0x48a   : > { %10375 = vmatprep.mubr.msk.f32.mxu0 %vm12864_vm0, %v12865_v1 }
 0x48d   : > { %10376 = vmatmul.mubr.f32.gmra.mrb[54].mxu0 %v3276_v55 }
 0x48e   : > { %10378 = vmatprep.mubr.msk.f32.mxu0 %vm12864_vm0, %v12865_v1 }
 0x491   : > { %10379 = vmatmul.mubr.f32.gmra.mrb[56].mxu0 %v3277_v60 }
 0x492   : > { %10381 = vmatprep.mubr.msk.f32.mxu0 %vm12864_vm0, %v12865_v1 }
 0x495   : > { %10382 = vmatmul.mubr.f32.gmra.mrb[58].mxu0 %v3278_v6 }
 0x496   : > { %10384 = vmatprep.mubr.msk.f32.mxu0 %vm12864_vm0, %v12865_v1 }
 0x499   : > { %10385 = vmatmul.mubr.f32.gmra.mrb[60].mxu0 %v3279_v12 }
 0x49a   : > { %10387 = vmatprep.mubr.msk.f32.mxu0 %vm12864_vm0, %v12865_v1 }
 0x49d   : > { %10388 = vmatmul.mubr.f32.gmra.mrb[62].mxu0 %v3280_v23 }
 0x49e   : > { %10390 = vmatprep.mubr.msk.f32.mxu0 %vm12864_vm0, %v12865_v1 }
 0x4a1   : > { %10391 = vmatmul.mubr.f32.gmra.mrb[64].mxu0 %v3281_v31 }
 0x4a2   : > { %10393 = vmatprep.mubr.msk.f32.mxu0 %vm12864_vm0, %v12865_v1 }
 0x4a5   : > { %10394 = vmatmul.mubr.f32.gmra.mrb[66].mxu0 %v3282_v38 }
 0x4a6   : > { %10396 = vmatprep.mubr.msk.f32.mxu0 %vm12864_vm0, %v12865_v1 }
 0x4a9   : > { %10397 = vmatmul.mubr.f32.gmra.mrb[68].mxu0 %v3283_v59 }
 0x4aa   : > { %10399 = vmatprep.mubr.msk.f32.mxu0 %vm12864_vm0, %v12865_v1 }
 0x4ad   : > { %10400 = vmatmul.mubr.f32.gmra.mrb[70].mxu0 %v3284_v61 }
 0x4ae   : > { %10402 = vmatprep.mubr.msk.f32.mxu0 %vm12864_vm0, %v12865_v1 }
 0x4b1   : > { %10403 = vmatmul.mubr.f32.gmra.mrb[72].mxu0 %v3285_v8 }
 0x4b2   : > { %10405 = vmatprep.mubr.msk.f32.mxu0 %vm12864_vm0, %v12865_v1 }
 0x4b5   : > { %10406 = vmatmul.mubr.f32.gmra.mrb[74].mxu0 %v3286_v21 }
 0x4b6   : > { %10408 = vmatprep.mubr.msk.f32.mxu0 %vm12864_vm0, %v12865_v1 }
 0x4b9   : > { %10409 = vmatmul.mubr.f32.gmra.mrb[76].mxu0 %v3287_v24 }
 0x4ba   : > { %10411 = vmatprep.mubr.msk.f32.mxu0 %vm12864_vm0, %v12865_v1 }
 0x4bd   : > { %10412 = vmatmul.mubr.f32.gmra.mrb[78].mxu0 %v3288_v57 }
 0x4be   : > { %10414 = vmatprep.mubr.msk.f32.mxu0 %vm12864_vm0, %v12865_v1 }
 0x4c1   : > { %10415 = vmatmul.mubr.f32.gmra.mrb[80].mxu0 %v3289_v36  ;;  %v14842_v36 = vpop.permute.xlu0 %3661 }
 0x4c2   : > { %16814 = vst [vmem:[#allocation15_spill] sm:$0xff] %v14842_v36 }
 0x4f4   : > { %v3373_v45 = vpop.f32.mrb[0].mxu0 }
 0x4f5   : > { %v14816_v46 = vadd.f32 %v3373_v45, %v14249_v26  ;;  %v10296_v47 = vpop.f32.mrb[1].mxu0 }
 0x4f8   : > { %v3378_v37 = vpop.f32.mrb[2].mxu0 }
 0x4f9   : > { %v14819_v7 = vadd.f32 %v3378_v37, %v14254_v43  ;;  %v10299_v10 = vpop.f32.mrb[3].mxu0  ;;  %v14849_v37 = vpop.permute.xlu0 %3666 }
 0x4fa   : > { %16816 = vst [vmem:[#allocation17_spill] sm:$0xff] %v14849_v37 }
 0x4fb   : > { %16813 = vst [vmem:[#allocation14_spill] sm:$0xff] %v14819_v7 }
 0x4fc   : > { %v3383_v22 = vpop.f32.mrb[4].mxu0 }
 0x4fd   : > { %v14822_v51 = vadd.f32 %v3383_v22, %v14260_v4  ;;  %v10302_v55 = vpop.f32.mrb[5].mxu0 }
 0x500   : > { %v3388_v60 = vpop.f32.mrb[6].mxu0 }
 0x501   : > { %v14825_v1 = vadd.f32 %v3388_v60, %v14266_v49  ;;  %v10305_v6 = vpop.f32.mrb[7].mxu0 }
 0x504   : > { %v3393_v12 = vpop.f32.mrb[8].mxu0 }
 0x505   : > { %v14828_v26 = vadd.f32 %v3393_v12, %v14272_v32  ;;  %v10308_v23 = vpop.f32.mrb[9].mxu0  ;;  %v14859_v12 = vpop.permute.xlu0 %3681 }
 0x506   : > { %16818 = vst [vmem:[#allocation19_spill] sm:$0xff] %v14859_v12 }
 0x508   : > { %v3398_v31 = vpop.f32.mrb[10].mxu0 }
 0x509   : > { %v14831_v43 = vadd.f32 %v3398_v31, %v14278_v15  ;;  %v10311_v38 = vpop.f32.mrb[11].mxu0  ;;  %v14844_v15 = vpop.permute.xlu1 %3671 }
 0x50a   : > { %16815 = vst [vmem:[#allocation16_spill] sm:$0xff] %v14844_v15 }
 0x50c   : > { %v3403_v59 = vpop.f32.mrb[12].mxu0 }
 0x50d   : > { %v14834_v4 = vadd.f32 %v3403_v59, %v14284_v33  ;;  %v10314_v61 = vpop.f32.mrb[13].mxu0  ;;  %v14854_v55 = vpop.permute.xlu1 %3676 }
 0x50e   : > { %16817 = vst [vmem:[#allocation18_spill] sm:$0xff] %v14854_v55  ;;  %v14866_v59 = vpop.permute.xlu0 %3691 }
 0x50f   : > { %16820 = vst [vmem:[#allocation21_spill] sm:$0xff] %v14866_v59 }
 0x510   : > { %v3408_v8 = vpop.f32.mrb[14].mxu0 }
 0x511   : > { %v14837_v49 = vadd.f32 %v3408_v8, %v14290_v13  ;;  %v10317_v21 = vpop.f32.mrb[15].mxu0  ;;  %v14861_v23 = vpop.permute.xlu1 %3686 }
 0x512   : > { %16819 = vst [vmem:[#allocation20_spill] sm:$0xff] %v14861_v23 }
 0x514   : > { %v3413_v24 = vpop.f32.mrb[16].mxu0 }
 0x515   : > { %v14840_v32 = vadd.f32 %v3413_v24, %v14296_v25  ;;  %v10320_v57 = vpop.f32.mrb[17].mxu0  ;;  %v14871_v21 = vpop.permute.xlu1 %3696 }
 0x516   : > { %16821 = vst [vmem:[#allocation22_spill] sm:$0xff] %v14871_v21 }
 0x518   : > { %v3418_v45 = vpop.f32.mrb[18].mxu0 }
 0x519   : > { %v14847_v47 = vadd.f32 %v3418_v45, %v14301_v53  ;;  %v10323_v33 = vpop.f32.mrb[19].mxu0  ;;  %v14876_v45 = vpop.permute.xlu0 %3701 }
 0x51a   : > { %16822 = vst [vmem:[#allocation23_spill] sm:$0xff] %v14876_v45  ;;  %v14878_v33 = vpop.permute.xlu1 %3706 }
 0x51b   : > { %16823 = vst [vmem:[#allocation24_spill] sm:$0xff] %v14878_v33 }
 0x51c   : > { %v3423_v10 = vpop.f32.mrb[20].mxu0 }
 0x51d   : > { %v14852_v13 = vadd.f32 %v3423_v10, %v14306_v0  ;;  %v10326_v22 = vpop.f32.mrb[21].mxu0 }
 0x520   : > { %v3428_v25 = vpop.f32.mrb[22].mxu0 }
 0x521   : > { %v14857_v60 = vadd.f32 %v3428_v25, %v14311_v52  ;;  %v10329_v6 = vpop.f32.mrb[23].mxu0  ;;  %v14883_v25 = vpop.permute.xlu0 %3711 }
 0x522   : > { %16824 = vst [vmem:[#allocation25_spill] sm:$0xff] %v14883_v25 }
 0x524   : > { %v3433_v53 = vpop.f32.mrb[24].mxu0 }
 0x525   : > { %v14864_v31 = vadd.f32 %v3433_v53, %v14316_v9  ;;  %v10332_v38 = vpop.f32.mrb[25].mxu0 }
 0x526   : > { %v14888_v38 = vpop.permute.xlu1 %3716 }
 0x527   : > { %16825 = vst [vmem:[#allocation26_spill] sm:$0xff] %v14888_v38 }
 0x528   : > { %v3438_v0 = vpop.f32.mrb[26].mxu0 }
 0x529   : > { %v14869_v61 = vadd.f32 %v3438_v0, %v14324_v29  ;;  %v10335_v8 = vpop.f32.mrb[27].mxu0 }
 0x52a   : > { %v3864_v8 = vmul.f32 %v14816_v46, %v14842_v36  ;;  %v3868_v36 = vmul.f32 %v14828_v26, %v14859_v12 }
 0x52c   : > { %v3443_v52 = vpop.f32.mrb[28].mxu0 }
 0x52d   : > { %v14874_v24 = vadd.f32 %v3443_v52, %v14332_v40  ;;  %v10338_v57 = vpop.f32.mrb[29].mxu0  ;;  %v3865_v40 = vmul.f32 %v14819_v7, %v14849_v37 }
 0x530   : > { %v3448_v9 = vpop.f32.mrb[30].mxu0 }
 0x531   : > { %v14881_v10 = vadd.f32 %v3448_v9, %v14343_v63  ;;  %v10341_v22 = vpop.f32.mrb[31].mxu0  ;;  %v3866_v63 = vmul.f32 %v14822_v51, %v14844_v15  ;;  %v14899_v9 = vpop.permute.xlu0 %3721 }
 0x532   : > { %16826 = vst [vmem:[#allocation27_spill] sm:$0xff] %v14899_v9  ;;  %v3867_v22 = vmul.f32 %v14825_v1, %v14854_v55  ;;  %v3870_v55 = vmul.f32 %v14834_v4, %v14866_v59 }
 0x534   : > { %v3453_v29 = vpop.f32.mrb[32].mxu0 }
 0x535   : > { %v14886_v6 = vadd.f32 %v3453_v29, %v14354_v18  ;;  %v10344_v53 = vpop.f32.mrb[33].mxu0  ;;  %v3905_v18 = vadd.f32 %v3865_v40, %v3864_v8  ;;  %v14903_v29 = vpop.permute.xlu1 %3726 }
 0x536   : > { %16827 = vst [vmem:[#allocation28_spill] sm:$0xff] %v14903_v29 }
 0x537   : > { %v3906_v37 = vadd.f32 %v3905_v18, %v3866_v63 }
 0x538   : > { %v3458_v0 = vpop.f32.mrb[34].mxu0 }
 0x539   : > { %v14897_v52 = vadd.f32 %v3458_v0, %v14365_v30  ;;  %v10347_v57 = vpop.f32.mrb[35].mxu0  ;;  %v3907_v30 = vadd.f32 %v3906_v37, %v3867_v22  ;;  %v3869_v0 = vmul.f32 %v14831_v43, %v14861_v23  ;;  %v14919_v12 = vpop.permute.xlu1 %3736 }
 0x53a   : > { %v14912_v57 = vpop.permute.xlu0 %3731  ;;  %16829 = vst [vmem:[#allocation30_spill] sm:$0xff] %v14919_v12 }
 0x53b   : > { %16828 = vst [vmem:[#allocation29_spill] sm:$0xff] %v14912_v57  ;;  %v3908_v8 = vadd.f32 %v3907_v30, %v3868_v36 }
 0x53c   : > { %v3463_v53 = vpop.f32.mrb[36].mxu0 }
 0x53d   : > { %v14908_v7 = vadd.f32 %v3463_v53, %v14376_v44  ;;  %v10350_v15 = vpop.f32.mrb[37].mxu0  ;;  %v3909_v44 = vadd.f32 %v3908_v8, %v3869_v0  ;;  %v3872_v53 = vmul.f32 %v14840_v32, %v14876_v45 }
 0x53e   : > { %v3871_v15 = vmul.f32 %v14837_v49, %v14871_v21  ;;  %v14928_v59 = vpop.permute.xlu0 %3741 }
 0x53f   : > { %v3910_v22 = vadd.f32 %v3909_v44, %v3870_v55  ;;  %16830 = vst [vmem:[#allocation31_spill] sm:$0xff] %v14928_v59  ;;  %v3874_v55 = vmul.f32 %v14852_v13, %v14883_v25 }
 0x540   : > { %v3468_v40 = vpop.f32.mrb[38].mxu0 }
 0x541   : > { %v14917_v63 = vadd.f32 %v3468_v40, %v14387_v50  ;;  %v10353_v18 = vpop.f32.mrb[39].mxu0  ;;  %v3911_v50 = vadd.f32 %v3910_v22, %v3871_v15  ;;  %v3873_v40 = vmul.f32 %v14847_v47, %v14878_v33  ;;  %v3876_v33 = vmul.f32 %v14864_v31, %v14899_v9 }
 0x542   : > { %v14932_v18 = vpop.permute.xlu1 %3746 }
 0x543   : > { %v3912_v8 = vadd.f32 %v3911_v50, %v3872_v53 }
 0x544   : > { %v3473_v37 = vpop.f32.mrb[40].mxu0 }
 0x545   : > { %v14926_v36 = vadd.f32 %v3473_v37, %v14410_v48  ;;  %v10356_v30 = vpop.f32.mrb[41].mxu0  ;;  %v3913_v48 = vadd.f32 %v3912_v8, %v3873_v40  ;;  %v3875_v37 = vmul.f32 %v14857_v60, %v14888_v38  ;;  %v3878_v8 = vmul.f32 %v14874_v24, %v14912_v57 }
 0x546   : > { %v14941_v30 = vpop.permute.xlu0 %3751  ;;  %v14948_v25 = vpop.permute.xlu1 %3756 }
 0x547   : > { %16831 = vst [vmem:[#allocation32_spill] sm:$0xff] %v14941_v30  ;;  %v3914_v22 = vadd.f32 %v3913_v48, %v3874_v55  ;;  %16832 = vst [vmem:[#allocation33_spill] sm:$0xff] %v14948_v25 }
 0x548   : > { %v3478_v0 = vpop.f32.mrb[42].mxu0 }
 0x549   : > { %v14937_v44 = vadd.f32 %v3478_v0, %v14421_v62  ;;  %v10359_v45 = vpop.f32.mrb[43].mxu0  ;;  %v3915_v62 = vadd.f32 %v3914_v22, %v3875_v37 }
 0x54a   : > { %v3877_v45 = vmul.f32 %v14869_v61, %v14903_v29  ;;  %v14957_v9 = vpop.permute.xlu0 %3761 }
 0x54b   : > { %v3916_v0 = vadd.f32 %v3915_v62, %v3876_v33  ;;  %16833 = vst [vmem:[#allocation34_spill] sm:$0xff] %v14957_v9  ;;  %v3880_v33 = vmul.f32 %v14886_v6, %v14928_v59 }
 0x54c   : > { %v3483_v15 = vpop.f32.mrb[44].mxu0 }
 0x54d   : > { %v14946_v53 = vadd.f32 %v3483_v15, %v14432_v20  ;;  %v10362_v50 = vpop.f32.mrb[45].mxu0  ;;  %v3917_v20 = vadd.f32 %v3916_v0, %v3877_v45  ;;  %v3879_v15 = vmul.f32 %v14881_v10, %v14919_v12  ;;  %v3882_v12 = vmul.f32 %v14908_v7, %v14941_v30 }
 0x54e   : > { %v14961_v50 = vpop.permute.xlu1 %3766 }
 0x54f   : > { %16834 = vst [vmem:[#allocation35_spill] sm:$0xff] %v14961_v50  ;;  %v3918_v22 = vadd.f32 %v3917_v20, %v3878_v8 }
 0x550   : > { %v3488_v40 = vpop.f32.mrb[46].mxu0 }
 0x551   : > { %v14955_v55 = vadd.f32 %v3488_v40, %v14443_v54  ;;  %v10365_v48 = vpop.f32.mrb[47].mxu0  ;;  %v3919_v54 = vadd.f32 %v3918_v22, %v3879_v15  ;;  %v3881_v40 = vmul.f32 %v14897_v52, %v14932_v18  ;;  %v3884_v22 = vmul.f32 %v14926_v36, %v14957_v9 }
 0x552   : > { %v14970_v48 = vpop.permute.xlu0 %3771  ;;  %v14977_v59 = vpop.permute.xlu1 %3776 }
 0x553   : > { %16835 = vst [vmem:[#allocation36_spill] sm:$0xff] %v14970_v48  ;;  %v3920_v0 = vadd.f32 %v3919_v54, %v3880_v33  ;;  %16836 = vst [vmem:[#allocation37_spill] sm:$0xff] %v14977_v59 }
 0x554   : > { %v3493_v37 = vpop.f32.mrb[48].mxu0 }
 0x555   : > { %v14966_v62 = vadd.f32 %v3493_v37, %v14454_v41  ;;  %v10368_v57 = vpop.f32.mrb[49].mxu0  ;;  %v3921_v41 = vadd.f32 %v3920_v0, %v3881_v40 }
 0x556   : > { %v3883_v57 = vmul.f32 %v14917_v63, %v14948_v25  ;;  %v14986_v30 = vpop.permute.xlu0 %3781 }
 0x557   : > { %v3922_v37 = vadd.f32 %v3921_v41, %v3882_v12  ;;  %16837 = vst [vmem:[#allocation38_spill] sm:$0xff] %v14986_v30  ;;  %v3886_v12 = vmul.f32 %v14946_v53, %v14970_v48 }
 0x558   : > { %v3498_v45 = vpop.f32.mrb[50].mxu0 }
 0x559   : > { %v14975_v8 = vadd.f32 %v3498_v45, %v14465_v28  ;;  %v10371_v20 = vpop.f32.mrb[51].mxu0  ;;  %v3923_v28 = vadd.f32 %v3922_v37, %v3883_v57  ;;  %v3885_v45 = vmul.f32 %v14937_v44, %v14961_v50  ;;  %v3888_v50 = vmul.f32 %v14966_v62, %v14986_v30 }
 0x55a   : > { %v14990_v20 = vpop.permute.xlu1 %3786 }
 0x55b   : > { %16838 = vst [vmem:[#allocation39_spill] sm:$0xff] %v14990_v20  ;;  %v3924_v0 = vadd.f32 %v3923_v28, %v3884_v22 }
 0x55c   : > { %v3503_v15 = vpop.f32.mrb[52].mxu0 }
 0x55d   : > { %v14984_v33 = vadd.f32 %v3503_v15, %v14476_v42  ;;  %v10374_v54 = vpop.f32.mrb[53].mxu0  ;;  %v3925_v42 = vadd.f32 %v3924_v0, %v3885_v45  ;;  %v3887_v15 = vmul.f32 %v14955_v55, %v14977_v59 }
 0x55e   : > { %v14999_v54 = vpop.permute.xlu0 %3791  ;;  %v15006_v48 = vpop.permute.xlu1 %3796 }
 0x55f   : > { %16839 = vst [vmem:[#allocation40_spill] sm:$0xff] %v14999_v54  ;;  %v3926_v37 = vadd.f32 %v3925_v42, %v3886_v12  ;;  %16840 = vst [vmem:[#allocation41_spill] sm:$0xff] %v15006_v48  ;;  %v3890_v0 = vmul.f32 %v14984_v33, %v14999_v54 }
 0x560   : > { %v3508_v40 = vpop.f32.mrb[54].mxu0 }
 0x561   : > { %v14995_v41 = vadd.f32 %v3508_v40, %v14487_v35  ;;  %v10377_v9 = vpop.f32.mrb[55].mxu0  ;;  %v3927_v35 = vadd.f32 %v3926_v37, %v3887_v15 }
 0x562   : > { %v3889_v9 = vmul.f32 %v14975_v8, %v14990_v20  ;;  %v15015_v30 = vpop.permute.xlu0 %3801 }
 0x563   : > { %v3928_v40 = vadd.f32 %v3927_v35, %v3888_v50  ;;  %16841 = vst [vmem:[#allocation42_spill] sm:$0xff] %v15015_v30 }
 0x564   : > { %v3513_v57 = vpop.f32.mrb[56].mxu0 }
 0x565   : > { %v15004_v22 = vadd.f32 %v3513_v57, %v14498_v16  ;;  %v10380_v28 = vpop.f32.mrb[57].mxu0  ;;  %v3929_v16 = vadd.f32 %v3928_v40, %v3889_v9  ;;  %v3891_v57 = vmul.f32 %v14995_v41, %v15006_v48 }
 0x566   : > { %v15019_v28 = vpop.permute.xlu1 %3806 }
 0x567   : > { %16842 = vst [vmem:[#allocation43_spill] sm:$0xff] %v15019_v28  ;;  %v3930_v37 = vadd.f32 %v3929_v16, %v3890_v0  ;;  %v3892_v50 = vmul.f32 %v15004_v22, %v15015_v30 }
 0x568   : > { %v3518_v45 = vpop.f32.mrb[58].mxu0 }
 0x569   : > { %v15013_v12 = vadd.f32 %v3518_v45, %v14509_v58  ;;  %v10383_v42 = vpop.f32.mrb[59].mxu0  ;;  %v3931_v58 = vadd.f32 %v3930_v37, %v3891_v57 }
 0x56a   : > { %v15028_v42 = vpop.permute.xlu0 %3811  ;;  %v15035_v30 = vpop.permute.xlu1 %3816 }
 0x56b   : > { %v3893_v45 = vmul.f32 %v15013_v12, %v15019_v28  ;;  %16844 = vst [vmem:[#allocation45_spill] sm:$0xff] %v15028_v42  ;;  %v3932_v40 = vadd.f32 %v3931_v58, %v3892_v50  ;;  %16845 = vst [vmem:[#allocation46_spill] sm:$0xff] %v15035_v30 }
 0x56c   : > { %v3523_v15 = vpop.f32.mrb[60].mxu0 }
 0x56d   : > { %v15024_v35 = vadd.f32 %v3523_v15, %v14520_v17  ;;  %v10386_v54 = vpop.f32.mrb[61].mxu0  ;;  %v3933_v17 = vadd.f32 %v3932_v40, %v3893_v45 }
 0x56e   : > { %v15042_v50 = vpop.permute.xlu0 %3821  ;;  %v15047_v40 = vpop.permute.xlu1 %3826 }
 0x56f   : > { %16843 = vst [vmem:[#allocation44_spill] sm:$0xff] %v15024_v35  ;;  %v3894_v48 = vmul.f32 %v15024_v35, %v15028_v42  ;;  %16846 = vst [vmem:[#allocation47_spill] sm:$0xff] %v15042_v50 }
 0x570   : > { %v3528_v9 = vpop.f32.mrb[62].mxu0  ;;  %16847 = vst [vmem:[#allocation48_spill] sm:$0xff] %v15047_v40 }
 0x571   : > { %v15033_v0 = vadd.f32 %v3528_v9, %v14531_v56  ;;  %v10389_v16 = vpop.f32.mrb[63].mxu0  ;;  %v3934_v15 = vadd.f32 %v3933_v17, %v3894_v48 }
 0x573   : > { %v3895_v54 = vmul.f32 %v15033_v0, %v15035_v30 }
 0x574   : > { %v3533_v57 = vpop.f32.mrb[64].mxu0 }
 0x575   : > { %v15040_v37 = vadd.f32 %v3533_v57, %v14542_v14  ;;  %v10392_v28 = vpop.f32.mrb[65].mxu0  ;;  %v3935_v58 = vadd.f32 %v3934_v15, %v3895_v54  ;;  %v15051_v57 = vpop.permute.xlu0 %3831 }
 0x576   : > { %16848 = vst [vmem:[#allocation49_spill] sm:$0xff] %v15051_v57 }
 0x577   : > { %v3896_v56 = vmul.f32 %v15040_v37, %v15042_v50 }
 0x578   : > { %v3538_v9 = vpop.f32.mrb[66].mxu0 }
 0x579   : > { %v3936_v16 = vadd.f32 %v3935_v58, %v3896_v56  ;;  %v11744_v42 = vadd.f32 %v3538_v9, %v14553_v3  ;;  %v10395_v45 = vpop.f32.mrb[67].mxu0  ;;  %v15055_v3 = vpop.permute.xlu1 %3836 }
 0x57a   : > { %16849 = vst [vmem:[#allocation50_spill] sm:$0xff] %v15055_v3 }
 0x57b   : > { %v3897_v30 = vmul.f32 %v11744_v42, %v15047_v40 }
 0x57c   : > { %v3543_v48 = vpop.f32.mrb[68].mxu0 }
 0x57d   : > { %v3937_v17 = vadd.f32 %v3936_v16, %v3897_v30  ;;  %v11745_v14 = vadd.f32 %v3543_v48, %v14564_v27  ;;  %v10398_v28 = vpop.f32.mrb[69].mxu0  ;;  %v15059_v27 = vpop.permute.xlu0 %3841 }
 0x57e   : > { %16850 = vst [vmem:[#allocation51_spill] sm:$0xff] %v15059_v27 }
 0x57f   : > { %v3898_v54 = vmul.f32 %v11745_v14, %v15051_v57 }
 0x580   : > { %v3548_v15 = vpop.f32.mrb[70].mxu0 }
 0x581   : > { %v3938_v50 = vadd.f32 %v3937_v17, %v3898_v54  ;;  %v11746_v58 = vadd.f32 %v3548_v15, %v14575_v19  ;;  %v10401_v56 = vpop.f32.mrb[71].mxu0  ;;  %v15063_v19 = vpop.permute.xlu1 %3846 }
 0x582   : > { %16851 = vst [vmem:[#allocation52_spill] sm:$0xff] %v15063_v19 }
 0x583   : > { %v3899_v9 = vmul.f32 %v11746_v58, %v15055_v3 }
 0x584   : > { %v3553_v45 = vpop.f32.mrb[72].mxu0 }
 0x585   : > { %v3939_v40 = vadd.f32 %v3938_v50, %v3899_v9  ;;  %v11747_v30 = vadd.f32 %v3553_v45, %v14586_v2  ;;  %v10404_v16 = vpop.f32.mrb[73].mxu0  ;;  %v15067_v2 = vpop.permute.xlu0 %3851 }
 0x586   : > { %16852 = vst [vmem:[#allocation53_spill] sm:$0xff] %v15067_v2 }
 0x587   : > { %v3900_v48 = vmul.f32 %v11747_v30, %v15059_v27 }
 0x588   : > { %v3558_v28 = vpop.f32.mrb[74].mxu0 }
 0x589   : > { %v3940_v57 = vadd.f32 %v3939_v40, %v3900_v48  ;;  %v11748_v17 = vadd.f32 %v3558_v28, %v14597_v34  ;;  %v10407_v54 = vpop.f32.mrb[75].mxu0  ;;  %v15071_v34 = vpop.permute.xlu1 %3856 }
 0x58a   : > { %16853 = vst [vmem:[#allocation54_spill] sm:$0xff] %v15071_v34 }
 0x58b   : > { %v3901_v15 = vmul.f32 %v11748_v17, %v15063_v19 }
 0x58c   : > { %v3563_v56 = vpop.f32.mrb[76].mxu0 }
 0x58d   : > { %v3941_v3 = vadd.f32 %v3940_v57, %v3901_v15  ;;  %v11749_v50 = vadd.f32 %v3563_v56, %v14608_v11  ;;  %v10410_v9 = vpop.f32.mrb[77].mxu0  ;;  %v15075_v11 = vpop.permute.xlu0 %3861 }
 0x58e   : > { %16854 = vst [vmem:[#allocation55_spill] sm:$0xff] %v15075_v11 }
 0x58f   : > { %v3902_v45 = vmul.f32 %v11749_v50, %v15067_v2 }
 0x590   : > { %v3568_v16 = vpop.f32.mrb[78].mxu0 }
 0x591   : > { %v3942_v27 = vadd.f32 %v3941_v3, %v3902_v45  ;;  %v11750_v40 = vadd.f32 %v3568_v16, %v14619_v39  ;;  %v10413_v48 = vpop.f32.mrb[79].mxu0 }
 0x593   : > { %v3903_v28 = vmul.f32 %v11750_v40, %v15071_v34 }
 0x594   : > { %v3573_v54 = vpop.f32.mrb[80].mxu0 }
 0x595   : > { %v3943_v19 = vadd.f32 %v3942_v27, %v3903_v28  ;;  %v11751_v57 = vadd.f32 %v3573_v54, %v14630_v5  ;;  %v10416_v15 = vpop.f32.mrb[81].mxu0 }
 0x597   : > { %v3904_v56 = vmul.f32 %v11751_v57, %v15075_v11 }
 0x599   : > { %v3945_v9 = vsel %vm3944_vm1, %v3904_v56, 0.0 }
 0x59a   : > { %v3946_v3 = vadd.f32 %v3945_v9, %v3943_v19  ;;  %v16862_v9 = vld [vmem:[#allocation16_spill] sm:$0xff] }
 0x59c   : > { %v3947_v45 = vrot.slane %v3946_v3, 4 }
 0x59e   : > { %v3948_v39 = vadd.f32 %v3947_v45, %v3946_v3 }
 0x5a0   : > { %v3949_v16 = vrot.slane %v3948_v39, 2 }
 0x5a2   : > { %v3950_v48 = vadd.f32 %v3949_v16, %v3948_v39 }
 0x5a4   : > { %v3951_v2 = vrot.slane %v3950_v48, 1 }
 0x5a6   : > { %v3952_v35 = vadd.f32 %v3951_v2, %v3950_v48  ;;  %v16863_v48 = vld [vmem:[#allocation18_spill] sm:$0xff] }
 0x5a8   : > { %v15079_v34 = vmul.f32 0.00390625, %v3952_v35 }
 0x5aa   : > { %v15083_v5 = vsub.f32 %v15033_v0, %v15079_v34  ;;  %v15087_v27 = vsub.f32 %v15040_v37, %v15079_v34  ;;  %v15090_v28 = vsub.f32 %v11744_v42, %v15079_v34  ;;  %v15093_v19 = vsub.f32 %v11745_v14, %v15079_v34 }
 0x5ab   : > { %v15096_v54 = vsub.f32 %v11746_v58, %v15079_v34  ;;  %v15099_v35 = vsub.f32 %v11747_v30, %v15079_v34  ;;  %v15102_v2 = vsub.f32 %v11748_v17, %v15079_v34  ;;  %v15105_v0 = vsub.f32 %v11749_v50, %v15079_v34  ;;  %v16856_v58 = vld [vmem:[#allocation14_spill] sm:$0xff]  ;;  %v16859_v50 = vld [vmem:[#allocation15_spill] sm:$0xff] }
 0x5ac   : > { %v15108_v37 = vsub.f32 %v11750_v40, %v15079_v34  ;;  %v15111_v42 = vsub.f32 %v11751_v57, %v15079_v34  ;;  %v15115_v14 = vsub.f32 %v14816_v46, %v15079_v34  ;;  %v15119_v30 = vsub.f32 %v16856_v58, %v15079_v34  ;;  %v16860_v40 = vld [vmem:[#allocation17_spill] sm:$0xff] }
 0x5ad   : > { %v15123_v17 = vsub.f32 %v14822_v51, %v15079_v34  ;;  %v15131_v57 = vsub.f32 %v14825_v1, %v15079_v34  ;;  %v15135_v46 = vsub.f32 %v14828_v26, %v15079_v34  ;;  %v15143_v16 = vsub.f32 %v14831_v43, %v15079_v34  ;;  %v4436_v26 = vld [vmem:[#allocation8 + $0x80] sm:$0xff] }
 0x5ae   : > { %16855 = vst [vmem:[#allocation56_spill] sm:$0xff] %v15115_v14  ;;  %16857 = vst [vmem:[#allocation14_spill] sm:$0xff] %v15119_v30  ;;  %v3995_v15 = vmul.f32 %v15115_v14, %v16859_v50  ;;  %v3996_v56 = vmul.f32 %v15119_v30, %v16860_v40  ;;  %v4035_v51 = vmul.f32 %v15111_v42, %v15075_v11  ;;  %v4437_v40 = vld [vmem:[#allocation8 + $0x88] sm:$0xff] }
 0x5af   : > { %16858 = vst [vmem:[#allocation57_spill] sm:$0xff] %v15123_v17  ;;  %16861 = vst [vmem:[#allocation58_spill] sm:$0xff] %v15131_v57  ;;  %v3997_v3 = vmul.f32 %v15123_v17, %v16862_v9  ;;  %v3998_v1 = vmul.f32 %v15131_v57, %v16863_v48  ;;  %v15149_v58 = vsub.f32 %v14834_v4, %v15079_v34  ;;  %v16864_v50 = vld [vmem:[#allocation19_spill] sm:$0xff] }
 0x5b0   : > { %v4036_v45 = vmul.f32 %v3995_v15, %v3995_v15  ;;  %v4037_v39 = vmul.f32 %v3996_v56, %v3996_v56  ;;  %v3999_v9 = vmul.f32 %v15135_v46, %v16864_v50  ;;  %v4076_v11 = vmul.f32 %v4035_v51, %v4035_v51  ;;  %v4439_v51 = vld [vmem:[#allocation8 + $0x98] sm:$0xff] }
 0x5b1   : > { %v4038_v17 = vmul.f32 %v3997_v3, %v3997_v3  ;;  %v15155_v56 = vsub.f32 %v14837_v49, %v15079_v34  ;;  %v11407_v43 = vpack.c.bf16 %v4437_v40, %v4436_v26  ;;  %v4000_v48 = vmul.f32 %v15143_v16, %v14861_v23  ;;  %v4438_v3 = vld [vmem:[#allocation8 + $0x90] sm:$0xff]  ;;  %v4440_v23 = vld [vmem:[#allocation8 + $0xa0] sm:$0xff] }
 0x5b2   : > { %v4077_v15 = vadd.f32 %v4037_v39, %v4036_v45  ;;  %v4039_v57 = vmul.f32 %v3998_v1, %v3998_v1  ;;  %v15160_v4 = vsel %vm3944_vm1, %v4076_v11, 0.0  ;;  %v15164_v14 = vsub.f32 %v14840_v32, %v15079_v34  ;;  %v16865_v45 = vld [vmem:[#allocation21_spill] sm:$0xff] }
 0x5b3   : > { %11408 = vmatprep.subr.bf16.mxu1 %v11407_v43  ;;  %v4001_v49 = vmul.f32 %v15149_v58, %v16865_v45  ;;  %v4040_v39 = vmul.f32 %v3999_v9, %v3999_v9  ;;  %v11411_v26 = vpack.c.bf16 %v4439_v51, %v4438_v3  ;;  %v4002_v11 = vmul.f32 %v15155_v56, %v14871_v21  ;;  %v4441_v45 = vld [vmem:[#allocation8 + $0xa8] sm:$0xff]  ;;  %v4442_v21 = vld [vmem:[#allocation8 + $0xb0] sm:$0xff] }
 0x5b4   : > { %v4078_v30 = vadd.f32 %v4077_v15, %v4038_v17  ;;  %11410 = vmatpush3.bf16.msra.mxu1 %v11407_v43  ;;  %v15170_v17 = vsub.f32 %v14847_v47, %v15079_v34  ;;  %v4041_v1 = vmul.f32 %v4000_v48, %v4000_v48  ;;  %v15176_v15 = vsub.f32 %v14852_v13, %v15079_v34  ;;  %v16866_v9 = vld [vmem:[#allocation23_spill] sm:$0xff]  ;;  %v16867_v48 = vld [vmem:[#allocation24_spill] sm:$0xff] }
 0x5b5   : > { %11412 = vmatprep.subr.bf16.mxu1 %v11411_v26  ;;  %v11415_v47 = vpack.c.bf16 %v4441_v45, %v4440_v23  ;;  %v15182_v3 = vsub.f32 %v14857_v60, %v15079_v34  ;;  %v15188_v13 = vsub.f32 %v14864_v31, %v15079_v34  ;;  %v15200_v31 = vsub.f32 %v14874_v24, %v15079_v34 }
 0x5b6   : > { %v4079_v40 = vadd.f32 %v4078_v30, %v4039_v57  ;;  %v4003_v30 = vmul.f32 %v15164_v14, %v16866_v9  ;;  %v4042_v57 = vmul.f32 %v4001_v49, %v4001_v49  ;;  %v4004_v51 = vmul.f32 %v15170_v17, %v16867_v48  ;;  %v4443_v9 = vld [vmem:[#allocation8 + $0xb8] sm:$0xff]  ;;  %v4384_v48 = vld [vmem:[#allocation8 + $0x8] sm:$0xff] }
 0x5b7   : > { %v16868_v49 = vld [vmem:[#allocation25_spill] sm:$0xff]  ;;  %v11419_v60 = vpack.c.bf16 %v4443_v9, %v4442_v21  ;;  %v15212_v24 = vsub.f32 %v14886_v6, %v15079_v34  ;;  %v15224_v6 = vsub.f32 %v14908_v7, %v15079_v34 }
 0x5b8   : > { %v4080_v32 = vadd.f32 %v4079_v40, %v4040_v39  ;;  %11414 = vmatpush3.bf16.msra.mxu1 %v11411_v26  ;;  %v4043_v39 = vmul.f32 %v4002_v11, %v4002_v11  ;;  %v4005_v26 = vmul.f32 %v15176_v15, %v16868_v49  ;;  %v4044_v23 = vmul.f32 %v4003_v30, %v4003_v30  ;;  %v4445_v49 = vld [vmem:[#allocation8 + $0xc8] sm:$0xff] }
 0x5b9   : > { %11416 = vmatprep.subr.bf16.mxu1 %v11415_v47  ;;  %v4006_v11 = vmul.f32 %v15182_v3, %v14888_v38  ;;  %v16869_v30 = vld [vmem:[#allocation27_spill] sm:$0xff]  ;;  %v4383_v38 = vld [vmem:[#allocation8] sm:$0xff] }
 0x5ba   : > { %v4081_v43 = vadd.f32 %v4080_v32, %v4041_v1  ;;  %v15194_v1 = vsub.f32 %v14869_v61, %v15079_v34  ;;  %v4045_v32 = vmul.f32 %v4004_v51, %v4004_v51  ;;  %v4046_v21 = vmul.f32 %v4005_v26, %v4005_v26  ;;  %v16870_v26 = vld [vmem:[#allocation29_spill] sm:$0xff] }
 0x5bc   : > { %v4082_v40 = vadd.f32 %v4081_v43, %v4042_v57  ;;  %11418 = vmatpush3.bf16.msra.mxu1 %v11415_v47  ;;  %v4444_v43 = vld [vmem:[#allocation8 + $0xc0] sm:$0xff]  ;;  %v4007_v47 = vmul.f32 %v15188_v13, %v16869_v30  ;;  %v4008_v51 = vmul.f32 %v15194_v1, %v14903_v29  ;;  %v4447_v30 = vld [vmem:[#allocation8 + $0xd8] sm:$0xff] }
 0x5bd   : > { %11420 = vmatprep.subr.bf16.mxu1 %v11419_v60  ;;  %v11423_v61 = vpack.c.bf16 %v4445_v49, %v4444_v43  ;;  %v4448_v29 = vld [vmem:[#allocation8 + $0xe0] sm:$0xff] }
 0x5be   : > { %v4083_v45 = vadd.f32 %v4082_v40, %v4043_v39  ;;  %v15206_v39 = vsub.f32 %v14881_v10, %v15079_v34  ;;  %v4047_v40 = vmul.f32 %v4006_v11, %v4006_v11  ;;  %v4048_v49 = vmul.f32 %v4007_v47, %v4007_v47  ;;  %v16871_v11 = vld [vmem:[#allocation30_spill] sm:$0xff]  ;;  %v16872_v47 = vld [vmem:[#allocation31_spill] sm:$0xff] }
 0x5c0   : > { %v4084_v57 = vadd.f32 %v4083_v45, %v4044_v23  ;;  %11422 = vmatpush3.bf16.msra.mxu1 %v11419_v60  ;;  %v4446_v45 = vld [vmem:[#allocation8 + $0xd0] sm:$0xff]  ;;  %v4009_v60 = vmul.f32 %v15200_v31, %v16870_v26  ;;  %v4010_v43 = vmul.f32 %v15206_v39, %v16871_v11  ;;  %v4449_v26 = vld [vmem:[#allocation8 + $0xe8] sm:$0xff] }
 0x5c1   : > { %11424 = vmatprep.subr.bf16.mxu1 %v11423_v61  ;;  %v11427_v10 = vpack.c.bf16 %v4447_v30, %v4446_v45  ;;  %v4451_v45 = vld [vmem:[#allocation8 + $0xf8] sm:$0xff] }
 0x5c2   : > { %v4085_v9 = vadd.f32 %v4084_v57, %v4045_v32  ;;  %v15218_v57 = vsub.f32 %v14897_v52, %v15079_v34  ;;  %v4050_v30 = vmul.f32 %v4009_v60, %v4009_v60  ;;  %v11431_v52 = vpack.c.bf16 %v4449_v26, %v4448_v29  ;;  %v16873_v29 = vld [vmem:[#allocation32_spill] sm:$0xff] }
 0x5c3   : > { %v4051_v7 = vmul.f32 %v4010_v43, %v4010_v43  ;;  %v15236_v60 = vsub.f32 %v14926_v36, %v15079_v34  ;;  %v4013_v26 = vmul.f32 %v15224_v6, %v16873_v29  ;;  %v15244_v43 = vsub.f32 %v14937_v44, %v15079_v34  ;;  %v16876_v44 = vld [vmem:[#allocation35_spill] sm:$0xff] }
 0x5c4   : > { %v4086_v23 = vadd.f32 %v4085_v9, %v4046_v21  ;;  %11426 = vmatpush3.bf16.msra.mxu1 %v11423_v61  ;;  %v4049_v21 = vmul.f32 %v4008_v51, %v4008_v51  ;;  %v4011_v61 = vmul.f32 %v15212_v24, %v16872_v47  ;;  %v4450_v51 = vld [vmem:[#allocation8 + $0xf0] sm:$0xff]  ;;  %v15250_v36 = vsub.f32 %v14946_v53, %v15079_v34 }
 0x5c5   : > { %11428 = vmatprep.subr.bf16.mxu1 %v11427_v10  ;;  %v11435_v11 = vpack.c.bf16 %v4451_v45, %v4450_v51  ;;  %v16875_v51 = vld [vmem:[#allocation34_spill] sm:$0xff]  ;;  %v15263_v53 = vsub.f32 %v14966_v62, %v15079_v34 }
 0x5c6   : > { %v4087_v32 = vadd.f32 %v4086_v23, %v4047_v40  ;;  %v15230_v23 = vsub.f32 %v14917_v63, %v15079_v34  ;;  %v4052_v63 = vmul.f32 %v4011_v61, %v4011_v61  ;;  %v4015_v61 = vmul.f32 %v15236_v60, %v16875_v51  ;;  %v16878_v62 = vld [vmem:[#allocation38_spill] sm:$0xff]  ;;  %v16886_v51 = vld [vmem:[#allocation47_spill] sm:$0xff] }
 0x5c8   : > { %v4088_v9 = vadd.f32 %v4087_v32, %v4048_v49  ;;  %11430 = vmatpush3.bf16.msra.mxu1 %v11427_v10  ;;  %v4012_v49 = vmul.f32 %v15218_v57, %v14932_v18 }
 0x5c9   : > { %11432 = vmatprep.subr.bf16.mxu1 %v11431_v52 }
 0x5ca   : > { %v4089_v40 = vadd.f32 %v4088_v9, %v4049_v21  ;;  %v15240_v21 = vpack.c.bf16 %v4384_v48, %v4383_v38  ;;  %v4014_v9 = vmul.f32 %v15230_v23, %v14948_v25  ;;  %v15257_v38 = vsub.f32 %v14955_v55, %v15079_v34 }
 0x5cb   : > { %v4016_v48 = vmul.f32 %v15244_v43, %v16876_v44 }
 0x5cc   : > { %v4090_v32 = vadd.f32 %v4089_v40, %v4050_v30  ;;  %11434 = vmatpush3.bf16.msra.mxu1 %v11431_v52  ;;  %16874 = vst [vmem:[#allocation19_spill] sm:$0xff] %v15240_v21  ;;  %v4053_v30 = vmul.f32 %v4012_v49, %v4012_v49  ;;  %v4054_v52 = vmul.f32 %v4013_v26, %v4013_v26 }
 0x5cd   : > { %11436 = vmatprep.subr.bf16.mxu1 %v11435_v11  ;;  %v4055_v49 = vmul.f32 %v4014_v9, %v4014_v9  ;;  %v4018_v55 = vmul.f32 %v15257_v38, %v14977_v59  ;;  %v15275_v9 = vsub.f32 %v14984_v33, %v15079_v34  ;;  %v16879_v33 = vld [vmem:[#allocation40_spill] sm:$0xff] }
 0x5ce   : > { %v4091_v10 = vadd.f32 %v4090_v32, %v4051_v7  ;;  %v16877_v32 = vld [vmem:[#allocation36_spill] sm:$0xff] }
 0x5cf   : > { %v4017_v26 = vmul.f32 %v15250_v36, %v16877_v32  ;;  %v16884_v32 = vld [vmem:[#allocation45_spill] sm:$0xff] }
 0x5d0   : > { %v4092_v40 = vadd.f32 %v4091_v10, %v4052_v63  ;;  %11438 = vmatpush3.bf16.msra.mxu1 %v11435_v11  ;;  %v4056_v63 = vmul.f32 %v4015_v61, %v4015_v61  ;;  %v15269_v10 = vsub.f32 %v14975_v8, %v15079_v34  ;;  %v15281_v61 = vsub.f32 %v14995_v41, %v15079_v34  ;;  %v16880_v41 = vld [vmem:[#allocation41_spill] sm:$0xff] }
 0x5d1   : > { %11440 = vmatprep.subr.bf16.mxu1 %v15240_v21 }
 0x5d2   : > { %v4093_v45 = vadd.f32 %v4092_v40, %v4053_v30  ;;  %v4057_v30 = vmul.f32 %v4016_v48, %v4016_v48  ;;  %v4020_v8 = vmul.f32 %v15269_v10, %v14990_v20  ;;  %v15287_v48 = vsub.f32 %v15004_v22, %v15079_v34  ;;  %v16882_v22 = vld [vmem:[#allocation42_spill] sm:$0xff] }
 0x5d4   : > { %v4094_v7 = vadd.f32 %v4093_v45, %v4054_v52  ;;  %v4019_v52 = vmul.f32 %v15263_v53, %v16878_v62  ;;  %v4058_v45 = vmul.f32 %v4017_v26, %v4017_v26  ;;  %v15293_v26 = vsub.f32 %v15013_v12, %v15079_v34 }
 0x5d6   : > { %v4095_v11 = vadd.f32 %v4094_v7, %v4055_v49  ;;  %v4059_v49 = vmul.f32 %v4018_v55, %v4018_v55 }
 0x5d8   : > { %v4096_v40 = vadd.f32 %v4095_v11, %v4056_v63  ;;  %v4021_v63 = vmul.f32 %v15275_v9, %v16879_v33  ;;  %v4060_v11 = vmul.f32 %v4019_v52, %v4019_v52  ;;  %v16883_v52 = vld [vmem:[#allocation43_spill] sm:$0xff] }
 0x5da   : > { %v4097_v21 = vadd.f32 %v4096_v40, %v4057_v30  ;;  %v4022_v30 = vmul.f32 %v15281_v61, %v16880_v41  ;;  %v4061_v40 = vmul.f32 %v4020_v8, %v4020_v8  ;;  %v4062_v59 = vmul.f32 %v4021_v63, %v4021_v63 }
 0x5dc   : > { %v4098_v7 = vadd.f32 %v4097_v21, %v4058_v45  ;;  %v16881_v21 = vld [vmem:[#allocation44_spill] sm:$0xff]  ;;  %v4023_v45 = vmul.f32 %v15287_v48, %v16882_v22  ;;  %v4027_v22 = vmul.f32 %v15087_v27, %v16886_v51 }
 0x5dd   : > { %v15299_v55 = vsub.f32 %v16881_v21, %v15079_v34 }
 0x5de   : > { %v4099_v62 = vadd.f32 %v4098_v7, %v4059_v49  ;;  %v4024_v49 = vmul.f32 %v15293_v26, %v16883_v52  ;;  %v4063_v7 = vmul.f32 %v4022_v30, %v4022_v30  ;;  %v4064_v41 = vmul.f32 %v4023_v45, %v4023_v45 }
 0x5df   : > { %v4025_v44 = vmul.f32 %v15299_v55, %v16884_v32  ;;  %v4068_v45 = vmul.f32 %v4027_v22, %v4027_v22 }
 0x5e0   : > { %v4100_v20 = vadd.f32 %v4099_v62, %v4060_v11  ;;  %v16885_v62 = vld [vmem:[#allocation46_spill] sm:$0xff]  ;;  %v4065_v34 = vmul.f32 %v4024_v49, %v4024_v49 }
 0x5e1   : > { %v4026_v11 = vmul.f32 %v15083_v5, %v16885_v62  ;;  %v4066_v63 = vmul.f32 %v4025_v44, %v4025_v44 }
 0x5e2   : > { %v4101_v33 = vadd.f32 %v4100_v20, %v4061_v40  ;;  %v16887_v40 = vld [vmem:[#allocation48_spill] sm:$0xff] }
 0x5e3   : > { %v4028_v52 = vmul.f32 %v15090_v28, %v16887_v40  ;;  %v4067_v30 = vmul.f32 %v4026_v11, %v4026_v11 }
 0x5e4   : > { %v4102_v12 = vadd.f32 %v4101_v33, %v4062_v59  ;;  %v16888_v33 = vld [vmem:[#allocation49_spill] sm:$0xff] }
 0x5e5   : > { %v4029_v32 = vmul.f32 %v15093_v19, %v16888_v33  ;;  %v4069_v49 = vmul.f32 %v4028_v52, %v4028_v52 }
 0x5e6   : > { %v4103_v8 = vadd.f32 %v4102_v12, %v4063_v7  ;;  %v16889_v12 = vld [vmem:[#allocation50_spill] sm:$0xff] }
 0x5e7   : > { %v4030_v62 = vmul.f32 %v15096_v54, %v16889_v12  ;;  %v4070_v44 = vmul.f32 %v4029_v32, %v4029_v32 }
 0x5e8   : > { %v4104_v21 = vadd.f32 %v4103_v8, %v4064_v41  ;;  %v16890_v8 = vld [vmem:[#allocation51_spill] sm:$0xff] }
 0x5e9   : > { %v4031_v51 = vmul.f32 %v15099_v35, %v16890_v8  ;;  %v4071_v11 = vmul.f32 %v4030_v62, %v4030_v62 }
 0x5ea   : > { %v4105_v20 = vadd.f32 %v4104_v21, %v4065_v34  ;;  %v16891_v21 = vld [vmem:[#allocation52_spill] sm:$0xff] }
 0x5eb   : > { %v4032_v40 = vmul.f32 %v15102_v2, %v16891_v21  ;;  %v4072_v22 = vmul.f32 %v4031_v51, %v4031_v51 }
 0x5ec   : > { %v4106_v59 = vadd.f32 %v4105_v20, %v4066_v63  ;;  %v16892_v20 = vld [vmem:[#allocation53_spill] sm:$0xff] }
 0x5ed   : > { %v4033_v33 = vmul.f32 %v15105_v0, %v16892_v20  ;;  %v4073_v52 = vmul.f32 %v4032_v40, %v4032_v40  ;;  %v4125_v40 = vld [vmem:[%s16677_s4] sm:$0x1] }
 0x5ee   : > { %v4107_v7 = vadd.f32 %v4106_v59, %v4067_v30  ;;  %v16893_v59 = vld [vmem:[#allocation54_spill] sm:$0xff] }
 0x5ef   : > { %v4034_v12 = vmul.f32 %v15108_v37, %v16893_v59 }
 0x5f0   : > { %v4108_v41 = vadd.f32 %v4107_v7, %v4068_v45  ;;  %v4074_v7 = vmul.f32 %v4033_v33, %v4033_v33 }
 0x5f1   : > { %v4075_v8 = vmul.f32 %v4034_v12, %v4034_v12  ;;  %v4385_v12 = vld [vmem:[#allocation8 + $0x10] sm:$0xff] }
 0x5f2   : > { %v4109_v34 = vadd.f32 %v4108_v41, %v4069_v49 }
 0x5f4   : > { %v4110_v63 = vadd.f32 %v4109_v34, %v4070_v44 }
 0x5f6   : > { %v4111_v30 = vadd.f32 %v4110_v63, %v4071_v11  ;;  %v4131_v63 = vlaneseq }
 0x5f8   : > { %v4112_v45 = vadd.f32 %v4111_v30, %v4072_v22  ;;  %v15326_v59 = vshrl.u32 %v4131_v63, 7  ;;  %v16895_v30 = vld [vmem:[#allocation56_spill] sm:$0xff] }
 0x5fa   : > { %v4113_v25 = vadd.f32 %v4112_v45, %v4073_v52  ;;  %16894 = vst [vmem:[#allocation31_spill] sm:$0xff] %v15326_v59  ;;  %v16896_v45 = vld [vmem:[#allocation14_spill] sm:$0xff] }
 0x5fc   : > { %v4114_v32 = vadd.f32 %v4113_v25, %v4074_v7  ;;  %v16768_v25 = vsub.s32 0, %v15326_v59 }
 0x5fe   : > { %v4115_v49 = vadd.f32 %v4114_v32, %v4075_v8  ;;  %v4386_v8 = vld [vmem:[#allocation8 + $0x18] sm:$0xff] }
 0x5ff   : > { %v16897_v32 = vld [vmem:[#allocation57_spill] sm:$0xff] }
 0x600   : > { %v4117_v41 = vadd.f32 %v15160_v4, %v4115_v49 }
 0x602   : > { %v4118_v21 = vrot.slane %v4117_v41, 4 }
 0x604   : > { %v4119_v62 = vadd.f32 %v4118_v21, %v4117_v41  ;;  %v16898_v41 = vld [vmem:[#allocation58_spill] sm:$0xff] }
 0x606   : > { %v4120_v44 = vrot.slane %v4119_v62, 2 }
 0x608   : > { %v4121_v34 = vadd.f32 %v4120_v44, %v4119_v62 }
 0x60a   : > { %v4122_v29 = vrot.slane %v4121_v34, 1 }
 0x60c   : > { %v4123_v20 = vadd.f32 %v4122_v29, %v4121_v34  ;;  %v15337_v29 = vld [vmem:[%s16678_s5] ss:$0 sm:$0xff] }
 0x60e   : > { %v4124_v51 = vmul.f32 0.00390625, %v4123_v20  ;;  %v15339_v20 = vpack.c.bf16 %v4386_v8, %v4385_v12 }
 0x610   : > { %v4126_v11 = vadd.f32 1e-05, %v4124_v51 }
 0x612   : > { %12696 = vrsqrt.f32 %v4126_v11 }
 0x61c   : > { %v12697_v33 = vpop.eup %12696 }
 0x61d   : > { %v4128_v4 = vmul.f32 %v12697_v33, %v4125_v40 }
 0x61f   : > { %v4134_v21 = vrot.slane %v4128_v4, %v16768_v25 }
 0x621   : > { %v4176_v22 = vmul.f32 %v4134_v21, %v15111_v42  ;;  %v4136_v52 = vmul.f32 %v4134_v21, %v16895_v30  ;;  %v4137_v7 = vmul.f32 %v4134_v21, %v16896_v45  ;;  %v4138_v49 = vmul.f32 %v4134_v21, %v16897_v32 }
 0x622   : > { %v4139_v62 = vmul.f32 %v4134_v21, %v16898_v41  ;;  %v4140_v44 = vmul.f32 %v4134_v21, %v15135_v46  ;;  %v4141_v34 = vmul.f32 %v4134_v21, %v15143_v16  ;;  %v4142_v51 = vmul.f32 %v4134_v21, %v15149_v58 }
 0x623   : > { %v4223_v11 = vadd.f32 %v15337_v29, %v4176_v22  ;;  %v4143_v63 = vmul.f32 %v4134_v21, %v15155_v56  ;;  %v4144_v42 = vmul.f32 %v4134_v21, %v15164_v14  ;;  %v4145_v40 = vmul.f32 %v4134_v21, %v15170_v17 }
 0x624   : > { %v4146_v33 = vmul.f32 %v4134_v21, %v15176_v15  ;;  %v4147_v4 = vmul.f32 %v4134_v21, %v15182_v3  ;;  %v4148_v12 = vmul.f32 %v4134_v21, %v15188_v13  ;;  %v4149_v46 = vmul.f32 %v4134_v21, %v15194_v1  ;;  %v16899_v3 = vld [vmem:[#allocation55_spill] sm:$0xff] }
 0x625   : > { %v4264_v8 = vmax.f32 %v4223_v11, 0.0  ;;  %v4150_v16 = vmul.f32 %v4134_v21, %v15200_v31  ;;  %v4151_v58 = vmul.f32 %v4134_v21, %v15206_v39  ;;  %v4152_v22 = vmul.f32 %v4134_v21, %v15212_v24 }
 0x626   : > { %v4153_v56 = vmul.f32 %v4134_v21, %v15218_v57  ;;  %v4154_v14 = vmul.f32 %v4134_v21, %v15224_v6  ;;  %v4155_v17 = vmul.f32 %v4134_v21, %v15230_v23  ;;  %v4156_v15 = vmul.f32 %v4134_v21, %v15236_v60 }
 0x627   : > { %v4305_v30 = vmul.f32 %v4264_v8, %v16899_v3  ;;  %v4157_v13 = vmul.f32 %v4134_v21, %v15244_v43  ;;  %v4158_v1 = vmul.f32 %v4134_v21, %v15250_v36  ;;  %v4159_v31 = vmul.f32 %v4134_v21, %v15257_v38 }
 0x628   : > { %v4160_v39 = vmul.f32 %v4134_v21, %v15263_v53  ;;  %v4161_v24 = vmul.f32 %v4134_v21, %v15269_v10  ;;  %v4162_v57 = vmul.f32 %v4134_v21, %v15275_v9  ;;  %v4163_v6 = vmul.f32 %v4134_v21, %v15281_v61 }
 0x629   : > { %4346 = vst [vmem:[#allocation2 + $0x140] sm:$0x3f] %v4305_v30  ;;  %v4164_v23 = vmul.f32 %v4134_v21, %v15287_v48  ;;  %v4165_v60 = vmul.f32 %v4134_v21, %v15293_v26  ;;  %v4166_v45 = vmul.f32 %v4134_v21, %v15299_v55  ;;  %v4167_v43 = vmul.f32 %v4134_v21, %v15083_v5 }
 0x62a   : > { %v4168_v36 = vmul.f32 %v4134_v21, %v15087_v27  ;;  %v4169_v38 = vmul.f32 %v4134_v21, %v15090_v28  ;;  %v4170_v53 = vmul.f32 %v4134_v21, %v15093_v19  ;;  %v4171_v10 = vmul.f32 %v4134_v21, %v15096_v54 }
 0x62b   : > { %v4172_v9 = vmul.f32 %v4134_v21, %v15099_v35  ;;  %v4173_v61 = vmul.f32 %v4134_v21, %v15102_v2  ;;  %v4174_v48 = vmul.f32 %v4134_v21, %v15105_v0  ;;  %v4175_v26 = vmul.f32 %v4134_v21, %v15108_v37 }
 0x62c   : > { %v15385_v55 = vadd.f32 %v15337_v29, %v4136_v52  ;;  %v15388_v5 = vadd.f32 %v15337_v29, %v4137_v7  ;;  %v15391_v27 = vadd.f32 %v15337_v29, %v4138_v49  ;;  %v15394_v28 = vadd.f32 %v15337_v29, %v4139_v62 }
 0x62d   : > { %v15397_v19 = vadd.f32 %v15337_v29, %v4140_v44  ;;  %v15400_v54 = vadd.f32 %v15337_v29, %v4141_v34  ;;  %v15403_v35 = vadd.f32 %v15337_v29, %v4142_v51  ;;  %v15406_v2 = vadd.f32 %v15337_v29, %v4143_v63 }
 0x62e   : > { %v15409_v0 = vadd.f32 %v15337_v29, %v4144_v42  ;;  %v15412_v37 = vadd.f32 %v15337_v29, %v4145_v40  ;;  %v15415_v21 = vadd.f32 %v15337_v29, %v4146_v33  ;;  %v15418_v52 = vadd.f32 %v15337_v29, %v4147_v4 }
 0x62f   : > { %v15421_v7 = vadd.f32 %v15337_v29, %v4148_v12  ;;  %v15424_v32 = vadd.f32 %v15337_v29, %v4149_v46  ;;  %v15427_v49 = vadd.f32 %v15337_v29, %v4150_v16  ;;  %v15430_v41 = vadd.f32 %v15337_v29, %v4151_v58 }
 0x630   : > { %v15433_v62 = vadd.f32 %v15337_v29, %v4152_v22  ;;  %v15436_v44 = vadd.f32 %v15337_v29, %v4153_v56  ;;  %v15439_v34 = vadd.f32 %v15337_v29, %v4154_v14  ;;  %v15442_v51 = vadd.f32 %v15337_v29, %v4155_v17 }
 0x631   : > { %v15445_v11 = vadd.f32 %v15337_v29, %v4156_v15  ;;  %v15448_v63 = vadd.f32 %v15337_v29, %v4157_v13  ;;  %v15451_v42 = vadd.f32 %v15337_v29, %v4158_v1  ;;  %v15454_v40 = vadd.f32 %v15337_v29, %v4159_v31 }
 0x632   : > { %v15457_v33 = vadd.f32 %v15337_v29, %v4160_v39  ;;  %v15460_v4 = vadd.f32 %v15337_v29, %v4161_v24  ;;  %v15463_v12 = vadd.f32 %v15337_v29, %v4162_v57  ;;  %v15466_v46 = vadd.f32 %v15337_v29, %v4163_v6 }
 0x633   : > { %v15469_v8 = vadd.f32 %v15337_v29, %v4164_v23  ;;  %v15472_v16 = vadd.f32 %v15337_v29, %v4165_v60  ;;  %v15475_v58 = vadd.f32 %v15337_v29, %v4166_v45  ;;  %v15478_v22 = vadd.f32 %v15337_v29, %v4167_v43 }
 0x634   : > { %v15481_v56 = vadd.f32 %v15337_v29, %v4168_v36  ;;  %v15484_v14 = vadd.f32 %v15337_v29, %v4169_v38  ;;  %v15487_v17 = vadd.f32 %v15337_v29, %v4170_v53  ;;  %v15490_v15 = vadd.f32 %v15337_v29, %v4171_v10 }
 0x635   : > { %v15493_v3 = vadd.f32 %v15337_v29, %v4172_v9  ;;  %v15496_v30 = vadd.f32 %v15337_v29, %v4173_v61  ;;  %v15499_v13 = vadd.f32 %v15337_v29, %v4174_v48  ;;  %v15502_v1 = vadd.f32 %v15337_v29, %v4175_v26 }
 0x636   : > { %v4224_v31 = vmax.f32 %v15385_v55, 0.0  ;;  %v4225_v39 = vmax.f32 %v15388_v5, 0.0  ;;  %v4226_v24 = vmax.f32 %v15391_v27, 0.0  ;;  %v4227_v57 = vmax.f32 %v15394_v28, 0.0 }
 0x637   : > { %v4228_v6 = vmax.f32 %v15397_v19, 0.0  ;;  %v4229_v23 = vmax.f32 %v15400_v54, 0.0  ;;  %v4230_v60 = vmax.f32 %v15403_v35, 0.0  ;;  %v4231_v45 = vmax.f32 %v15406_v2, 0.0 }
 0x638   : > { %v4232_v43 = vmax.f32 %v15409_v0, 0.0  ;;  %v4233_v29 = vmax.f32 %v15412_v37, 0.0  ;;  %v4234_v36 = vmax.f32 %v15415_v21, 0.0  ;;  %v4235_v38 = vmax.f32 %v15418_v52, 0.0 }
 0x639   : > { %v4236_v53 = vmax.f32 %v15421_v7, 0.0  ;;  %v4237_v10 = vmax.f32 %v15424_v32, 0.0  ;;  %v4238_v9 = vmax.f32 %v15427_v49, 0.0  ;;  %v4239_v61 = vmax.f32 %v15430_v41, 0.0 }
 0x63a   : > { %v4240_v48 = vmax.f32 %v15433_v62, 0.0  ;;  %v4241_v26 = vmax.f32 %v15436_v44, 0.0  ;;  %v4242_v55 = vmax.f32 %v15439_v34, 0.0  ;;  %v4243_v5 = vmax.f32 %v15442_v51, 0.0 }
 0x63b   : > { %v4244_v27 = vmax.f32 %v15445_v11, 0.0  ;;  %v4245_v28 = vmax.f32 %v15448_v63, 0.0  ;;  %v4246_v19 = vmax.f32 %v15451_v42, 0.0  ;;  %v4247_v54 = vmax.f32 %v15454_v40, 0.0  ;;  %v16900_v42 = vld [vmem:[#allocation15_spill] sm:$0xff]  ;;  %v16905_v11 = vld [vmem:[#allocation21_spill] sm:$0xff] }
 0x63c   : > { %v4248_v35 = vmax.f32 %v15457_v33, 0.0  ;;  %v4249_v2 = vmax.f32 %v15460_v4, 0.0  ;;  %v4250_v0 = vmax.f32 %v15463_v12, 0.0  ;;  %v4251_v37 = vmax.f32 %v15466_v46, 0.0  ;;  %v16901_v33 = vld [vmem:[#allocation17_spill] sm:$0xff]  ;;  %v16902_v12 = vld [vmem:[#allocation16_spill] sm:$0xff] }
 0x63d   : > { %v4252_v21 = vmax.f32 %v15469_v8, 0.0  ;;  %v4253_v52 = vmax.f32 %v15472_v16, 0.0  ;;  %v4254_v7 = vmax.f32 %v15475_v58, 0.0  ;;  %v4255_v32 = vmax.f32 %v15478_v22, 0.0  ;;  %v16903_v8 = vld [vmem:[#allocation18_spill] sm:$0xff]  ;;  %v16904_v22 = vld [vmem:[#allocation20_spill] sm:$0xff] }
 0x63e   : > { %v4256_v49 = vmax.f32 %v15481_v56, 0.0  ;;  %v4257_v41 = vmax.f32 %v15484_v14, 0.0  ;;  %v4258_v62 = vmax.f32 %v15487_v17, 0.0  ;;  %v4259_v44 = vmax.f32 %v15490_v15, 0.0  ;;  %v16933_v56 = vld [vmem:[#allocation51_spill] sm:$0xff]  ;;  %v16934_v17 = vld [vmem:[#allocation52_spill] sm:$0xff] }
 0x63f   : > { %v4260_v34 = vmax.f32 %v15493_v3, 0.0  ;;  %v4261_v51 = vmax.f32 %v15496_v30, 0.0  ;;  %v15545_v40 = vmul.f32 %v4224_v31, %v16900_v42  ;;  %v15548_v4 = vmul.f32 %v4225_v39, %v16901_v33  ;;  %v16906_v31 = vld [vmem:[#allocation22_spill] sm:$0xff]  ;;  %v16907_v39 = vld [vmem:[#allocation23_spill] sm:$0xff] }
 0x640   : > { %v15551_v46 = vmul.f32 %v4226_v24, %v16902_v12  ;;  %v15554_v16 = vmul.f32 %v4227_v57, %v16903_v8  ;;  %v15557_v58 = vmul.f32 %v4228_v6, %v16864_v50  ;;  %v15560_v25 = vmul.f32 %v4229_v23, %v16904_v22  ;;  %v16908_v24 = vld [vmem:[#allocation24_spill] sm:$0xff]  ;;  %v16909_v57 = vld [vmem:[#allocation25_spill] sm:$0xff]  ;;  %v16910_v50 = vld [vmem:[#allocation26_spill] sm:$0xff] }
 0x641   : > { %v15563_v63 = vmul.f32 %v4230_v60, %v16905_v11  ;;  %v15566_v42 = vmul.f32 %v4231_v45, %v16906_v31  ;;  %v15569_v33 = vmul.f32 %v4232_v43, %v16907_v39  ;;  %v15572_v12 = vmul.f32 %v4233_v29, %v16908_v24  ;;  %4306 = vst [vmem:[#allocation2] sm:$0xff] %v15545_v40  ;;  %v16911_v23 = vld [vmem:[#allocation27_spill] sm:$0xff]  ;;  %v16912_v45 = vld [vmem:[#allocation28_spill] sm:$0xff]  ;;  %v16913_v29 = vld [vmem:[#allocation29_spill] sm:$0xff] }
 0x642   : > { %v15575_v8 = vmul.f32 %v4234_v36, %v16909_v57  ;;  %v15578_v6 = vmul.f32 %v4235_v38, %v16910_v50  ;;  %4307 = vst [vmem:[#allocation2 + $0x8] sm:$0xff] %v15548_v4  ;;  %4308 = vst [vmem:[#allocation2 + $0x10] sm:$0xff] %v15551_v46  ;;  %v15585_v60 = vmul.f32 %v4236_v53, %v16911_v23  ;;  %v16914_v11 = vld [vmem:[#allocation30_spill] sm:$0xff]  ;;  %v16915_v22 = vld [vmem:[#allocation32_spill] sm:$0xff]  ;;  %v16936_v15 = vmax.f32 %v15499_v13, 0.0 }
 0x643   : > { %4309 = vst [vmem:[#allocation2 + $0x18] sm:$0xff] %v15554_v16  ;;  %v15588_v43 = vmul.f32 %v4237_v10, %v16912_v45  ;;  %v15591_v36 = vmul.f32 %v4238_v9, %v16913_v29  ;;  %v15594_v38 = vmul.f32 %v4239_v61, %v16914_v11  ;;  %4310 = vst [vmem:[#allocation2 + $0x20] sm:$0xff] %v15557_v58  ;;  %v16916_v31 = vld [vmem:[#allocation33_spill] sm:$0xff]  ;;  %v16917_v39 = vld [vmem:[#allocation34_spill] sm:$0xff] }
 0x644   : > { %4311 = vst [vmem:[#allocation2 + $0x28] sm:$0xff] %v15560_v25  ;;  %4312 = vst [vmem:[#allocation2 + $0x30] sm:$0xff] %v15563_v63  ;;  %v15601_v53 = vmul.f32 %v4240_v48, %v16872_v47  ;;  %v15604_v10 = vmul.f32 %v4241_v26, %v14932_v18  ;;  %v15607_v9 = vmul.f32 %v4242_v55, %v16915_v22  ;;  %v16918_v48 = vld [vmem:[#allocation35_spill] sm:$0xff]  ;;  %v16919_v26 = vld [vmem:[#allocation36_spill] sm:$0xff] }
 0x645   : > { %4313 = vst [vmem:[#allocation2 + $0x38] sm:$0xff] %v15566_v42  ;;  %v15610_v61 = vmul.f32 %v4243_v5, %v16916_v31  ;;  %4314 = vst [vmem:[#allocation2 + $0x40] sm:$0xff] %v15569_v33  ;;  %v15617_v47 = vmul.f32 %v4244_v27, %v16917_v39  ;;  %v15620_v18 = vmul.f32 %v4245_v28, %v16918_v48  ;;  %v16920_v24 = vld [vmem:[#allocation37_spill] sm:$0xff]  ;;  %v16921_v57 = vld [vmem:[#allocation38_spill] sm:$0xff] }
 0x646   : > { %4315 = vst [vmem:[#allocation2 + $0x48] sm:$0xff] %v15572_v12  ;;  %4316 = vst [vmem:[#allocation2 + $0x50] sm:$0xff] %v15575_v8  ;;  %v15623_v55 = vmul.f32 %v4246_v19, %v16919_v26  ;;  %v15626_v5 = vmul.f32 %v4247_v54, %v16920_v24  ;;  %v15633_v27 = vmul.f32 %v4248_v35, %v16921_v57  ;;  %v16922_v50 = vld [vmem:[#allocation39_spill] sm:$0xff]  ;;  %v16923_v23 = vld [vmem:[#allocation40_spill] sm:$0xff]  ;;  %v16938_v57 = vmax.f32 %v15502_v1, 0.0 }
 0x647   : > { %4317 = vst [vmem:[#allocation2 + $0x58] sm:$0xff] %v15578_v6  ;;  %4318 = vst [vmem:[#allocation2 + $0x60] sm:$0xff] %v15585_v60  ;;  %v15636_v28 = vmul.f32 %v4249_v2, %v16922_v50  ;;  %v15639_v19 = vmul.f32 %v4250_v0, %v16923_v23  ;;  %v16924_v45 = vld [vmem:[#allocation41_spill] sm:$0xff]  ;;  %v16925_v29 = vld [vmem:[#allocation42_spill] sm:$0xff]  ;;  %v4301_v14 = vmul.f32 %v4260_v34, %v16933_v56 }
 0x648   : > { %4319 = vst [vmem:[#allocation2 + $0x68] sm:$0xff] %v15588_v43  ;;  %4320 = vst [vmem:[#allocation2 + $0x70] sm:$0xff] %v15591_v36  ;;  %v15642_v54 = vmul.f32 %v4251_v37, %v16924_v45  ;;  %v15649_v35 = vmul.f32 %v4252_v21, %v16925_v29  ;;  %v16926_v11 = vld [vmem:[#allocation43_spill] sm:$0xff]  ;;  %v16927_v22 = vld [vmem:[#allocation45_spill] sm:$0xff] }
 0x649   : > { %4321 = vst [vmem:[#allocation2 + $0x78] sm:$0xff] %v15594_v38  ;;  %4322 = vst [vmem:[#allocation2 + $0x80] sm:$0xff] %v15601_v53  ;;  %v15652_v2 = vmul.f32 %v4253_v52, %v16926_v11  ;;  %v15655_v0 = vmul.f32 %v4254_v7, %v16927_v22  ;;  %v16928_v31 = vld [vmem:[#allocation46_spill] sm:$0xff]  ;;  %v16929_v39 = vld [vmem:[#allocation47_spill] sm:$0xff] }
 0x64a   : > { %4323 = vst [vmem:[#allocation2 + $0x88] sm:$0xff] %v15604_v10  ;;  %4324 = vst [vmem:[#allocation2 + $0x90] sm:$0xff] %v15607_v9  ;;  %v15658_v37 = vmul.f32 %v4255_v32, %v16928_v31  ;;  %v15667_v21 = vmul.f32 %v4256_v49, %v16929_v39  ;;  %v16930_v52 = vld [vmem:[#allocation48_spill] sm:$0xff]  ;;  %v16931_v32 = vld [vmem:[#allocation49_spill] sm:$0xff]  ;;  %v4302_v49 = vmul.f32 %v4261_v51, %v16934_v17 }
 0x64b   : > { %4325 = vst [vmem:[#allocation2 + $0x98] sm:$0xff] %v15610_v61  ;;  %4326 = vst [vmem:[#allocation2 + $0xa0] sm:$0xff] %v15617_v47  ;;  %v15672_v7 = vmul.f32 %v4257_v41, %v16930_v52  ;;  %v15677_v48 = vmul.f32 %v4258_v62, %v16931_v32  ;;  %v16932_v26 = vld [vmem:[#allocation50_spill] sm:$0xff]  ;;  %v16935_v41 = vld [vmem:[#allocation53_spill] sm:$0xff] }
 0x64c   : > { %4327 = vst [vmem:[#allocation2 + $0xa8] sm:$0xff] %v15620_v18  ;;  %4328 = vst [vmem:[#allocation2 + $0xb0] sm:$0xff] %v15623_v55  ;;  %v15682_v24 = vmul.f32 %v4259_v44, %v16932_v26  ;;  %v4303_v62 = vmul.f32 %v16936_v15, %v16935_v41  ;;  %v16937_v44 = vld [vmem:[#allocation54_spill] sm:$0xff]  ;;  %v4399_v3 = vld [vmem:[#allocation2 + $0x1] sm:$0xff] }
 0x64d   : > { %4329 = vst [vmem:[#allocation2 + $0xb8] sm:$0xff] %v15626_v5  ;;  %4330 = vst [vmem:[#allocation2 + $0xc0] sm:$0xff] %v15633_v27  ;;  %v4304_v50 = vmul.f32 %v16938_v57, %v16937_v44  ;;  %v4400_v34 = vld [vmem:[#allocation2 + $0x9] sm:$0xff]  ;;  %10449 = vmatprep.mubr.f32.mxu1 %v4399_v3  ;;  %v4387_v30 = vld [vmem:[#allocation8 + $0x20] sm:$0xff] }
 0x64e   : > { %4331 = vst [vmem:[#allocation2 + $0xc8] sm:$0xff] %v15636_v28  ;;  %4332 = vst [vmem:[#allocation2 + $0xd0] sm:$0xff] %v15639_v19  ;;  %v4388_v13 = vld [vmem:[#allocation8 + $0x28] sm:$0xff]  ;;  %10450 = vmatmul.mubr.f32.vlgmr.msra.gmra.mrb[82].mxu1 %v4400_v34  ;;  %v4401_v1 = vld [vmem:[#allocation2 + $0x11] sm:$0xff] }
 0x64f   : > { %4333 = vst [vmem:[#allocation2 + $0xd8] sm:$0xff] %v15642_v54  ;;  %4334 = vst [vmem:[#allocation2 + $0xe0] sm:$0xff] %v15649_v35  ;;  %10452 = vmatprep.mubr.f32.mxu1 %v4401_v1  ;;  %v16939_v51 = vld [vmem:[#allocation19_spill] sm:$0xff]  ;;  %v11447_v23 = vpack.c.bf16 %v4388_v13, %v4387_v30  ;;  %v4389_v29 = vld [vmem:[#allocation8 + $0x30] sm:$0xff] }
 0x650   : > { %4335 = vst [vmem:[#allocation2 + $0xe8] sm:$0xff] %v15652_v2  ;;  %4336 = vst [vmem:[#allocation2 + $0xf0] sm:$0xff] %v15655_v0  ;;  %11442 = vmatpush3.bf16.msra.mxu1 %v16939_v51  ;;  %v4402_v45 = vld [vmem:[#allocation2 + $0x19] sm:$0xff]  ;;  %v4390_v11 = vld [vmem:[#allocation8 + $0x38] sm:$0xff] }
 0x651   : > { %4337 = vst [vmem:[#allocation2 + $0xf8] sm:$0xff] %v15658_v37  ;;  %4338 = vst [vmem:[#allocation2 + $0x100] sm:$0xff] %v15667_v21  ;;  %11444 = vmatprep.subr.bf16.mxu1 %v15339_v20  ;;  %v4403_v22 = vld [vmem:[#allocation2 + $0x21] sm:$0xff]  ;;  %v11451_v31 = vpack.c.bf16 %v4390_v11, %v4389_v29  ;;  %v4404_v39 = vld [vmem:[#allocation2 + $0x29] sm:$0xff] }
 0x652   : > { %4339 = vst [vmem:[#allocation2 + $0x108] sm:$0xff] %v15672_v7  ;;  %4340 = vst [vmem:[#allocation2 + $0x110] sm:$0xff] %v15677_v48  ;;  %10453 = vmatmul.mubr.f32.gmra.mrb[84].mxu1 %v4402_v45  ;;  %v4391_v52 = vld [vmem:[#allocation8 + $0x40] sm:$0xff]  ;;  %v4392_v32 = vld [vmem:[#allocation8 + $0x48] sm:$0xff] }
 0x653   : > { %4341 = vst [vmem:[#allocation2 + $0x118] sm:$0xff] %v15682_v24  ;;  %4342 = vst [vmem:[#allocation2 + $0x120] sm:$0xff] %v4301_v14  ;;  %10455 = vmatprep.mubr.f32.mxu1 %v4403_v22  ;;  %v4405_v26 = vld [vmem:[#allocation2 + $0x31] sm:$0xff]  ;;  %v11455_v56 = vpack.c.bf16 %v4392_v32, %v4391_v52  ;;  %v4406_v14 = vld [vmem:[#allocation2 + $0x39] sm:$0xff] }
 0x654   : > { %4343 = vst [vmem:[#allocation2 + $0x128] sm:$0xff] %v4302_v49  ;;  %4344 = vst [vmem:[#allocation2 + $0x130] sm:$0xff] %v4303_v62  ;;  %11446 = vmatpush3.bf16.msra.mxu1 %v15339_v20  ;;  %v4393_v17 = vld [vmem:[#allocation8 + $0x50] sm:$0xff]  ;;  %v4394_v49 = vld [vmem:[#allocation8 + $0x58] sm:$0xff] }
 0x655   : > { %4345 = vst [vmem:[#allocation2 + $0x138] sm:$0xff] %v4304_v50  ;;  %11448 = vmatprep.subr.bf16.mxu1 %v11447_v23  ;;  %v4407_v41 = vld [vmem:[#allocation2 + $0x41] sm:$0xff]  ;;  %v11459_v20 = vpack.c.bf16 %v4394_v49, %v4393_v17  ;;  %v4408_v15 = vld [vmem:[#allocation2 + $0x49] sm:$0xff]  ;;  %v4395_v62 = vld [vmem:[#allocation8 + $0x60] sm:$0xff] }
 0x656   : > { %10456 = vmatmul.mubr.f32.gmra.mrb[86].mxu1 %v4404_v39  ;;  %v4396_v44 = vld [vmem:[#allocation8 + $0x68] sm:$0xff]  ;;  %v4409_v57 = vld [vmem:[#allocation2 + $0x51] sm:$0xff]  ;;  %v4397_v34 = vld [vmem:[#allocation8 + $0x70] sm:$0xff] }
 0x657   : > { %10458 = vmatprep.mubr.f32.mxu1 %v4405_v26  ;;  %v11463_v50 = vpack.c.bf16 %v4396_v44, %v4395_v62  ;;  %v4410_v3 = vld [vmem:[#allocation2 + $0x59] sm:$0xff]  ;;  %v4398_v30 = vld [vmem:[#allocation8 + $0x78] sm:$0xff]  ;;  %v4411_v13 = vld [vmem:[#allocation2 + $0x61] sm:$0xff] }
 0x658   : > { %11450 = vmatpush3.bf16.msra.mxu1 %v11447_v23  ;;  %v11467_v1 = vpack.c.bf16 %v4398_v30, %v4397_v34  ;;  %v4412_v51 = vld [vmem:[#allocation2 + $0x69] sm:$0xff]  ;;  %v4979_v23 = vld [vmem:[#allocation8 + $0x100] sm:$0xff]  ;;  %v4980_v45 = vld [vmem:[#allocation8 + $0x108] sm:$0xff] }
 0x659   : > { %11452 = vmatprep.subr.bf16.mxu1 %v11451_v31  ;;  %v4413_v29 = vld [vmem:[#allocation2 + $0x71] sm:$0xff]  ;;  %v11471_v11 = vpack.c.bf16 %v4980_v45, %v4979_v23  ;;  %v4414_v22 = vld [vmem:[#allocation2 + $0x79] sm:$0xff]  ;;  %v4416_v39 = vld [vmem:[#allocation2 + $0x89] sm:$0xff] }
 0x65a   : > { %10459 = vmatmul.mubr.f32.gmra.mrb[88].mxu1 %v4406_v14  ;;  %v4417_v52 = vld [vmem:[#allocation2 + $0x91] sm:$0xff]  ;;  %v4418_v32 = vld [vmem:[#allocation2 + $0x99] sm:$0xff]  ;;  %v4419_v26 = vld [vmem:[#allocation2 + $0xa1] sm:$0xff] }
 0x65b   : > { %10461 = vmatprep.mubr.f32.mxu1 %v4407_v41  ;;  %v4421_v14 = vld [vmem:[#allocation2 + $0xb1] sm:$0xff]  ;;  %v4422_v17 = vld [vmem:[#allocation2 + $0xb9] sm:$0xff]  ;;  %v4423_v49 = vld [vmem:[#allocation2 + $0xc1] sm:$0xff] }
 0x65c   : > { %11454 = vmatpush3.bf16.msra.mxu1 %v11451_v31  ;;  %v4415_v31 = vld [vmem:[#allocation2 + $0x81] sm:$0xff]  ;;  %v4424_v41 = vld [vmem:[#allocation2 + $0xc9] sm:$0xff]  ;;  %v4433_v30 = vld [vmem:[#allocation2 + $0x111] sm:$0xff] }
 0x65d   : > { %11456 = vmatprep.subr.bf16.mxu1 %v11455_v56  ;;  %v4427_v62 = vld [vmem:[#allocation2 + $0xe1] sm:$0xff]  ;;  %v4428_v44 = vld [vmem:[#allocation2 + $0xe9] sm:$0xff]  ;;  %v4983_v45 = vld [vmem:[#allocation8 + $0x120] sm:$0xff] }
 0x65e   : > { %10462 = vmatmul.mubr.f32.gmra.mrb[90].mxu1 %v4408_v15  ;;  %v4426_v15 = vld [vmem:[#allocation2 + $0xd9] sm:$0xff]  ;;  %v4432_v34 = vld [vmem:[#allocation2 + $0x109] sm:$0xff] }
 0x65f   : > { %10464 = vmatprep.mubr.f32.mxu1 %v4409_v57  ;;  %v4429_v57 = vld [vmem:[#allocation2 + $0xf1] sm:$0xff] }
 0x660   : > { %11458 = vmatpush3.bf16.msra.mxu1 %v11455_v56  ;;  %v4420_v56 = vld [vmem:[#allocation2 + $0xa9] sm:$0xff] }
 0x661   : > { %11460 = vmatprep.subr.bf16.mxu1 %v11459_v20 }
 0x662   : > { %10465 = vmatmul.mubr.f32.gmra.mrb[92].mxu1 %v4410_v3  ;;  %v4431_v3 = vld [vmem:[#allocation2 + $0x101] sm:$0xff] }
 0x663   : > { %10467 = vmatprep.mubr.f32.mxu1 %v4411_v13  ;;  %v4434_v13 = vld [vmem:[#allocation2 + $0x119] sm:$0xff] }
 0x664   : > { %11462 = vmatpush3.bf16.msra.mxu1 %v11459_v20  ;;  %v4425_v20 = vld [vmem:[#allocation2 + $0xd1] sm:$0xff] }
 0x665   : > { %11464 = vmatprep.subr.bf16.mxu1 %v11463_v50 }
 0x666   : > { %10468 = vmatmul.mubr.f32.gmra.mrb[94].mxu1 %v4412_v51  ;;  %v4982_v51 = vld [vmem:[#allocation8 + $0x118] sm:$0xff] }
 0x667   : > { %10470 = vmatprep.mubr.f32.mxu1 %v4413_v29  ;;  %v4984_v29 = vld [vmem:[#allocation8 + $0x128] sm:$0xff] }
 0x668   : > { %11466 = vmatpush3.bf16.msra.mxu1 %v11463_v50  ;;  %v4430_v50 = vld [vmem:[#allocation2 + $0xf9] sm:$0xff] }
 0x669   : > { %11468 = vmatprep.subr.bf16.mxu1 %v11467_v1 }
 0x66a   : > { %10471 = vmatmul.mubr.f32.gmra.mrb[96].mxu1 %v4414_v22  ;;  %v11479_v22 = vpack.c.bf16 %v4984_v29, %v4983_v45  ;;  %v15795_v45 = vld [vmem:[#allocation2 + $0x92] sm:$0xff]  ;;  %v15798_v29 = vld [vmem:[#allocation2 + $0x9a] sm:$0xff] }
 0x66b   : > { %10473 = vmatprep.mubr.f32.mxu1 %v4415_v31  ;;  %v4985_v31 = vld [vmem:[#allocation8 + $0x130] sm:$0xff] }
 0x66c   : > { %11470 = vmatpush3.bf16.msra.mxu1 %v11467_v1  ;;  %v4981_v1 = vld [vmem:[#allocation8 + $0x110] sm:$0xff] }
 0x66d   : > { %11472 = vmatprep.subr.bf16.mxu1 %v11471_v11  ;;  %v11475_v23 = vpack.c.bf16 %v4982_v51, %v4981_v1  ;;  %v15786_v1 = vld [vmem:[#allocation2 + $0x7a] sm:$0xff]  ;;  %v15789_v51 = vld [vmem:[#allocation2 + $0x82] sm:$0xff] }
 0x66e   : > { %10474 = vmatmul.mubr.f32.gmra.mrb[98].mxu1 %v4416_v39  ;;  %v4986_v39 = vld [vmem:[#allocation8 + $0x138] sm:$0xff] }
 0x66f   : > { %10476 = vmatprep.mubr.f32.mxu1 %v4417_v52  ;;  %v11483_v52 = vpack.c.bf16 %v4986_v39, %v4985_v31  ;;  %v15804_v31 = vld [vmem:[#allocation2 + $0xaa] sm:$0xff]  ;;  %v15807_v39 = vld [vmem:[#allocation2 + $0xb2] sm:$0xff] }
 0x672   : > { %10477 = vmatmul.mubr.f32.gmra.mrb[100].mxu1 %v4418_v32  ;;  %v4988_v32 = vld [vmem:[#allocation8 + $0x148] sm:$0xff] }
 0x673   : > { %10479 = vmatprep.mubr.f32.mxu1 %v4419_v26  ;;  %v4992_v26 = vld [vmem:[#allocation8 + $0x168] sm:$0xff] }
 0x676   : > { %10480 = vmatmul.mubr.f32.gmra.mrb[102].mxu1 %v4420_v56  ;;  %v4994_v56 = vld [vmem:[#allocation8 + $0x178] sm:$0xff] }
 0x677   : > { %10482 = vmatprep.mubr.f32.mxu1 %v4421_v14  ;;  %v5314_v14 = vld [vmem:[#allocation8 + $0x188] sm:$0xff] }
 0x67a   : > { %10483 = vmatmul.mubr.f32.gmra.mrb[104].mxu1 %v4422_v17  ;;  %v5326_v17 = vld [vmem:[#allocation8 + $0x1e8] sm:$0xff] }
 0x67b   : > { %10485 = vmatprep.mubr.f32.mxu1 %v4423_v49  ;;  %v15771_v49 = vld [vmem:[#allocation2 + $0x52] sm:$0xff] }
 0x67e   : > { %10486 = vmatmul.mubr.f32.gmra.mrb[106].mxu1 %v4424_v41 }
 0x67f   : > { %10488 = vmatprep.mubr.f32.mxu1 %v4425_v20  ;;  %v15774_v20 = vld [vmem:[#allocation2 + $0x5a] sm:$0xff] }
 0x682   : > { %10489 = vmatmul.mubr.f32.gmra.mrb[108].mxu1 %v4426_v15  ;;  %v5327_v15 = vld [vmem:[#allocation8 + $0x1f0] sm:$0xff] }
 0x683   : > { %10491 = vmatprep.mubr.f32.mxu1 %v4427_v62  ;;  %v5328_v62 = vld [vmem:[#allocation8 + $0x1f8] sm:$0xff] }
 0x686   : > { %10492 = vmatmul.mubr.f32.gmra.mrb[110].mxu1 %v4428_v44  ;;  %v15777_v44 = vld [vmem:[#allocation2 + $0x62] sm:$0xff] }
 0x687   : > { %10494 = vmatprep.mubr.f32.mxu1 %v4429_v57  ;;  %v11531_v57 = vpack.c.bf16 %v5328_v62, %v5327_v15  ;;  %v5612_v15 = vld [vmem:[#allocation2 + $0x23] sm:$0xff] }
 0x68a   : > { %10495 = vmatmul.mubr.f32.gmra.mrb[112].mxu1 %v4430_v50  ;;  %v15780_v50 = vld [vmem:[#allocation2 + $0x6a] sm:$0xff] }
 0x68b   : > { %10497 = vmatprep.mubr.f32.mxu1 %v4431_v3  ;;  %v5647_v3 = vld [vmem:[#allocation8 + $0x200] sm:$0xff] }
 0x68e   : > { %10498 = vmatmul.mubr.f32.gmra.mrb[114].mxu1 %v4432_v34  ;;  %v5648_v34 = vld [vmem:[#allocation8 + $0x208] sm:$0xff] }
 0x68f   : > { %10500 = vmatprep.mubr.f32.mxu1 %v4433_v30  ;;  %v15783_v30 = vld [vmem:[#allocation2 + $0x72] sm:$0xff] }
 0x692   : > { %10501 = vmatmul.mubr.f32.gmra.mrb[116].mxu1 %v4434_v13  ;;  %v11535_v13 = vpack.c.bf16 %v5648_v34, %v5647_v3  ;;  %v5614_v3 = vld [vmem:[#allocation2 + $0x33] sm:$0xff] }
 0x693   : > { %10535 = vmatprep.mubr.f32.mxu1 %v15545_v40  ;;  %v4987_v40 = vld [vmem:[#allocation8 + $0x140] sm:$0xff] }
 0x696   : > { %10536 = vmatmul.mubr.f32.vlgmr.msra.gmra.mrb[82].mxu1 %v15548_v4  ;;  %v11487_v4 = vpack.c.bf16 %v4988_v32, %v4987_v40  ;;  %v15813_v40 = vld [vmem:[#allocation2 + $0xc2] sm:$0xff]  ;;  %v15816_v32 = vld [vmem:[#allocation2 + $0xca] sm:$0xff] }
 0x697   : > { %10538 = vmatprep.mubr.f32.mxu1 %v15551_v46  ;;  %11474 = vmatpush3.bf16.msra.mxu1 %v11471_v11  ;;  %v4989_v46 = vld [vmem:[#allocation8 + $0x150] sm:$0xff]  ;;  %v4990_v11 = vld [vmem:[#allocation8 + $0x158] sm:$0xff] }
 0x698   : > { %11476 = vmatprep.subr.bf16.mxu1 %v11475_v23 }
 0x69a   : > { %10539 = vmatmul.mubr.f32.gmra.mrb[84].mxu1 %v15554_v16  ;;  %v11491_v16 = vpack.c.bf16 %v4990_v11, %v4989_v46  ;;  %v15822_v46 = vld [vmem:[#allocation2 + $0xda] sm:$0xff]  ;;  %v15825_v11 = vld [vmem:[#allocation2 + $0xe2] sm:$0xff] }
 0x69b   : > { %10541 = vmatprep.mubr.f32.mxu1 %v15557_v58  ;;  %11478 = vmatpush3.bf16.msra.mxu1 %v11475_v23  ;;  %v4991_v58 = vld [vmem:[#allocation8 + $0x160] sm:$0xff]  ;;  %v15792_v23 = vld [vmem:[#allocation2 + $0x8a] sm:$0xff] }
 0x69c   : > { %11480 = vmatprep.subr.bf16.mxu1 %v11479_v22 }
 0x69e   : > { %10542 = vmatmul.mubr.f32.gmra.mrb[86].mxu1 %v15560_v25  ;;  %v11495_v25 = vpack.c.bf16 %v4992_v26, %v4991_v58  ;;  %v15831_v58 = vld [vmem:[#allocation2 + $0xf2] sm:$0xff]  ;;  %v15834_v26 = vld [vmem:[#allocation2 + $0xfa] sm:$0xff] }
 0x69f   : > { %10544 = vmatprep.mubr.f32.mxu1 %v15563_v63  ;;  %11482 = vmatpush3.bf16.msra.mxu1 %v11479_v22  ;;  %v4993_v63 = vld [vmem:[#allocation8 + $0x170] sm:$0xff] }
 0x6a0   : > { %11484 = vmatprep.subr.bf16.mxu1 %v11483_v52  ;;  %v15801_v22 = vld [vmem:[#allocation2 + $0xa2] sm:$0xff] }
 0x6a2   : > { %10545 = vmatmul.mubr.f32.gmra.mrb[88].mxu1 %v15566_v42  ;;  %v11499_v42 = vpack.c.bf16 %v4994_v56, %v4993_v63  ;;  %v15840_v63 = vld [vmem:[#allocation2 + $0x10a] sm:$0xff]  ;;  %v15843_v56 = vld [vmem:[#allocation2 + $0x112] sm:$0xff] }
 0x6a3   : > { %10547 = vmatprep.mubr.f32.mxu1 %v15569_v33  ;;  %11486 = vmatpush3.bf16.msra.mxu1 %v11483_v52  ;;  %v5313_v33 = vld [vmem:[#allocation8 + $0x180] sm:$0xff] }
 0x6a4   : > { %11488 = vmatprep.subr.bf16.mxu1 %v11487_v4  ;;  %v15810_v52 = vld [vmem:[#allocation2 + $0xba] sm:$0xff] }
 0x6a6   : > { %10548 = vmatmul.mubr.f32.gmra.mrb[90].mxu1 %v15572_v12  ;;  %v11503_v12 = vpack.c.bf16 %v5314_v14, %v5313_v33  ;;  %v5649_v33 = vld [vmem:[#allocation8 + $0x210] sm:$0xff]  ;;  %v5650_v14 = vld [vmem:[#allocation8 + $0x218] sm:$0xff] }
 0x6a7   : > { %10550 = vmatprep.mubr.f32.mxu1 %v15575_v8  ;;  %11490 = vmatpush3.bf16.msra.mxu1 %v11487_v4  ;;  %v5315_v8 = vld [vmem:[#allocation8 + $0x190] sm:$0xff]  ;;  %v15819_v4 = vld [vmem:[#allocation2 + $0xd2] sm:$0xff] }
 0x6a8   : > { %11492 = vmatprep.subr.bf16.mxu1 %v11491_v16 }
 0x6aa   : > { %10551 = vmatmul.mubr.f32.gmra.mrb[92].mxu1 %v15578_v6  ;;  %v5316_v6 = vld [vmem:[#allocation8 + $0x198] sm:$0xff] }
 0x6ab   : > { %10553 = vmatprep.mubr.f32.mxu1 %v15585_v60  ;;  %11494 = vmatpush3.bf16.msra.mxu1 %v11491_v16  ;;  %v4942_v60 = vld [vmem:[#allocation2 + $0x2] sm:$0xff]  ;;  %v15828_v16 = vld [vmem:[#allocation2 + $0xea] sm:$0xff] }
 0x6ac   : > { %11496 = vmatprep.subr.bf16.mxu1 %v11495_v25 }
 0x6ae   : > { %10554 = vmatmul.mubr.f32.gmra.mrb[94].mxu1 %v15588_v43  ;;  %v11507_v43 = vpack.c.bf16 %v5316_v6, %v5315_v8  ;;  %v5651_v8 = vld [vmem:[#allocation8 + $0x220] sm:$0xff]  ;;  %v5652_v6 = vld [vmem:[#allocation8 + $0x228] sm:$0xff] }
 0x6af   : > { %10556 = vmatprep.mubr.f32.mxu1 %v15591_v36  ;;  %11498 = vmatpush3.bf16.msra.mxu1 %v11495_v25  ;;  %v4943_v36 = vld [vmem:[#allocation2 + $0xa] sm:$0xff]  ;;  %v15837_v25 = vld [vmem:[#allocation2 + $0x102] sm:$0xff] }
 0x6b0   : > { %11500 = vmatprep.subr.bf16.mxu1 %v11499_v42 }
 0x6b2   : > { %10557 = vmatmul.mubr.f32.gmra.mrb[96].mxu1 %v15594_v38  ;;  %v5317_v38 = vld [vmem:[#allocation8 + $0x1a0] sm:$0xff] }
 0x6b3   : > { %10559 = vmatprep.mubr.f32.mxu1 %v15601_v53  ;;  %11502 = vmatpush3.bf16.msra.mxu1 %v11499_v42  ;;  %v5318_v53 = vld [vmem:[#allocation8 + $0x1a8] sm:$0xff] }
 0x6b4   : > { %11504 = vmatprep.subr.bf16.mxu1 %v11503_v12  ;;  %v15846_v42 = vld [vmem:[#allocation2 + $0x11a] sm:$0xff] }
 0x6b6   : > { %10560 = vmatmul.mubr.f32.gmra.mrb[98].mxu1 %v15604_v10  ;;  %v15747_v10 = vld [vmem:[#allocation2 + $0x12] sm:$0xff] }
 0x6b7   : > { %10562 = vmatprep.mubr.f32.mxu1 %v15607_v9  ;;  %v11511_v9 = vpack.c.bf16 %v5318_v53, %v5317_v38  ;;  %v5655_v53 = vld [vmem:[#allocation8 + $0x240] sm:$0xff] }
 0x6ba   : > { %10563 = vmatmul.mubr.f32.gmra.mrb[100].mxu1 %v15610_v61  ;;  %v15750_v61 = vld [vmem:[#allocation2 + $0x1a] sm:$0xff] }
 0x6bb   : > { %10565 = vmatprep.mubr.f32.mxu1 %v15617_v47  ;;  %v5319_v47 = vld [vmem:[#allocation8 + $0x1b0] sm:$0xff] }
 0x6be   : > { %10566 = vmatmul.mubr.f32.gmra.mrb[102].mxu1 %v15620_v18  ;;  %v5320_v18 = vld [vmem:[#allocation8 + $0x1b8] sm:$0xff] }
 0x6bf   : > { %10568 = vmatprep.mubr.f32.mxu1 %v15623_v55  ;;  %v15753_v55 = vld [vmem:[#allocation2 + $0x22] sm:$0xff] }
 0x6c2   : > { %10569 = vmatmul.mubr.f32.gmra.mrb[104].mxu1 %v15626_v5  ;;  %v11515_v5 = vpack.c.bf16 %v5320_v18, %v5319_v47  ;;  %v5658_v47 = vld [vmem:[#allocation8 + $0x258] sm:$0xff] }
 0x6c3   : > { %10571 = vmatprep.mubr.f32.mxu1 %v15633_v27  ;;  %v15756_v27 = vld [vmem:[#allocation2 + $0x2a] sm:$0xff] }
 0x6c6   : > { %10572 = vmatmul.mubr.f32.gmra.mrb[106].mxu1 %v15636_v28  ;;  %v5321_v28 = vld [vmem:[#allocation8 + $0x1c0] sm:$0xff] }
 0x6c7   : > { %10574 = vmatprep.mubr.f32.mxu1 %v15639_v19  ;;  %v5322_v19 = vld [vmem:[#allocation8 + $0x1c8] sm:$0xff] }
 0x6ca   : > { %10575 = vmatmul.mubr.f32.gmra.mrb[108].mxu1 %v15642_v54  ;;  %v15759_v54 = vld [vmem:[#allocation2 + $0x32] sm:$0xff] }
 0x6cb   : > { %10577 = vmatprep.mubr.f32.mxu1 %v15649_v35  ;;  %v11519_v35 = vpack.c.bf16 %v5322_v19, %v5321_v28  ;;  %v5661_v28 = vld [vmem:[#allocation8 + $0x270] sm:$0xff]  ;;  %v5662_v19 = vld [vmem:[#allocation8 + $0x278] sm:$0xff] }
 0x6ce   : > { %10578 = vmatmul.mubr.f32.gmra.mrb[110].mxu1 %v15652_v2  ;;  %v15762_v2 = vld [vmem:[#allocation2 + $0x3a] sm:$0xff] }
 0x6cf   : > { %10580 = vmatprep.mubr.f32.mxu1 %v15655_v0  ;;  %v5323_v0 = vld [vmem:[#allocation8 + $0x1d0] sm:$0xff] }
 0x6d2   : > { %10581 = vmatmul.mubr.f32.gmra.mrb[112].mxu1 %v15658_v37  ;;  %v5324_v37 = vld [vmem:[#allocation8 + $0x1d8] sm:$0xff] }
 0x6d3   : > { %10583 = vmatprep.mubr.f32.mxu1 %v15667_v21  ;;  %v15765_v21 = vld [vmem:[#allocation2 + $0x42] sm:$0xff] }
 0x6d6   : > { %10584 = vmatmul.mubr.f32.gmra.mrb[114].mxu1 %v15672_v7  ;;  %v11523_v7 = vpack.c.bf16 %v5324_v37, %v5323_v0  ;;  %v5310_v37 = vld [vmem:[#allocation2 + $0x122] sm:$0xff] }
 0x6d7   : > { %10586 = vmatprep.mubr.f32.mxu1 %v15677_v48  ;;  %v15768_v48 = vld [vmem:[#allocation2 + $0x4a] sm:$0xff] }
 0x6da   : > { %10587 = vmatmul.mubr.f32.gmra.mrb[116].mxu1 %v15682_v24  ;;  %v5325_v24 = vld [vmem:[#allocation8 + $0x1e0] sm:$0xff] }
 0x6db   : > { %10621 = vmatprep.mubr.f32.mxu1 %v4942_v60  ;;  %v11527_v41 = vpack.c.bf16 %v5326_v17, %v5325_v24  ;;  %v11543_v60 = vpack.c.bf16 %v5652_v6, %v5651_v8  ;;  %v5610_v24 = vld [vmem:[#allocation2 + $0x13] sm:$0xff]  ;;  %v5627_v6 = vld [vmem:[#allocation2 + $0x9b] sm:$0xff] }
 0x6dc   : > { %v5626_v8 = vld [vmem:[#allocation2 + $0x93] sm:$0xff] }
 0x6de   : > { %10622 = vmatmul.mubr.f32.vlgmr.msra.gmra.mrb[82].mxu1 %v4943_v36  ;;  %v5654_v36 = vld [vmem:[#allocation8 + $0x238] sm:$0xff] }
 0x6df   : > { %10624 = vmatprep.mubr.f32.mxu1 %v15747_v10  ;;  %11506 = vmatpush3.bf16.msra.mxu1 %v11503_v12  ;;  %v11539_v12 = vpack.c.bf16 %v5650_v14, %v5649_v33  ;;  %v5624_v33 = vld [vmem:[#allocation2 + $0x83] sm:$0xff] }
 0x6e0   : > { %11508 = vmatprep.subr.bf16.mxu1 %v11507_v43 }
 0x6e2   : > { %10625 = vmatmul.mubr.f32.gmra.mrb[84].mxu1 %v15750_v61 }
 0x6e3   : > { %10627 = vmatprep.mubr.f32.mxu1 %v15753_v55  ;;  %11510 = vmatpush3.bf16.msra.mxu1 %v11507_v43  ;;  %v5653_v43 = vld [vmem:[#allocation8 + $0x230] sm:$0xff] }
 0x6e4   : > { %11512 = vmatprep.subr.bf16.mxu1 %v11511_v9  ;;  %v11547_v38 = vpack.c.bf16 %v5654_v36, %v5653_v43  ;;  %v5629_v43 = vld [vmem:[#allocation2 + $0xab] sm:$0xff]  ;;  %v5630_v36 = vld [vmem:[#allocation2 + $0xb3] sm:$0xff] }
 0x6e6   : > { %10628 = vmatmul.mubr.f32.gmra.mrb[86].mxu1 %v15756_v27 }
 0x6e7   : > { %10630 = vmatprep.mubr.f32.mxu1 %v15759_v54  ;;  %11514 = vmatpush3.bf16.msra.mxu1 %v11511_v9 }
 0x6e8   : > { %11516 = vmatprep.subr.bf16.mxu1 %v11515_v5 }
 0x6ea   : > { %10631 = vmatmul.mubr.f32.gmra.mrb[88].mxu1 %v15762_v2 }
 0x6eb   : > { %10633 = vmatprep.mubr.f32.mxu1 %v15765_v21  ;;  %11518 = vmatpush3.bf16.msra.mxu1 %v11515_v5  ;;  %v5660_v5 = vld [vmem:[#allocation8 + $0x268] sm:$0xff] }
 0x6ec   : > { %11520 = vmatprep.subr.bf16.mxu1 %v11519_v35 }
 0x6ee   : > { %10634 = vmatmul.mubr.f32.gmra.mrb[90].mxu1 %v15768_v48 }
 0x6ef   : > { %10636 = vmatprep.mubr.f32.mxu1 %v15771_v49  ;;  %11522 = vmatpush3.bf16.msra.mxu1 %v11519_v35  ;;  %v5981_v35 = vld [vmem:[#allocation8 + $0x280] sm:$0xff] }
 0x6f0   : > { %11524 = vmatprep.subr.bf16.mxu1 %v11523_v7 }
 0x6f2   : > { %10637 = vmatmul.mubr.f32.gmra.mrb[92].mxu1 %v15774_v20 }
 0x6f3   : > { %10639 = vmatprep.mubr.f32.mxu1 %v15777_v44  ;;  %11526 = vmatpush3.bf16.msra.mxu1 %v11523_v7  ;;  %v5983_v7 = vld [vmem:[#allocation8 + $0x290] sm:$0xff] }
 0x6f4   : > { %11528 = vmatprep.subr.bf16.mxu1 %v11527_v41 }
 0x6f6   : > { %10640 = vmatmul.mubr.f32.gmra.mrb[94].mxu1 %v15780_v50 }
 0x6f7   : > { %10642 = vmatprep.mubr.f32.mxu1 %v15783_v30  ;;  %11530 = vmatpush3.bf16.msra.mxu1 %v11527_v41  ;;  %v5985_v41 = vld [vmem:[#allocation8 + $0x2a0] sm:$0xff] }
 0x6f8   : > { %11532 = vmatprep.subr.bf16.mxu1 %v11531_v57 }
 0x6fa   : > { %10643 = vmatmul.mubr.f32.gmra.mrb[96].mxu1 %v15786_v1 }
 0x6fb   : > { %10645 = vmatprep.mubr.f32.mxu1 %v15789_v51  ;;  %11534 = vmatpush3.bf16.msra.mxu1 %v11531_v57  ;;  %v5987_v57 = vld [vmem:[#allocation8 + $0x2b0] sm:$0xff] }
 0x6fc   : > { %11536 = vmatprep.subr.bf16.mxu1 %v11535_v13 }
 0x6fe   : > { %10646 = vmatmul.mubr.f32.gmra.mrb[98].mxu1 %v15792_v23 }
 0x6ff   : > { %10648 = vmatprep.mubr.f32.mxu1 %v15795_v45 }
 0x702   : > { %10649 = vmatmul.mubr.f32.gmra.mrb[100].mxu1 %v15798_v29 }
 0x703   : > { %10651 = vmatprep.mubr.f32.mxu1 %v15801_v22 }
 0x706   : > { %10652 = vmatmul.mubr.f32.gmra.mrb[102].mxu1 %v15804_v31 }
 0x707   : > { %10654 = vmatprep.mubr.f32.mxu1 %v15807_v39 }
 0x70a   : > { %10655 = vmatmul.mubr.f32.gmra.mrb[104].mxu1 %v15810_v52 }
 0x70b   : > { %10657 = vmatprep.mubr.f32.mxu1 %v15813_v40 }
 0x70e   : > { %10658 = vmatmul.mubr.f32.gmra.mrb[106].mxu1 %v15816_v32 }
 0x70f   : > { %10660 = vmatprep.mubr.f32.mxu1 %v15819_v4 }
 0x712   : > { %10661 = vmatmul.mubr.f32.gmra.mrb[108].mxu1 %v15822_v46 }
 0x713   : > { %10663 = vmatprep.mubr.f32.mxu1 %v15825_v11 }
 0x716   : > { %10664 = vmatmul.mubr.f32.gmra.mrb[110].mxu1 %v15828_v16 }
 0x717   : > { %10666 = vmatprep.mubr.f32.mxu1 %v15831_v58 }
 0x71a   : > { %10667 = vmatmul.mubr.f32.gmra.mrb[112].mxu1 %v15834_v26 }
 0x71b   : > { %10669 = vmatprep.mubr.f32.mxu1 %v15837_v25 }
 0x71e   : > { %10670 = vmatmul.mubr.f32.gmra.mrb[114].mxu1 %v15840_v63 }
 0x71f   : > { %10672 = vmatprep.mubr.f32.mxu1 %v15843_v56 }
 0x722   : > { %10673 = vmatmul.mubr.f32.gmra.mrb[116].mxu1 %v15846_v42 }
 0x723   : > { %10707 = vmatprep.mubr.f32.mxu1 %v15747_v10  ;;  %v5656_v10 = vld [vmem:[#allocation8 + $0x248] sm:$0xff] }
 0x724   : > { %v11551_v9 = vpack.c.bf16 %v5656_v10, %v5655_v53  ;;  %v5632_v53 = vld [vmem:[#allocation2 + $0xc3] sm:$0xff]  ;;  %v5633_v10 = vld [vmem:[#allocation2 + $0xcb] sm:$0xff] }
 0x726   : > { %10708 = vmatmul.mubr.f32.vlgmr.msra.gmra.mrb[82].mxu1 %v15750_v61  ;;  %v5657_v61 = vld [vmem:[#allocation8 + $0x250] sm:$0xff] }
 0x727   : > { %10710 = vmatprep.mubr.f32.mxu1 %v15753_v55  ;;  %11538 = vmatpush3.bf16.msra.mxu1 %v11535_v13  ;;  %v11555_v18 = vpack.c.bf16 %v5658_v47, %v5657_v61  ;;  %v5659_v55 = vld [vmem:[#allocation8 + $0x260] sm:$0xff]  ;;  %v5636_v47 = vld [vmem:[#allocation2 + $0xe3] sm:$0xff] }
 0x728   : > { %11540 = vmatprep.subr.bf16.mxu1 %v11539_v12  ;;  %v5989_v13 = vld [vmem:[#allocation8 + $0x2c0] sm:$0xff] }
 0x729   : > { %v5635_v61 = vld [vmem:[#allocation2 + $0xdb] sm:$0xff] }
 0x72a   : > { %10711 = vmatmul.mubr.f32.gmra.mrb[84].mxu1 %v15756_v27  ;;  %v11559_v27 = vpack.c.bf16 %v5660_v5, %v5659_v55  ;;  %v5638_v55 = vld [vmem:[#allocation2 + $0xf3] sm:$0xff]  ;;  %v5639_v5 = vld [vmem:[#allocation2 + $0xfb] sm:$0xff] }
 0x72b   : > { %10713 = vmatprep.mubr.f32.mxu1 %v15759_v54  ;;  %11542 = vmatpush3.bf16.msra.mxu1 %v11539_v12  ;;  %v11563_v54 = vpack.c.bf16 %v5662_v19, %v5661_v28  ;;  %v5625_v12 = vld [vmem:[#allocation2 + $0x8b] sm:$0xff]  ;;  %v5642_v19 = vld [vmem:[#allocation2 + $0x113] sm:$0xff] }
 0x72c   : > { %11544 = vmatprep.subr.bf16.mxu1 %v11543_v60  ;;  %v5641_v28 = vld [vmem:[#allocation2 + $0x10b] sm:$0xff] }
 0x72e   : > { %10714 = vmatmul.mubr.f32.gmra.mrb[86].mxu1 %v15762_v2  ;;  %v5982_v2 = vld [vmem:[#allocation8 + $0x288] sm:$0xff] }
 0x72f   : > { %10716 = vmatprep.mubr.f32.mxu1 %v15765_v21  ;;  %11546 = vmatpush3.bf16.msra.mxu1 %v11543_v60  ;;  %v11567_v0 = vpack.c.bf16 %v5982_v2, %v5981_v35  ;;  %v5311_v21 = vld [vmem:[#allocation2 + $0x12a] sm:$0xff] }
 0x730   : > { %11548 = vmatprep.subr.bf16.mxu1 %v11547_v38  ;;  %v5628_v60 = vld [vmem:[#allocation2 + $0xa3] sm:$0xff]  ;;  %v5645_v2 = vld [vmem:[#allocation2 + $0x12b] sm:$0xff] }
 0x731   : > { %v5644_v35 = vld [vmem:[#allocation2 + $0x123] sm:$0xff] }
 0x732   : > { %10717 = vmatmul.mubr.f32.gmra.mrb[88].mxu1 %v15768_v48  ;;  %v5984_v48 = vld [vmem:[#allocation8 + $0x298] sm:$0xff] }
 0x733   : > { %10719 = vmatprep.mubr.f32.mxu1 %v15771_v49  ;;  %11550 = vmatpush3.bf16.msra.mxu1 %v11547_v38  ;;  %v11571_v17 = vpack.c.bf16 %v5984_v48, %v5983_v7  ;;  %v5611_v49 = vld [vmem:[#allocation2 + $0x1b] sm:$0xff] }
 0x734   : > { %11552 = vmatprep.subr.bf16.mxu1 %v11551_v9  ;;  %v5631_v38 = vld [vmem:[#allocation2 + $0xbb] sm:$0xff] }
 0x735   : > { %v5945_v48 = vld [vmem:[#allocation2 + $0x1c] sm:$0xff] }
 0x736   : > { %10720 = vmatmul.mubr.f32.gmra.mrb[90].mxu1 %v15774_v20  ;;  %v5986_v20 = vld [vmem:[#allocation8 + $0x2a8] sm:$0xff] }
 0x737   : > { %10722 = vmatprep.mubr.f32.mxu1 %v15777_v44  ;;  %11554 = vmatpush3.bf16.msra.mxu1 %v11551_v9  ;;  %v11575_v62 = vpack.c.bf16 %v5986_v20, %v5985_v41  ;;  %v5613_v44 = vld [vmem:[#allocation2 + $0x2b] sm:$0xff]  ;;  %v5634_v9 = vld [vmem:[#allocation2 + $0xd3] sm:$0xff] }
 0x738   : > { %11556 = vmatprep.subr.bf16.mxu1 %v11555_v18  ;;  %v15886_v20 = vld [vmem:[#allocation2 + $0x2c] sm:$0xff] }
 0x73a   : > { %10723 = vmatmul.mubr.f32.gmra.mrb[92].mxu1 %v15780_v50  ;;  %v5988_v50 = vld [vmem:[#allocation8 + $0x2b8] sm:$0xff] }
 0x73b   : > { %10725 = vmatprep.mubr.f32.mxu1 %v15783_v30  ;;  %11558 = vmatpush3.bf16.msra.mxu1 %v11555_v18  ;;  %v11579_v34 = vpack.c.bf16 %v5988_v50, %v5987_v57  ;;  %v5615_v30 = vld [vmem:[#allocation2 + $0x3b] sm:$0xff]  ;;  %v5637_v18 = vld [vmem:[#allocation2 + $0xeb] sm:$0xff] }
 0x73c   : > { %11560 = vmatprep.subr.bf16.mxu1 %v11559_v27  ;;  %v15892_v50 = vld [vmem:[#allocation2 + $0x3c] sm:$0xff] }
 0x73e   : > { %10726 = vmatmul.mubr.f32.gmra.mrb[94].mxu1 %v15786_v1  ;;  %v5990_v1 = vld [vmem:[#allocation8 + $0x2c8] sm:$0xff] }
 0x73f   : > { %10728 = vmatprep.mubr.f32.mxu1 %v15789_v51  ;;  %11562 = vmatpush3.bf16.msra.mxu1 %v11559_v27  ;;  %v5616_v51 = vld [vmem:[#allocation2 + $0x43] sm:$0xff] }
 0x740   : > { %11564 = vmatprep.subr.bf16.mxu1 %v11563_v54  ;;  %v5640_v27 = vld [vmem:[#allocation2 + $0x103] sm:$0xff] }
 0x742   : > { %10729 = vmatmul.mubr.f32.gmra.mrb[96].mxu1 %v15792_v23  ;;  %v11583_v23 = vpack.c.bf16 %v5990_v1, %v5989_v13  ;;  %v15898_v1 = vld [vmem:[#allocation2 + $0x4c] sm:$0xff] }
 0x743   : > { %10731 = vmatprep.mubr.f32.mxu1 %v15795_v45  ;;  %11566 = vmatpush3.bf16.msra.mxu1 %v11563_v54  ;;  %v5617_v45 = vld [vmem:[#allocation2 + $0x4b] sm:$0xff]  ;;  %v5643_v54 = vld [vmem:[#allocation2 + $0x11b] sm:$0xff] }
 0x744   : > { %11568 = vmatprep.subr.bf16.mxu1 %v11567_v0 }
 0x746   : > { %10732 = vmatmul.mubr.f32.gmra.mrb[98].mxu1 %v15798_v29  ;;  %v5991_v29 = vld [vmem:[#allocation8 + $0x2d0] sm:$0xff] }
 0x747   : > { %10734 = vmatprep.mubr.f32.mxu1 %v15801_v22  ;;  %v5992_v22 = vld [vmem:[#allocation8 + $0x2d8] sm:$0xff] }
 0x74a   : > { %10735 = vmatmul.mubr.f32.gmra.mrb[100].mxu1 %v15804_v31  ;;  %v5618_v31 = vld [vmem:[#allocation2 + $0x53] sm:$0xff] }
 0x74b   : > { %10737 = vmatprep.mubr.f32.mxu1 %v15807_v39  ;;  %v11587_v39 = vpack.c.bf16 %v5992_v22, %v5991_v29  ;;  %v15904_v22 = vld [vmem:[#allocation2 + $0x5c] sm:$0xff] }
 0x74e   : > { %10738 = vmatmul.mubr.f32.gmra.mrb[102].mxu1 %v15810_v52  ;;  %v5619_v52 = vld [vmem:[#allocation2 + $0x5b] sm:$0xff] }
 0x74f   : > { %10740 = vmatprep.mubr.f32.mxu1 %v15813_v40  ;;  %v5993_v40 = vld [vmem:[#allocation8 + $0x2e0] sm:$0xff] }
 0x752   : > { %10741 = vmatmul.mubr.f32.gmra.mrb[104].mxu1 %v15816_v32  ;;  %v5994_v32 = vld [vmem:[#allocation8 + $0x2e8] sm:$0xff] }
 0x753   : > { %10743 = vmatprep.mubr.f32.mxu1 %v15819_v4  ;;  %v5620_v4 = vld [vmem:[#allocation2 + $0x63] sm:$0xff] }
 0x756   : > { %10744 = vmatmul.mubr.f32.gmra.mrb[106].mxu1 %v15822_v46  ;;  %v11591_v46 = vpack.c.bf16 %v5994_v32, %v5993_v40  ;;  %v15910_v32 = vld [vmem:[#allocation2 + $0x6c] sm:$0xff] }
 0x757   : > { %10746 = vmatprep.mubr.f32.mxu1 %v15825_v11  ;;  %v5621_v11 = vld [vmem:[#allocation2 + $0x6b] sm:$0xff] }
 0x75a   : > { %10747 = vmatmul.mubr.f32.gmra.mrb[108].mxu1 %v15828_v16  ;;  %v5995_v16 = vld [vmem:[#allocation8 + $0x2f0] sm:$0xff] }
 0x75b   : > { %10749 = vmatprep.mubr.f32.mxu1 %v15831_v58  ;;  %v5996_v58 = vld [vmem:[#allocation8 + $0x2f8] sm:$0xff] }
 0x75e   : > { %10750 = vmatmul.mubr.f32.gmra.mrb[110].mxu1 %v15834_v26  ;;  %v5622_v26 = vld [vmem:[#allocation2 + $0x73] sm:$0xff] }
 0x75f   : > { %10752 = vmatprep.mubr.f32.mxu1 %v15837_v25  ;;  %v11595_v25 = vpack.c.bf16 %v5996_v58, %v5995_v16  ;;  %v15916_v58 = vld [vmem:[#allocation2 + $0x7c] sm:$0xff] }
 0x762   : > { %10753 = vmatmul.mubr.f32.gmra.mrb[112].mxu1 %v15840_v63  ;;  %v5623_v63 = vld [vmem:[#allocation2 + $0x7b] sm:$0xff] }
 0x763   : > { %10755 = vmatprep.mubr.f32.mxu1 %v15843_v56  ;;  %v6315_v56 = vld [vmem:[#allocation8 + $0x300] sm:$0xff] }
 0x766   : > { %10756 = vmatmul.mubr.f32.gmra.mrb[114].mxu1 %v15846_v42  ;;  %v6316_v42 = vld [vmem:[#allocation8 + $0x308] sm:$0xff] }
 0x767   : > { %10758 = vmatprep.mubr.f32.mxu1 %v5310_v37  ;;  %v11599_v14 = vpack.c.bf16 %v6316_v42, %v6315_v56  ;;  %v6318_v37 = vld [vmem:[#allocation8 + $0x318] sm:$0xff] }
 0x768   : > { %v15922_v42 = vld [vmem:[#allocation2 + $0x8c] sm:$0xff] }
 0x76a   : > { %10759 = vmatmul.mubr.f32.gmra.mrb[116].mxu1 %v5311_v21  ;;  %v5944_v21 = vld [vmem:[#allocation2 + $0x14] sm:$0xff] }
 0x76b   : > { %10793 = vmatprep.mubr.f32.mxu1 %v5610_v24  ;;  %v6319_v24 = vld [vmem:[#allocation8 + $0x320] sm:$0xff] }
 0x76e   : > { %10794 = vmatmul.mubr.f32.vlgmr.msra.gmra.mrb[82].mxu1 %v5611_v49  ;;  %v15883_v49 = vld [vmem:[#allocation2 + $0x24] sm:$0xff] }
 0x76f   : > { %10796 = vmatprep.mubr.f32.mxu1 %v5612_v15  ;;  %11570 = vmatpush3.bf16.msra.mxu1 %v11567_v0  ;;  %v6317_v0 = vld [vmem:[#allocation8 + $0x310] sm:$0xff] }
 0x770   : > { %11572 = vmatprep.subr.bf16.mxu1 %v11571_v17  ;;  %v11603_v7 = vpack.c.bf16 %v6318_v37, %v6317_v0  ;;  %v6321_v15 = vld [vmem:[#allocation8 + $0x330] sm:$0xff]  ;;  %v6653_v0 = vld [vmem:[#allocation8 + $0x3a0] sm:$0xff]  ;;  %v6654_v37 = vld [vmem:[#allocation8 + $0x3a8] sm:$0xff] }
 0x772   : > { %10797 = vmatmul.mubr.f32.gmra.mrb[84].mxu1 %v5613_v44  ;;  %v15889_v44 = vld [vmem:[#allocation2 + $0x34] sm:$0xff] }
 0x773   : > { %10799 = vmatprep.mubr.f32.mxu1 %v5614_v3  ;;  %11574 = vmatpush3.bf16.msra.mxu1 %v11571_v17  ;;  %v6320_v17 = vld [vmem:[#allocation8 + $0x328] sm:$0xff]  ;;  %v6323_v3 = vld [vmem:[#allocation8 + $0x340] sm:$0xff] }
 0x774   : > { %11576 = vmatprep.subr.bf16.mxu1 %v11575_v62  ;;  %v11607_v41 = vpack.c.bf16 %v6320_v17, %v6319_v24  ;;  %v6657_v17 = vld [vmem:[#allocation8 + $0x3c0] sm:$0xff] }
 0x776   : > { %10800 = vmatmul.mubr.f32.gmra.mrb[86].mxu1 %v5615_v30  ;;  %v15895_v30 = vld [vmem:[#allocation2 + $0x44] sm:$0xff] }
 0x777   : > { %10802 = vmatprep.mubr.f32.mxu1 %v5616_v51  ;;  %11578 = vmatpush3.bf16.msra.mxu1 %v11575_v62  ;;  %v6322_v62 = vld [vmem:[#allocation8 + $0x338] sm:$0xff]  ;;  %v6325_v51 = vld [vmem:[#allocation8 + $0x350] sm:$0xff] }
 0x778   : > { %11580 = vmatprep.subr.bf16.mxu1 %v11579_v34  ;;  %v11611_v57 = vpack.c.bf16 %v6322_v62, %v6321_v15  ;;  %v6660_v15 = vld [vmem:[#allocation8 + $0x3d8] sm:$0xff] }
 0x77a   : > { %10803 = vmatmul.mubr.f32.gmra.mrb[88].mxu1 %v5617_v45  ;;  %v15901_v45 = vld [vmem:[#allocation2 + $0x54] sm:$0xff] }
 0x77b   : > { %10805 = vmatprep.mubr.f32.mxu1 %v5618_v31  ;;  %11582 = vmatpush3.bf16.msra.mxu1 %v11579_v34  ;;  %v6324_v34 = vld [vmem:[#allocation8 + $0x348] sm:$0xff]  ;;  %v6327_v31 = vld [vmem:[#allocation8 + $0x360] sm:$0xff] }
 0x77c   : > { %11584 = vmatprep.subr.bf16.mxu1 %v11583_v23  ;;  %v11615_v13 = vpack.c.bf16 %v6324_v34, %v6323_v3  ;;  %v6663_v3 = vld [vmem:[#allocation8 + $0x3f0] sm:$0xff]  ;;  %v6664_v34 = vld [vmem:[#allocation8 + $0x3f8] sm:$0xff] }
 0x77e   : > { %10806 = vmatmul.mubr.f32.gmra.mrb[90].mxu1 %v5619_v52  ;;  %v15907_v52 = vld [vmem:[#allocation2 + $0x64] sm:$0xff] }
 0x77f   : > { %10808 = vmatprep.mubr.f32.mxu1 %v5620_v4  ;;  %11586 = vmatpush3.bf16.msra.mxu1 %v11583_v23  ;;  %v6326_v23 = vld [vmem:[#allocation8 + $0x358] sm:$0xff]  ;;  %v6329_v4 = vld [vmem:[#allocation8 + $0x370] sm:$0xff] }
 0x780   : > { %11588 = vmatprep.subr.bf16.mxu1 %v11587_v39  ;;  %v11619_v29 = vpack.c.bf16 %v6326_v23, %v6325_v51  ;;  %v6312_v23 = vld [vmem:[#allocation2 + $0x134] sm:$0xff] }
 0x782   : > { %10809 = vmatmul.mubr.f32.gmra.mrb[92].mxu1 %v5621_v11  ;;  %v15913_v11 = vld [vmem:[#allocation2 + $0x74] sm:$0xff] }
 0x783   : > { %10811 = vmatprep.mubr.f32.mxu1 %v5622_v26  ;;  %11590 = vmatpush3.bf16.msra.mxu1 %v11587_v39  ;;  %v6328_v39 = vld [vmem:[#allocation8 + $0x368] sm:$0xff]  ;;  %v6649_v26 = vld [vmem:[#allocation8 + $0x380] sm:$0xff] }
 0x784   : > { %11592 = vmatprep.subr.bf16.mxu1 %v11591_v46  ;;  %v11623_v40 = vpack.c.bf16 %v6328_v39, %v6327_v31  ;;  %v6612_v31 = vld [vmem:[#allocation2 + $0x25] sm:$0xff] }
 0x786   : > { %10812 = vmatmul.mubr.f32.gmra.mrb[94].mxu1 %v5623_v63  ;;  %v15919_v63 = vld [vmem:[#allocation2 + $0x84] sm:$0xff] }
 0x787   : > { %10814 = vmatprep.mubr.f32.mxu1 %v5624_v33  ;;  %11594 = vmatpush3.bf16.msra.mxu1 %v11591_v46  ;;  %v6330_v46 = vld [vmem:[#allocation8 + $0x378] sm:$0xff] }
 0x788   : > { %11596 = vmatprep.subr.bf16.mxu1 %v11595_v25  ;;  %v11627_v16 = vpack.c.bf16 %v6330_v46, %v6329_v4  ;;  %v15925_v33 = vld [vmem:[#allocation2 + $0x94] sm:$0xff] }
 0x789   : > { %v6614_v4 = vld [vmem:[#allocation2 + $0x35] sm:$0xff] }
 0x78a   : > { %10815 = vmatmul.mubr.f32.gmra.mrb[96].mxu1 %v5625_v12  ;;  %v15931_v12 = vld [vmem:[#allocation2 + $0xa4] sm:$0xff] }
 0x78b   : > { %10817 = vmatprep.mubr.f32.mxu1 %v5626_v8  ;;  %11598 = vmatpush3.bf16.msra.mxu1 %v11595_v25  ;;  %v6650_v25 = vld [vmem:[#allocation8 + $0x388] sm:$0xff]  ;;  %v15934_v8 = vld [vmem:[#allocation2 + $0xac] sm:$0xff] }
 0x78c   : > { %11600 = vmatprep.subr.bf16.mxu1 %v11599_v14  ;;  %v11631_v56 = vpack.c.bf16 %v6650_v25, %v6649_v26  ;;  %v6616_v26 = vld [vmem:[#allocation2 + $0x45] sm:$0xff] }
 0x78e   : > { %10818 = vmatmul.mubr.f32.gmra.mrb[98].mxu1 %v5627_v6  ;;  %v15937_v6 = vld [vmem:[#allocation2 + $0xb4] sm:$0xff] }
 0x78f   : > { %10820 = vmatprep.mubr.f32.mxu1 %v5628_v60  ;;  %v15940_v60 = vld [vmem:[#allocation2 + $0xbc] sm:$0xff] }
 0x792   : > { %10821 = vmatmul.mubr.f32.gmra.mrb[100].mxu1 %v5629_v43  ;;  %v15943_v43 = vld [vmem:[#allocation2 + $0xc4] sm:$0xff] }
 0x793   : > { %10823 = vmatprep.mubr.f32.mxu1 %v5630_v36  ;;  %v15946_v36 = vld [vmem:[#allocation2 + $0xcc] sm:$0xff] }
 0x796   : > { %10824 = vmatmul.mubr.f32.gmra.mrb[102].mxu1 %v5631_v38  ;;  %v15949_v38 = vld [vmem:[#allocation2 + $0xd4] sm:$0xff] }
 0x797   : > { %10826 = vmatprep.mubr.f32.mxu1 %v5632_v53  ;;  %v15952_v53 = vld [vmem:[#allocation2 + $0xdc] sm:$0xff] }
 0x79a   : > { %10827 = vmatmul.mubr.f32.gmra.mrb[104].mxu1 %v5633_v10  ;;  %v15955_v10 = vld [vmem:[#allocation2 + $0xe4] sm:$0xff] }
 0x79b   : > { %10829 = vmatprep.mubr.f32.mxu1 %v5634_v9  ;;  %v15958_v9 = vld [vmem:[#allocation2 + $0xec] sm:$0xff] }
 0x79e   : > { %10830 = vmatmul.mubr.f32.gmra.mrb[106].mxu1 %v5635_v61  ;;  %v15961_v61 = vld [vmem:[#allocation2 + $0xf4] sm:$0xff] }
 0x79f   : > { %10832 = vmatprep.mubr.f32.mxu1 %v5636_v47  ;;  %v15964_v47 = vld [vmem:[#allocation2 + $0xfc] sm:$0xff] }
 0x7a2   : > { %10833 = vmatmul.mubr.f32.gmra.mrb[108].mxu1 %v5637_v18  ;;  %v15967_v18 = vld [vmem:[#allocation2 + $0x104] sm:$0xff] }
 0x7a3   : > { %10835 = vmatprep.mubr.f32.mxu1 %v5638_v55  ;;  %v15970_v55 = vld [vmem:[#allocation2 + $0x10c] sm:$0xff] }
 0x7a6   : > { %10836 = vmatmul.mubr.f32.gmra.mrb[110].mxu1 %v5639_v5  ;;  %v15973_v5 = vld [vmem:[#allocation2 + $0x114] sm:$0xff] }
 0x7a7   : > { %10838 = vmatprep.mubr.f32.mxu1 %v5640_v27  ;;  %v15976_v27 = vld [vmem:[#allocation2 + $0x11c] sm:$0xff] }
 0x7aa   : > { %10839 = vmatmul.mubr.f32.gmra.mrb[112].mxu1 %v5641_v28  ;;  %v15979_v28 = vld [vmem:[#allocation2 + $0x124] sm:$0xff] }
 0x7ab   : > { %10841 = vmatprep.mubr.f32.mxu1 %v5642_v19  ;;  %v15982_v19 = vld [vmem:[#allocation2 + $0x12c] sm:$0xff] }
 0x7ae   : > { %10842 = vmatmul.mubr.f32.gmra.mrb[114].mxu1 %v5643_v54  ;;  %v6651_v54 = vld [vmem:[#allocation8 + $0x390] sm:$0xff] }
 0x7af   : > { %10844 = vmatprep.mubr.f32.mxu1 %v5644_v35  ;;  %v6652_v35 = vld [vmem:[#allocation8 + $0x398] sm:$0xff] }
 0x7b2   : > { %10845 = vmatmul.mubr.f32.gmra.mrb[116].mxu1 %v5645_v2  ;;  %v11635_v2 = vpack.c.bf16 %v6652_v35, %v6651_v54  ;;  %v6628_v54 = vld [vmem:[#allocation2 + $0xa5] sm:$0xff]  ;;  %v6629_v35 = vld [vmem:[#allocation2 + $0xad] sm:$0xff] }
 0x7b3   : > { %10879 = vmatprep.mubr.f32.mxu1 %v5944_v21  ;;  %v11639_v21 = vpack.c.bf16 %v6654_v37, %v6653_v0  ;;  %v6631_v0 = vld [vmem:[#allocation2 + $0xbd] sm:$0xff]  ;;  %v6632_v37 = vld [vmem:[#allocation2 + $0xc5] sm:$0xff] }
 0x7b6   : > { %10880 = vmatmul.mubr.f32.vlgmr.msra.gmra.mrb[82].mxu1 %v5945_v48  ;;  %v6656_v48 = vld [vmem:[#allocation8 + $0x3b8] sm:$0xff] }
 0x7b7   : > { %10882 = vmatprep.mubr.f32.mxu1 %v15883_v49  ;;  %11602 = vmatpush3.bf16.msra.mxu1 %v11599_v14  ;;  %v15928_v14 = vld [vmem:[#allocation2 + $0x9c] sm:$0xff] }
 0x7b8   : > { %11604 = vmatprep.subr.bf16.mxu1 %v11603_v7 }
 0x7ba   : > { %10883 = vmatmul.mubr.f32.gmra.mrb[84].mxu1 %v15886_v20 }
 0x7bb   : > { %10885 = vmatprep.mubr.f32.mxu1 %v15889_v44  ;;  %11606 = vmatpush3.bf16.msra.mxu1 %v11603_v7  ;;  %v6655_v7 = vld [vmem:[#allocation8 + $0x3b0] sm:$0xff] }
 0x7bc   : > { %11608 = vmatprep.subr.bf16.mxu1 %v11607_v41  ;;  %v11643_v24 = vpack.c.bf16 %v6656_v48, %v6655_v7  ;;  %v6634_v7 = vld [vmem:[#allocation2 + $0xd5] sm:$0xff]  ;;  %v6635_v48 = vld [vmem:[#allocation2 + $0xdd] sm:$0xff] }
 0x7be   : > { %10886 = vmatmul.mubr.f32.gmra.mrb[86].mxu1 %v15892_v50 }
 0x7bf   : > { %10888 = vmatprep.mubr.f32.mxu1 %v15895_v30  ;;  %11610 = vmatpush3.bf16.msra.mxu1 %v11607_v41 }
 0x7c0   : > { %11612 = vmatprep.subr.bf16.mxu1 %v11611_v57 }
 0x7c2   : > { %10889 = vmatmul.mubr.f32.gmra.mrb[88].mxu1 %v15898_v1 }
 0x7c3   : > { %10891 = vmatprep.mubr.f32.mxu1 %v15901_v45  ;;  %11614 = vmatpush3.bf16.msra.mxu1 %v11611_v57  ;;  %v6662_v57 = vld [vmem:[#allocation8 + $0x3e8] sm:$0xff] }
 0x7c4   : > { %11616 = vmatprep.subr.bf16.mxu1 %v11615_v13 }
 0x7c6   : > { %10892 = vmatmul.mubr.f32.gmra.mrb[90].mxu1 %v15904_v22 }
 0x7c7   : > { %10894 = vmatprep.mubr.f32.mxu1 %v15907_v52  ;;  %11618 = vmatpush3.bf16.msra.mxu1 %v11615_v13  ;;  %v6983_v13 = vld [vmem:[#allocation8 + $0x400] sm:$0xff] }
 0x7c8   : > { %11620 = vmatprep.subr.bf16.mxu1 %v11619_v29 }
 0x7ca   : > { %10895 = vmatmul.mubr.f32.gmra.mrb[92].mxu1 %v15910_v32 }
 0x7cb   : > { %10897 = vmatprep.mubr.f32.mxu1 %v15913_v11  ;;  %11622 = vmatpush3.bf16.msra.mxu1 %v11619_v29  ;;  %v6985_v29 = vld [vmem:[#allocation8 + $0x410] sm:$0xff] }
 0x7cc   : > { %11624 = vmatprep.subr.bf16.mxu1 %v11623_v40 }
 0x7ce   : > { %10898 = vmatmul.mubr.f32.gmra.mrb[94].mxu1 %v15916_v58 }
 0x7cf   : > { %10900 = vmatprep.mubr.f32.mxu1 %v15919_v63  ;;  %11626 = vmatpush3.bf16.msra.mxu1 %v11623_v40  ;;  %v6987_v40 = vld [vmem:[#allocation8 + $0x420] sm:$0xff] }
 0x7d0   : > { %11628 = vmatprep.subr.bf16.mxu1 %v11627_v16 }
 0x7d2   : > { %10901 = vmatmul.mubr.f32.gmra.mrb[96].mxu1 %v15922_v42 }
 0x7d3   : > { %10903 = vmatprep.mubr.f32.mxu1 %v15925_v33  ;;  %11630 = vmatpush3.bf16.msra.mxu1 %v11627_v16  ;;  %v6989_v16 = vld [vmem:[#allocation8 + $0x430] sm:$0xff] }
 0x7d4   : > { %11632 = vmatprep.subr.bf16.mxu1 %v11631_v56 }
 0x7d6   : > { %10904 = vmatmul.mubr.f32.gmra.mrb[98].mxu1 %v15928_v14 }
 0x7d7   : > { %10906 = vmatprep.mubr.f32.mxu1 %v15931_v12 }
 0x7da   : > { %10907 = vmatmul.mubr.f32.gmra.mrb[100].mxu1 %v15934_v8 }
 0x7db   : > { %10909 = vmatprep.mubr.f32.mxu1 %v15937_v6 }
 0x7de   : > { %10910 = vmatmul.mubr.f32.gmra.mrb[102].mxu1 %v15940_v60 }
 0x7df   : > { %10912 = vmatprep.mubr.f32.mxu1 %v15943_v43 }
 0x7e2   : > { %10913 = vmatmul.mubr.f32.gmra.mrb[104].mxu1 %v15946_v36 }
 0x7e3   : > { %10915 = vmatprep.mubr.f32.mxu1 %v15949_v38 }
 0x7e6   : > { %10916 = vmatmul.mubr.f32.gmra.mrb[106].mxu1 %v15952_v53 }
 0x7e7   : > { %10918 = vmatprep.mubr.f32.mxu1 %v15955_v10 }
 0x7ea   : > { %10919 = vmatmul.mubr.f32.gmra.mrb[108].mxu1 %v15958_v9 }
 0x7eb   : > { %10921 = vmatprep.mubr.f32.mxu1 %v15961_v61 }
 0x7ee   : > { %10922 = vmatmul.mubr.f32.gmra.mrb[110].mxu1 %v15964_v47 }
 0x7ef   : > { %10924 = vmatprep.mubr.f32.mxu1 %v15967_v18 }
 0x7f2   : > { %10925 = vmatmul.mubr.f32.gmra.mrb[112].mxu1 %v15970_v55 }
 0x7f3   : > { %10927 = vmatprep.mubr.f32.mxu1 %v15973_v5 }
 0x7f6   : > { %10928 = vmatmul.mubr.f32.gmra.mrb[114].mxu1 %v15976_v27 }
 0x7f7   : > { %10930 = vmatprep.mubr.f32.mxu1 %v15979_v28 }
 0x7fa   : > { %10931 = vmatmul.mubr.f32.gmra.mrb[116].mxu1 %v15982_v19 }
 0x7fb   : > { %10965 = vmatprep.mubr.f32.mxu1 %v15883_v49  ;;  %v6658_v49 = vld [vmem:[#allocation8 + $0x3c8] sm:$0xff] }
 0x7fc   : > { %v11647_v41 = vpack.c.bf16 %v6658_v49, %v6657_v17  ;;  %v6637_v17 = vld [vmem:[#allocation2 + $0xed] sm:$0xff]  ;;  %v6638_v49 = vld [vmem:[#allocation2 + $0xf5] sm:$0xff] }
 0x7fe   : > { %10966 = vmatmul.mubr.f32.vlgmr.msra.gmra.mrb[82].mxu1 %v15886_v20  ;;  %v6659_v20 = vld [vmem:[#allocation8 + $0x3d0] sm:$0xff] }
 0x7ff   : > { %10968 = vmatprep.mubr.f32.mxu1 %v15889_v44  ;;  %11634 = vmatpush3.bf16.msra.mxu1 %v11631_v56  ;;  %v11651_v62 = vpack.c.bf16 %v6660_v15, %v6659_v20  ;;  %v6661_v44 = vld [vmem:[#allocation8 + $0x3e0] sm:$0xff]  ;;  %v6640_v20 = vld [vmem:[#allocation2 + $0x105] sm:$0xff]  ;;  %v6641_v15 = vld [vmem:[#allocation2 + $0x10d] sm:$0xff] }
 0x800   : > { %11636 = vmatprep.subr.bf16.mxu1 %v11635_v2  ;;  %v6991_v56 = vld [vmem:[#allocation8 + $0x440] sm:$0xff] }
 0x802   : > { %10969 = vmatmul.mubr.f32.gmra.mrb[84].mxu1 %v15892_v50  ;;  %v11655_v50 = vpack.c.bf16 %v6662_v57, %v6661_v44  ;;  %v6643_v44 = vld [vmem:[#allocation2 + $0x11d] sm:$0xff]  ;;  %v6644_v57 = vld [vmem:[#allocation2 + $0x125] sm:$0xff] }
 0x803   : > { %10971 = vmatprep.mubr.f32.mxu1 %v15895_v30  ;;  %11638 = vmatpush3.bf16.msra.mxu1 %v11635_v2  ;;  %v11659_v30 = vpack.c.bf16 %v6664_v34, %v6663_v3  ;;  %v6630_v2 = vld [vmem:[#allocation2 + $0xb5] sm:$0xff]  ;;  %v6647_v34 = vld [vmem:[#allocation2 + $0x13d] sm:$0xff] }
 0x804   : > { %11640 = vmatprep.subr.bf16.mxu1 %v11639_v21  ;;  %v6646_v3 = vld [vmem:[#allocation2 + $0x135] sm:$0xff] }
 0x806   : > { %10972 = vmatmul.mubr.f32.gmra.mrb[86].mxu1 %v15898_v1  ;;  %v6984_v1 = vld [vmem:[#allocation8 + $0x408] sm:$0xff] }
 0x807   : > { %10974 = vmatprep.mubr.f32.mxu1 %v15901_v45  ;;  %11642 = vmatpush3.bf16.msra.mxu1 %v11639_v21  ;;  %v11663_v51 = vpack.c.bf16 %v6984_v1, %v6983_v13  ;;  %v6313_v45 = vld [vmem:[#allocation2 + $0x13c] sm:$0xff]  ;;  %v6633_v21 = vld [vmem:[#allocation2 + $0xcd] sm:$0xff] }
 0x808   : > { %11644 = vmatprep.subr.bf16.mxu1 %v11643_v24  ;;  %v6947_v13 = vld [vmem:[#allocation2 + $0x2e] sm:$0xff]  ;;  %v6948_v1 = vld [vmem:[#allocation2 + $0x36] sm:$0xff] }
 0x80a   : > { %10975 = vmatmul.mubr.f32.gmra.mrb[88].mxu1 %v15904_v22  ;;  %v6986_v22 = vld [vmem:[#allocation8 + $0x418] sm:$0xff] }
 0x80b   : > { %10977 = vmatprep.mubr.f32.mxu1 %v15907_v52  ;;  %11646 = vmatpush3.bf16.msra.mxu1 %v11643_v24  ;;  %v11667_v39 = vpack.c.bf16 %v6986_v22, %v6985_v29  ;;  %v6613_v52 = vld [vmem:[#allocation2 + $0x2d] sm:$0xff]  ;;  %v6636_v24 = vld [vmem:[#allocation2 + $0xe5] sm:$0xff]  ;;  %v6952_v29 = vld [vmem:[#allocation2 + $0x56] sm:$0xff] }
 0x80c   : > { %11648 = vmatprep.subr.bf16.mxu1 %v11647_v41  ;;  %v6953_v22 = vld [vmem:[#allocation2 + $0x5e] sm:$0xff] }
 0x80e   : > { %10978 = vmatmul.mubr.f32.gmra.mrb[90].mxu1 %v15910_v32  ;;  %v6988_v32 = vld [vmem:[#allocation8 + $0x428] sm:$0xff] }
 0x80f   : > { %10980 = vmatprep.mubr.f32.mxu1 %v15913_v11  ;;  %11650 = vmatpush3.bf16.msra.mxu1 %v11647_v41  ;;  %v11671_v46 = vpack.c.bf16 %v6988_v32, %v6987_v40  ;;  %v6615_v11 = vld [vmem:[#allocation2 + $0x3d] sm:$0xff]  ;;  %v6958_v32 = vld [vmem:[#allocation2 + $0x86] sm:$0xff] }
 0x810   : > { %11652 = vmatprep.subr.bf16.mxu1 %v11651_v62  ;;  %v6639_v41 = vld [vmem:[#allocation2 + $0xfd] sm:$0xff] }
 0x811   : > { %v6957_v40 = vld [vmem:[#allocation2 + $0x7e] sm:$0xff] }
 0x812   : > { %10981 = vmatmul.mubr.f32.gmra.mrb[92].mxu1 %v15916_v58  ;;  %v6990_v58 = vld [vmem:[#allocation8 + $0x438] sm:$0xff] }
 0x813   : > { %10983 = vmatprep.mubr.f32.mxu1 %v15919_v63  ;;  %11654 = vmatpush3.bf16.msra.mxu1 %v11651_v62  ;;  %v11675_v25 = vpack.c.bf16 %v6990_v58, %v6989_v16  ;;  %v6617_v63 = vld [vmem:[#allocation2 + $0x4d] sm:$0xff]  ;;  %v6642_v62 = vld [vmem:[#allocation2 + $0x115] sm:$0xff] }
 0x814   : > { %11656 = vmatprep.subr.bf16.mxu1 %v11655_v50  ;;  %v6962_v16 = vld [vmem:[#allocation2 + $0xa6] sm:$0xff]  ;;  %v6963_v58 = vld [vmem:[#allocation2 + $0xae] sm:$0xff] }
 0x816   : > { %10984 = vmatmul.mubr.f32.gmra.mrb[94].mxu1 %v15922_v42  ;;  %v6992_v42 = vld [vmem:[#allocation8 + $0x448] sm:$0xff] }
 0x817   : > { %10986 = vmatprep.mubr.f32.mxu1 %v15925_v33  ;;  %11658 = vmatpush3.bf16.msra.mxu1 %v11655_v50  ;;  %v6618_v33 = vld [vmem:[#allocation2 + $0x55] sm:$0xff]  ;;  %v6645_v50 = vld [vmem:[#allocation2 + $0x12d] sm:$0xff] }
 0x818   : > { %11660 = vmatprep.subr.bf16.mxu1 %v11659_v30 }
 0x81a   : > { %10987 = vmatmul.mubr.f32.gmra.mrb[96].mxu1 %v15928_v14  ;;  %v11679_v14 = vpack.c.bf16 %v6992_v42, %v6991_v56  ;;  %v6967_v56 = vld [vmem:[#allocation2 + $0xce] sm:$0xff]  ;;  %v6968_v42 = vld [vmem:[#allocation2 + $0xd6] sm:$0xff] }
 0x81b   : > { %10989 = vmatprep.mubr.f32.mxu1 %v15931_v12  ;;  %11662 = vmatpush3.bf16.msra.mxu1 %v11659_v30  ;;  %v6619_v12 = vld [vmem:[#allocation2 + $0x5d] sm:$0xff]  ;;  %v6946_v30 = vld [vmem:[#allocation2 + $0x26] sm:$0xff] }
 0x81c   : > { %11664 = vmatprep.subr.bf16.mxu1 %v11663_v51 }
 0x81e   : > { %10990 = vmatmul.mubr.f32.gmra.mrb[98].mxu1 %v15934_v8  ;;  %v6993_v8 = vld [vmem:[#allocation8 + $0x450] sm:$0xff] }
 0x81f   : > { %10992 = vmatprep.mubr.f32.mxu1 %v15937_v6  ;;  %v6994_v6 = vld [vmem:[#allocation8 + $0x458] sm:$0xff] }
 0x822   : > { %10993 = vmatmul.mubr.f32.gmra.mrb[100].mxu1 %v15940_v60  ;;  %v6620_v60 = vld [vmem:[#allocation2 + $0x65] sm:$0xff] }
 0x823   : > { %10995 = vmatprep.mubr.f32.mxu1 %v15943_v43  ;;  %v11683_v43 = vpack.c.bf16 %v6994_v6, %v6993_v8  ;;  %v6972_v8 = vld [vmem:[#allocation2 + $0xf6] sm:$0xff]  ;;  %v6973_v6 = vld [vmem:[#allocation2 + $0xfe] sm:$0xff] }
 0x826   : > { %10996 = vmatmul.mubr.f32.gmra.mrb[102].mxu1 %v15946_v36  ;;  %v6621_v36 = vld [vmem:[#allocation2 + $0x6d] sm:$0xff] }
 0x827   : > { %10998 = vmatprep.mubr.f32.mxu1 %v15949_v38  ;;  %v6995_v38 = vld [vmem:[#allocation8 + $0x460] sm:$0xff] }
 0x82a   : > { %10999 = vmatmul.mubr.f32.gmra.mrb[104].mxu1 %v15952_v53  ;;  %v6996_v53 = vld [vmem:[#allocation8 + $0x468] sm:$0xff] }
 0x82b   : > { %11001 = vmatprep.mubr.f32.mxu1 %v15955_v10  ;;  %v6622_v10 = vld [vmem:[#allocation2 + $0x75] sm:$0xff] }
 0x82e   : > { %11002 = vmatmul.mubr.f32.gmra.mrb[106].mxu1 %v15958_v9  ;;  %v11687_v9 = vpack.c.bf16 %v6996_v53, %v6995_v38  ;;  %v6977_v38 = vld [vmem:[#allocation2 + $0x11e] sm:$0xff]  ;;  %v6978_v53 = vld [vmem:[#allocation2 + $0x126] sm:$0xff] }
 0x82f   : > { %11004 = vmatprep.mubr.f32.mxu1 %v15961_v61  ;;  %v6623_v61 = vld [vmem:[#allocation2 + $0x7d] sm:$0xff] }
 0x832   : > { %11005 = vmatmul.mubr.f32.gmra.mrb[108].mxu1 %v15964_v47  ;;  %v6997_v47 = vld [vmem:[#allocation8 + $0x470] sm:$0xff] }
 0x833   : > { %11007 = vmatprep.mubr.f32.mxu1 %v15967_v18  ;;  %v6998_v18 = vld [vmem:[#allocation8 + $0x478] sm:$0xff] }
 0x836   : > { %11008 = vmatmul.mubr.f32.gmra.mrb[110].mxu1 %v15970_v55  ;;  %v6624_v55 = vld [vmem:[#allocation2 + $0x85] sm:$0xff] }
 0x837   : > { %11010 = vmatprep.mubr.f32.mxu1 %v15973_v5  ;;  %v11691_v5 = vpack.c.bf16 %v6998_v18, %v6997_v47  ;;  %v16019_v47 = vpop.permute.xlu1 %7318  ;;  %v16021_v18 = vpop.permute.xlu0 %7323 }
 0x83a   : > { %11011 = vmatmul.mubr.f32.gmra.mrb[112].mxu1 %v15976_v27  ;;  %v6625_v27 = vld [vmem:[#allocation2 + $0x8d] sm:$0xff] }
 0x83b   : > { %11013 = vmatprep.mubr.f32.mxu1 %v15979_v28  ;;  %v6626_v28 = vld [vmem:[#allocation2 + $0x95] sm:$0xff] }
 0x83e   : > { %11014 = vmatmul.mubr.f32.gmra.mrb[114].mxu1 %v15982_v19  ;;  %v6627_v19 = vld [vmem:[#allocation2 + $0x9d] sm:$0xff] }
 0x83f   : > { %11016 = vmatprep.mubr.f32.mxu1 %v6312_v23  ;;  %v6950_v23 = vld [vmem:[#allocation2 + $0x46] sm:$0xff] }
 0x842   : > { %11017 = vmatmul.mubr.f32.gmra.mrb[116].mxu1 %v6313_v45  ;;  %v6951_v45 = vld [vmem:[#allocation2 + $0x4e] sm:$0xff] }
 0x843   : > { %11051 = vmatprep.mubr.f32.mxu1 %v6612_v31  ;;  %v6954_v31 = vld [vmem:[#allocation2 + $0x66] sm:$0xff] }
 0x846   : > { %11052 = vmatmul.mubr.f32.vlgmr.msra.gmra.mrb[82].mxu1 %v6613_v52  ;;  %v6956_v52 = vld [vmem:[#allocation2 + $0x76] sm:$0xff] }
 0x847   : > { %11054 = vmatprep.mubr.f32.mxu1 %v6614_v4  ;;  %11666 = vmatpush3.bf16.msra.mxu1 %v11663_v51  ;;  %v6949_v51 = vld [vmem:[#allocation2 + $0x3e] sm:$0xff]  ;;  %v6959_v4 = vld [vmem:[#allocation2 + $0x8e] sm:$0xff] }
 0x848   : > { %11668 = vmatprep.subr.bf16.mxu1 %v11667_v39 }
 0x84a   : > { %11055 = vmatmul.mubr.f32.gmra.mrb[84].mxu1 %v6615_v11  ;;  %v6961_v11 = vld [vmem:[#allocation2 + $0x9e] sm:$0xff] }
 0x84b   : > { %11057 = vmatprep.mubr.f32.mxu1 %v6616_v26  ;;  %11670 = vmatpush3.bf16.msra.mxu1 %v11667_v39  ;;  %v6955_v39 = vld [vmem:[#allocation2 + $0x6e] sm:$0xff]  ;;  %v6964_v26 = vld [vmem:[#allocation2 + $0xb6] sm:$0xff] }
 0x84c   : > { %11672 = vmatprep.subr.bf16.mxu1 %v11671_v46 }
 0x84e   : > { %11058 = vmatmul.mubr.f32.gmra.mrb[86].mxu1 %v6617_v63  ;;  %v6966_v63 = vld [vmem:[#allocation2 + $0xc6] sm:$0xff] }
 0x84f   : > { %11060 = vmatprep.mubr.f32.mxu1 %v6618_v33  ;;  %11674 = vmatpush3.bf16.msra.mxu1 %v11671_v46  ;;  %v6960_v46 = vld [vmem:[#allocation2 + $0x96] sm:$0xff]  ;;  %v6969_v33 = vld [vmem:[#allocation2 + $0xde] sm:$0xff] }
 0x850   : > { %11676 = vmatprep.subr.bf16.mxu1 %v11675_v25 }
 0x852   : > { %11061 = vmatmul.mubr.f32.gmra.mrb[88].mxu1 %v6619_v12  ;;  %v6971_v12 = vld [vmem:[#allocation2 + $0xee] sm:$0xff] }
 0x853   : > { %11063 = vmatprep.mubr.f32.mxu1 %v6620_v60  ;;  %11678 = vmatpush3.bf16.msra.mxu1 %v11675_v25  ;;  %v6965_v25 = vld [vmem:[#allocation2 + $0xbe] sm:$0xff]  ;;  %v6974_v60 = vld [vmem:[#allocation2 + $0x106] sm:$0xff] }
 0x854   : > { %11680 = vmatprep.subr.bf16.mxu1 %v11679_v14 }
 0x856   : > { %11064 = vmatmul.mubr.f32.gmra.mrb[90].mxu1 %v6621_v36  ;;  %v6976_v36 = vld [vmem:[#allocation2 + $0x116] sm:$0xff] }
 0x857   : > { %11066 = vmatprep.mubr.f32.mxu1 %v6622_v10  ;;  %11682 = vmatpush3.bf16.msra.mxu1 %v11679_v14  ;;  %v6970_v14 = vld [vmem:[#allocation2 + $0xe6] sm:$0xff]  ;;  %v6979_v10 = vld [vmem:[#allocation2 + $0x12e] sm:$0xff] }
 0x858   : > { %11684 = vmatprep.subr.bf16.mxu1 %v11683_v43 }
 0x85a   : > { %11067 = vmatmul.mubr.f32.gmra.mrb[92].mxu1 %v6623_v61  ;;  %v6981_v61 = vld [vmem:[#allocation2 + $0x13e] sm:$0xff] }
 0x85b   : > { %11069 = vmatprep.mubr.f32.mxu1 %v6624_v55  ;;  %11686 = vmatpush3.bf16.msra.mxu1 %v11683_v43  ;;  %v6975_v43 = vld [vmem:[#allocation2 + $0x10e] sm:$0xff]  ;;  %v16023_v55 = vpop.permute.xlu1 %7328 }
 0x85c   : > { %11688 = vmatprep.subr.bf16.mxu1 %v11687_v9 }
 0x85e   : > { %11070 = vmatmul.mubr.f32.gmra.mrb[94].mxu1 %v6625_v27 }
 0x85f   : > { %11072 = vmatprep.mubr.f32.mxu1 %v6626_v28  ;;  %11690 = vmatpush3.bf16.msra.mxu1 %v11687_v9  ;;  %v6980_v9 = vld [vmem:[#allocation2 + $0x136] sm:$0xff]  ;;  %v16027_v27 = vpop.permute.xlu1 %7338 }
 0x860   : > { %11692 = vmatprep.subr.bf16.mxu1 %v11691_v5 }
 0x862   : > { %11073 = vmatmul.mubr.f32.gmra.mrb[96].mxu1 %v6627_v19 }
 0x863   : > { %11075 = vmatprep.mubr.f32.mxu1 %v6628_v54  ;;  %11694 = vmatpush3.bf16.msra.mxu1 %v11691_v5  ;;  %v16025_v5 = vpop.permute.xlu0 %7333  ;;  %v16031_v19 = vpop.permute.xlu1 %7348 }
 0x866   : > { %11076 = vmatmul.mubr.f32.gmra.mrb[98].mxu1 %v6629_v35 }
 0x867   : > { %11078 = vmatprep.mubr.f32.mxu1 %v6630_v2  ;;  %v16029_v28 = vpop.permute.xlu0 %7343  ;;  %v16035_v35 = vpop.permute.xlu1 %7358 }
 0x868   : > { %16941 = vst [vmem:[#allocation56_spill] sm:$0xff] %v16035_v35 }
 0x86a   : > { %11079 = vmatmul.mubr.f32.gmra.mrb[100].mxu1 %v6631_v0 }
 0x86b   : > { %11081 = vmatprep.mubr.f32.mxu1 %v6632_v37  ;;  %v16033_v54 = vpop.permute.xlu0 %7353  ;;  %v16039_v0 = vpop.permute.xlu1 %7368 }
 0x86c   : > { %16940 = vst [vmem:[#allocation44_spill] sm:$0xff] %v16033_v54  ;;  %16943 = vst [vmem:[#allocation57_spill] sm:$0xff] %v16039_v0 }
 0x86e   : > { %11082 = vmatmul.mubr.f32.gmra.mrb[102].mxu1 %v6633_v21 }
 0x86f   : > { %11084 = vmatprep.mubr.f32.mxu1 %v6634_v7  ;;  %v16037_v2 = vpop.permute.xlu0 %7363 }
 0x870   : > { %16942 = vst [vmem:[#allocation14_spill] sm:$0xff] %v16037_v2 }
 0x872   : > { %11085 = vmatmul.mubr.f32.gmra.mrb[104].mxu1 %v6635_v48 }
 0x873   : > { %11087 = vmatprep.mubr.f32.mxu1 %v6636_v24  ;;  %v16041_v37 = vpop.permute.xlu0 %7373 }
 0x874   : > { %16944 = vst [vmem:[#allocation58_spill] sm:$0xff] %v16041_v37 }
 0x876   : > { %11088 = vmatmul.mubr.f32.gmra.mrb[106].mxu1 %v6637_v17  ;;  %v16051_v17 = vpop.permute.xlu1 %7378 }
 0x877   : > { %11090 = vmatprep.mubr.f32.mxu1 %v6638_v49  ;;  %16945 = vst [vmem:[#allocation55_spill] sm:$0xff] %v16051_v17 }
 0x87a   : > { %11091 = vmatmul.mubr.f32.gmra.mrb[108].mxu1 %v6639_v41 }
 0x87b   : > { %11093 = vmatprep.mubr.f32.mxu1 %v6640_v20  ;;  %v16055_v20 = vpop.permute.xlu0 %7383 }
 0x87c   : > { %16946 = vst [vmem:[#allocation15_spill] sm:$0xff] %v16055_v20 }
 0x87e   : > { %11094 = vmatmul.mubr.f32.gmra.mrb[110].mxu1 %v6641_v15 }
 0x87f   : > { %11096 = vmatprep.mubr.f32.mxu1 %v6642_v62 }
 0x882   : > { %11097 = vmatmul.mubr.f32.gmra.mrb[112].mxu1 %v6643_v44 }
 0x883   : > { %11099 = vmatprep.mubr.f32.mxu1 %v6644_v57 }
 0x886   : > { %11100 = vmatmul.mubr.f32.gmra.mrb[114].mxu1 %v6645_v50 }
 0x887   : > { %11102 = vmatprep.mubr.f32.mxu1 %v6646_v3  ;;  %v16065_v3 = vpop.permute.xlu1 %7388 }
 0x888   : > { %16947 = vst [vmem:[#allocation17_spill] sm:$0xff] %v16065_v3 }
 0x88a   : > { %11103 = vmatmul.mubr.f32.gmra.mrb[116].mxu1 %v6647_v34 }
 0x88b   : > { %11137 = vmatprep.mubr.f32.mxu1 %v6946_v30 }
 0x88e   : > { %11138 = vmatmul.mubr.f32.vlgmr.msra.gmra.mrb[82].mxu1 %v6947_v13 }
 0x88f   : > { %11140 = vmatprep.mubr.f32.mxu1 %v6948_v1  ;;  %v16071_v1 = vpop.permute.xlu0 %7393 }
 0x890   : > { %16948 = vst [vmem:[#allocation16_spill] sm:$0xff] %v16071_v1 }
 0x892   : > { %11141 = vmatmul.mubr.f32.gmra.mrb[84].mxu1 %v6949_v51 }
 0x893   : > { %11143 = vmatprep.mubr.f32.mxu1 %v6950_v23 }
 0x896   : > { %11144 = vmatmul.mubr.f32.gmra.mrb[86].mxu1 %v6951_v45 }
 0x897   : > { %11146 = vmatprep.mubr.f32.mxu1 %v6952_v29 }
 0x89a   : > { %11147 = vmatmul.mubr.f32.gmra.mrb[88].mxu1 %v6953_v22 }
 0x89b   : > { %11149 = vmatprep.mubr.f32.mxu1 %v6954_v31 }
 0x89e   : > { %11150 = vmatmul.mubr.f32.gmra.mrb[90].mxu1 %v6955_v39  ;;  %v16081_v39 = vpop.permute.xlu1 %7398 }
 0x89f   : > { %11152 = vmatprep.mubr.f32.mxu1 %v6956_v52  ;;  %16949 = vst [vmem:[#allocation18_spill] sm:$0xff] %v16081_v39 }
 0x8a2   : > { %11153 = vmatmul.mubr.f32.gmra.mrb[92].mxu1 %v6957_v40 }
 0x8a3   : > { %11155 = vmatprep.mubr.f32.mxu1 %v6958_v32 }
 0x8a6   : > { %11156 = vmatmul.mubr.f32.gmra.mrb[94].mxu1 %v6959_v4  ;;  %v16087_v4 = vpop.permute.xlu0 %7403 }
 0x8a7   : > { %11158 = vmatprep.mubr.f32.mxu1 %v6960_v46  ;;  %16950 = vst [vmem:[#allocation20_spill] sm:$0xff] %v16087_v4 }
 0x8aa   : > { %11159 = vmatmul.mubr.f32.gmra.mrb[96].mxu1 %v6961_v11 }
 0x8ab   : > { %11161 = vmatprep.mubr.f32.mxu1 %v6962_v16 }
 0x8ae   : > { %11162 = vmatmul.mubr.f32.gmra.mrb[98].mxu1 %v6963_v58 }
 0x8af   : > { %11164 = vmatprep.mubr.f32.mxu1 %v6964_v26 }
 0x8b2   : > { %11165 = vmatmul.mubr.f32.gmra.mrb[100].mxu1 %v6965_v25 }
 0x8b3   : > { %11167 = vmatprep.mubr.f32.mxu1 %v6966_v63  ;;  %v16097_v63 = vpop.permute.xlu1 %7408 }
 0x8b4   : > { %16951 = vst [vmem:[#allocation21_spill] sm:$0xff] %v16097_v63 }
 0x8b6   : > { %11168 = vmatmul.mubr.f32.gmra.mrb[102].mxu1 %v6967_v56 }
 0x8b7   : > { %11170 = vmatprep.mubr.f32.mxu1 %v6968_v42 }
 0x8ba   : > { %11171 = vmatmul.mubr.f32.gmra.mrb[104].mxu1 %v6969_v33 }
 0x8bb   : > { %11173 = vmatprep.mubr.f32.mxu1 %v6970_v14  ;;  %v16103_v14 = vpop.permute.xlu0 %7413 }
 0x8bc   : > { %16952 = vst [vmem:[#allocation22_spill] sm:$0xff] %v16103_v14 }
 0x8be   : > { %11174 = vmatmul.mubr.f32.gmra.mrb[106].mxu1 %v6971_v12 }
 0x8bf   : > { %11176 = vmatprep.mubr.f32.mxu1 %v6972_v8 }
 0x8c2   : > { %11177 = vmatmul.mubr.f32.gmra.mrb[108].mxu1 %v6973_v6 }
 0x8c3   : > { %11179 = vmatprep.mubr.f32.mxu1 %v6974_v60 }
 0x8c6   : > { %11180 = vmatmul.mubr.f32.gmra.mrb[110].mxu1 %v6975_v43 }
 0x8c7   : > { %11182 = vmatprep.mubr.f32.mxu1 %v6976_v36 }
 0x8ca   : > { %11183 = vmatmul.mubr.f32.gmra.mrb[112].mxu1 %v6977_v38  ;;  %v16113_v38 = vpop.permute.xlu1 %7418 }
 0x8cb   : > { %11185 = vmatprep.mubr.f32.mxu1 %v6978_v53  ;;  %16953 = vst [vmem:[#allocation23_spill] sm:$0xff] %v16113_v38 }
 0x8ce   : > { %11186 = vmatmul.mubr.f32.gmra.mrb[114].mxu1 %v6979_v10 }
 0x8cf   : > { %11188 = vmatprep.mubr.f32.mxu1 %v6980_v9 }
 0x8d2   : > { %11189 = vmatmul.mubr.f32.gmra.mrb[116].mxu1 %v6981_v61  ;;  %v16119_v61 = vpop.permute.xlu0 %7423 }
 0x8d3   : > { %16954 = vst [vmem:[#allocation24_spill] sm:$0xff] %v16119_v61 }
 0x961   : > { %v16043_v21 = vpop.f32.mrb[82].mxu1 }
 0x962   : > { %v7497_v7 = vmul.f32 %v16043_v21, %v16021_v18  ;;  %v16047_v48 = vpop.f32.mrb[83].mxu1 }
 0x963   : > { %v7496_v24 = vmul.f32 %v16019_v47, %v16047_v48 }
 0x965   : > { %v7532_v49 = vadd.f32 %v7497_v7, %v7496_v24  ;;  %v16053_v41 = vpop.f32.mrb[84].mxu1 }
 0x966   : > { %v16057_v15 = vpop.f32.mrb[85].mxu1  ;;  %v7499_v44 = vmul.f32 %v16053_v41, %v16025_v5 }
 0x967   : > { %v7498_v62 = vmul.f32 %v16023_v55, %v16057_v15 }
 0x969   : > { %v7533_v57 = vadd.f32 %v7532_v49, %v7498_v62  ;;  %v16063_v50 = vpop.f32.mrb[86].mxu1 }
 0x96a   : > { %v16067_v34 = vpop.f32.mrb[87].mxu1  ;;  %v7501_v51 = vmul.f32 %v16063_v50, %v16029_v28 }
 0x96b   : > { %v7500_v30 = vmul.f32 %v16027_v27, %v16067_v34  ;;  %v7534_v13 = vadd.f32 %v7533_v57, %v7499_v44 }
 0x96d   : > { %v7535_v23 = vadd.f32 %v7534_v13, %v7500_v30  ;;  %v16075_v45 = vpop.f32.mrb[88].mxu1  ;;  %v16129_v30 = vpop.permute.xlu1 %7428 }
 0x96e   : > { %v16077_v29 = vpop.f32.mrb[89].mxu1  ;;  %v7503_v52 = vmul.f32 %v16075_v45, %v16033_v54  ;;  %16955 = vst [vmem:[#allocation25_spill] sm:$0xff] %v16129_v30 }
 0x96f   : > { %v7502_v22 = vmul.f32 %v16031_v19, %v16077_v29  ;;  %v7536_v31 = vadd.f32 %v7535_v23, %v7501_v51 }
 0x971   : > { %v7537_v40 = vadd.f32 %v7536_v31, %v7502_v22  ;;  %v16085_v32 = vpop.f32.mrb[90].mxu1  ;;  %v16135_v22 = vpop.permute.xlu0 %7433 }
 0x972   : > { %v16089_v46 = vpop.f32.mrb[91].mxu1  ;;  %v7505_v58 = vmul.f32 %v16085_v32, %v16037_v2  ;;  %16956 = vst [vmem:[#allocation26_spill] sm:$0xff] %v16135_v22 }
 0x973   : > { %v7504_v11 = vmul.f32 %v16035_v35, %v16089_v46  ;;  %v7538_v16 = vadd.f32 %v7537_v40, %v7503_v52 }
 0x975   : > { %v7539_v26 = vadd.f32 %v7538_v16, %v7504_v11  ;;  %v16095_v25 = vpop.f32.mrb[92].mxu1 }
 0x976   : > { %v16099_v56 = vpop.f32.mrb[93].mxu1  ;;  %v7507_v12 = vmul.f32 %v16095_v25, %v16041_v37 }
 0x977   : > { %v7506_v42 = vmul.f32 %v16039_v0, %v16099_v56  ;;  %v7540_v33 = vadd.f32 %v7539_v26, %v7505_v58  ;;  %v16145_v26 = vpop.permute.xlu1 %7438 }
 0x978   : > { %16957 = vst [vmem:[#allocation27_spill] sm:$0xff] %v16145_v26 }
 0x979   : > { %v7541_v8 = vadd.f32 %v7540_v33, %v7506_v42  ;;  %v16107_v6 = vpop.f32.mrb[94].mxu1 }
 0x97a   : > { %v16109_v60 = vpop.f32.mrb[95].mxu1  ;;  %v7509_v53 = vmul.f32 %v16107_v6, %v16055_v20 }
 0x97b   : > { %v7508_v43 = vmul.f32 %v16051_v17, %v16109_v60  ;;  %v7542_v36 = vadd.f32 %v7541_v8, %v7507_v12  ;;  %v16151_v8 = vpop.permute.xlu0 %7443 }
 0x97c   : > { %16958 = vst [vmem:[#allocation28_spill] sm:$0xff] %v16151_v8 }
 0x97d   : > { %v7543_v10 = vadd.f32 %v7542_v36, %v7508_v43  ;;  %v16117_v9 = vpop.f32.mrb[96].mxu1 }
 0x97e   : > { %v16121_v7 = vpop.f32.mrb[97].mxu1  ;;  %v7511_v62 = vmul.f32 %v16117_v9, %v16071_v1 }
 0x97f   : > { %v7510_v24 = vmul.f32 %v16065_v3, %v16121_v7  ;;  %v7544_v49 = vadd.f32 %v7543_v10, %v7509_v53 }
 0x981   : > { %v7545_v44 = vadd.f32 %v7544_v49, %v7510_v24  ;;  %v16127_v57 = vpop.f32.mrb[98].mxu1 }
 0x982   : > { %v16131_v13 = vpop.f32.mrb[99].mxu1  ;;  %v7513_v31 = vmul.f32 %v16127_v57, %v16087_v4 }
 0x983   : > { %v7512_v51 = vmul.f32 %v16081_v39, %v16131_v13  ;;  %v7546_v23 = vadd.f32 %v7545_v44, %v7511_v62  ;;  %v16161_v62 = vpop.permute.xlu1 %7448 }
 0x984   : > { %16959 = vst [vmem:[#allocation29_spill] sm:$0xff] %v16161_v62 }
 0x985   : > { %v7547_v52 = vadd.f32 %v7546_v23, %v7512_v51  ;;  %v16139_v40 = vpop.f32.mrb[100].mxu1 }
 0x986   : > { %v16141_v11 = vpop.f32.mrb[101].mxu1  ;;  %v7515_v42 = vmul.f32 %v16139_v40, %v16103_v14 }
 0x987   : > { %v7514_v16 = vmul.f32 %v16097_v63, %v16141_v11  ;;  %v7548_v58 = vadd.f32 %v7547_v52, %v7513_v31  ;;  %v16167_v31 = vpop.permute.xlu0 %7453 }
 0x988   : > { %16960 = vst [vmem:[#allocation30_spill] sm:$0xff] %v16167_v31 }
 0x989   : > { %v7549_v33 = vadd.f32 %v7548_v58, %v7514_v16  ;;  %v16149_v12 = vpop.f32.mrb[102].mxu1 }
 0x98a   : > { %v16153_v43 = vpop.f32.mrb[103].mxu1  ;;  %v7517_v10 = vmul.f32 %v16149_v12, %v16119_v61 }
 0x98b   : > { %v7516_v36 = vmul.f32 %v16113_v38, %v16153_v43  ;;  %v7550_v53 = vadd.f32 %v7549_v33, %v7515_v42 }
 0x98d   : > { %v7551_v24 = vadd.f32 %v7550_v53, %v7516_v36  ;;  %v16159_v49 = vpop.f32.mrb[104].mxu1  ;;  %v16177_v53 = vpop.permute.xlu1 %7458 }
 0x98e   : > { %v16163_v44 = vpop.f32.mrb[105].mxu1  ;;  %v7519_v52 = vmul.f32 %v16159_v49, %v16135_v22  ;;  %16961 = vst [vmem:[#allocation32_spill] sm:$0xff] %v16177_v53 }
 0x98f   : > { %v7518_v51 = vmul.f32 %v16129_v30, %v16163_v44  ;;  %v7552_v23 = vadd.f32 %v7551_v24, %v7517_v10  ;;  %v16183_v30 = vpop.permute.xlu0 %7463 }
 0x990   : > { %16962 = vst [vmem:[#allocation33_spill] sm:$0xff] %v16183_v30 }
 0x991   : > { %v7553_v16 = vadd.f32 %v7552_v23, %v7518_v51  ;;  %v16171_v58 = vpop.f32.mrb[106].mxu1  ;;  %v16193_v61 = vpop.permute.xlu1 %7468 }
 0x992   : > { %v16173_v42 = vpop.f32.mrb[107].mxu1  ;;  %v7521_v59 = vmul.f32 %v16171_v58, %v16151_v8  ;;  %16963 = vst [vmem:[#allocation34_spill] sm:$0xff] %v16193_v61 }
 0x993   : > { %v7520_v33 = vmul.f32 %v16145_v26, %v16173_v42  ;;  %v7554_v36 = vadd.f32 %v7553_v16, %v7519_v52  ;;  %v16199_v38 = vpop.permute.xlu0 %7473 }
 0x994   : > { %16964 = vst [vmem:[#allocation35_spill] sm:$0xff] %v16199_v38 }
 0x995   : > { %v7555_v10 = vadd.f32 %v7554_v36, %v7520_v33  ;;  %v16181_v24 = vpop.f32.mrb[108].mxu1 }
 0x996   : > { %v16185_v22 = vpop.f32.mrb[109].mxu1  ;;  %v7523_v26 = vmul.f32 %v16181_v24, %v16167_v31  ;;  %v16204_v31 = vpop.permute.xlu1 %7478 }
 0x997   : > { %v7522_v51 = vmul.f32 %v16161_v62, %v16185_v22  ;;  %v7556_v23 = vadd.f32 %v7555_v10, %v7521_v59  ;;  %16965 = vst [vmem:[#allocation36_spill] sm:$0xff] %v16204_v31  ;;  %v16207_v1 = vpop.permute.xlu0 %7483 }
 0x999   : > { %v7557_v52 = vadd.f32 %v7556_v23, %v7522_v51  ;;  %v16191_v16 = vpop.f32.mrb[110].mxu1 }
 0x99a   : > { %v16195_v8 = vpop.f32.mrb[111].mxu1  ;;  %v7525_v62 = vmul.f32 %v16191_v16, %v16183_v30  ;;  %v7489_v3 = vpop.permute.xlu1 %7488 }
 0x99b   : > { %v7524_v33 = vmul.f32 %v16177_v53, %v16195_v8  ;;  %v7558_v36 = vadd.f32 %v7557_v52, %v7523_v26 }
 0x99d   : > { %v7559_v59 = vadd.f32 %v7558_v36, %v7524_v33  ;;  %v11184_v10 = vpop.f32.mrb[112].mxu1 }
 0x99e   : > { %v7215_v14 = vpop.f32.mrb[113].mxu1  ;;  %v7527_v63 = vmul.f32 %v11184_v10, %v16199_v38 }
 0x99f   : > { %v7526_v51 = vmul.f32 %v16193_v61, %v7215_v14  ;;  %v7560_v23 = vadd.f32 %v7559_v59, %v7525_v62  ;;  %v7494_v59 = vpop.permute.xlu0 %7493 }
 0x9a1   : > { %v7561_v4 = vadd.f32 %v7560_v23, %v7526_v51  ;;  %v11187_v39 = vpop.f32.mrb[114].mxu1 }
 0x9a2   : > { %v7225_v26 = vpop.f32.mrb[115].mxu1  ;;  %v7529_v30 = vmul.f32 %v11187_v39, %v16207_v1 }
 0x9a3   : > { %v7528_v52 = vmul.f32 %v16204_v31, %v7225_v26  ;;  %v7562_v53 = vadd.f32 %v7561_v4, %v7527_v63 }
 0x9a5   : > { %v7563_v33 = vadd.f32 %v7562_v53, %v7528_v52  ;;  %v11190_v36 = vpop.f32.mrb[116].mxu1 }
 0x9a6   : > { %v7235_v20 = vpop.f32.mrb[117].mxu1  ;;  %v7531_v17 = vmul.f32 %v11190_v36, %v7494_v59 }
 0x9a7   : > { %v7530_v61 = vmul.f32 %v7489_v3, %v7235_v20  ;;  %v7564_v62 = vadd.f32 %v7563_v33, %v7529_v30  ;;  %v16966_v33 = vld [vmem:[#allocation44_spill] sm:$0xff] }
 0x9a9   : > { %v7565_v37 = vadd.f32 %v7564_v62, %v7530_v61 }
 0x9ab   : > { %v7566_v38 = vadd.f32 %v7565_v37, %v7531_v17 }
 0x9ad   : > { %v7567_v51 = vrot.slane %v7566_v38, 4 }
 0x9af   : > { %v7568_v23 = vadd.f32 %v7567_v51, %v7566_v38 }
 0x9b1   : > { %v7569_v0 = vrot.slane %v7568_v23, 2 }
 0x9b3   : > { %v7570_v2 = vadd.f32 %v7569_v0, %v7568_v23 }
 0x9b5   : > { %v7571_v35 = vrot.slane %v7570_v2, 1 }
 0x9b7   : > { %v7572_v54 = vadd.f32 %v7571_v35, %v7570_v2 }
 0x9b9   : > { %v7573_v31 = vmul.f32 0.00390625, %v7572_v54 }
 0x9bb   : > { %v16212_v4 = vsub.f32 %v16047_v48, %v7573_v31  ;;  %v16215_v63 = vsub.f32 %v16043_v21, %v7573_v31  ;;  %v16218_v53 = vsub.f32 %v16057_v15, %v7573_v31  ;;  %v16221_v30 = vsub.f32 %v16053_v41, %v7573_v31 }
 0x9bc   : > { %v16224_v37 = vsub.f32 %v16067_v34, %v7573_v31  ;;  %v16227_v0 = vsub.f32 %v16063_v50, %v7573_v31  ;;  %v16230_v54 = vsub.f32 %v16077_v29, %v7573_v31  ;;  %v16233_v35 = vsub.f32 %v16075_v45, %v7573_v31 }
 0x9bd   : > { %v16236_v2 = vsub.f32 %v16089_v46, %v7573_v31  ;;  %v16239_v21 = vsub.f32 %v16085_v32, %v7573_v31  ;;  %v16242_v48 = vsub.f32 %v16099_v56, %v7573_v31  ;;  %v16245_v17 = vsub.f32 %v16095_v25, %v7573_v31 }
 0x9be   : > { %v16248_v41 = vsub.f32 %v16109_v60, %v7573_v31  ;;  %v16251_v15 = vsub.f32 %v16107_v6, %v7573_v31  ;;  %v16254_v50 = vsub.f32 %v16121_v7, %v7573_v31  ;;  %v16257_v34 = vsub.f32 %v16117_v9, %v7573_v31 }
 0x9bf   : > { %v16260_v45 = vsub.f32 %v16131_v13, %v7573_v31  ;;  %v16263_v29 = vsub.f32 %v16127_v57, %v7573_v31  ;;  %v16266_v32 = vsub.f32 %v16141_v11, %v7573_v31  ;;  %v16269_v46 = vsub.f32 %v16139_v40, %v7573_v31 }
 0x9c0   : > { %v16272_v25 = vsub.f32 %v16153_v43, %v7573_v31  ;;  %v16275_v56 = vsub.f32 %v16149_v12, %v7573_v31  ;;  %v16278_v6 = vsub.f32 %v16163_v44, %v7573_v31  ;;  %v16281_v60 = vsub.f32 %v16159_v49, %v7573_v31 }
 0x9c1   : > { %v16284_v38 = vsub.f32 %v16173_v42, %v7573_v31  ;;  %v16287_v9 = vsub.f32 %v16171_v58, %v7573_v31  ;;  %v16290_v61 = vsub.f32 %v16185_v22, %v7573_v31  ;;  %v16293_v7 = vsub.f32 %v16181_v24, %v7573_v31 }
 0x9c2   : > { %v16296_v57 = vsub.f32 %v16195_v8, %v7573_v31  ;;  %v16299_v13 = vsub.f32 %v16191_v16, %v7573_v31  ;;  %v16301_v40 = vsub.f32 %v7215_v14, %v7573_v31  ;;  %v16303_v11 = vsub.f32 %v11184_v10, %v7573_v31 }
 0x9c3   : > { %v16305_v12 = vsub.f32 %v7225_v26, %v7573_v31  ;;  %v16307_v43 = vsub.f32 %v11187_v39, %v7573_v31  ;;  %v16309_v49 = vsub.f32 %v7235_v20, %v7573_v31  ;;  %v16311_v22 = vsub.f32 %v11190_v36, %v7573_v31 }
 0x9c4   : > { %v7610_v14 = vmul.f32 %v16212_v4, %v16019_v47  ;;  %v7611_v58 = vmul.f32 %v16215_v63, %v16021_v18  ;;  %v7612_v39 = vmul.f32 %v16218_v53, %v16023_v55  ;;  %v7613_v31 = vmul.f32 %v16221_v30, %v16025_v5 }
 0x9c5   : > { %v16314_v44 = vmul.f32 %v16309_v49, %v7489_v3  ;;  %v16317_v8 = vmul.f32 %v16311_v22, %v7494_v59  ;;  %v7614_v3 = vmul.f32 %v16224_v37, %v16027_v27  ;;  %v7615_v10 = vmul.f32 %v16227_v0, %v16029_v28  ;;  %v16967_v59 = vld [vmem:[#allocation56_spill] sm:$0xff] }
 0x9c6   : > { %v7646_v42 = vmul.f32 %v7610_v14, %v7610_v14  ;;  %v7647_v20 = vmul.f32 %v7611_v58, %v7611_v58  ;;  %v7648_v24 = vmul.f32 %v7612_v39, %v7612_v39  ;;  %v7649_v47 = vmul.f32 %v7613_v31, %v7613_v31  ;;  %v16968_v14 = vld [vmem:[#allocation14_spill] sm:$0xff] }
 0x9c7   : > { %v7616_v18 = vmul.f32 %v16230_v54, %v16031_v19  ;;  %v7650_v52 = vmul.f32 %v7614_v3, %v7614_v3  ;;  %v7617_v36 = vmul.f32 %v16233_v35, %v16966_v33  ;;  %v7651_v62 = vmul.f32 %v7615_v10, %v7615_v10  ;;  %v16970_v3 = vld [vmem:[#allocation58_spill] sm:$0xff] }
 0x9c8   : > { %v7682_v16 = vadd.f32 %v7647_v20, %v7646_v42  ;;  %v7618_v27 = vmul.f32 %v16236_v2, %v16967_v59  ;;  %v7619_v28 = vmul.f32 %v16239_v21, %v16968_v14  ;;  %v16969_v42 = vld [vmem:[#allocation57_spill] sm:$0xff] }
 0x9c9   : > { %v7652_v51 = vmul.f32 %v7616_v18, %v7616_v18  ;;  %v7653_v58 = vmul.f32 %v7617_v36, %v7617_v36  ;;  %v7620_v19 = vmul.f32 %v16242_v48, %v16969_v42 }
 0x9ca   : > { %v7683_v26 = vadd.f32 %v7682_v16, %v7648_v24  ;;  %v7654_v20 = vmul.f32 %v7618_v27, %v7618_v27  ;;  %v7621_v24 = vmul.f32 %v16245_v17, %v16970_v3  ;;  %v7655_v16 = vmul.f32 %v7619_v28, %v7619_v28 }
 0x9cb   : > { %v7656_v18 = vmul.f32 %v7620_v19, %v7620_v19 }
 0x9cc   : > { %v7684_v55 = vadd.f32 %v7683_v26, %v7649_v47  ;;  %v16971_v47 = vld [vmem:[#allocation55_spill] sm:$0xff]  ;;  %v7657_v36 = vmul.f32 %v7621_v24, %v7621_v24 }
 0x9cd   : > { %v7622_v26 = vmul.f32 %v16248_v41, %v16971_v47 }
 0x9ce   : > { %v7685_v5 = vadd.f32 %v7684_v55, %v7650_v52  ;;  %v16972_v55 = vld [vmem:[#allocation15_spill] sm:$0xff] }
 0x9cf   : > { %v7623_v33 = vmul.f32 %v16251_v15, %v16972_v55  ;;  %v7658_v27 = vmul.f32 %v7622_v26, %v7622_v26 }
 0x9d0   : > { %v7686_v23 = vadd.f32 %v7685_v5, %v7651_v62  ;;  %v16973_v5 = vld [vmem:[#allocation17_spill] sm:$0xff] }
 0x9d1   : > { %v7624_v59 = vmul.f32 %v16254_v50, %v16973_v5  ;;  %v7659_v28 = vmul.f32 %v7623_v33, %v7623_v33 }
 0x9d2   : > { %v7687_v39 = vadd.f32 %v7686_v23, %v7652_v51  ;;  %v16974_v23 = vld [vmem:[#allocation16_spill] sm:$0xff] }
 0x9d3   : > { %v7625_v14 = vmul.f32 %v16257_v34, %v16974_v23  ;;  %v7660_v19 = vmul.f32 %v7624_v59, %v7624_v59 }
 0x9d4   : > { %v7688_v31 = vadd.f32 %v7687_v39, %v7653_v58  ;;  %v16975_v39 = vld [vmem:[#allocation18_spill] sm:$0xff] }
 0x9d5   : > { %v7626_v42 = vmul.f32 %v16260_v45, %v16975_v39  ;;  %v7661_v24 = vmul.f32 %v7625_v14, %v7625_v14 }
 0x9d6   : > { %v7689_v10 = vadd.f32 %v7688_v31, %v7654_v20  ;;  %v16976_v31 = vld [vmem:[#allocation20_spill] sm:$0xff] }
 0x9d7   : > { %v7627_v3 = vmul.f32 %v16263_v29, %v16976_v31  ;;  %v7662_v26 = vmul.f32 %v7626_v42, %v7626_v42 }
 0x9d8   : > { %v7690_v52 = vadd.f32 %v7689_v10, %v7655_v16  ;;  %v16977_v10 = vld [vmem:[#allocation21_spill] sm:$0xff] }
 0x9d9   : > { %v7628_v47 = vmul.f32 %v16266_v32, %v16977_v10  ;;  %v7663_v33 = vmul.f32 %v7627_v3, %v7627_v3 }
 0x9da   : > { %v7691_v62 = vadd.f32 %v7690_v52, %v7656_v18  ;;  %v16978_v52 = vld [vmem:[#allocation22_spill] sm:$0xff] }
 0x9db   : > { %v7629_v55 = vmul.f32 %v16269_v46, %v16978_v52  ;;  %v7664_v59 = vmul.f32 %v7628_v47, %v7628_v47 }
 0x9dc   : > { %v7692_v51 = vadd.f32 %v7691_v62, %v7657_v36  ;;  %v16979_v62 = vld [vmem:[#allocation23_spill] sm:$0xff] }
 0x9dd   : > { %v7630_v5 = vmul.f32 %v16272_v25, %v16979_v62  ;;  %v7665_v14 = vmul.f32 %v7629_v55, %v7629_v55 }
 0x9de   : > { %v7693_v58 = vadd.f32 %v7692_v51, %v7658_v27  ;;  %v16980_v51 = vld [vmem:[#allocation24_spill] sm:$0xff] }
 0x9df   : > { %v7631_v23 = vmul.f32 %v16275_v56, %v16980_v51  ;;  %v7666_v42 = vmul.f32 %v7630_v5, %v7630_v5 }
 0x9e0   : > { %v7694_v20 = vadd.f32 %v7693_v58, %v7659_v28  ;;  %v16981_v58 = vld [vmem:[#allocation25_spill] sm:$0xff] }
 0x9e1   : > { %v7632_v39 = vmul.f32 %v16278_v6, %v16981_v58  ;;  %v7667_v3 = vmul.f32 %v7631_v23, %v7631_v23 }
 0x9e2   : > { %v7695_v16 = vadd.f32 %v7694_v20, %v7660_v19  ;;  %v16982_v20 = vld [vmem:[#allocation26_spill] sm:$0xff] }
 0x9e3   : > { %v7633_v31 = vmul.f32 %v16281_v60, %v16982_v20  ;;  %v7668_v47 = vmul.f32 %v7632_v39, %v7632_v39 }
 0x9e4   : > { %v7696_v18 = vadd.f32 %v7695_v16, %v7661_v24  ;;  %v16983_v16 = vld [vmem:[#allocation27_spill] sm:$0xff] }
 0x9e5   : > { %v7634_v10 = vmul.f32 %v16284_v38, %v16983_v16  ;;  %v7669_v55 = vmul.f32 %v7633_v31, %v7633_v31 }
 0x9e6   : > { %v7697_v36 = vadd.f32 %v7696_v18, %v7662_v26  ;;  %v16984_v18 = vld [vmem:[#allocation28_spill] sm:$0xff] }
 0x9e7   : > { %v7635_v52 = vmul.f32 %v16287_v9, %v16984_v18  ;;  %v7670_v5 = vmul.f32 %v7634_v10, %v7634_v10 }
 0x9e8   : > { %v7698_v27 = vadd.f32 %v7697_v36, %v7663_v33  ;;  %v16985_v36 = vld [vmem:[#allocation29_spill] sm:$0xff] }
 0x9e9   : > { %v7636_v62 = vmul.f32 %v16290_v61, %v16985_v36  ;;  %v7671_v23 = vmul.f32 %v7635_v52, %v7635_v52 }
 0x9ea   : > { %v7699_v28 = vadd.f32 %v7698_v27, %v7664_v59  ;;  %v16986_v27 = vld [vmem:[#allocation30_spill] sm:$0xff] }
 0x9eb   : > { %v7637_v51 = vmul.f32 %v16293_v7, %v16986_v27  ;;  %v7672_v39 = vmul.f32 %v7636_v62, %v7636_v62 }
 0x9ec   : > { %v7700_v19 = vadd.f32 %v7699_v28, %v7665_v14  ;;  %v16987_v28 = vld [vmem:[#allocation32_spill] sm:$0xff] }
 0x9ed   : > { %v7638_v58 = vmul.f32 %v16296_v57, %v16987_v28  ;;  %v7673_v31 = vmul.f32 %v7637_v51, %v7637_v51 }
 0x9ee   : > { %v7701_v24 = vadd.f32 %v7700_v19, %v7666_v42  ;;  %v16988_v19 = vld [vmem:[#allocation33_spill] sm:$0xff] }
 0x9ef   : > { %v7639_v20 = vmul.f32 %v16299_v13, %v16988_v19  ;;  %v7674_v10 = vmul.f32 %v7638_v58, %v7638_v58  ;;  %v7681_v19 = vmul.f32 %v16317_v8, %v16317_v8  ;;  %v16992_v8 = vld [vmem:[#allocation31_spill] sm:$0xff] }
 0x9f0   : > { %v7702_v26 = vadd.f32 %v7701_v24, %v7667_v3  ;;  %v16989_v24 = vld [vmem:[#allocation34_spill] sm:$0xff] }
 0x9f1   : > { %v7640_v16 = vmul.f32 %v16301_v40, %v16989_v24  ;;  %v7675_v52 = vmul.f32 %v7639_v20, %v7639_v20 }
 0x9f2   : > { %v7703_v33 = vadd.f32 %v7702_v26, %v7668_v47  ;;  %v16990_v26 = vld [vmem:[#allocation35_spill] sm:$0xff] }
 0x9f3   : > { %v7641_v18 = vmul.f32 %v16303_v11, %v16990_v26  ;;  %v7676_v62 = vmul.f32 %v7640_v16, %v7640_v16 }
 0x9f4   : > { %v7704_v59 = vadd.f32 %v7703_v33, %v7669_v55  ;;  %v16991_v33 = vld [vmem:[#allocation36_spill] sm:$0xff] }
 0x9f5   : > { %v7642_v36 = vmul.f32 %v16305_v12, %v16991_v33  ;;  %v7677_v27 = vmul.f32 %v7641_v18, %v7641_v18  ;;  %v16993_v33 = vsub.s32 0, %v16992_v8  ;;  %v7731_v8 = vld [vmem:[%s13105_s28 + $0x3c] sm:$0xff] }
 0x9f6   : > { %v7705_v14 = vadd.f32 %v7704_v59, %v7670_v5  ;;  %v7643_v59 = vmul.f32 %v16307_v43, %v16207_v1 }
 0x9f8   : > { %v7706_v42 = vadd.f32 %v7705_v14, %v7671_v23  ;;  %v7678_v23 = vmul.f32 %v7642_v36, %v7642_v36  ;;  %v7679_v28 = vmul.f32 %v7643_v59, %v7643_v59 }
 0x9fa   : > { %v7707_v3 = vadd.f32 %v7706_v42, %v7672_v39  ;;  %v7680_v39 = vmul.f32 %v16314_v44, %v16314_v44  ;;  %v7724_v44 = vld [vmem:[%s16680_s7] sm:$0x1] }
 0x9fc   : > { %v7708_v47 = vadd.f32 %v7707_v3, %v7673_v31 }
 0x9fe   : > { %v7709_v55 = vadd.f32 %v7708_v47, %v7674_v10 }
 0xa00   : > { %v7710_v5 = vadd.f32 %v7709_v55, %v7675_v52 }
 0xa02   : > { %v7711_v51 = vadd.f32 %v7710_v5, %v7676_v62  ;;  %v16400_v62 = vld [vmem:[%s16681_s8] ss:$0 sm:$0xff] }
 0xa04   : > { %v7712_v14 = vadd.f32 %v7711_v51, %v7677_v27 }
 0xa06   : > { %v7713_v58 = vadd.f32 %v7712_v14, %v7678_v23  ;;  %v7763_v23 = vld [vmem:[%s13105_s28 + $0x13c] sm:$0xff] }
 0xa08   : > { %v7714_v42 = vadd.f32 %v7713_v58, %v7679_v28 }
 0xa0a   : > { %v7715_v20 = vadd.f32 %v7714_v42, %v7680_v39 }
 0xa0c   : > { %v7716_v31 = vadd.f32 %v7715_v20, %v7681_v19 }
 0xa0e   : > { %v7717_v3 = vrot.slane %v7716_v31, 4 }
 0xa10   : > { %v7718_v24 = vadd.f32 %v7717_v3, %v7716_v31 }
 0xa12   : > { %v7719_v16 = vrot.slane %v7718_v24, 2 }
 0xa14   : > { %v7720_v1 = vadd.f32 %v7719_v16, %v7718_v24 }
 0xa16   : > { %v7721_v10 = vrot.slane %v7720_v1, 1 }
 0xa18   : > { %v7722_v47 = vadd.f32 %v7721_v10, %v7720_v1  ;;  %v7730_v10 = vld [vmem:[%s13105_s28 + $0x34] sm:$0xff] }
 0xa1a   : > { %v7723_v26 = vmul.f32 0.00390625, %v7722_v47  ;;  %v7729_v47 = vld [vmem:[%s13105_s28 + $0x2c] sm:$0xff] }
 0xa1c   : > { %v7725_v18 = vadd.f32 1e-05, %v7723_v26 }
 0xa1e   : > { %12698 = vrsqrt.f32 %v7725_v18 }
 0xa28   : > { %v12699_v52 = vpop.eup %12698 }
 0xa29   : > { %v7727_v55 = vmul.f32 %v12699_v52, %v7724_v44 }
 0xa2b   : > { %v7769_v36 = vrot.slane %v7727_v55, %v16993_v33  ;;  %v7732_v55 = vld [vmem:[%s13105_s28 + $0x44] sm:$0xff]  ;;  %v7734_v33 = vld [vmem:[%s13105_s28 + $0x54] sm:$0xff] }
 0xa2d   : > { %v7805_v5 = vmul.f32 %v7769_v36, %v16309_v49  ;;  %v7771_v59 = vmul.f32 %v7769_v36, %v16212_v4  ;;  %v7772_v27 = vmul.f32 %v7769_v36, %v16215_v63  ;;  %v7773_v51 = vmul.f32 %v7769_v36, %v16218_v53 }
 0xa2e   : > { %v7774_v14 = vmul.f32 %v7769_v36, %v16221_v30  ;;  %v7775_v28 = vmul.f32 %v7769_v36, %v16224_v37  ;;  %v7776_v58 = vmul.f32 %v7769_v36, %v16227_v0  ;;  %v7777_v39 = vmul.f32 %v7769_v36, %v16230_v54 }
 0xa2f   : > { %v7847_v42 = vadd.f32 %v16400_v62, %v7805_v5  ;;  %v7778_v19 = vmul.f32 %v7769_v36, %v16233_v35  ;;  %v7779_v49 = vmul.f32 %v7769_v36, %v16236_v2  ;;  %v7780_v4 = vmul.f32 %v7769_v36, %v16239_v21 }
 0xa30   : > { %v7781_v63 = vmul.f32 %v7769_v36, %v16242_v48  ;;  %v7782_v53 = vmul.f32 %v7769_v36, %v16245_v17  ;;  %v7783_v30 = vmul.f32 %v7769_v36, %v16248_v41  ;;  %v7784_v37 = vmul.f32 %v7769_v36, %v16251_v15 }
 0xa31   : > { %v7883_v20 = vadd.f32 %v7847_v42, %v7763_v23  ;;  %v7785_v0 = vmul.f32 %v7769_v36, %v16254_v50  ;;  %v7786_v54 = vmul.f32 %v7769_v36, %v16257_v34  ;;  %v7787_v31 = vmul.f32 %v7769_v36, %v16260_v45  ;;  %v7736_v23 = vld [vmem:[%s13105_s28 + $0x64] sm:$0xff] }
 0xa32   : > { %v7788_v35 = vmul.f32 %v7769_v36, %v16263_v29  ;;  %v7789_v2 = vmul.f32 %v7769_v36, %v16266_v32  ;;  %v7790_v21 = vmul.f32 %v7769_v36, %v16269_v46  ;;  %v7791_v48 = vmul.f32 %v7769_v36, %v16272_v25 }
 0xa33   : > { %7919 = vst [vmem:[%s16426_s24 + $0x110] sm:$0xff] %v7883_v20  ;;  %v7792_v17 = vmul.f32 %v7769_v36, %v16275_v56  ;;  %v7793_v41 = vmul.f32 %v7769_v36, %v16278_v6  ;;  %v7794_v15 = vmul.f32 %v7769_v36, %v16281_v60  ;;  %v7795_v50 = vmul.f32 %v7769_v36, %v16284_v38 }
 0xa34   : > { %v7796_v34 = vmul.f32 %v7769_v36, %v16287_v9  ;;  %v7797_v45 = vmul.f32 %v7769_v36, %v16290_v61  ;;  %v7798_v29 = vmul.f32 %v7769_v36, %v16293_v7  ;;  %v7799_v32 = vmul.f32 %v7769_v36, %v16296_v57 }
 0xa35   : > { %v7800_v46 = vmul.f32 %v7769_v36, %v16299_v13  ;;  %v7801_v25 = vmul.f32 %v7769_v36, %v16301_v40  ;;  %v7802_v56 = vmul.f32 %v7769_v36, %v16303_v11  ;;  %v7803_v6 = vmul.f32 %v7769_v36, %v16305_v12 }
 0xa36   : > { %v7804_v60 = vmul.f32 %v7769_v36, %v16307_v43  ;;  %v7806_v38 = vmul.f32 %v7769_v36, %v16311_v22  ;;  %v7813_v9 = vadd.f32 %v16400_v62, %v7771_v59  ;;  %v7814_v61 = vadd.f32 %v16400_v62, %v7772_v27  ;;  %v7733_v36 = vld [vmem:[%s13105_s28 + $0x4c] sm:$0xff] }
 0xa37   : > { %v7815_v7 = vadd.f32 %v16400_v62, %v7773_v51  ;;  %v7816_v57 = vadd.f32 %v16400_v62, %v7774_v14  ;;  %v7817_v13 = vadd.f32 %v16400_v62, %v7775_v28  ;;  %v7818_v40 = vadd.f32 %v16400_v62, %v7776_v58  ;;  %v7735_v14 = vld [vmem:[%s13105_s28 + $0x5c] sm:$0xff]  ;;  %v7738_v28 = vld [vmem:[%s13105_s28 + $0x74] sm:$0xff]  ;;  %v7737_v58 = vld [vmem:[%s13105_s28 + $0x6c] sm:$0xff] }
 0xa38   : > { %v7819_v11 = vadd.f32 %v16400_v62, %v7777_v39  ;;  %v7820_v12 = vadd.f32 %v16400_v62, %v7778_v19  ;;  %v7821_v43 = vadd.f32 %v16400_v62, %v7779_v49  ;;  %v7822_v22 = vadd.f32 %v16400_v62, %v7780_v4  ;;  %v7740_v4 = vld [vmem:[%s13105_s28 + $0x84] sm:$0xff] }
 0xa39   : > { %v7823_v3 = vadd.f32 %v16400_v62, %v7781_v63  ;;  %v16455_v24 = vadd.f32 %v16400_v62, %v7782_v53  ;;  %v16458_v16 = vadd.f32 %v16400_v62, %v7783_v30  ;;  %v16461_v1 = vadd.f32 %v16400_v62, %v7784_v37  ;;  %v7739_v63 = vld [vmem:[%s13105_s28 + $0x7c] sm:$0xff]  ;;  %v7742_v53 = vld [vmem:[%s13105_s28 + $0x94] sm:$0xff]  ;;  %v7741_v30 = vld [vmem:[%s13105_s28 + $0x8c] sm:$0xff] }
 0xa3a   : > { %v16466_v26 = vadd.f32 %v16400_v62, %v7785_v0  ;;  %v16469_v18 = vadd.f32 %v16400_v62, %v7786_v54  ;;  %v16472_v44 = vadd.f32 %v16400_v62, %v7787_v31  ;;  %v16475_v52 = vadd.f32 %v16400_v62, %v7788_v35  ;;  %v7744_v31 = vld [vmem:[%s13105_s28 + $0xa4] sm:$0xff]  ;;  %v7743_v35 = vld [vmem:[%s13105_s28 + $0x9c] sm:$0xff] }
 0xa3b   : > { %v16482_v5 = vadd.f32 %v16400_v62, %v7789_v2  ;;  %v16485_v59 = vadd.f32 %v16400_v62, %v7790_v21  ;;  %v16488_v27 = vadd.f32 %v16400_v62, %v7791_v48  ;;  %v16491_v51 = vadd.f32 %v16400_v62, %v7792_v17  ;;  %v7746_v2 = vld [vmem:[%s13105_s28 + $0xb4] sm:$0xff] }
 0xa3c   : > { %v16498_v39 = vadd.f32 %v16400_v62, %v7793_v41  ;;  %v16501_v42 = vadd.f32 %v16400_v62, %v7794_v15  ;;  %v16504_v19 = vadd.f32 %v16400_v62, %v7795_v50  ;;  %v16507_v49 = vadd.f32 %v16400_v62, %v7796_v34  ;;  %v7745_v15 = vld [vmem:[%s13105_s28 + $0xac] sm:$0xff]  ;;  %v7748_v50 = vld [vmem:[%s13105_s28 + $0xc4] sm:$0xff]  ;;  %v7747_v34 = vld [vmem:[%s13105_s28 + $0xbc] sm:$0xff] }
 0xa3d   : > { %v16514_v37 = vadd.f32 %v16400_v62, %v7797_v45  ;;  %v16517_v20 = vadd.f32 %v16400_v62, %v7798_v29  ;;  %v16520_v0 = vadd.f32 %v16400_v62, %v7799_v32  ;;  %v16523_v54 = vadd.f32 %v16400_v62, %v7800_v46 }
 0xa3e   : > { %v16529_v21 = vadd.f32 %v16400_v62, %v7801_v25  ;;  %v16532_v48 = vadd.f32 %v16400_v62, %v7802_v56  ;;  %v16535_v17 = vadd.f32 %v16400_v62, %v7803_v6  ;;  %v16538_v41 = vadd.f32 %v16400_v62, %v7804_v60  ;;  %v7750_v25 = vld [vmem:[%s13105_s28 + $0xd4] sm:$0xff]  ;;  %v7749_v56 = vld [vmem:[%s13105_s28 + $0xcc] sm:$0xff]  ;;  %v7752_v6 = vld [vmem:[%s13105_s28 + $0xe4] sm:$0xff] }
 0xa3f   : > { %16994 = vst [vmem:[#allocation37_spill] sm:$0xff] %v16523_v54  ;;  %v16544_v45 = vadd.f32 %v16400_v62, %v7806_v38  ;;  %v7849_v29 = vadd.f32 %v7813_v9, %v7729_v47  ;;  %v7850_v32 = vadd.f32 %v7814_v61, %v7730_v10  ;;  %v7851_v46 = vadd.f32 %v7815_v7, %v7731_v8  ;;  %v7754_v54 = vld [vmem:[%s13105_s28 + $0xf4] sm:$0xff]  ;;  %v7753_v62 = vld [vmem:[%s13105_s28 + $0xec] sm:$0xff]  ;;  %v7759_v10 = vld [vmem:[%s13105_s28 + $0x11c] sm:$0xff] }
 0xa40   : > { %16995 = vst [vmem:[#allocation38_spill] sm:$0xff] %v16529_v21  ;;  %16996 = vst [vmem:[#allocation39_spill] sm:$0xff] %v16532_v48  ;;  %v7852_v60 = vadd.f32 %v7816_v57, %v7732_v55  ;;  %v7855_v48 = vadd.f32 %v7819_v11, %v7735_v14  ;;  %v7751_v21 = vld [vmem:[%s13105_s28 + $0xdc] sm:$0xff]  ;;  %v7856_v38 = vadd.f32 %v7820_v12, %v7736_v23  ;;  %v7756_v57 = vld [vmem:[%s13105_s28 + $0x104] sm:$0xff] }
 0xa41   : > { %16997 = vst [vmem:[#allocation40_spill] sm:$0xff] %v16535_v17  ;;  %16998 = vst [vmem:[#allocation41_spill] sm:$0xff] %v16538_v41  ;;  %v7853_v41 = vadd.f32 %v7817_v13, %v7733_v36  ;;  %v7854_v17 = vadd.f32 %v7818_v40, %v7734_v33  ;;  %v7857_v9 = vadd.f32 %v7821_v43, %v7737_v58  ;;  %v7755_v13 = vld [vmem:[%s13105_s28 + $0xfc] sm:$0xff]  ;;  %v7758_v40 = vld [vmem:[%s13105_s28 + $0x114] sm:$0xff] }
 0xa42   : > { %v7858_v61 = vadd.f32 %v7822_v22, %v7738_v28  ;;  %v7859_v7 = vadd.f32 %v7823_v3, %v7739_v63  ;;  %7885 = vst [vmem:[%s16426_s24] sm:$0xff] %v7849_v29  ;;  %7886 = vst [vmem:[%s16426_s24 + $0x8] sm:$0xff] %v7850_v32  ;;  %v7860_v11 = vadd.f32 %v16455_v24, %v7740_v4  ;;  %v7757_v3 = vld [vmem:[%s13105_s28 + $0x10c] sm:$0xff]  ;;  %v7760_v24 = vld [vmem:[%s13105_s28 + $0x124] sm:$0xff] }
 0xa43   : > { %7887 = vst [vmem:[%s16426_s24 + $0x10] sm:$0xff] %v7851_v46  ;;  %v7861_v12 = vadd.f32 %v16458_v16, %v7741_v30  ;;  %v7862_v43 = vadd.f32 %v16461_v1, %v7742_v53  ;;  %v7863_v22 = vadd.f32 %v16466_v26, %v7743_v35  ;;  %7888 = vst [vmem:[%s16426_s24 + $0x18] sm:$0xff] %v7852_v60  ;;  %v7762_v55 = vld [vmem:[%s13105_s28 + $0x134] sm:$0xff]  ;;  %v7761_v8 = vld [vmem:[%s13105_s28 + $0x12c] sm:$0xff] }
 0xa44   : > { %7889 = vst [vmem:[%s16426_s24 + $0x20] sm:$0xff] %v7853_v41  ;;  %7890 = vst [vmem:[%s16426_s24 + $0x28] sm:$0xff] %v7854_v17  ;;  %v7864_v16 = vadd.f32 %v16469_v18, %v7744_v31  ;;  %v7865_v1 = vadd.f32 %v16472_v44, %v7745_v15  ;;  %v7866_v47 = vadd.f32 %v16475_v52, %v7746_v2  ;;  %v7764_v33 = vld [vmem:[%s13105_s28 + $0x144] sm:$0xff] }
 0xa45   : > { %7891 = vst [vmem:[%s16426_s24 + $0x30] sm:$0xff] %v7855_v48  ;;  %v7867_v26 = vadd.f32 %v16482_v5, %v7747_v34  ;;  %7892 = vst [vmem:[%s16426_s24 + $0x38] sm:$0xff] %v7856_v38  ;;  %v7868_v18 = vadd.f32 %v16485_v59, %v7748_v50  ;;  %v7869_v44 = vadd.f32 %v16488_v27, %v7749_v56 }
 0xa46   : > { %7893 = vst [vmem:[%s16426_s24 + $0x40] sm:$0xff] %v7857_v9  ;;  %7894 = vst [vmem:[%s16426_s24 + $0x48] sm:$0xff] %v7858_v61  ;;  %v7870_v52 = vadd.f32 %v16491_v51, %v7750_v25  ;;  %v7871_v36 = vadd.f32 %v16498_v39, %v7751_v21  ;;  %v7872_v5 = vadd.f32 %v16501_v42, %v7752_v6  ;;  %v16999_v28 = vld [vmem:[#allocation37_spill] sm:$0xff] }
 0xa47   : > { %7895 = vst [vmem:[%s16426_s24 + $0x50] sm:$0xff] %v7859_v7  ;;  %7896 = vst [vmem:[%s16426_s24 + $0x58] sm:$0xff] %v7860_v11  ;;  %v7873_v59 = vadd.f32 %v16504_v19, %v7753_v62  ;;  %v7874_v27 = vadd.f32 %v16507_v49, %v7754_v54  ;;  %v7875_v51 = vadd.f32 %v16514_v37, %v7755_v13  ;;  %v17000_v39 = vld [vmem:[#allocation38_spill] sm:$0xff]  ;;  %v17001_v19 = vld [vmem:[#allocation39_spill] sm:$0xff] }
 0xa48   : > { %7897 = vst [vmem:[%s16426_s24 + $0x60] sm:$0xff] %v7861_v12  ;;  %7898 = vst [vmem:[%s16426_s24 + $0x68] sm:$0xff] %v7862_v43  ;;  %v7876_v23 = vadd.f32 %v16517_v20, %v7756_v57  ;;  %v7877_v14 = vadd.f32 %v16520_v0, %v7757_v3  ;;  %v7878_v58 = vadd.f32 %v16999_v28, %v7758_v40  ;;  %v17002_v4 = vld [vmem:[#allocation40_spill] sm:$0xff]  ;;  %v17003_v53 = vld [vmem:[#allocation41_spill] sm:$0xff] }
 0xa49   : > { %7899 = vst [vmem:[%s16426_s24 + $0x70] sm:$0xff] %v7863_v22  ;;  %7900 = vst [vmem:[%s16426_s24 + $0x78] sm:$0xff] %v7864_v16  ;;  %v7879_v42 = vadd.f32 %v17000_v39, %v7759_v10  ;;  %v7880_v49 = vadd.f32 %v17001_v19, %v7760_v24  ;;  %v7881_v63 = vadd.f32 %v17002_v4, %v7761_v8 }
 0xa4a   : > { %7901 = vst [vmem:[%s16426_s24 + $0x80] sm:$0xff] %v7865_v1  ;;  %7902 = vst [vmem:[%s16426_s24 + $0x88] sm:$0xff] %v7866_v47  ;;  %v7882_v30 = vadd.f32 %v17003_v53, %v7762_v55  ;;  %v7884_v37 = vadd.f32 %v16544_v45, %v7764_v33 }
 0xa4b   : > { %7903 = vst [vmem:[%s16426_s24 + $0x90] sm:$0xff] %v7867_v26  ;;  %7904 = vst [vmem:[%s16426_s24 + $0x98] sm:$0xff] %v7868_v18 }
 0xa4c   : > { %7905 = vst [vmem:[%s16426_s24 + $0xa0] sm:$0xff] %v7869_v44  ;;  %7906 = vst [vmem:[%s16426_s24 + $0xa8] sm:$0xff] %v7870_v52 }
 0xa4d   : > { %7907 = vst [vmem:[%s16426_s24 + $0xb0] sm:$0xff] %v7871_v36  ;;  %7908 = vst [vmem:[%s16426_s24 + $0xb8] sm:$0xff] %v7872_v5 }
 0xa4e   : > { %7909 = vst [vmem:[%s16426_s24 + $0xc0] sm:$0xff] %v7873_v59  ;;  %7910 = vst [vmem:[%s16426_s24 + $0xc8] sm:$0xff] %v7874_v27 }
 0xa4f   : > { %7911 = vst [vmem:[%s16426_s24 + $0xd0] sm:$0xff] %v7875_v51  ;;  %7912 = vst [vmem:[%s16426_s24 + $0xd8] sm:$0xff] %v7876_v23 }
 0xa50   : > { %7913 = vst [vmem:[%s16426_s24 + $0xe0] sm:$0xff] %v7877_v14  ;;  %7914 = vst [vmem:[%s16426_s24 + $0xe8] sm:$0xff] %v7878_v58 }
 0xa51   : > { %7915 = vst [vmem:[%s16426_s24 + $0xf0] sm:$0xff] %v7879_v42  ;;  %7916 = vst [vmem:[%s16426_s24 + $0xf8] sm:$0xff] %v7880_v49 }
 0xa52   : > { %7917 = vst [vmem:[%s16426_s24 + $0x100] sm:$0xff] %v7881_v63  ;;  %7918 = vst [vmem:[%s16426_s24 + $0x108] sm:$0xff] %v7882_v30 }
 0xa53   : > { %7920 = vst [vmem:[%s16426_s24 + $0x118] sm:$0xff] %v7884_v37 }
 0xa54   : > { %12799 = shalt.err (!%p12796_p1)
}
 0xa55   : > { %s12800_s14 = scalar_lea.hbm %s16611_s19, 4608  ;;  %s12804_s29 = scalar_lea.hbm %s16682_s9, 9216 }
 0xa56   : > { %p12801_p13 = scmp.ne.s32.totalorder %s16611_s19, %s12800_s14  ;;  %p12805_p4 = scmp.lt.u32.totalorder %s16611_s19, %s16682_s9 }
 0xa57   : > { %p12806_p5 = scmp.lt.u32.totalorder %s12804_s29, %s12800_s14  ;;  %p12808_p11 = scmp.lt.u32.totalorder %s12800_s14, %s16611_s19 }
 0xa58   : > { %p12802_p6 = pnand %p12801_p13, %p17004_p0 }
 0xa59   : > { %p12807_p8 = por %p12806_p5, %p12805_p4 }
 0xa5a   : > { %p12803_p10 = pneg %p12802_p6 }
 0xa5b   : > { %p12809_p2 = por %p12808_p11, %p12807_p8 }
 0xa5d   : > { %p12810_p3 = pnand %p12809_p2, %p12803_p10 }
 0xa5f   : > { %12813 = shalt.err (!%p12810_p3)
}
 0xa60   : > { %s12868_s28 = smov 128   ;;  %s12869_s21 = smov 8  }
 0xa61   : > { %12629 = dma.vmem_to_hbm [thread:$0]  (%p17004_p0), %s16621_s6, 4608, %s16611_s19, %s7922_s13, %s12868_s28, %s12868_s28, %s12869_s21  }
 0xa62 PF: > { %s17005_s16 = sld [smem:[#allocation13_spill]]  ;;  %s7950_s15 = sand.u32 1, %s12844_s30  }
 0xa63   : > { %p17007_p9 = scmp.ge.s32.totalorder %s12856_s12, 2  ;;  %s7951_s17 = scalar_lea.sflag [#allocation5], %s7950_s15 }
 0xa68   : > { %p17006_p7 = scmp.ne.s32.totalorder %s17005_s16, 0 }
 0xa6a   : > { %p12643_p12 = pnand %p17007_p9, %p17006_p7 }
 0xa6c   : > { %12839 = dma.done.wait (!%p12643_p12), %s7951_s17, 4608  }
 0xa6d   : > { %12841 = vsyncadd (!%p12643_p12), %s7951_s17, 4294962688  ;;  %p23_p1 = scmp.ge.s32.totalorder %s13036_s20, 4   ;;  %s17008_s30 = smov %s12848_s10 }
 0xa6e   : > { %s17009_s10 = smov %s12852_s11  ;;  %s17010_s11 = smov %s13052_s27 }
 0xa6f   : > { %s17011_s12 = smov %s13036_s20  ;;  %25 = sbr.rel (!%p23_p1) target bundleno = 9 (0x9), region = 125 }
 0xa76   :  { %7956 = vsyncpa [#allocation4], 1 }
 0xa77   :  { %7958 = vsyncpa [#allocation4 + $0x1], 1 }
 0xa78   :  { %7959 = vsyncpa [#allocation7], 1 }
 0xa79   :  { %7960 = vsyncpa [#allocation5], 1 }
 0xa7a   :  { %7962 = vsyncpa [#allocation5 + $0x1], 1 }

</bundles_post_ra>
